<compile_context>
chip_gen: v5e
topology: v5e:2x2
jax: 0.10.0
libtpu: 0.0.40
codegen_flags: <defaults>
</compile_context>

<pallas_src>
import math
import numpy as np
import jax
import jax.numpy as jnp
from jax.experimental import pallas as pl
from jax.experimental.pallas import tpu as pltpu


# ----------------------------------------------------------------------------
# Pallas kernel: fused 3x3 "same" convolution + bias + LeakyReLU(0.2)
# ----------------------------------------------------------------------------
def _pick_band_rows(H, W, cap=512):
    """Largest divisor TH of H with TH*W <= cap (output rows per grid step)."""
    best = 1
    for th in range(1, H + 1):
        if H % th == 0 and th * W <= cap:
            best = th
    return best


def conv_block_pallas(x, w, b):
    """x: (N, H, W, Cin) f32, w: (3,3,Cin,Cout), b: (1,Cout) -> (N, H, W, Cout)."""
    N, H, W, cin = x.shape
    cout = w.shape[-1]
    # Tap-merged weight: (dy, dx, ci) flattened row-major -> (9*Cin, Cout).
    w9 = w.reshape(9 * cin, cout)

    flat = (W % 8 == 0)                 # row-flattened (TH*W) matmul needs W % 8 == 0
    TH = _pick_band_rows(H, W) if flat else 1
    nbands = H // TH

    def kernel(x_ref, w_ref, b_ref, o_ref):
        h0 = pl.program_id(1) * TH
        # --- band of input rows plus one halo row above/below (zero at edges) ---
        mid = x_ref[0, pl.ds(h0, TH), :, :]                               # (TH, W, Cin)
        top = x_ref[0, pl.ds(jnp.maximum(h0 - 1, 0), 1), :, :]            # (1, W, Cin)
        top = top * (h0 > 0).astype(top.dtype)
        bot = x_ref[0, pl.ds(jnp.minimum(h0 + TH, H - 1), 1), :, :]       # (1, W, Cin)
        bot = bot * (h0 + TH < H).astype(bot.dtype)
        band = jnp.concatenate([top, mid, bot], axis=0)                   # (TH+2, W, Cin)
        # --- width-shifted copies (zero columns at left/right image edges) ---
        zc = jnp.zeros((TH + 2, 1, cin), band.dtype)
        band_l = jnp.concatenate([zc, band[:, :W - 1, :]], axis=1)        # col w <- x[.., w-1]
        band_r = jnp.concatenate([band[:, 1:, :], zc], axis=1)            # col w <- x[.., w+1]
        shifted = (band_l, band, band_r)
        # --- im2col: single (TH*W, 9*Cin) operand, one MXU matmul ---
        taps = [shifted[dx][dy:dy + TH] for dy in range(3) for dx in range(3)]
        patch = jnp.concatenate(taps, axis=-1)                            # (TH, W, 9*Cin)
        patch = patch.reshape(TH * W, 9 * cin)
        acc = jnp.dot(patch, w_ref[...], preferred_element_type=jnp.float32)
        acc = acc + b_ref[...]                                            # bias broadcast
        y = jnp.where(acc > 0, acc, 0.2 * acc)                            # LeakyReLU(0.2)
        if flat:
            o_ref[0] = y                                                  # (TH*W, Cout)
        else:
            o_ref[0, 0] = y                                               # (W, Cout)

    # Input image stays resident in VMEM across the band axis (only re-DMAed per n).
    x_spec = pl.BlockSpec((1, H, W, cin), lambda n, bb: (n, 0, 0, 0))
    w_spec = pl.BlockSpec((9 * cin, cout), lambda n, bb: (0, 0))
    b_spec = pl.BlockSpec((1, cout), lambda n, bb: (0, 0))

    if flat:
        out_shape = jax.ShapeDtypeStruct((N, H * W, cout), jnp.float32)
        out_spec = pl.BlockSpec((1, TH * W, cout), lambda n, bb: (n, bb, 0))
    else:
        out_shape = jax.ShapeDtypeStruct((N, H, W, cout), jnp.float32)
        out_spec = pl.BlockSpec((1, 1, W, cout), lambda n, bb: (n, bb, 0, 0))

    cost = pl.CostEstimate(
        flops=2 * N * H * W * 9 * cin * cout,
        transcendentals=0,
        bytes_accessed=4 * (N * H * W * cin + 9 * cin * cout + cout + N * H * W * cout),
    )

    out = pl.pallas_call(
        kernel,
        out_shape=out_shape,
        grid=(N, nbands),
        in_specs=[x_spec, w_spec, b_spec],
        out_specs=out_spec,
        compiler_params=pltpu.CompilerParams(
            dimension_semantics=("parallel", "parallel")),
        cost_estimate=cost,
    )(x, w9, b)
    return out.reshape(N, H, W, cout)


# ----------------------------------------------------------------------------
# Plain-JAX glue (layout-only / tiny ops): maxpool2, nearest upsample2, concat.
# ----------------------------------------------------------------------------
def maxpool2(x):  # (N,H,W,C) -> (N,H/2,W/2,C), MaxPool2d(2)
    N, H, W, C = x.shape
    return jnp.max(x.reshape(N, H // 2, 2, W // 2, 2, C), axis=(2, 4))


def upsample2(x):  # nearest, scale 2 (matches nn.Upsample(mode='nearest'))
    return jnp.repeat(jnp.repeat(x, 2, axis=1), 2, axis=2)


# ----------------------------------------------------------------------------
# Deterministic parameter construction (mirrors Unet.__init__ channel plan).
# ----------------------------------------------------------------------------
def _init_conv(key, cin, cout):
    kw, kb = jax.random.split(key)
    fan_in = cin * 9
    bound = 1.0 / math.sqrt(fan_in)
    w = jax.random.uniform(kw, (3, 3, cin, cout), jnp.float32, -bound, bound)
    b = jax.random.uniform(kb, (1, cout), jnp.float32, -bound, bound)
    return (w, b)


def build_unet_params(key, infeats, nb_features, nb_conv_per_level=1, half_res=False):
    enc_nf, dec_nf = [list(f) for f in nb_features]
    nb_dec_convs = len(enc_nf)
    final_convs = dec_nf[nb_dec_convs:]
    dec_nf = dec_nf[:nb_dec_convs]
    nb_levels = nb_dec_convs // nb_conv_per_level + 1

    keys = iter(jax.random.split(key, 128))
    prev_nf = infeats
    encoder_nfs = [prev_nf]
    encoder = []
    for level in range(nb_levels - 1):
        convs = []
        for c in range(nb_conv_per_level):
            nf = enc_nf[level * nb_conv_per_level + c]
            convs.append(_init_conv(next(keys), prev_nf, nf))
            prev_nf = nf
        encoder.append(convs)
        encoder_nfs.append(prev_nf)
    encoder_nfs = encoder_nfs[::-1]

    decoder = []
    for level in range(nb_levels - 1):
        convs = []
        for c in range(nb_conv_per_level):
            nf = dec_nf[level * nb_conv_per_level + c]
            convs.append(_init_conv(next(keys), prev_nf, nf))
            prev_nf = nf
        decoder.append(convs)
        if not half_res or level < nb_levels - 2:
            prev_nf += encoder_nfs[level]

    remaining = []
    for nf in final_convs:
        remaining.append(_init_conv(next(keys), prev_nf, nf))
        prev_nf = nf

    return {"encoder": encoder, "decoder": decoder, "remaining": remaining,
            "nb_levels": nb_levels, "half_res": half_res, "final_nf": prev_nf}


# ----------------------------------------------------------------------------
# Unet forward (matches the PyTorch module's forward exactly).
# ----------------------------------------------------------------------------
def unet_forward(params, x_nchw, conv_fn):
    x = jnp.transpose(x_nchw, (0, 2, 3, 1))  # NCHW -> NHWC
    half_res = params["half_res"]
    nb_levels = params["nb_levels"]

    x_history = [x]
    for level, convs in enumerate(params["encoder"]):
        for (w, b) in convs:
            x = conv_fn(x, w, b)
        x_history.append(x)
        x = maxpool2(x)

    for level, convs in enumerate(params["decoder"]):
        for (w, b) in convs:
            x = conv_fn(x, w, b)
        if not half_res or level < nb_levels - 2:
            x = upsample2(x)
            x = jnp.concatenate([x, x_history.pop()], axis=-1)  # [upsampled, skip]

    for (w, b) in params["remaining"]:
        x = conv_fn(x, w, b)

    return jnp.transpose(x, (0, 3, 1, 2))  # NHWC -> NCHW


# Pure-JAX reference ConvBlock (for correctness check only).
def conv_block_ref(x, w, b):
    y = jax.lax.conv_general_dilated(
        x, w, window_strides=(1, 1), padding="SAME",
        dimension_numbers=("NHWC", "HWIO", "NHWC"),
        precision=jax.lax.Precision.HIGHEST)
    y = y + b.reshape(1, 1, 1, -1)
    return jnp.where(y > 0, y, 0.2 * y)


if __name__ == "__main__":
    key = jax.random.PRNGKey(0)
    kx, kp = jax.random.split(key)

    # Small config: ndims=2, inshape=(16,16), infeats=4,
    # nb_features = (enc_nf=[8,16], dec_nf=[16,8,8]) -> 3 levels, final_nf=8.
    x = jax.random.normal(kx, (2, 4, 16, 16), jnp.float32)   # NCHW like PyTorch
    params = build_unet_params(kp, infeats=4, nb_features=([8, 16], [16, 8, 8]))

    fwd = jax.jit(lambda xx: unet_forward(params, xx, conv_block_pallas))
    out = jax.block_until_ready(fwd(x))
    assert out.shape == (2, params["final_nf"], 16, 16), out.shape

    # Correctness check against a pure-JAX reference of the same forward pass.
    ref = unet_forward(params, x, conv_block_ref)
    np.testing.assert_allclose(np.asarray(out), np.asarray(ref), rtol=2e-3, atol=2e-3)

    print("KERNEL_OK")
</pallas_src>

<mosaic_0001>
module attributes {stable_mosaic.version = 11 : i64} {
  func.func @kernel(%arg0: i32, %arg1: i32, %arg2: memref<1x8x8x8xf32, #tpu.memory_space<vmem>>, %arg3: memref<72x16xf32, #tpu.memory_space<vmem>>, %arg4: memref<1x16xf32, #tpu.memory_space<vmem>>, %arg5: memref<1x64x16xf32, #tpu.memory_space<vmem>>) attributes {dimension_semantics = [#tpu.dimension_semantics<parallel>, #tpu.dimension_semantics<parallel>], iteration_bounds = array<i64: 2, 1>, scalar_prefetch = 0 : i64, scratch_operands = 0 : i64, tpu.core_type = #tpu.core_type<tc>, window_params = [{transform_indices = @transform_0, window_bounds = array<i64: 1, 8, 8, 8>}, {pipeline_mode = #tpu.pipeline_mode<synchronous>, transform_indices = @transform_1, window_bounds = array<i64: 72, 16>}, {pipeline_mode = #tpu.pipeline_mode<synchronous>, transform_indices = @transform_2, window_bounds = array<i64: 1, 16>}, {transform_indices = @transform_3, window_bounds = array<i64: 1, 64, 16>}]} {
    %c8_i32 = arith.constant 8 : i32
    %0 = arith.muli %arg1, %c8_i32 : i32
    %c0 = arith.constant 0 : index
    %1 = arith.index_cast %0 : i32 to index
    %c0_0 = arith.constant 0 : index
    %c0_1 = arith.constant 0 : index
    %2 = vector.load %arg2[%c0, %1, %c0_0, %c0_1] : memref<1x8x8x8xf32, #tpu.memory_space<vmem>>, vector<1x8x8x8xf32>
    %3 = vector.shape_cast %2 : vector<1x8x8x8xf32> to vector<8x8x8xf32>
    %c1_i32 = arith.constant 1 : i32
    %4 = arith.subi %0, %c1_i32 : i32
    %c0_i32 = arith.constant 0 : i32
    %5 = arith.maxsi %4, %c0_i32 : i32
    %c0_2 = arith.constant 0 : index
    %6 = arith.index_cast %5 : i32 to index
    %c0_3 = arith.constant 0 : index
    %c0_4 = arith.constant 0 : index
    %7 = vector.load %arg2[%c0_2, %6, %c0_3, %c0_4] : memref<1x8x8x8xf32, #tpu.memory_space<vmem>>, vector<1x1x8x8xf32>
    %8 = vector.shape_cast %7 : vector<1x1x8x8xf32> to vector<1x8x8xf32>
    %c0_i32_5 = arith.constant 0 : i32
    %9 = arith.cmpi sgt, %0, %c0_i32_5 : i32
    %10 = arith.extui %9 : i1 to i32
    %11 = arith.sitofp %10 : i32 to f32
    %12 = vector.broadcast %11 : f32 to vector<1x8x8xf32>
    %13 = arith.mulf %8, %12 : vector<1x8x8xf32>
    %c8_i32_6 = arith.constant 8 : i32
    %14 = arith.addi %0, %c8_i32_6 : i32
    %c7_i32 = arith.constant 7 : i32
    %15 = arith.minsi %14, %c7_i32 : i32
    %c0_7 = arith.constant 0 : index
    %16 = arith.index_cast %15 : i32 to index
    %c0_8 = arith.constant 0 : index
    %c0_9 = arith.constant 0 : index
    %17 = vector.load %arg2[%c0_7, %16, %c0_8, %c0_9] : memref<1x8x8x8xf32, #tpu.memory_space<vmem>>, vector<1x1x8x8xf32>
    %18 = vector.shape_cast %17 : vector<1x1x8x8xf32> to vector<1x8x8xf32>
    %c8_i32_10 = arith.constant 8 : i32
    %19 = arith.addi %0, %c8_i32_10 : i32
    %c8_i32_11 = arith.constant 8 : i32
    %20 = arith.cmpi slt, %19, %c8_i32_11 : i32
    %21 = arith.extui %20 : i1 to i32
    %22 = arith.sitofp %21 : i32 to f32
    %23 = vector.broadcast %22 : f32 to vector<1x8x8xf32>
    %24 = arith.mulf %18, %23 : vector<1x8x8xf32>
    %25 = tpu.concatenate %13, %3, %24 in 0 : vector<1x8x8xf32>, vector<8x8x8xf32>, vector<1x8x8xf32> -> vector<10x8x8xf32>
    %cst = arith.constant 0.000000e+00 : f32
    %26 = vector.broadcast %cst : f32 to vector<10x1x8xf32>
    %27 = vector.extract_strided_slice %25 {offsets = [0, 0, 0], sizes = [10, 7, 8], strides = [1, 1, 1]} : vector<10x8x8xf32> to vector<10x7x8xf32>
    %28 = tpu.concatenate %26, %27 in 1 : vector<10x1x8xf32>, vector<10x7x8xf32> -> vector<10x8x8xf32>
    %29 = vector.extract_strided_slice %25 {offsets = [0, 1, 0], sizes = [10, 7, 8], strides = [1, 1, 1]} : vector<10x8x8xf32> to vector<10x7x8xf32>
    %30 = tpu.concatenate %29, %26 in 1 : vector<10x7x8xf32>, vector<10x1x8xf32> -> vector<10x8x8xf32>
    %31 = vector.extract_strided_slice %28 {offsets = [0, 0, 0], sizes = [8, 8, 8], strides = [1, 1, 1]} : vector<10x8x8xf32> to vector<8x8x8xf32>
    %32 = vector.extract_strided_slice %25 {offsets = [0, 0, 0], sizes = [8, 8, 8], strides = [1, 1, 1]} : vector<10x8x8xf32> to vector<8x8x8xf32>
    %33 = vector.extract_strided_slice %30 {offsets = [0, 0, 0], sizes = [8, 8, 8], strides = [1, 1, 1]} : vector<10x8x8xf32> to vector<8x8x8xf32>
    %34 = vector.extract_strided_slice %28 {offsets = [1, 0, 0], sizes = [8, 8, 8], strides = [1, 1, 1]} : vector<10x8x8xf32> to vector<8x8x8xf32>
    %35 = vector.extract_strided_slice %25 {offsets = [1, 0, 0], sizes = [8, 8, 8], strides = [1, 1, 1]} : vector<10x8x8xf32> to vector<8x8x8xf32>
    %36 = vector.extract_strided_slice %30 {offsets = [1, 0, 0], sizes = [8, 8, 8], strides = [1, 1, 1]} : vector<10x8x8xf32> to vector<8x8x8xf32>
    %37 = vector.extract_strided_slice %28 {offsets = [2, 0, 0], sizes = [8, 8, 8], strides = [1, 1, 1]} : vector<10x8x8xf32> to vector<8x8x8xf32>
    %38 = vector.extract_strided_slice %25 {offsets = [2, 0, 0], sizes = [8, 8, 8], strides = [1, 1, 1]} : vector<10x8x8xf32> to vector<8x8x8xf32>
    %39 = vector.extract_strided_slice %30 {offsets = [2, 0, 0], sizes = [8, 8, 8], strides = [1, 1, 1]} : vector<10x8x8xf32> to vector<8x8x8xf32>
    %40 = tpu.concatenate %31, %32, %33, %34, %35, %36, %37, %38, %39 in 2 : vector<8x8x8xf32>, vector<8x8x8xf32>, vector<8x8x8xf32>, vector<8x8x8xf32>, vector<8x8x8xf32>, vector<8x8x8xf32>, vector<8x8x8xf32>, vector<8x8x8xf32>, vector<8x8x8xf32> -> vector<8x8x72xf32>
    %41 = vector.shape_cast %40 : vector<8x8x72xf32> to vector<64x72xf32>
    %c0_12 = arith.constant 0 : index
    %c0_13 = arith.constant 0 : index
    %42 = vector.load %arg3[%c0_12, %c0_13] : memref<72x16xf32, #tpu.memory_space<vmem>>, vector<72x16xf32>
    %cst_14 = arith.constant dense<0.000000e+00> : vector<64x16xf32>
    %43 = tpu.matmul %41, %42, %cst_14 {dimension_numbers = #tpu.dot_dimension_numbers<[1], [0], [0], [1], [0, 0, 1, 1], [], []>} : vector<64x72xf32>, vector<72x16xf32>, vector<64x16xf32> -> vector<64x16xf32>
    %c0_15 = arith.constant 0 : index
    %c0_16 = arith.constant 0 : index
    %44 = vector.load %arg4[%c0_15, %c0_16] : memref<1x16xf32, #tpu.memory_space<vmem>>, vector<1x16xf32>
    %45 = vector.broadcast %44 : vector<1x16xf32> to vector<64x16xf32>
    %46 = arith.addf %43, %45 : vector<64x16xf32>
    %cst_17 = arith.constant 0.000000e+00 : f32
    %47 = vector.broadcast %cst_17 : f32 to vector<64x16xf32>
    %48 = arith.cmpf ogt, %46, %47 : vector<64x16xf32>
    %cst_18 = arith.constant 2.000000e-01 : f32
    %49 = vector.broadcast %cst_18 : f32 to vector<64x16xf32>
    %50 = arith.mulf %49, %46 : vector<64x16xf32>
    %51 = arith.select %48, %46, %50 : vector<64x16xi1>, vector<64x16xf32>
    %c0_19 = arith.constant 0 : index
    %c0_20 = arith.constant 0 : index
    %c0_21 = arith.constant 0 : index
    %52 = vector.load %arg5[%c0_19, %c0_20, %c0_21] : memref<1x64x16xf32, #tpu.memory_space<vmem>>, vector<1x64x16xf32>
    %53 = vector.shape_cast %52 : vector<1x64x16xf32> to vector<64x16xf32>
    %54 = vector.shape_cast %51 : vector<64x16xf32> to vector<1x64x16xf32>
    tpu.vector_store %arg5[%c0_19, %c0_20, %c0_21], %54 {strides = array<i32>} : memref<1x64x16xf32, #tpu.memory_space<vmem>>, vector<1x64x16xf32>,
    return
  }
  func.func @transform_0(%arg0: i32, %arg1: i32) -> (i32, i32, i32, i32) {
    %c0_i32 = arith.constant 0 : i32
    %c0_i32_0 = arith.constant 0 : i32
    %c0_i32_1 = arith.constant 0 : i32
    %c0_i32_2 = arith.constant 0 : i32
    return %arg0, %c0_i32, %c0_i32_0, %c0_i32_1 : i32, i32, i32, i32
  }
  func.func @transform_1(%arg0: i32, %arg1: i32) -> (i32, i32) {
    %c0_i32 = arith.constant 0 : i32
    %c0_i32_0 = arith.constant 0 : i32
    %c0_i32_1 = arith.constant 0 : i32
    return %c0_i32, %c0_i32_0 : i32, i32
  }
  func.func @transform_2(%arg0: i32, %arg1: i32) -> (i32, i32) {
    %c0_i32 = arith.constant 0 : i32
    %c0_i32_0 = arith.constant 0 : i32
    %c0_i32_1 = arith.constant 0 : i32
    return %c0_i32, %c0_i32_0 : i32, i32
  }
  func.func @transform_3(%arg0: i32, %arg1: i32) -> (i32, i32, i32) {
    %c0_i32 = arith.constant 0 : i32
    %c0_i32_0 = arith.constant 0 : i32
    return %arg0, %arg1, %c0_i32 : i32, i32, i32
  }
}

module attributes {stable_mosaic.version = 11 : i64} {
  func.func @kernel(%arg0: i32, %arg1: i32, %arg2: memref<1x16x16x4xf32, #tpu.memory_space<vmem>>, %arg3: memref<36x8xf32, #tpu.memory_space<vmem>>, %arg4: memref<1x8xf32, #tpu.memory_space<vmem>>, %arg5: memref<1x256x8xf32, #tpu.memory_space<vmem>>) attributes {dimension_semantics = [#tpu.dimension_semantics<parallel>, #tpu.dimension_semantics<parallel>], iteration_bounds = array<i64: 2, 1>, scalar_prefetch = 0 : i64, scratch_operands = 0 : i64, tpu.core_type = #tpu.core_type<tc>, window_params = [{transform_indices = @transform_0, window_bounds = array<i64: 1, 16, 16, 4>}, {pipeline_mode = #tpu.pipeline_mode<synchronous>, transform_indices = @transform_1, window_bounds = array<i64: 36, 8>}, {pipeline_mode = #tpu.pipeline_mode<synchronous>, transform_indices = @transform_2, window_bounds = array<i64: 1, 8>}, {transform_indices = @transform_3, window_bounds = array<i64: 1, 256, 8>}]} {
    %c16_i32 = arith.constant 16 : i32
    %0 = arith.muli %arg1, %c16_i32 : i32
    %c0 = arith.constant 0 : index
    %1 = arith.index_cast %0 : i32 to index
    %c0_0 = arith.constant 0 : index
    %c0_1 = arith.constant 0 : index
    %2 = vector.load %arg2[%c0, %1, %c0_0, %c0_1] : memref<1x16x16x4xf32, #tpu.memory_space<vmem>>, vector<1x16x16x4xf32>
    %3 = vector.shape_cast %2 : vector<1x16x16x4xf32> to vector<16x16x4xf32>
    %c1_i32 = arith.constant 1 : i32
    %4 = arith.subi %0, %c1_i32 : i32
    %c0_i32 = arith.constant 0 : i32
    %5 = arith.maxsi %4, %c0_i32 : i32
    %c0_2 = arith.constant 0 : index
    %6 = arith.index_cast %5 : i32 to index
    %c0_3 = arith.constant 0 : index
    %c0_4 = arith.constant 0 : index
    %7 = vector.load %arg2[%c0_2, %6, %c0_3, %c0_4] : memref<1x16x16x4xf32, #tpu.memory_space<vmem>>, vector<1x1x16x4xf32>
    %8 = vector.shape_cast %7 : vector<1x1x16x4xf32> to vector<1x16x4xf32>
    %c0_i32_5 = arith.constant 0 : i32
    %9 = arith.cmpi sgt, %0, %c0_i32_5 : i32
    %10 = arith.extui %9 : i1 to i32
    %11 = arith.sitofp %10 : i32 to f32
    %12 = vector.broadcast %11 : f32 to vector<1x16x4xf32>
    %13 = arith.mulf %8, %12 : vector<1x16x4xf32>
    %c16_i32_6 = arith.constant 16 : i32
    %14 = arith.addi %0, %c16_i32_6 : i32
    %c15_i32 = arith.constant 15 : i32
    %15 = arith.minsi %14, %c15_i32 : i32
    %c0_7 = arith.constant 0 : index
    %16 = arith.index_cast %15 : i32 to index
    %c0_8 = arith.constant 0 : index
    %c0_9 = arith.constant 0 : index
    %17 = vector.load %arg2[%c0_7, %16, %c0_8, %c0_9] : memref<1x16x16x4xf32, #tpu.memory_space<vmem>>, vector<1x1x16x4xf32>
    %18 = vector.shape_cast %17 : vector<1x1x16x4xf32> to vector<1x16x4xf32>
    %c16_i32_10 = arith.constant 16 : i32
    %19 = arith.addi %0, %c16_i32_10 : i32
    %c16_i32_11 = arith.constant 16 : i32
    %20 = arith.cmpi slt, %19, %c16_i32_11 : i32
    %21 = arith.extui %20 : i1 to i32
    %22 = arith.sitofp %21 : i32 to f32
    %23 = vector.broadcast %22 : f32 to vector<1x16x4xf32>
    %24 = arith.mulf %18, %23 : vector<1x16x4xf32>
    %25 = tpu.concatenate %13, %3, %24 in 0 : vector<1x16x4xf32>, vector<16x16x4xf32>, vector<1x16x4xf32> -> vector<18x16x4xf32>
    %cst = arith.constant 0.000000e+00 : f32
    %26 = vector.broadcast %cst : f32 to vector<18x1x4xf32>
    %27 = vector.extract_strided_slice %25 {offsets = [0, 0, 0], sizes = [18, 15, 4], strides = [1, 1, 1]} : vector<18x16x4xf32> to vector<18x15x4xf32>
    %28 = tpu.concatenate %26, %27 in 1 : vector<18x1x4xf32>, vector<18x15x4xf32> -> vector<18x16x4xf32>
    %29 = vector.extract_strided_slice %25 {offsets = [0, 1, 0], sizes = [18, 15, 4], strides = [1, 1, 1]} : vector<18x16x4xf32> to vector<18x15x4xf32>
    %30 = tpu.concatenate %29, %26 in 1 : vector<18x15x4xf32>, vector<18x1x4xf32> -> vector<18x16x4xf32>
    %31 = vector.extract_strided_slice %28 {offsets = [0, 0, 0], sizes = [16, 16, 4], strides = [1, 1, 1]} : vector<18x16x4xf32> to vector<16x16x4xf32>
    %32 = vector.extract_strided_slice %25 {offsets = [0, 0, 0], sizes = [16, 16, 4], strides = [1, 1, 1]} : vector<18x16x4xf32> to vector<16x16x4xf32>
    %33 = vector.extract_strided_slice %30 {offsets = [0, 0, 0], sizes = [16, 16, 4], strides = [1, 1, 1]} : vector<18x16x4xf32> to vector<16x16x4xf32>
    %34 = vector.extract_strided_slice %28 {offsets = [1, 0, 0], sizes = [16, 16, 4], strides = [1, 1, 1]} : vector<18x16x4xf32> to vector<16x16x4xf32>
    %35 = vector.extract_strided_slice %25 {offsets = [1, 0, 0], sizes = [16, 16, 4], strides = [1, 1, 1]} : vector<18x16x4xf32> to vector<16x16x4xf32>
    %36 = vector.extract_strided_slice %30 {offsets = [1, 0, 0], sizes = [16, 16, 4], strides = [1, 1, 1]} : vector<18x16x4xf32> to vector<16x16x4xf32>
    %37 = vector.extract_strided_slice %28 {offsets = [2, 0, 0], sizes = [16, 16, 4], strides = [1, 1, 1]} : vector<18x16x4xf32> to vector<16x16x4xf32>
    %38 = vector.extract_strided_slice %25 {offsets = [2, 0, 0], sizes = [16, 16, 4], strides = [1, 1, 1]} : vector<18x16x4xf32> to vector<16x16x4xf32>
    %39 = vector.extract_strided_slice %30 {offsets = [2, 0, 0], sizes = [16, 16, 4], strides = [1, 1, 1]} : vector<18x16x4xf32> to vector<16x16x4xf32>
    %40 = tpu.concatenate %31, %32, %33, %34, %35, %36, %37, %38, %39 in 2 : vector<16x16x4xf32>, vector<16x16x4xf32>, vector<16x16x4xf32>, vector<16x16x4xf32>, vector<16x16x4xf32>, vector<16x16x4xf32>, vector<16x16x4xf32>, vector<16x16x4xf32>, vector<16x16x4xf32> -> vector<16x16x36xf32>
    %41 = vector.shape_cast %40 : vector<16x16x36xf32> to vector<256x36xf32>
    %c0_12 = arith.constant 0 : index
    %c0_13 = arith.constant 0 : index
    %42 = vector.load %arg3[%c0_12, %c0_13] : memref<36x8xf32, #tpu.memory_space<vmem>>, vector<36x8xf32>
    %cst_14 = arith.constant dense<0.000000e+00> : vector<256x8xf32>
    %43 = tpu.matmul %41, %42, %cst_14 {dimension_numbers = #tpu.dot_dimension_numbers<[1], [0], [0], [1], [0, 0, 1, 1], [], []>} : vector<256x36xf32>, vector<36x8xf32>, vector<256x8xf32> -> vector<256x8xf32>
    %c0_15 = arith.constant 0 : index
    %c0_16 = arith.constant 0 : index
    %44 = vector.load %arg4[%c0_15, %c0_16] : memref<1x8xf32, #tpu.memory_space<vmem>>, vector<1x8xf32>
    %45 = vector.broadcast %44 : vector<1x8xf32> to vector<256x8xf32>
    %46 = arith.addf %43, %45 : vector<256x8xf32>
    %cst_17 = arith.constant 0.000000e+00 : f32
    %47 = vector.broadcast %cst_17 : f32 to vector<256x8xf32>
    %48 = arith.cmpf ogt, %46, %47 : vector<256x8xf32>
    %cst_18 = arith.constant 2.000000e-01 : f32
    %49 = vector.broadcast %cst_18 : f32 to vector<256x8xf32>
    %50 = arith.mulf %49, %46 : vector<256x8xf32>
    %51 = arith.select %48, %46, %50 : vector<256x8xi1>, vector<256x8xf32>
    %c0_19 = arith.constant 0 : index
    %c0_20 = arith.constant 0 : index
    %c0_21 = arith.constant 0 : index
    %52 = vector.load %arg5[%c0_19, %c0_20, %c0_21] : memref<1x256x8xf32, #tpu.memory_space<vmem>>, vector<1x256x8xf32>
    %53 = vector.shape_cast %52 : vector<1x256x8xf32> to vector<256x8xf32>
    %54 = vector.shape_cast %51 : vector<256x8xf32> to vector<1x256x8xf32>
    tpu.vector_store %arg5[%c0_19, %c0_20, %c0_21], %54 {strides = array<i32>} : memref<1x256x8xf32, #tpu.memory_space<vmem>>, vector<1x256x8xf32>,
    return
  }
  func.func @transform_0(%arg0: i32, %arg1: i32) -> (i32, i32, i32, i32) {
    %c0_i32 = arith.constant 0 : i32
    %c0_i32_0 = arith.constant 0 : i32
    %c0_i32_1 = arith.constant 0 : i32
    %c0_i32_2 = arith.constant 0 : i32
    return %arg0, %c0_i32, %c0_i32_0, %c0_i32_1 : i32, i32, i32, i32
  }
  func.func @transform_1(%arg0: i32, %arg1: i32) -> (i32, i32) {
    %c0_i32 = arith.constant 0 : i32
    %c0_i32_0 = arith.constant 0 : i32
    %c0_i32_1 = arith.constant 0 : i32
    return %c0_i32, %c0_i32_0 : i32, i32
  }
  func.func @transform_2(%arg0: i32, %arg1: i32) -> (i32, i32) {
    %c0_i32 = arith.constant 0 : i32
    %c0_i32_0 = arith.constant 0 : i32
    %c0_i32_1 = arith.constant 0 : i32
    return %c0_i32, %c0_i32_0 : i32, i32
  }
  func.func @transform_3(%arg0: i32, %arg1: i32) -> (i32, i32, i32) {
    %c0_i32 = arith.constant 0 : i32
    %c0_i32_0 = arith.constant 0 : i32
    return %arg0, %arg1, %c0_i32 : i32, i32, i32
  }
}

module attributes {stable_mosaic.version = 11 : i64} {
  func.func @kernel(%arg0: i32, %arg1: i32, %arg2: memref<1x4x4x16xf32, #tpu.memory_space<vmem>>, %arg3: memref<144x16xf32, #tpu.memory_space<vmem>>, %arg4: memref<1x16xf32, #tpu.memory_space<vmem>>, %arg5: memref<1x1x4x16xf32, #tpu.memory_space<vmem>>) attributes {dimension_semantics = [#tpu.dimension_semantics<parallel>, #tpu.dimension_semantics<parallel>], iteration_bounds = array<i64: 2, 4>, scalar_prefetch = 0 : i64, scratch_operands = 0 : i64, tpu.core_type = #tpu.core_type<tc>, window_params = [{transform_indices = @transform_0, window_bounds = array<i64: 1, 4, 4, 16>}, {pipeline_mode = #tpu.pipeline_mode<synchronous>, transform_indices = @transform_1, window_bounds = array<i64: 144, 16>}, {pipeline_mode = #tpu.pipeline_mode<synchronous>, transform_indices = @transform_2, window_bounds = array<i64: 1, 16>}, {transform_indices = @transform_3, window_bounds = array<i64: 1, 1, 4, 16>}]} {
    %c1_i32 = arith.constant 1 : i32
    %0 = arith.muli %arg1, %c1_i32 : i32
    %c0 = arith.constant 0 : index
    %1 = arith.index_cast %0 : i32 to index
    %c0_0 = arith.constant 0 : index
    %c0_1 = arith.constant 0 : index
    %2 = vector.load %arg2[%c0, %1, %c0_0, %c0_1] : memref<1x4x4x16xf32, #tpu.memory_space<vmem>>, vector<1x1x4x16xf32>
    %3 = vector.shape_cast %2 : vector<1x1x4x16xf32> to vector<1x4x16xf32>
    %c1_i32_2 = arith.constant 1 : i32
    %4 = arith.subi %0, %c1_i32_2 : i32
    %c0_i32 = arith.constant 0 : i32
    %5 = arith.maxsi %4, %c0_i32 : i32
    %c0_3 = arith.constant 0 : index
    %6 = arith.index_cast %5 : i32 to index
    %c0_4 = arith.constant 0 : index
    %c0_5 = arith.constant 0 : index
    %7 = vector.load %arg2[%c0_3, %6, %c0_4, %c0_5] : memref<1x4x4x16xf32, #tpu.memory_space<vmem>>, vector<1x1x4x16xf32>
    %8 = vector.shape_cast %7 : vector<1x1x4x16xf32> to vector<1x4x16xf32>
    %c0_i32_6 = arith.constant 0 : i32
    %9 = arith.cmpi sgt, %0, %c0_i32_6 : i32
    %10 = arith.extui %9 : i1 to i32
    %11 = arith.sitofp %10 : i32 to f32
    %12 = vector.broadcast %11 : f32 to vector<1x4x16xf32>
    %13 = arith.mulf %8, %12 : vector<1x4x16xf32>
    %c1_i32_7 = arith.constant 1 : i32
    %14 = arith.addi %0, %c1_i32_7 : i32
    %c3_i32 = arith.constant 3 : i32
    %15 = arith.minsi %14, %c3_i32 : i32
    %c0_8 = arith.constant 0 : index
    %16 = arith.index_cast %15 : i32 to index
    %c0_9 = arith.constant 0 : index
    %c0_10 = arith.constant 0 : index
    %17 = vector.load %arg2[%c0_8, %16, %c0_9, %c0_10] : memref<1x4x4x16xf32, #tpu.memory_space<vmem>>, vector<1x1x4x16xf32>
    %18 = vector.shape_cast %17 : vector<1x1x4x16xf32> to vector<1x4x16xf32>
    %c1_i32_11 = arith.constant 1 : i32
    %19 = arith.addi %0, %c1_i32_11 : i32
    %c4_i32 = arith.constant 4 : i32
    %20 = arith.cmpi slt, %19, %c4_i32 : i32
    %21 = arith.extui %20 : i1 to i32
    %22 = arith.sitofp %21 : i32 to f32
    %23 = vector.broadcast %22 : f32 to vector<1x4x16xf32>
    %24 = arith.mulf %18, %23 : vector<1x4x16xf32>
    %25 = tpu.concatenate %13, %3, %24 in 0 : vector<1x4x16xf32>, vector<1x4x16xf32>, vector<1x4x16xf32> -> vector<3x4x16xf32>
    %cst = arith.constant 0.000000e+00 : f32
    %26 = vector.broadcast %cst : f32 to vector<3x1x16xf32>
    %27 = vector.extract_strided_slice %25 {offsets = [0, 0, 0], sizes = [3, 3, 16], strides = [1, 1, 1]} : vector<3x4x16xf32> to vector<3x3x16xf32>
    %28 = tpu.concatenate %26, %27 in 1 : vector<3x1x16xf32>, vector<3x3x16xf32> -> vector<3x4x16xf32>
    %29 = vector.extract_strided_slice %25 {offsets = [0, 1, 0], sizes = [3, 3, 16], strides = [1, 1, 1]} : vector<3x4x16xf32> to vector<3x3x16xf32>
    %30 = tpu.concatenate %29, %26 in 1 : vector<3x3x16xf32>, vector<3x1x16xf32> -> vector<3x4x16xf32>
    %31 = vector.extract_strided_slice %28 {offsets = [0, 0, 0], sizes = [1, 4, 16], strides = [1, 1, 1]} : vector<3x4x16xf32> to vector<1x4x16xf32>
    %32 = vector.extract_strided_slice %25 {offsets = [0, 0, 0], sizes = [1, 4, 16], strides = [1, 1, 1]} : vector<3x4x16xf32> to vector<1x4x16xf32>
    %33 = vector.extract_strided_slice %30 {offsets = [0, 0, 0], sizes = [1, 4, 16], strides = [1, 1, 1]} : vector<3x4x16xf32> to vector<1x4x16xf32>
    %34 = vector.extract_strided_slice %28 {offsets = [1, 0, 0], sizes = [1, 4, 16], strides = [1, 1, 1]} : vector<3x4x16xf32> to vector<1x4x16xf32>
    %35 = vector.extract_strided_slice %25 {offsets = [1, 0, 0], sizes = [1, 4, 16], strides = [1, 1, 1]} : vector<3x4x16xf32> to vector<1x4x16xf32>
    %36 = vector.extract_strided_slice %30 {offsets = [1, 0, 0], sizes = [1, 4, 16], strides = [1, 1, 1]} : vector<3x4x16xf32> to vector<1x4x16xf32>
    %37 = vector.extract_strided_slice %28 {offsets = [2, 0, 0], sizes = [1, 4, 16], strides = [1, 1, 1]} : vector<3x4x16xf32> to vector<1x4x16xf32>
    %38 = vector.extract_strided_slice %25 {offsets = [2, 0, 0], sizes = [1, 4, 16], strides = [1, 1, 1]} : vector<3x4x16xf32> to vector<1x4x16xf32>
    %39 = vector.extract_strided_slice %30 {offsets = [2, 0, 0], sizes = [1, 4, 16], strides = [1, 1, 1]} : vector<3x4x16xf32> to vector<1x4x16xf32>
    %40 = tpu.concatenate %31, %32, %33, %34, %35, %36, %37, %38, %39 in 2 : vector<1x4x16xf32>, vector<1x4x16xf32>, vector<1x4x16xf32>, vector<1x4x16xf32>, vector<1x4x16xf32>, vector<1x4x16xf32>, vector<1x4x16xf32>, vector<1x4x16xf32>, vector<1x4x16xf32> -> vector<1x4x144xf32>
    %41 = vector.shape_cast %40 : vector<1x4x144xf32> to vector<4x144xf32>
    %c0_12 = arith.constant 0 : index
    %c0_13 = arith.constant 0 : index
    %42 = vector.load %arg3[%c0_12, %c0_13] : memref<144x16xf32, #tpu.memory_space<vmem>>, vector<144x16xf32>
    %cst_14 = arith.constant dense<0.000000e+00> : vector<4x16xf32>
    %43 = tpu.matmul %41, %42, %cst_14 {dimension_numbers = #tpu.dot_dimension_numbers<[1], [0], [0], [1], [0, 0, 1, 1], [], []>} : vector<4x144xf32>, vector<144x16xf32>, vector<4x16xf32> -> vector<4x16xf32>
    %c0_15 = arith.constant 0 : index
    %c0_16 = arith.constant 0 : index
    %44 = vector.load %arg4[%c0_15, %c0_16] : memref<1x16xf32, #tpu.memory_space<vmem>>, vector<1x16xf32>
    %45 = vector.broadcast %44 : vector<1x16xf32> to vector<4x16xf32>
    %46 = arith.addf %43, %45 : vector<4x16xf32>
    %cst_17 = arith.constant 0.000000e+00 : f32
    %47 = vector.broadcast %cst_17 : f32 to vector<4x16xf32>
    %48 = arith.cmpf ogt, %46, %47 : vector<4x16xf32>
    %cst_18 = arith.constant 2.000000e-01 : f32
    %49 = vector.broadcast %cst_18 : f32 to vector<4x16xf32>
    %50 = arith.mulf %49, %46 : vector<4x16xf32>
    %51 = arith.select %48, %46, %50 : vector<4x16xi1>, vector<4x16xf32>
    %c0_19 = arith.constant 0 : index
    %c0_20 = arith.constant 0 : index
    %c0_21 = arith.constant 0 : index
    %c0_22 = arith.constant 0 : index
    %52 = vector.load %arg5[%c0_19, %c0_20, %c0_21, %c0_22] : memref<1x1x4x16xf32, #tpu.memory_space<vmem>>, vector<1x1x4x16xf32>
    %53 = vector.shape_cast %52 : vector<1x1x4x16xf32> to vector<4x16xf32>
    %54 = vector.shape_cast %51 : vector<4x16xf32> to vector<1x1x4x16xf32>
    tpu.vector_store %arg5[%c0_19, %c0_20, %c0_21, %c0_22], %54 {strides = array<i32>} : memref<1x1x4x16xf32, #tpu.memory_space<vmem>>, vector<1x1x4x16xf32>,
    return
  }
  func.func @transform_0(%arg0: i32, %arg1: i32) -> (i32, i32, i32, i32) {
    %c0_i32 = arith.constant 0 : i32
    %c0_i32_0 = arith.constant 0 : i32
    %c0_i32_1 = arith.constant 0 : i32
    %c0_i32_2 = arith.constant 0 : i32
    return %arg0, %c0_i32, %c0_i32_0, %c0_i32_1 : i32, i32, i32, i32
  }
  func.func @transform_1(%arg0: i32, %arg1: i32) -> (i32, i32) {
    %c0_i32 = arith.constant 0 : i32
    %c0_i32_0 = arith.constant 0 : i32
    %c0_i32_1 = arith.constant 0 : i32
    return %c0_i32, %c0_i32_0 : i32, i32
  }
  func.func @transform_2(%arg0: i32, %arg1: i32) -> (i32, i32) {
    %c0_i32 = arith.constant 0 : i32
    %c0_i32_0 = arith.constant 0 : i32
    %c0_i32_1 = arith.constant 0 : i32
    return %c0_i32, %c0_i32_0 : i32, i32
  }
  func.func @transform_3(%arg0: i32, %arg1: i32) -> (i32, i32, i32, i32) {
    %c0_i32 = arith.constant 0 : i32
    %c0_i32_0 = arith.constant 0 : i32
    %c0_i32_1 = arith.constant 0 : i32
    return %arg0, %arg1, %c0_i32, %c0_i32_0 : i32, i32, i32, i32
  }
}

module attributes {stable_mosaic.version = 11 : i64} {
  func.func @kernel(%arg0: i32, %arg1: i32, %arg2: memref<1x8x8x32xf32, #tpu.memory_space<vmem>>, %arg3: memref<288x8xf32, #tpu.memory_space<vmem>>, %arg4: memref<1x8xf32, #tpu.memory_space<vmem>>, %arg5: memref<1x64x8xf32, #tpu.memory_space<vmem>>) attributes {dimension_semantics = [#tpu.dimension_semantics<parallel>, #tpu.dimension_semantics<parallel>], iteration_bounds = array<i64: 2, 1>, scalar_prefetch = 0 : i64, scratch_operands = 0 : i64, tpu.core_type = #tpu.core_type<tc>, window_params = [{transform_indices = @transform_0, window_bounds = array<i64: 1, 8, 8, 32>}, {pipeline_mode = #tpu.pipeline_mode<synchronous>, transform_indices = @transform_1, window_bounds = array<i64: 288, 8>}, {pipeline_mode = #tpu.pipeline_mode<synchronous>, transform_indices = @transform_2, window_bounds = array<i64: 1, 8>}, {transform_indices = @transform_3, window_bounds = array<i64: 1, 64, 8>}]} {
    %c8_i32 = arith.constant 8 : i32
    %0 = arith.muli %arg1, %c8_i32 : i32
    %c0 = arith.constant 0 : index
    %1 = arith.index_cast %0 : i32 to index
    %c0_0 = arith.constant 0 : index
    %c0_1 = arith.constant 0 : index
    %2 = vector.load %arg2[%c0, %1, %c0_0, %c0_1] : memref<1x8x8x32xf32, #tpu.memory_space<vmem>>, vector<1x8x8x32xf32>
    %3 = vector.shape_cast %2 : vector<1x8x8x32xf32> to vector<8x8x32xf32>
    %c1_i32 = arith.constant 1 : i32
    %4 = arith.subi %0, %c1_i32 : i32
    %c0_i32 = arith.constant 0 : i32
    %5 = arith.maxsi %4, %c0_i32 : i32
    %c0_2 = arith.constant 0 : index
    %6 = arith.index_cast %5 : i32 to index
    %c0_3 = arith.constant 0 : index
    %c0_4 = arith.constant 0 : index
    %7 = vector.load %arg2[%c0_2, %6, %c0_3, %c0_4] : memref<1x8x8x32xf32, #tpu.memory_space<vmem>>, vector<1x1x8x32xf32>
    %8 = vector.shape_cast %7 : vector<1x1x8x32xf32> to vector<1x8x32xf32>
    %c0_i32_5 = arith.constant 0 : i32
    %9 = arith.cmpi sgt, %0, %c0_i32_5 : i32
    %10 = arith.extui %9 : i1 to i32
    %11 = arith.sitofp %10 : i32 to f32
    %12 = vector.broadcast %11 : f32 to vector<1x8x32xf32>
    %13 = arith.mulf %8, %12 : vector<1x8x32xf32>
    %c8_i32_6 = arith.constant 8 : i32
    %14 = arith.addi %0, %c8_i32_6 : i32
    %c7_i32 = arith.constant 7 : i32
    %15 = arith.minsi %14, %c7_i32 : i32
    %c0_7 = arith.constant 0 : index
    %16 = arith.index_cast %15 : i32 to index
    %c0_8 = arith.constant 0 : index
    %c0_9 = arith.constant 0 : index
    %17 = vector.load %arg2[%c0_7, %16, %c0_8, %c0_9] : memref<1x8x8x32xf32, #tpu.memory_space<vmem>>, vector<1x1x8x32xf32>
    %18 = vector.shape_cast %17 : vector<1x1x8x32xf32> to vector<1x8x32xf32>
    %c8_i32_10 = arith.constant 8 : i32
    %19 = arith.addi %0, %c8_i32_10 : i32
    %c8_i32_11 = arith.constant 8 : i32
    %20 = arith.cmpi slt, %19, %c8_i32_11 : i32
    %21 = arith.extui %20 : i1 to i32
    %22 = arith.sitofp %21 : i32 to f32
    %23 = vector.broadcast %22 : f32 to vector<1x8x32xf32>
    %24 = arith.mulf %18, %23 : vector<1x8x32xf32>
    %25 = tpu.concatenate %13, %3, %24 in 0 : vector<1x8x32xf32>, vector<8x8x32xf32>, vector<1x8x32xf32> -> vector<10x8x32xf32>
    %cst = arith.constant 0.000000e+00 : f32
    %26 = vector.broadcast %cst : f32 to vector<10x1x32xf32>
    %27 = vector.extract_strided_slice %25 {offsets = [0, 0, 0], sizes = [10, 7, 32], strides = [1, 1, 1]} : vector<10x8x32xf32> to vector<10x7x32xf32>
    %28 = tpu.concatenate %26, %27 in 1 : vector<10x1x32xf32>, vector<10x7x32xf32> -> vector<10x8x32xf32>
    %29 = vector.extract_strided_slice %25 {offsets = [0, 1, 0], sizes = [10, 7, 32], strides = [1, 1, 1]} : vector<10x8x32xf32> to vector<10x7x32xf32>
    %30 = tpu.concatenate %29, %26 in 1 : vector<10x7x32xf32>, vector<10x1x32xf32> -> vector<10x8x32xf32>
    %31 = vector.extract_strided_slice %28 {offsets = [0, 0, 0], sizes = [8, 8, 32], strides = [1, 1, 1]} : vector<10x8x32xf32> to vector<8x8x32xf32>
    %32 = vector.extract_strided_slice %25 {offsets = [0, 0, 0], sizes = [8, 8, 32], strides = [1, 1, 1]} : vector<10x8x32xf32> to vector<8x8x32xf32>
    %33 = vector.extract_strided_slice %30 {offsets = [0, 0, 0], sizes = [8, 8, 32], strides = [1, 1, 1]} : vector<10x8x32xf32> to vector<8x8x32xf32>
    %34 = vector.extract_strided_slice %28 {offsets = [1, 0, 0], sizes = [8, 8, 32], strides = [1, 1, 1]} : vector<10x8x32xf32> to vector<8x8x32xf32>
    %35 = vector.extract_strided_slice %25 {offsets = [1, 0, 0], sizes = [8, 8, 32], strides = [1, 1, 1]} : vector<10x8x32xf32> to vector<8x8x32xf32>
    %36 = vector.extract_strided_slice %30 {offsets = [1, 0, 0], sizes = [8, 8, 32], strides = [1, 1, 1]} : vector<10x8x32xf32> to vector<8x8x32xf32>
    %37 = vector.extract_strided_slice %28 {offsets = [2, 0, 0], sizes = [8, 8, 32], strides = [1, 1, 1]} : vector<10x8x32xf32> to vector<8x8x32xf32>
    %38 = vector.extract_strided_slice %25 {offsets = [2, 0, 0], sizes = [8, 8, 32], strides = [1, 1, 1]} : vector<10x8x32xf32> to vector<8x8x32xf32>
    %39 = vector.extract_strided_slice %30 {offsets = [2, 0, 0], sizes = [8, 8, 32], strides = [1, 1, 1]} : vector<10x8x32xf32> to vector<8x8x32xf32>
    %40 = tpu.concatenate %31, %32, %33, %34, %35, %36, %37, %38, %39 in 2 : vector<8x8x32xf32>, vector<8x8x32xf32>, vector<8x8x32xf32>, vector<8x8x32xf32>, vector<8x8x32xf32>, vector<8x8x32xf32>, vector<8x8x32xf32>, vector<8x8x32xf32>, vector<8x8x32xf32> -> vector<8x8x288xf32>
    %41 = vector.shape_cast %40 : vector<8x8x288xf32> to vector<64x288xf32>
    %c0_12 = arith.constant 0 : index
    %c0_13 = arith.constant 0 : index
    %42 = vector.load %arg3[%c0_12, %c0_13] : memref<288x8xf32, #tpu.memory_space<vmem>>, vector<288x8xf32>
    %cst_14 = arith.constant dense<0.000000e+00> : vector<64x8xf32>
    %43 = tpu.matmul %41, %42, %cst_14 {dimension_numbers = #tpu.dot_dimension_numbers<[1], [0], [0], [1], [0, 0, 1, 1], [], []>} : vector<64x288xf32>, vector<288x8xf32>, vector<64x8xf32> -> vector<64x8xf32>
    %c0_15 = arith.constant 0 : index
    %c0_16 = arith.constant 0 : index
    %44 = vector.load %arg4[%c0_15, %c0_16] : memref<1x8xf32, #tpu.memory_space<vmem>>, vector<1x8xf32>
    %45 = vector.broadcast %44 : vector<1x8xf32> to vector<64x8xf32>
    %46 = arith.addf %43, %45 : vector<64x8xf32>
    %cst_17 = arith.constant 0.000000e+00 : f32
    %47 = vector.broadcast %cst_17 : f32 to vector<64x8xf32>
    %48 = arith.cmpf ogt, %46, %47 : vector<64x8xf32>
    %cst_18 = arith.constant 2.000000e-01 : f32
    %49 = vector.broadcast %cst_18 : f32 to vector<64x8xf32>
    %50 = arith.mulf %49, %46 : vector<64x8xf32>
    %51 = arith.select %48, %46, %50 : vector<64x8xi1>, vector<64x8xf32>
    %c0_19 = arith.constant 0 : index
    %c0_20 = arith.constant 0 : index
    %c0_21 = arith.constant 0 : index
    %52 = vector.load %arg5[%c0_19, %c0_20, %c0_21] : memref<1x64x8xf32, #tpu.memory_space<vmem>>, vector<1x64x8xf32>
    %53 = vector.shape_cast %52 : vector<1x64x8xf32> to vector<64x8xf32>
    %54 = vector.shape_cast %51 : vector<64x8xf32> to vector<1x64x8xf32>
    tpu.vector_store %arg5[%c0_19, %c0_20, %c0_21], %54 {strides = array<i32>} : memref<1x64x8xf32, #tpu.memory_space<vmem>>, vector<1x64x8xf32>,
    return
  }
  func.func @transform_0(%arg0: i32, %arg1: i32) -> (i32, i32, i32, i32) {
    %c0_i32 = arith.constant 0 : i32
    %c0_i32_0 = arith.constant 0 : i32
    %c0_i32_1 = arith.constant 0 : i32
    %c0_i32_2 = arith.constant 0 : i32
    return %arg0, %c0_i32, %c0_i32_0, %c0_i32_1 : i32, i32, i32, i32
  }
  func.func @transform_1(%arg0: i32, %arg1: i32) -> (i32, i32) {
    %c0_i32 = arith.constant 0 : i32
    %c0_i32_0 = arith.constant 0 : i32
    %c0_i32_1 = arith.constant 0 : i32
    return %c0_i32, %c0_i32_0 : i32, i32
  }
  func.func @transform_2(%arg0: i32, %arg1: i32) -> (i32, i32) {
    %c0_i32 = arith.constant 0 : i32
    %c0_i32_0 = arith.constant 0 : i32
    %c0_i32_1 = arith.constant 0 : i32
    return %c0_i32, %c0_i32_0 : i32, i32
  }
  func.func @transform_3(%arg0: i32, %arg1: i32) -> (i32, i32, i32) {
    %c0_i32 = arith.constant 0 : i32
    %c0_i32_0 = arith.constant 0 : i32
    return %arg0, %arg1, %c0_i32 : i32, i32, i32
  }
}

module attributes {stable_mosaic.version = 11 : i64} {
  func.func @kernel(%arg0: i32, %arg1: i32, %arg2: memref<1x16x16x16xf32, #tpu.memory_space<vmem>>, %arg3: memref<144x8xf32, #tpu.memory_space<vmem>>, %arg4: memref<1x8xf32, #tpu.memory_space<vmem>>, %arg5: memref<1x256x8xf32, #tpu.memory_space<vmem>>) attributes {dimension_semantics = [#tpu.dimension_semantics<parallel>, #tpu.dimension_semantics<parallel>], iteration_bounds = array<i64: 2, 1>, scalar_prefetch = 0 : i64, scratch_operands = 0 : i64, tpu.core_type = #tpu.core_type<tc>, window_params = [{transform_indices = @transform_0, window_bounds = array<i64: 1, 16, 16, 16>}, {pipeline_mode = #tpu.pipeline_mode<synchronous>, transform_indices = @transform_1, window_bounds = array<i64: 144, 8>}, {pipeline_mode = #tpu.pipeline_mode<synchronous>, transform_indices = @transform_2, window_bounds = array<i64: 1, 8>}, {transform_indices = @transform_3, window_bounds = array<i64: 1, 256, 8>}]} {
    %c16_i32 = arith.constant 16 : i32
    %0 = arith.muli %arg1, %c16_i32 : i32
    %c0 = arith.constant 0 : index
    %1 = arith.index_cast %0 : i32 to index
    %c0_0 = arith.constant 0 : index
    %c0_1 = arith.constant 0 : index
    %2 = vector.load %arg2[%c0, %1, %c0_0, %c0_1] : memref<1x16x16x16xf32, #tpu.memory_space<vmem>>, vector<1x16x16x16xf32>
    %3 = vector.shape_cast %2 : vector<1x16x16x16xf32> to vector<16x16x16xf32>
    %c1_i32 = arith.constant 1 : i32
    %4 = arith.subi %0, %c1_i32 : i32
    %c0_i32 = arith.constant 0 : i32
    %5 = arith.maxsi %4, %c0_i32 : i32
    %c0_2 = arith.constant 0 : index
    %6 = arith.index_cast %5 : i32 to index
    %c0_3 = arith.constant 0 : index
    %c0_4 = arith.constant 0 : index
    %7 = vector.load %arg2[%c0_2, %6, %c0_3, %c0_4] : memref<1x16x16x16xf32, #tpu.memory_space<vmem>>, vector<1x1x16x16xf32>
    %8 = vector.shape_cast %7 : vector<1x1x16x16xf32> to vector<1x16x16xf32>
    %c0_i32_5 = arith.constant 0 : i32
    %9 = arith.cmpi sgt, %0, %c0_i32_5 : i32
    %10 = arith.extui %9 : i1 to i32
    %11 = arith.sitofp %10 : i32 to f32
    %12 = vector.broadcast %11 : f32 to vector<1x16x16xf32>
    %13 = arith.mulf %8, %12 : vector<1x16x16xf32>
    %c16_i32_6 = arith.constant 16 : i32
    %14 = arith.addi %0, %c16_i32_6 : i32
    %c15_i32 = arith.constant 15 : i32
    %15 = arith.minsi %14, %c15_i32 : i32
    %c0_7 = arith.constant 0 : index
    %16 = arith.index_cast %15 : i32 to index
    %c0_8 = arith.constant 0 : index
    %c0_9 = arith.constant 0 : index
    %17 = vector.load %arg2[%c0_7, %16, %c0_8, %c0_9] : memref<1x16x16x16xf32, #tpu.memory_space<vmem>>, vector<1x1x16x16xf32>
    %18 = vector.shape_cast %17 : vector<1x1x16x16xf32> to vector<1x16x16xf32>
    %c16_i32_10 = arith.constant 16 : i32
    %19 = arith.addi %0, %c16_i32_10 : i32
    %c16_i32_11 = arith.constant 16 : i32
    %20 = arith.cmpi slt, %19, %c16_i32_11 : i32
    %21 = arith.extui %20 : i1 to i32
    %22 = arith.sitofp %21 : i32 to f32
    %23 = vector.broadcast %22 : f32 to vector<1x16x16xf32>
    %24 = arith.mulf %18, %23 : vector<1x16x16xf32>
    %25 = tpu.concatenate %13, %3, %24 in 0 : vector<1x16x16xf32>, vector<16x16x16xf32>, vector<1x16x16xf32> -> vector<18x16x16xf32>
    %cst = arith.constant 0.000000e+00 : f32
    %26 = vector.broadcast %cst : f32 to vector<18x1x16xf32>
    %27 = vector.extract_strided_slice %25 {offsets = [0, 0, 0], sizes = [18, 15, 16], strides = [1, 1, 1]} : vector<18x16x16xf32> to vector<18x15x16xf32>
    %28 = tpu.concatenate %26, %27 in 1 : vector<18x1x16xf32>, vector<18x15x16xf32> -> vector<18x16x16xf32>
    %29 = vector.extract_strided_slice %25 {offsets = [0, 1, 0], sizes = [18, 15, 16], strides = [1, 1, 1]} : vector<18x16x16xf32> to vector<18x15x16xf32>
    %30 = tpu.concatenate %29, %26 in 1 : vector<18x15x16xf32>, vector<18x1x16xf32> -> vector<18x16x16xf32>
    %31 = vector.extract_strided_slice %28 {offsets = [0, 0, 0], sizes = [16, 16, 16], strides = [1, 1, 1]} : vector<18x16x16xf32> to vector<16x16x16xf32>
    %32 = vector.extract_strided_slice %25 {offsets = [0, 0, 0], sizes = [16, 16, 16], strides = [1, 1, 1]} : vector<18x16x16xf32> to vector<16x16x16xf32>
    %33 = vector.extract_strided_slice %30 {offsets = [0, 0, 0], sizes = [16, 16, 16], strides = [1, 1, 1]} : vector<18x16x16xf32> to vector<16x16x16xf32>
    %34 = vector.extract_strided_slice %28 {offsets = [1, 0, 0], sizes = [16, 16, 16], strides = [1, 1, 1]} : vector<18x16x16xf32> to vector<16x16x16xf32>
    %35 = vector.extract_strided_slice %25 {offsets = [1, 0, 0], sizes = [16, 16, 16], strides = [1, 1, 1]} : vector<18x16x16xf32> to vector<16x16x16xf32>
    %36 = vector.extract_strided_slice %30 {offsets = [1, 0, 0], sizes = [16, 16, 16], strides = [1, 1, 1]} : vector<18x16x16xf32> to vector<16x16x16xf32>
    %37 = vector.extract_strided_slice %28 {offsets = [2, 0, 0], sizes = [16, 16, 16], strides = [1, 1, 1]} : vector<18x16x16xf32> to vector<16x16x16xf32>
    %38 = vector.extract_strided_slice %25 {offsets = [2, 0, 0], sizes = [16, 16, 16], strides = [1, 1, 1]} : vector<18x16x16xf32> to vector<16x16x16xf32>
    %39 = vector.extract_strided_slice %30 {offsets = [2, 0, 0], sizes = [16, 16, 16], strides = [1, 1, 1]} : vector<18x16x16xf32> to vector<16x16x16xf32>
    %40 = tpu.concatenate %31, %32, %33, %34, %35, %36, %37, %38, %39 in 2 : vector<16x16x16xf32>, vector<16x16x16xf32>, vector<16x16x16xf32>, vector<16x16x16xf32>, vector<16x16x16xf32>, vector<16x16x16xf32>, vector<16x16x16xf32>, vector<16x16x16xf32>, vector<16x16x16xf32> -> vector<16x16x144xf32>
    %41 = vector.shape_cast %40 : vector<16x16x144xf32> to vector<256x144xf32>
    %c0_12 = arith.constant 0 : index
    %c0_13 = arith.constant 0 : index
    %42 = vector.load %arg3[%c0_12, %c0_13] : memref<144x8xf32, #tpu.memory_space<vmem>>, vector<144x8xf32>
    %cst_14 = arith.constant dense<0.000000e+00> : vector<256x8xf32>
    %43 = tpu.matmul %41, %42, %cst_14 {dimension_numbers = #tpu.dot_dimension_numbers<[1], [0], [0], [1], [0, 0, 1, 1], [], []>} : vector<256x144xf32>, vector<144x8xf32>, vector<256x8xf32> -> vector<256x8xf32>
    %c0_15 = arith.constant 0 : index
    %c0_16 = arith.constant 0 : index
    %44 = vector.load %arg4[%c0_15, %c0_16] : memref<1x8xf32, #tpu.memory_space<vmem>>, vector<1x8xf32>
    %45 = vector.broadcast %44 : vector<1x8xf32> to vector<256x8xf32>
    %46 = arith.addf %43, %45 : vector<256x8xf32>
    %cst_17 = arith.constant 0.000000e+00 : f32
    %47 = vector.broadcast %cst_17 : f32 to vector<256x8xf32>
    %48 = arith.cmpf ogt, %46, %47 : vector<256x8xf32>
    %cst_18 = arith.constant 2.000000e-01 : f32
    %49 = vector.broadcast %cst_18 : f32 to vector<256x8xf32>
    %50 = arith.mulf %49, %46 : vector<256x8xf32>
    %51 = arith.select %48, %46, %50 : vector<256x8xi1>, vector<256x8xf32>
    %c0_19 = arith.constant 0 : index
    %c0_20 = arith.constant 0 : index
    %c0_21 = arith.constant 0 : index
    %52 = vector.load %arg5[%c0_19, %c0_20, %c0_21] : memref<1x256x8xf32, #tpu.memory_space<vmem>>, vector<1x256x8xf32>
    %53 = vector.shape_cast %52 : vector<1x256x8xf32> to vector<256x8xf32>
    %54 = vector.shape_cast %51 : vector<256x8xf32> to vector<1x256x8xf32>
    tpu.vector_store %arg5[%c0_19, %c0_20, %c0_21], %54 {strides = array<i32>} : memref<1x256x8xf32, #tpu.memory_space<vmem>>, vector<1x256x8xf32>,
    return
  }
  func.func @transform_0(%arg0: i32, %arg1: i32) -> (i32, i32, i32, i32) {
    %c0_i32 = arith.constant 0 : i32
    %c0_i32_0 = arith.constant 0 : i32
    %c0_i32_1 = arith.constant 0 : i32
    %c0_i32_2 = arith.constant 0 : i32
    return %arg0, %c0_i32, %c0_i32_0, %c0_i32_1 : i32, i32, i32, i32
  }
  func.func @transform_1(%arg0: i32, %arg1: i32) -> (i32, i32) {
    %c0_i32 = arith.constant 0 : i32
    %c0_i32_0 = arith.constant 0 : i32
    %c0_i32_1 = arith.constant 0 : i32
    return %c0_i32, %c0_i32_0 : i32, i32
  }
  func.func @transform_2(%arg0: i32, %arg1: i32) -> (i32, i32) {
    %c0_i32 = arith.constant 0 : i32
    %c0_i32_0 = arith.constant 0 : i32
    %c0_i32_1 = arith.constant 0 : i32
    return %c0_i32, %c0_i32_0 : i32, i32
  }
  func.func @transform_3(%arg0: i32, %arg1: i32) -> (i32, i32, i32) {
    %c0_i32 = arith.constant 0 : i32
    %c0_i32_0 = arith.constant 0 : i32
    return %arg0, %arg1, %c0_i32 : i32, i32, i32
  }
}

</mosaic_0001>

<bundles_post_ra>
// kernel: _lambda_.6
= control target key start
LH: loop header
LB: loop body
LE: loop exit
PB: predicated region body
PF: predicated region fallthrough
CT: control target
= control target key end

     0   :  { %s914_s12 = smov 0   ;;  %s916_s13 = smov 0   ;;  %s1334_s0 = inlined_call_operand.vmem [shape: f32[2,8,8,8], index: 0, kind: input, shape index: {}]   ;;  %s1335_s1 = inlined_call_operand.vmem [shape: f32[72,16], index: 1, kind: input, shape index: {}]   ;;  %s1336_s2 = inlined_call_operand.vmem [shape: f32[1,16], index: 2, kind: input, shape index: {}]   ;;  %s1337_s3 = inlined_call_operand.vmem [shape: f32[2,64,16], index: 3, kind: output, shape index: {}]  }
   0x1   :  { %s918_s14 = smov 0  }
   0x2 LB: > { %s25_s15 = sadd.s32 1, %s880_s13  ;;  %p784_p0 = scmp.ge.s32.totalorder %s884_s14, 1  ;;  %s884_s14 = sphi %s918_s14, %s13_s14   ;;  %s880_s13 = sphi %s916_s13, %s1339_s13   ;;  %s876_s12 = sphi %s914_s12, %s1338_s12  }
   0x3   : > { %p27_p1 = scmp.ge.s32.totalorder %s25_s15, 2  ;;  %p151_p2 = scmp.lt.s32.totalorder %s884_s14, 3 }
   0x5   : > { %s1341_s15 = smov (%p27_p1, %s25_s15), 0  ;;  %p152_p3 = pnand %p784_p0, %p151_p2 }
   0x6   : > { %p179_p4 = scmp.lt.s32.totalorder (!%p152_p3), %s876_s12, 1  ;;  %s886_s20 = smov (!%p152_p3), 8  }
   0x7   : > { %155 = sbr.rel (%p152_p3) target bundleno = 432 (0x1b0), region = 32  ;;  %s887_s21 = smov (!%p152_p3), 16  }
   0x8   : > { %s888_s22 = smov (!%p152_p3), 24   ;;  %s889_s23 = smov (!%p152_p3), 32  }
   0x9   : > { %s890_s24 = smov (!%p152_p3), 40   ;;  %s891_s25 = smov (!%p152_p3), 48  }
   0xa   : > { %s892_s26 = smov (!%p152_p3), 56   ;;  %s893_s27 = smov (!%p152_p3), 64  }
   0xc   : > { %s1343_s12 = smov (!%p179_p4, %s876_s12), 1  ;;  %vm288_vm0 = vcmask 1046528   ;;  %vm257_vm1 = vcmask 1040384   ;;  %v590_v50 = vld [vmem:[%s1335_s1 + $0x40] sm:$0xff]  ;;  %v589_v51 = vld [vmem:[%s1335_s1 + $0x38] sm:$0xff]  ;;  %v588_v54 = vld [vmem:[%s1335_s1 + $0x30] sm:$0xff] }
   0xd   : > { %s800_s16 = sshll.u32 %s1343_s12, 6  ;;  %803 = vmatpush.msra.mxu2 %v590_v50  ;;  %804 = vmatpush.msra.mxu3 %v590_v50  ;;  %v587_v55 = vld [vmem:[%s1335_s1 + $0x28] sm:$0xff]  ;;  %v586_v57 = vld [vmem:[%s1335_s1 + $0x20] sm:$0xff]  ;;  %v585_v58 = vld [vmem:[%s1335_s1 + $0x18] sm:$0xff]  ;;  %vm510_vm2 = vcmask 64512   ;;  %vm519_vm3 = vcmask 130048  }
   0xe   : > { %s940_s19 = scalar_lea.vmem %s1334_s0, %s800_s16  ;;  %627 = vmatpush.msra.mxu0 %v590_v50  ;;  %802 = vmatpush.msra.mxu1 %v590_v50  ;;  %v584_v61 = vld [vmem:[%s1335_s1 + $0x10] sm:$0xff]  ;;  %v583_v62 = vld [vmem:[%s1335_s1 + $0x8] sm:$0xff]  ;;  %vm528_vm4 = vcmask 195584   ;;  %vm537_vm5 = vcmask 261120   ;;  %vm546_vm6 = vcmask 326656   ;;  %vm555_vm7 = vcmask 392192  }
   0xf   : > { %v943_v0 = vld [vmem:[%s940_s19 + $0x18] sm:$0xff]  ;;  %v946_v1 = vld [vmem:[%s940_s19 + $0x20] sm:$0xff]  ;;  %v953_v4 = vld [vmem:[%s940_s19 + $0x28] sm:$0xff]  ;;  %806 = vmatpush.msra.mxu2 %v589_v51  ;;  %807 = vmatpush.msra.mxu3 %v589_v51  ;;  %vm564_vm8 = vcmask 457728   ;;  %vm573_vm9 = vcmask 523264   ;;  %vm595_vm10 = vcmask 588800  }
  0x10   : > { %307 = vrot.lane.b32.xlu0 %v943_v0, %s886_s20  ;;  %v272_v2 = vrot.slane %v943_v0, 1  ;;  %v242_v3 = vrot.slane %v946_v1, 7  ;;  %v956_v5 = vld [vmem:[%s940_s19 + $0x30] sm:$0xff]  ;;  %v274_v8 = vrot.slane %v953_v4, 1  ;;  %v273_v12 = vrot.slane %v946_v1, 1  ;;  %v204_v15 = vld [vmem:[%s940_s19 + $0x38] sm:$0xff]  ;;  %628 = vmatpush.msra.mxu0 %v589_v51 }
  0x11   : > { %v244_v9 = vrot.slane %v956_v5, 7  ;;  %v275_v14 = vrot.slane %v956_v5, 1  ;;  %v243_v16 = vrot.slane %v953_v4, 7  ;;  %v245_v17 = vrot.slane %v204_v15, 7  ;;  %v1005_v21 = vld [vmem:[%s940_s19] sm:$0xff]  ;;  %v1016_v23 = vld [vmem:[%s940_s19 + $0x8] sm:$0xff]  ;;  %805 = vmatpush.msra.mxu1 %v589_v51  ;;  %809 = vmatpush.msra.mxu2 %v588_v54 }
  0x12   : > { %v959_v6 = vsel %vm288_vm0, %v272_v2, 0.0  ;;  %v962_v7 = vsel %vm257_vm1, 0.0, %v242_v3  ;;  %v973_v10 = vsel %vm288_vm0, %v274_v8, 0.0  ;;  %v986_v13 = vsel %vm288_vm0, %v273_v12, 0.0  ;;  %v1036_v30 = vld [vmem:[%s940_s19 + $0x10] sm:$0xff]  ;;  %810 = vmatpush.msra.mxu3 %v588_v54  ;;  %629 = vmatpush.msra.mxu0 %v588_v54  ;;  %v582_v3 = vld [vmem:[%s1335_s1] sm:$0xff] }
  0x13   : > { %339 = vrot.lane.b32.xlu1 %v959_v6, %s887_s21  ;;  %371 = vrot.lane.b32.xlu2 %v962_v7, %s888_s22  ;;  %v976_v11 = vsel %vm257_vm1, 0.0, %v244_v9  ;;  %v996_v18 = vsel %vm288_vm0, %v275_v14, 0.0  ;;  %v1001_v19 = vsel %vm257_vm1, 0.0, %v243_v16  ;;  %v266_v20 = vsel %vm257_vm1, 0.0, %v245_v17 }
  0x14   : > { %v1011_v22 = vmul.f32 0.0, %v1005_v21  ;;  %v270_v25 = vrot.slane %v1016_v23, 1  ;;  %v276_v28 = vrot.slane %v204_v15, 1  ;;  %v238_v31 = vrot.slane %v1005_v21, 7  ;;  %812 = vmatpush.msra.mxu2 %v587_v55  ;;  %808 = vmatpush.msra.mxu1 %v588_v54 }
  0x15   : > { %v240_v32 = vrot.slane %v1036_v30, 7  ;;  %v269_v35 = vrot.slane %v1005_v21, 1  ;;  %v271_v36 = vrot.slane %v1036_v30, 1  ;;  %v239_v39 = vrot.slane %v1016_v23, 7  ;;  %813 = vmatpush.msra.mxu3 %v587_v55  ;;  %630 = vmatpush.msra.mxu0 %v587_v55 }
  0x16   : > { %v268_v24 = vrot.slane %v1011_v22, 1  ;;  %v1027_v27 = vsel %vm288_vm0, %v270_v25, 0.0  ;;  %v297_v29 = vsel %vm288_vm0, %v276_v28, 0.0  ;;  %v1046_v33 = vsel %vm257_vm1, 0.0, %v238_v31  ;;  %815 = vmatpush.msra.mxu2 %v586_v57  ;;  %811 = vmatpush.msra.mxu1 %v587_v55 }
  0x17   : > { %v1049_v34 = vsel %vm257_vm1, 0.0, %v240_v32  ;;  %v1069_v37 = vsel %vm288_vm0, %v269_v35, 0.0  ;;  %v1074_v38 = vsel %vm288_vm0, %v271_v36, 0.0  ;;  %v241_v40 = vrot.slane %v943_v0, 7  ;;  %816 = vmatpush.msra.mxu3 %v586_v57  ;;  %631 = vmatpush.msra.mxu0 %v586_v57 }
  0x18   : > { %311 = vrot.lane.b32.xlu0 %v953_v4, %s886_s20  ;;  %v289_v26 = vsel %vm288_vm0, %v268_v24, 0.0  ;;  %v1084_v41 = vsel %vm257_vm1, 0.0, %v239_v39  ;;  %v1097_v44 = vmul.f32 0.0, %v204_v15  ;;  %818 = vmatpush.msra.mxu2 %v585_v58  ;;  %v237_v55 = vrot.slane %v1011_v22, 7 }
  0x19   : > { %v1087_v42 = vsel %vm257_vm1, 0.0, %v241_v40  ;;  %814 = vmatpush.msra.mxu1 %v586_v57  ;;  %819 = vmatpush.msra.mxu3 %v585_v58 }
  0x1a   : > { %v246_v45 = vrot.slane %v1097_v44, 7  ;;  %821 = vmatpush.msra.mxu2 %v584_v61  ;;  %v277_v63 = vrot.slane %v1097_v44, 1  ;;  %632 = vmatpush.msra.mxu0 %v585_v58  ;;  %v258_v57 = vsel %vm257_vm1, 0.0, %v237_v55 }
  0x1b   : > { %343 = vrot.lane.b32.xlu1 %v973_v10, %s887_s21  ;;  %375 = vrot.lane.b32.xlu2 %v976_v11, %s888_s22 }
  0x1c   : > { %v267_v47 = vsel %vm257_vm1, 0.0, %v246_v45  ;;  %824 = vmatpush.msra.mxu2 %v583_v62  ;;  %817 = vmatpush.msra.mxu1 %v585_v58  ;;  %v298_v8 = vsel %vm288_vm0, %v277_v63, 0.0 }
  0x1d   : > { %822 = vmatpush.msra.mxu3 %v584_v61  ;;  %633 = vmatpush.msra.mxu0 %v584_v61 }
  0x1e   : > { %827 = vmatpush.msra.mxu2 %v582_v3  ;;  %820 = vmatpush.msra.mxu1 %v584_v61 }
  0x1f   : > { %825 = vmatpush.msra.mxu3 %v583_v62  ;;  %634 = vmatpush.msra.mxu0 %v583_v62 }
  0x20   : > { %395 = vrot.lane.b32.xlu0 %v946_v1, %s889_s23  ;;  %823 = vmatpush.msra.mxu1 %v583_v62 }
  0x21   : > { %828 = vmatpush.msra.mxu3 %v582_v3  ;;  %635 = vmatpush.msra.mxu0 %v582_v3 }
  0x22   : > { %826 = vmatpush.msra.mxu1 %v582_v3 }
  0x23   : > { %399 = vrot.lane.b32.xlu1 %v956_v5, %s889_s23  ;;  %420 = vrot.lane.b32.xlu2 %v986_v13, %s890_s24 }
  0x28   : > { %424 = vrot.lane.b32.xlu0 %v996_v18, %s890_s24 }
  0x2b   : > { %445 = vrot.lane.b32.xlu1 %v1001_v19, %s891_s25  ;;  %449 = vrot.lane.b32.xlu2 %v266_v20, %s891_s25 }
  0x30   : > { %299 = vrot.lane.b32.xlu0 %v1011_v22, %s886_s20 }
  0x33   : > { %303 = vrot.lane.b32.xlu1 %v1016_v23, %s886_s20  ;;  %469 = vrot.lane.b32.xlu2 %v953_v4, %s892_s26 }
  0x38   : > { %473 = vrot.lane.b32.xlu0 %v204_v15, %s892_s26 }
  0x3b   : > { %331 = vrot.lane.b32.xlu1 %v289_v26, %s887_s21  ;;  %335 = vrot.lane.b32.xlu2 %v1027_v27, %s887_s21 }
  0x40   : > { %494 = vrot.lane.b32.xlu0 %v973_v10, %s893_s27 }
  0x43   : > { %498 = vrot.lane.b32.xlu1 %v297_v29, %s893_s27  ;;  %309 = vrot.lane.b32.xlu2 %v946_v1, %s886_s20 }
  0x48   : > { %313 = vrot.lane.b32.xlu0 %v956_v5, %s886_s20 }
  0x4b   : > { %363 = vrot.lane.b32.xlu1 %v1046_v33, %s888_s22  ;;  %367 = vrot.lane.b32.xlu2 %v1049_v34, %s888_s22 }
  0x50   : > { %341 = vrot.lane.b32.xlu0 %v986_v13, %s887_s21 }
  0x53   : > { %345 = vrot.lane.b32.xlu1 %v996_v18, %s887_s21  ;;  %387 = vrot.lane.b32.xlu2 %v1005_v21, %s889_s23 }
  0x58   : > { %391 = vrot.lane.b32.xlu0 %v1036_v30, %s889_s23 }
  0x5b   : > { %373 = vrot.lane.b32.xlu1 %v1001_v19, %s888_s22  ;;  %377 = vrot.lane.b32.xlu2 %v266_v20, %s888_s22 }
  0x60   : > { %412 = vrot.lane.b32.xlu0 %v1069_v37, %s890_s24 }
  0x63   : > { %416 = vrot.lane.b32.xlu1 %v1074_v38, %s890_s24  ;;  %397 = vrot.lane.b32.xlu2 %v953_v4, %s889_s23 }
  0x68   : > { %401 = vrot.lane.b32.xlu0 %v204_v15, %s889_s23 }
  0x6b   : > { %437 = vrot.lane.b32.xlu1 %v1084_v41, %s891_s25  ;;  %441 = vrot.lane.b32.xlu2 %v1087_v42, %s891_s25 }
  0x6d   : > { %v1093_v43 = vpop.permute.xlu2 %371 }
  0x70   : > { %422 = vrot.lane.b32.xlu0 %v973_v10, %s890_s24 }
  0x73   : > { %426 = vrot.lane.b32.xlu1 %v297_v29, %s890_s24  ;;  %461 = vrot.lane.b32.xlu2 %v1016_v23, %s892_s26 }
  0x75   : > { %v1103_v46 = vpop.permute.xlu2 %375 }
  0x78   : > { %465 = vrot.lane.b32.xlu0 %v943_v0, %s892_s26 }
  0x7b   : > { %447 = vrot.lane.b32.xlu1 %v976_v11, %s891_s25  ;;  %451 = vrot.lane.b32.xlu2 %v267_v47, %s891_s25 }
  0x7d   : > { %v1111_v48 = vpop.permute.xlu2 %420 }
  0x80   : > { %486 = vrot.lane.b32.xlu0 %v1027_v27, %s893_s27 }
  0x82   : > { %v1115_v49 = vpop.permute.xlu0 %307 }
  0x83   : > { %490 = vrot.lane.b32.xlu1 %v959_v6, %s893_s27  ;;  %301 = vrot.lane.b32.xlu2 %v1005_v21, %s886_s20  ;;  %v515_v17 = vsel %vm510_vm2, %v1087_v42, %v1115_v49 }
  0x85   : > { %v1127_v52 = vpop.permute.xlu1 %339  ;;  %v1129_v53 = vpop.permute.xlu2 %449 }
  0x86   : > { %v524_v20 = vsel %vm519_vm3, %v515_v17, %v1127_v52 }
  0x87   : > { %v533_v21 = vsel %vm528_vm4, %v524_v20, %v1093_v43 }
  0x88   : > { %305 = vrot.lane.b32.xlu0 %v1036_v30, %s886_s20 }
  0x8a   : > { %v1139_v56 = vpop.permute.xlu0 %311 }
  0x8b   : > { %471 = vrot.lane.b32.xlu1 %v956_v5, %s892_s26  ;;  %475 = vrot.lane.b32.xlu2 %v1097_v44, %s892_s26  ;;  %v517_v24 = vsel %vm510_vm2, %v1001_v19, %v1139_v56 }
  0x8d   : > { %v1151_v59 = vpop.permute.xlu1 %343  ;;  %v1153_v60 = vpop.permute.xlu2 %469 }
  0x90   : > { %333 = vrot.lane.b32.xlu0 %v1069_v37, %s887_s21 }
  0x92   : > { %v396_v2 = vpop.permute.xlu0 %395 }
  0x93   : > { %337 = vrot.lane.b32.xlu1 %v1074_v38, %s887_s21  ;;  %496 = vrot.lane.b32.xlu2 %v996_v18, %s893_s27  ;;  %v542_v25 = vsel %vm537_vm5, %v533_v21, %v396_v2 }
  0x94   : > { %v551_v28 = vsel %vm546_vm6, %v542_v25, %v1111_v48 }
  0x95   : > { %v400_v4 = vpop.permute.xlu1 %399  ;;  %v336_v5 = vpop.permute.xlu2 %335 }
  0x98   : > { %500 = vrot.lane.b32.xlu0 %v298_v8, %s893_s27 }
  0x9a   : > { %v425_v9 = vpop.permute.xlu0 %424 }
  0x9b   : > { %365 = vrot.lane.b32.xlu1 %v1084_v41, %s888_s22  ;;  %369 = vrot.lane.b32.xlu2 %v1087_v42, %s888_s22 }
  0x9d   : > { %v446_v10 = vpop.permute.xlu1 %445  ;;  %v1177_v12 = vpop.permute.xlu2 %309 }
  0x9e   : > { %v560_v29 = vsel %vm555_vm7, %v551_v28, %v446_v10 }
  0x9f   : > { %v569_v36 = vsel %vm564_vm8, %v560_v29, %v1153_v60 }
  0xa0   : > { %389 = vrot.lane.b32.xlu0 %v1016_v23, %s889_s23 }
  0xa2   : > { %v1181_v14 = vpop.permute.xlu0 %299 }
  0xa3   : > { %393 = vrot.lane.b32.xlu1 %v943_v0, %s889_s23  ;;  %414 = vrot.lane.b32.xlu2 %v1027_v27, %s890_s24  ;;  %v511_v58 = vsel %vm510_vm2, %v258_v57, %v1181_v14 }
  0xa5   : > { %v304_v15 = vpop.permute.xlu1 %303  ;;  %v1187_v16 = vpop.permute.xlu2 %367 }
  0xa6   : > { %v513_v18 = vsel %vm510_vm2, %v1084_v41, %v304_v15 }
  0xa7   : > { %v1197_v0 = vsel %vm519_vm3, %v513_v18, %v336_v5 }
  0xa8   : > { %418 = vrot.lane.b32.xlu0 %v959_v6, %s890_s24  ;;  %v526_v6 = vsel %vm519_vm3, %v517_v24, %v1151_v59  ;;  %v531_v22 = vsel %vm528_vm4, %v1197_v0, %v1187_v16  ;;  %v516_v16 = vsel %vm510_vm2, %v962_v7, %v1177_v12 }
  0xa9   : > { %v535_v19 = vsel %vm528_vm4, %v526_v6, %v1103_v46 }
  0xaa   : > { %v474_v23 = vpop.permute.xlu0 %473  ;;  %v544_v31 = vsel %vm537_vm5, %v535_v19, %v400_v4 }
  0xab   : > { %439 = vrot.lane.b32.xlu1 %v1049_v34, %s891_s25  ;;  %443 = vrot.lane.b32.xlu2 %v962_v7, %s891_s25  ;;  %v553_v32 = vsel %vm546_vm6, %v544_v31, %v425_v9  ;;  %s1307_s25 = scalar_lea.vmem %s1337_s3, %s800_s16 }
  0xac   : > { %v562_v39 = vsel %vm555_vm7, %v553_v32, %v1129_v53 }
  0xad   : > { %v332_v26 = vpop.permute.xlu1 %331  ;;  %v388_v27 = vpop.permute.xlu2 %387 }
  0xae   : > { %v520_v59 = vsel %vm519_vm3, %v511_v58, %v332_v26 }
  0xb0   : > { %463 = vrot.lane.b32.xlu0 %v1036_v30, %s892_s26  ;;  %v571_v30 = vsel %vm564_vm8, %v562_v39, %v474_v23 }
  0xb2   : > { %v495_v35 = vpop.permute.xlu0 %494 }
  0xb3   : > { %467 = vrot.lane.b32.xlu1 %v946_v1, %s892_s26  ;;  %v578_v37 = vsel %vm573_vm9, %v569_v36, %v495_v35  ;;  %488 = vrot.lane.b32.xlu2 %v1074_v38, %s893_s27 }
  0xb4   : > { %794 = vmatmul.msk.f32.vlgmr.msra.gmra.mxu2 %vm595_vm10, %v578_v37 }
  0xb5   : > { %v499_v40 = vpop.permute.xlu1 %498  ;;  %v378_v42 = vpop.permute.xlu2 %377 }
  0xb6   : > { %v580_v41 = vsel %vm573_vm9, %v571_v30, %v499_v40 }
  0xb7   : > { %796 = vmatmul.msk.f32.vlgmr.msra.gmra.mxu3 %vm595_vm10, %v580_v41 }
  0xb8   : > { %492 = vrot.lane.b32.xlu0 %v986_v13, %s893_s27 }
  0xba   : > { %v314_v1 = vpop.permute.xlu0 %313 }
  0xbb   : > { %v518_v7 = vsel %vm510_vm2, %v976_v11, %v314_v1 }
  0xbd   : > { %v364_v43 = vpop.permute.xlu1 %363  ;;  %v398_v44 = vpop.permute.xlu2 %397 }
  0xbe   : > { %v529_v61 = vsel %vm528_vm4, %v520_v59, %v364_v43 }
  0xbf   : > { %v538_v63 = vsel %vm537_vm5, %v529_v61, %v388_v27 }
  0xc2   : > { %v342_v38 = vpop.permute.xlu0 %341 }
  0xc3   : > { %v525_v21 = vsel %vm519_vm3, %v516_v16, %v342_v38 }
  0xc5   : > { %v346_v45 = vpop.permute.xlu1 %345  ;;  %v442_v47 = vpop.permute.xlu2 %441 }
  0xc6   : > { %v527_v19 = vsel %vm519_vm3, %v518_v7, %v346_v45 }
  0xc7   : > { %v536_v31 = vsel %vm528_vm4, %v527_v19, %v378_v42 }
  0xca   : > { %v392_v46 = vpop.permute.xlu0 %391 }
  0xcb   : > { %v540_v5 = vsel %vm537_vm5, %v531_v22, %v392_v46 }
  0xcd   : > { %v374_v48 = vpop.permute.xlu1 %373  ;;  %v462_v50 = vpop.permute.xlu2 %461 }
  0xce   : > { %v534_v23 = vsel %vm528_vm4, %v525_v21, %v374_v48 }
  0xcf   : > { %v543_v25 = vsel %vm537_vm5, %v534_v23, %v398_v44 }
  0xd2   : > { %v413_v49 = vpop.permute.xlu0 %412 }
  0xd3   : > { %v547_v3 = vsel %vm546_vm6, %v538_v63, %v413_v49 }
  0xd5   : > { %v417_v51 = vpop.permute.xlu1 %416  ;;  %v452_v54 = vpop.permute.xlu2 %451 }
  0xd6   : > { %v549_v8 = vsel %vm546_vm6, %v540_v5, %v417_v51 }
  0xd7   : > { %v558_v17 = vsel %vm555_vm7, %v549_v8, %v442_v47 }
  0xda   : > { %v402_v52 = vpop.permute.xlu0 %401 }
  0xdb   : > { %v545_v35 = vsel %vm537_vm5, %v536_v31, %v402_v52 }
  0xdd   : > { %v438_v53 = vpop.permute.xlu1 %437  ;;  %v302_v60 = vpop.permute.xlu2 %301 }
  0xde   : > { %v556_v4 = vsel %vm555_vm7, %v547_v3, %v438_v53  ;;  %v512_v46 = vsel %vm510_vm2, %v1046_v33, %v302_v60 }
  0xdf   : > { %v565_v10 = vsel %vm564_vm8, %v556_v4, %v462_v50 }
  0xe2   : > { %v423_v56 = vpop.permute.xlu0 %422 }
  0xe3   : > { %v552_v26 = vsel %vm546_vm6, %v543_v25, %v423_v56 }
  0xe5   : > { %v427_v13 = vpop.permute.xlu1 %426  ;;  %v476_v14 = vpop.permute.xlu2 %475 }
  0xe6   : > { %v554_v36 = vsel %vm546_vm6, %v545_v35, %v427_v13 }
  0xe7   : > { %v563_v30 = vsel %vm555_vm7, %v554_v36, %v452_v54 }
  0xe8   : > { %v572_v11 = vsel %vm564_vm8, %v563_v30, %v476_v14 }
  0xea   : > { %v466_v62 = vpop.permute.xlu0 %465 }
  0xeb   : > { %v567_v18 = vsel %vm564_vm8, %v558_v17, %v466_v62 }
  0xed   : > { %v448_v2 = vpop.permute.xlu1 %447  ;;  %v497_v6 = vpop.permute.xlu2 %496 }
  0xee   : > { %v561_v27 = vsel %vm555_vm7, %v552_v26, %v448_v2  ;;  %v861_v2 = vld [vmem:[%s1336_s2] ss:$0 sm:$0xff] }
  0xf2   : > { %v487_v9 = vpop.permute.xlu0 %486 }
  0xf3   : > { %v574_v15 = vsel %vm573_vm9, %v565_v10, %v487_v9 }
  0xf4   : > { %790 = vmatmul.msk.f32.vlgmr.msra.gmra.mxu0 %vm595_vm10, %v574_v15 }
  0xf5   : > { %v491_v20 = vpop.permute.xlu1 %490  ;;  %v370_v39 = vpop.permute.xlu2 %369 }
  0xf6   : > { %v576_v0 = vsel %vm573_vm9, %v567_v18, %v491_v20 }
  0xf7   : > { %792 = vmatmul.msk.f32.vlgmr.msra.gmra.mxu1 %vm595_vm10, %v576_v0 }
  0xfa   : > { %v306_v24 = vpop.permute.xlu0 %305 }
  0xfb   : > { %v514_v51 = vsel %vm510_vm2, %v1049_v34, %v306_v24 }
  0xfd   : > { %v472_v28 = vpop.permute.xlu1 %471  ;;  %v415_v43 = vpop.permute.xlu2 %414 }
  0xfe   : > { %v570_v12 = vsel %vm564_vm8, %v561_v27, %v472_v28 }
  0xff   : > { %v579_v29 = vsel %vm573_vm9, %v570_v12, %v497_v6 }
 0x100   : > { %795 = vmatmul.msk.f32.gmra.mxu2 %vm595_vm10, %v579_v29 }
 0x102   : > { %v334_v32 = vpop.permute.xlu0 %333 }
 0x103   : > { %v521_v47 = vsel %vm519_vm3, %v512_v46, %v334_v32 }
 0x105   : > { %v338_v37 = vpop.permute.xlu1 %337  ;;  %v444_v38 = vpop.permute.xlu2 %443 }
 0x106   : > { %v523_v52 = vsel %vm519_vm3, %v514_v51, %v338_v37 }
 0x107   : > { %v532_v57 = vsel %vm528_vm4, %v523_v52, %v370_v39 }
 0x10a   : > { %v501_v40 = vpop.permute.xlu0 %500 }
 0x10b   : > { %v581_v41 = vsel %vm573_vm9, %v572_v11, %v501_v40 }
 0x10c   : > { %797 = vmatmul.msk.f32.gmra.mxu3 %vm595_vm10, %v581_v41 }
 0x10d   : > { %v366_v1 = vpop.permute.xlu1 %365  ;;  %v489_v54 = vpop.permute.xlu2 %488 }
 0x10e   : > { %v530_v48 = vsel %vm528_vm4, %v521_v47, %v366_v1 }
 0x112   : > { %v390_v44 = vpop.permute.xlu0 %389 }
 0x113   : > { %v539_v50 = vsel %vm537_vm5, %v530_v48, %v390_v44 }
 0x114   : > { %v548_v53 = vsel %vm546_vm6, %v539_v50, %v415_v43 }
 0x115   : > { %v394_v42 = vpop.permute.xlu1 %393 }
 0x116   : > { %v541_v58 = vsel %vm537_vm5, %v532_v57, %v394_v42 }
 0x11a   : > { %v419_v45 = vpop.permute.xlu0 %418 }
 0x11b   : > { %v550_v34 = vsel %vm546_vm6, %v541_v58, %v419_v45 }
 0x11c   : > { %v559_v60 = vsel %vm555_vm7, %v550_v34, %v444_v38 }
 0x11d   : > { %v440_v49 = vpop.permute.xlu1 %439 }
 0x11e   : > { %v557_v55 = vsel %vm555_vm7, %v548_v53, %v440_v49 }
 0x122   : > { %v464_v56 = vpop.permute.xlu0 %463 }
 0x123   : > { %v566_v33 = vsel %vm564_vm8, %v557_v55, %v464_v56 }
 0x124   : > { %v575_v13 = vsel %vm573_vm9, %v566_v33, %v489_v54 }
 0x125   : > { %791 = vmatmul.msk.f32.gmra.mxu0 %vm595_vm10, %v575_v13  ;;  %v468_v59 = vpop.permute.xlu1 %467 }
 0x126   : > { %v568_v61 = vsel %vm564_vm8, %v559_v60, %v468_v59 }
 0x12a   : > { %v493_v62 = vpop.permute.xlu0 %492 }
 0x12b   : > { %v577_v63 = vsel %vm573_vm9, %v568_v61, %v493_v62 }
 0x12c   : > { %793 = vmatmul.msk.f32.gmra.mxu1 %vm595_vm10, %v577_v63 }
 0x137   : > { %v649_v3 = vpop.f32.mrf.mxu2 }
 0x138   : > { %v650_v22 = vadd.f32 %v861_v2, %v649_v3 }
 0x13a   : > { %vm665_vm11 = vcmp.gt.f32.partialorder %v650_v22, 0.0  ;;  %v673_v4 = vmul.f32 0.2, %v650_v22  ;;  %v655_v5 = vpop.f32.mrf.mxu3 }
 0x13b   : > { %v656_v8 = vadd.f32 %v861_v2, %v655_v5 }
 0x13c   : > { %v681_v9 = vsel %vm665_vm11, %v650_v22, %v673_v4 }
 0x13d   : > { %689 = vst.msk [vmem:[%s1307_s25 + $0x20] sm:$0xff] %vm519_vm3, %v681_v9  ;;  %vm667_vm12 = vcmp.gt.f32.partialorder %v656_v8, 0.0  ;;  %v675_v10 = vmul.f32 0.2, %v656_v8 }
 0x13f   : > { %v683_v14 = vsel %vm667_vm12, %v656_v8, %v675_v10 }
 0x140   : > { %691 = vst.msk [vmem:[%s1307_s25 + $0x30] sm:$0xff] %vm519_vm3, %v683_v14 }
 0x171   : > { %v637_v15 = vpop.f32.mrf.mxu0 }
 0x172   : > { %v638_v17 = vadd.f32 %v861_v2, %v637_v15 }
 0x174   : > { %vm661_vm13 = vcmp.gt.f32.partialorder %v638_v17, 0.0  ;;  %v669_v18 = vmul.f32 0.2, %v638_v17  ;;  %v643_v20 = vpop.f32.mrf.mxu1 }
 0x175   : > { %v644_v16 = vadd.f32 %v861_v2, %v643_v20 }
 0x176   : > { %v677_v0 = vsel %vm661_vm13, %v638_v17, %v669_v18 }
 0x177   : > { %685 = vst.msk [vmem:[%s1307_s25] sm:$0xff] %vm519_vm3, %v677_v0  ;;  %vm663_vm14 = vcmp.gt.f32.partialorder %v644_v16, 0.0  ;;  %v671_v21 = vmul.f32 0.2, %v644_v16 }
 0x179   : > { %v679_v23 = vsel %vm663_vm14, %v644_v16, %v671_v21 }
 0x17a   : > { %687 = vst.msk [vmem:[%s1307_s25 + $0x10] sm:$0xff] %vm519_vm3, %v679_v23 }
 0x183   : > { %v652_v24 = vpop.f32.mrf.mxu2 }
 0x184   : > { %v653_v25 = vadd.f32 %v861_v2, %v652_v24 }
 0x186   : > { %vm666_vm15 = vcmp.gt.f32.partialorder %v653_v25, 0.0  ;;  %v674_v6 = vmul.f32 0.2, %v653_v25 }
 0x188   : > { %v682_v26 = vsel %vm666_vm15, %v653_v25, %v674_v6 }
 0x189   : > { %690 = vst.msk [vmem:[%s1307_s25 + $0x28] sm:$0xff] %vm519_vm3, %v682_v26 }
 0x18f   : > { %v658_v27 = vpop.f32.mrf.mxu3 }
 0x190   : > { %v659_v28 = vadd.f32 %v861_v2, %v658_v27 }
 0x192   : > { %vm668_vm0 = vcmp.gt.f32.partialorder %v659_v28, 0.0  ;;  %v676_v7 = vmul.f32 0.2, %v659_v28 }
 0x194   : > { %v684_v12 = vsel %vm668_vm0, %v659_v28, %v676_v7 }
 0x195   : > { %692 = vst.msk [vmem:[%s1307_s25 + $0x38] sm:$0xff] %vm519_vm3, %v684_v12 }
 0x1a2   : > { %v640_v19 = vpop.f32.mrf.mxu0 }
 0x1a3   : > { %v641_v29 = vadd.f32 %v861_v2, %v640_v19 }
 0x1a5   : > { %vm662_vm1 = vcmp.gt.f32.partialorder %v641_v29, 0.0  ;;  %v670_v31 = vmul.f32 0.2, %v641_v29 }
 0x1a7   : > { %v678_v32 = vsel %vm662_vm1, %v641_v29, %v670_v31 }
 0x1a8   : > { %686 = vst.msk [vmem:[%s1307_s25 + $0x8] sm:$0xff] %vm519_vm3, %v678_v32 }
 0x1a9   : > { %v646_v35 = vpop.f32.mrf.mxu1 }
 0x1aa   : > { %v647_v36 = vadd.f32 %v861_v2, %v646_v35 }
 0x1ac   : > { %vm664_vm2 = vcmp.gt.f32.partialorder %v647_v36, 0.0  ;;  %v672_v37 = vmul.f32 0.2, %v647_v36 }
 0x1ae   : > { %v680_v39 = vsel %vm664_vm2, %v647_v36, %v672_v37 }
 0x1af   : > { %688 = vst.msk [vmem:[%s1307_s25 + $0x18] sm:$0xff] %vm519_vm3, %v680_v39 }
 0x1b0 PF: > { %s13_s14 = sadd.s32 1, %s884_s14   ;;  %s1338_s12 = smov %s880_s13 }
 0x1b1   : > { %p10_p5 = scmp.ge.s32.totalorder %s13_s14, 4   ;;  %s1339_s13 = smov %s1341_s15 }
 0x1b3   :  { %12 = sbr.rel (!%p10_p5) target bundleno = 2 (0x2), region = 65 }

// kernel: _lambda_.5
= control target key start
LH: loop header
LB: loop body
LE: loop exit
PB: predicated region body
PF: predicated region fallthrough
CT: control target
= control target key end

     0   :  { %s2169_s12 = smov 0   ;;  %s2171_s13 = smov 0   ;;  %s4058_s0 = inlined_call_operand.vmem [shape: f32[2,16,16,4], index: 0, kind: input, shape index: {}]   ;;  %s4059_s1 = inlined_call_operand.vmem [shape: f32[36,8], index: 1, kind: input, shape index: {}]   ;;  %s4060_s2 = inlined_call_operand.vmem [shape: f32[1,8], index: 2, kind: input, shape index: {}]   ;;  %s4061_s3 = inlined_call_operand.vmem [shape: f32[2,256,8], index: 3, kind: output, shape index: {}]  }
   0x1   :  { %s2173_s14 = smov 0  }
   0x2 LB: > { %s25_s15 = sadd.s32 1, %s2135_s13  ;;  %p1998_p0 = scmp.ge.s32.totalorder %s2139_s14, 1  ;;  %s2139_s14 = sphi %s2173_s14, %s13_s14   ;;  %s2135_s13 = sphi %s2171_s13, %s4490_s13   ;;  %s2131_s12 = sphi %s2169_s12, %s4489_s12  }
   0x3   : > { %p27_p1 = scmp.ge.s32.totalorder %s25_s15, 2  ;;  %p151_p2 = scmp.lt.s32.totalorder %s2139_s14, 3 }
   0x5   : > { %s4492_s15 = smov (%p27_p1, %s25_s15), 0  ;;  %p152_p3 = pnand %p1998_p0, %p151_p2 }
   0x7   : > { %155 = sbr.rel (%p152_p3) target bundleno = 948 (0x3b4), region = 32 }
   0xc   : > { %p179_p4 = scmp.lt.s32.totalorder %s2131_s12, 1  ;;  %s2141_s20 = smov 4   ;;  %vm398_vm0 = vcmask 1046528   ;;  %vm291_vm1 = vcmask 1040384   ;;  %vm1292_vm2 = vcmask 31744   ;;  %vm1325_vm3 = vcmask 64512  }
   0xd   : > { %s2142_s21 = smov 8   ;;  %s2143_s22 = smov 12   ;;  %vm1358_vm4 = vcmask 97280   ;;  %vm1391_vm5 = vcmask 130048   ;;  %vm1424_vm6 = vcmask 162816   ;;  %vm1457_vm7 = vcmask 195584  }
   0xe   : > { %s4494_s12 = smov (!%p179_p4, %s2131_s12), 1  ;;  %s2144_s23 = smov 16   ;;  %vm1662_vm8 = vcmask 1043456   ;;  %vm1490_vm9 = vcmask 228352   ;;  %vm1523_vm10 = vcmask 261120   ;;  %vm1565_vm11 = vcmask 293888  }
   0xf   : > { %s2040_s16 = sshll.u32 %s4494_s12, 8  ;;  %s2145_s24 = smov 20  }
  0x10   : > { %s2195_s19 = scalar_lea.vmem %s4058_s0, %s2040_s16  ;;  %s2146_s25 = smov 24  }
  0x11   : > { %v2198_v0 = vld [vmem:[%s2195_s19 + $0x10] sm:$0xff]  ;;  %v2201_v1 = vld [vmem:[%s2195_s19] sm:$0xff]  ;;  %v2213_v3 = vld [vmem:[%s2195_s19 + $0x8] sm:$0xff]  ;;  %s2147_s26 = smov 28   ;;  %s2148_s27 = smov 32  }
  0x12   : > { %497 = vrot.lane.b32.xlu2 %v2198_v0, %s2141_s20  ;;  %493 = vrot.lane.b32.xlu1 %v2201_v1, %s2141_s20  ;;  %v2208_v2 = vmul.f32 0.0, %v2201_v1  ;;  %v2216_v4 = vld [vmem:[%s2195_s19 + $0x18] sm:$0xff]  ;;  %v2219_v5 = vmul.f32 0.0, %v2213_v3  ;;  %v2228_v6 = vld [vmem:[%s2195_s19 + $0x30] sm:$0xff]  ;;  %v403_v35 = vrot.slane %v2213_v3, 1  ;;  %v402_v36 = vrot.slane %v2201_v1, 1 }
  0x13   : > { %v2231_v7 = vld [vmem:[%s2195_s19 + $0x28] sm:$0xff]  ;;  %v2234_v8 = vld [vmem:[%s2195_s19 + $0x20] sm:$0xff]  ;;  %v2249_v11 = vld [vmem:[%s2195_s19 + $0x38] sm:$0xff]  ;;  %v406_v42 = vrot.slane %v2216_v4, 1  ;;  %v405_v44 = vrot.slane %v2198_v0, 1  ;;  %v411_v49 = vrot.slane %v2228_v6, 1 }
  0x14   : > { %4161 = vst [vmem:[#allocation2_spill] sm:$0xff] %v2208_v2  ;;  %489 = vrot.lane.b32.xlu0 %v2208_v2, %s2141_s20  ;;  %v2243_v9 = vld [vmem:[%s2195_s19 + $0x48] sm:$0xff]  ;;  %v2246_v10 = vld [vmem:[%s2195_s19 + $0x40] sm:$0xff]  ;;  %v2261_v13 = vld [vmem:[%s2195_s19 + $0x58] sm:$0xff]  ;;  %v399_v30 = vrot.slane %v2208_v2, 1  ;;  %v400_v31 = vrot.slane %v2219_v5, 1  ;;  %v2367_v38 = vsel %vm398_vm0, %v402_v36, %v403_v35 }
  0x15   : > { %4162 = vst [vmem:[#allocation3_spill] sm:$0xff] %v2219_v5  ;;  %v2258_v12 = vld [vmem:[%s2195_s19 + $0x60] sm:$0xff]  ;;  %v2264_v14 = vld [vmem:[%s2195_s19 + $0x50] sm:$0xff]  ;;  %v2273_v15 = vld [vmem:[%s2195_s19 + $0x78] sm:$0xff]  ;;  %v2364_v37 = vsel %vm398_vm0, %v403_v35, 0.0  ;;  %v408_v40 = vrot.slane %v2234_v8, 1  ;;  %v2388_v47 = vsel %vm398_vm0, %v405_v44, %v406_v42 }
  0x16   : > { %v2276_v16 = vld [vmem:[%s2195_s19 + $0x70] sm:$0xff]  ;;  %v2279_v17 = vld [vmem:[%s2195_s19 + $0x68] sm:$0xff]  ;;  %v2294_v20 = vld [vmem:[%s2195_s19 + $0x80] sm:$0xff]  ;;  %v401_v32 = vsel %vm398_vm0, %v399_v30, %v400_v31  ;;  %v471_v39 = vsel %vm398_vm0, %v400_v31, 0.0  ;;  %v409_v41 = vrot.slane %v2231_v7, 1  ;;  %v2385_v46 = vsel %vm398_vm0, %v406_v42, 0.0 }
  0x17   : > { %v2288_v18 = vld [vmem:[%s2195_s19 + $0x90] sm:$0xff]  ;;  %v2291_v19 = vld [vmem:[%s2195_s19 + $0x88] sm:$0xff]  ;;  %v2306_v22 = vld [vmem:[%s2195_s19 + $0xa0] sm:$0xff]  ;;  %4165 = vst [vmem:[#allocation6_spill] sm:$0xff] %v2385_v46  ;;  %v412_v48 = vrot.slane %v2249_v11, 1  ;;  %v417_v54 = vrot.slane %v2264_v14, 1 }
  0x18   : > { %v2303_v21 = vld [vmem:[%s2195_s19 + $0xa8] sm:$0xff]  ;;  %v2309_v23 = vld [vmem:[%s2195_s19 + $0x98] sm:$0xff]  ;;  %v2318_v24 = vld [vmem:[%s2195_s19 + $0xc0] sm:$0xff]  ;;  %v2382_v45 = vsel %vm398_vm0, %v408_v40, %v409_v41  ;;  %v2407_v53 = vsel %vm398_vm0, %v409_v41, 0.0  ;;  %v418_v55 = vrot.slane %v2261_v13, 1  ;;  %v415_v56 = vrot.slane %v2243_v9, 1 }
  0x19   : > { %v2321_v25 = vld [vmem:[%s2195_s19 + $0xb8] sm:$0xff]  ;;  %v2324_v26 = vld [vmem:[%s2195_s19 + $0xb0] sm:$0xff]  ;;  %v2339_v29 = vld [vmem:[%s2195_s19 + $0xc8] sm:$0xff]  ;;  %4164 = vst [vmem:[#allocation5_spill] sm:$0xff] %v2382_v45  ;;  %v2401_v51 = vsel %vm398_vm0, %v412_v48, 0.0  ;;  %v2404_v52 = vsel %vm398_vm0, %v411_v49, %v412_v48  ;;  %v414_v58 = vrot.slane %v2246_v10, 1 }
  0x1a   : > { %499 = vrot.lane.b32.xlu2 %v2216_v4, %s2141_s20  ;;  %495 = vrot.lane.b32.xlu1 %v2213_v3, %s2141_s20  ;;  %v2333_v27 = vld [vmem:[%s2195_s19 + $0xd8] sm:$0xff]  ;;  %v2336_v28 = vld [vmem:[%s2195_s19 + $0xd0] sm:$0xff]  ;;  %4167 = vst [vmem:[#allocation8_spill] sm:$0xff] %v2401_v51  ;;  %v2422_v59 = vsel %vm398_vm0, %v417_v54, %v418_v55  ;;  %v2425_v60 = vsel %vm398_vm0, %v415_v56, 0.0  ;;  %v421_v62 = vrot.slane %v2279_v17, 1  ;;  %v420_v63 = vrot.slane %v2258_v12, 1 }
  0x1b   : > { %v2351_v33 = vld [vmem:[%s2195_s19 + $0xe8] sm:$0xff]  ;;  %v2354_v34 = vld [vmem:[%s2195_s19 + $0xe0] sm:$0xff]  ;;  %4168 = vst [vmem:[#allocation9_spill] sm:$0xff] %v2404_v52  ;;  %v2428_v61 = vsel %vm398_vm0, %v414_v58, %v415_v56  ;;  %v426_v40 = vrot.slane %v2294_v20, 1  ;;  %v427_v41 = vrot.slane %v2291_v19, 1  ;;  %v424_v42 = vrot.slane %v2273_v15, 1 }
  0x1c   : > { %491 = vrot.lane.b32.xlu0 %v2219_v5, %s2141_s20  ;;  %4169 = vst [vmem:[#allocation10_spill] sm:$0xff] %v2407_v53  ;;  %v2445_v35 = vsel %vm398_vm0, %v421_v62, 0.0  ;;  %v2448_v36 = vsel %vm398_vm0, %v420_v63, %v421_v62  ;;  %v423_v49 = vrot.slane %v2276_v16, 1  ;;  %v430_v62 = vrot.slane %v2309_v23, 1 }
  0x1d   : > { %4171 = vst [vmem:[#allocation12_spill] sm:$0xff] %v2425_v60  ;;  %v2473_v56 = vsel %vm398_vm0, %v424_v42, 0.0  ;;  %v429_v63 = vrot.slane %v2288_v18, 1 }
  0x1e   : > { %4172 = vst [vmem:[#allocation13_spill] sm:$0xff] %v2428_v61  ;;  %v2476_v58 = vsel %vm398_vm0, %v423_v49, %v424_v42  ;;  %v2493_v42 = vsel %vm398_vm0, %v430_v62, 0.0 }
  0x1f   : > { %4176 = vst [vmem:[#allocation17_spill] sm:$0xff] %v2445_v35  ;;  %v2496_v49 = vsel %vm398_vm0, %v429_v63, %v430_v62 }
  0x20   : > { %4177 = vst [vmem:[#allocation18_spill] sm:$0xff] %v2448_v36 }
  0x21   : > { %4183 = vst [vmem:[#allocation24_spill] sm:$0xff] %v2473_v56 }
  0x22   : > { %505 = vrot.lane.b32.xlu2 %v2228_v6, %s2141_s20  ;;  %503 = vrot.lane.b32.xlu1 %v2231_v7, %s2141_s20  ;;  %4184 = vst [vmem:[#allocation25_spill] sm:$0xff] %v2476_v58 }
  0x24   : > { %501 = vrot.lane.b32.xlu0 %v2234_v8, %s2141_s20 }
  0x2a   : > { %511 = vrot.lane.b32.xlu2 %v2243_v9, %s2141_s20  ;;  %509 = vrot.lane.b32.xlu1 %v2246_v10, %s2141_s20 }
  0x2c   : > { %507 = vrot.lane.b32.xlu0 %v2249_v11, %s2141_s20 }
  0x32   : > { %517 = vrot.lane.b32.xlu2 %v2258_v12, %s2141_s20  ;;  %515 = vrot.lane.b32.xlu1 %v2261_v13, %s2141_s20 }
  0x34   : > { %513 = vrot.lane.b32.xlu0 %v2264_v14, %s2141_s20 }
  0x3a   : > { %523 = vrot.lane.b32.xlu2 %v2273_v15, %s2141_s20  ;;  %521 = vrot.lane.b32.xlu1 %v2276_v16, %s2141_s20 }
  0x3c   : > { %519 = vrot.lane.b32.xlu0 %v2279_v17, %s2141_s20 }
  0x42   : > { %529 = vrot.lane.b32.xlu2 %v2288_v18, %s2141_s20  ;;  %527 = vrot.lane.b32.xlu1 %v2291_v19, %s2141_s20 }
  0x44   : > { %525 = vrot.lane.b32.xlu0 %v2294_v20, %s2141_s20 }
  0x4a   : > { %535 = vrot.lane.b32.xlu2 %v2303_v21, %s2141_s20  ;;  %533 = vrot.lane.b32.xlu1 %v2306_v22, %s2141_s20 }
  0x4c   : > { %531 = vrot.lane.b32.xlu0 %v2309_v23, %s2141_s20 }
  0x52   : > { %541 = vrot.lane.b32.xlu2 %v2318_v24, %s2141_s20  ;;  %539 = vrot.lane.b32.xlu1 %v2321_v25, %s2141_s20 }
  0x54   : > { %537 = vrot.lane.b32.xlu0 %v2324_v26, %s2141_s20 }
  0x5a   : > { %547 = vrot.lane.b32.xlu2 %v2333_v27, %s2141_s20  ;;  %545 = vrot.lane.b32.xlu1 %v2336_v28, %s2141_s20 }
  0x5c   : > { %543 = vrot.lane.b32.xlu0 %v2339_v29, %s2141_s20 }
  0x62   : > { %601 = vrot.lane.b32.xlu2 %v401_v32, %s2142_s21  ;;  %551 = vrot.lane.b32.xlu1 %v2351_v33, %s2141_s20 }
  0x64   : > { %549 = vrot.lane.b32.xlu0 %v2354_v34, %s2141_s20  ;;  %s3903_s20 = scalar_lea.vmem %s4061_s3, %s2040_s16 }
  0x6a   : > { %607 = vrot.lane.b32.xlu2 %v2364_v37, %s2142_s21  ;;  %605 = vrot.lane.b32.xlu1 %v2367_v38, %s2142_s21 }
  0x6c   : > { %603 = vrot.lane.b32.xlu0 %v471_v39, %s2142_s21  ;;  %v2378_v43 = vpop.permute.xlu2 %497  ;;  %v2451_v39 = vsel %vm398_vm0, %v418_v55, 0.0  ;;  %v2470_v55 = vsel %vm398_vm0, %v426_v40, %v427_v41 }
  0x6d   : > { %4163 = vst [vmem:[#allocation4_spill] sm:$0xff] %v2378_v43 }
  0x6e   : > { %4178 = vst [vmem:[#allocation19_spill] sm:$0xff] %v2451_v39 }
  0x6f   : > { %4182 = vst [vmem:[#allocation23_spill] sm:$0xff] %v2470_v55 }
  0x72   : > { %613 = vrot.lane.b32.xlu2 %v2382_v45, %s2142_s21  ;;  %611 = vrot.lane.b32.xlu1 %v2385_v46, %s2142_s21 }
  0x74   : > { %v2396_v50 = vpop.permute.xlu2 %499  ;;  %609 = vrot.lane.b32.xlu0 %v2388_v47, %s2142_s21 }
  0x75   : > { %4166 = vst [vmem:[#allocation7_spill] sm:$0xff] %v2396_v50  ;;  %v2499_v50 = vsel %vm398_vm0, %v427_v41, 0.0  ;;  %v432_v41 = vrot.slane %v2306_v22, 1 }
  0x76   : > { %4188 = vst [vmem:[#allocation29_spill] sm:$0xff] %v2499_v50 }
  0x7a   : > { %619 = vrot.lane.b32.xlu2 %v2401_v51, %s2142_s21  ;;  %617 = vrot.lane.b32.xlu1 %v2404_v52, %s2142_s21 }
  0x7c   : > { %v2416_v57 = vpop.permute.xlu2 %505  ;;  %615 = vrot.lane.b32.xlu0 %v2407_v53, %s2142_s21 }
  0x7d   : > { %4170 = vst [vmem:[#allocation11_spill] sm:$0xff] %v2416_v57 }
  0x82   : > { %625 = vrot.lane.b32.xlu2 %v2422_v59, %s2142_s21  ;;  %623 = vrot.lane.b32.xlu1 %v2425_v60, %s2142_s21 }
  0x84   : > { %v2436_v30 = vpop.permute.xlu2 %511  ;;  %621 = vrot.lane.b32.xlu0 %v2428_v61, %s2142_s21  ;;  %v2440_v31 = vpop.permute.xlu1 %493 }
  0x85   : > { %4173 = vst [vmem:[#allocation14_spill] sm:$0xff] %v2436_v30 }
  0x86   : > { %4174 = vst [vmem:[#allocation15_spill] sm:$0xff] %v2440_v31  ;;  %v2442_v32 = vpop.permute.xlu0 %489 }
  0x87   : > { %4175 = vst [vmem:[#allocation16_spill] sm:$0xff] %v2442_v32  ;;  %v435_v32 = vrot.slane %v2324_v26, 1 }
  0x8a   : > { %631 = vrot.lane.b32.xlu2 %v2445_v35, %s2142_s21  ;;  %629 = vrot.lane.b32.xlu1 %v2448_v36, %s2142_s21 }
  0x8c   : > { %v2460_v44 = vpop.permute.xlu2 %517  ;;  %627 = vrot.lane.b32.xlu0 %v2451_v39, %s2142_s21  ;;  %v2464_v48 = vpop.permute.xlu1 %495 }
  0x8d   : > { %4179 = vst [vmem:[#allocation20_spill] sm:$0xff] %v2460_v44 }
  0x8e   : > { %4180 = vst [vmem:[#allocation21_spill] sm:$0xff] %v2464_v48  ;;  %v2467_v54 = vpop.permute.xlu0 %491 }
  0x8f   : > { %4181 = vst [vmem:[#allocation22_spill] sm:$0xff] %v2467_v54 }
  0x92   : > { %637 = vrot.lane.b32.xlu2 %v2470_v55, %s2142_s21  ;;  %635 = vrot.lane.b32.xlu1 %v2473_v56, %s2142_s21 }
  0x94   : > { %v2484_v57 = vpop.permute.xlu2 %523  ;;  %633 = vrot.lane.b32.xlu0 %v2476_v58, %s2142_s21  ;;  %v2488_v40 = vpop.permute.xlu1 %503 }
  0x95   : > { %4185 = vst [vmem:[#allocation26_spill] sm:$0xff] %v2484_v57 }
  0x96   : > { %4186 = vst [vmem:[#allocation27_spill] sm:$0xff] %v2488_v40  ;;  %v2490_v30 = vpop.permute.xlu0 %501  ;;  %v436_v40 = vrot.slane %v2321_v25, 1 }
  0x97   : > { %4187 = vst [vmem:[#allocation28_spill] sm:$0xff] %v2490_v30  ;;  %v433_v30 = vrot.slane %v2303_v21, 1 }
  0x98   : > { %v2518_v54 = vsel %vm398_vm0, %v435_v32, %v436_v40  ;;  %v2547_v44 = vsel %vm398_vm0, %v436_v40, 0.0  ;;  %v441_v40 = vrot.slane %v2336_v28, 1 }
  0x99   : > { %4192 = vst [vmem:[#allocation33_spill] sm:$0xff] %v2518_v54  ;;  %v2521_v2 = vsel %vm398_vm0, %v433_v30, 0.0  ;;  %v2524_v5 = vsel %vm398_vm0, %v432_v41, %v433_v30 }
  0x9a   : > { %643 = vrot.lane.b32.xlu2 %v2493_v42, %s2142_s21  ;;  %641 = vrot.lane.b32.xlu1 %v2496_v49, %s2142_s21  ;;  %4193 = vst [vmem:[#allocation34_spill] sm:$0xff] %v2521_v2 }
  0x9b   : > { %4194 = vst [vmem:[#allocation35_spill] sm:$0xff] %v2524_v5 }
  0x9c   : > { %v2508_v43 = vpop.permute.xlu2 %529  ;;  %639 = vrot.lane.b32.xlu0 %v2499_v50, %s2142_s21  ;;  %v2512_v62 = vpop.permute.xlu1 %509  ;;  %4200 = vst [vmem:[#allocation41_spill] sm:$0xff] %v2547_v44 }
  0x9d   : > { %4189 = vst [vmem:[#allocation30_spill] sm:$0xff] %v2508_v43  ;;  %v438_v43 = vrot.slane %v2318_v24, 1 }
  0x9e   : > { %4190 = vst [vmem:[#allocation31_spill] sm:$0xff] %v2512_v62  ;;  %v2515_v63 = vpop.permute.xlu0 %507  ;;  %v439_v62 = vrot.slane %v2339_v29, 1 }
  0x9f   : > { %4191 = vst [vmem:[#allocation32_spill] sm:$0xff] %v2515_v63 }
  0xa0   : > { %v2541_v30 = vsel %vm398_vm0, %v439_v62, 0.0  ;;  %v2544_v41 = vsel %vm398_vm0, %v438_v43, %v439_v62 }
  0xa1   : > { %4198 = vst [vmem:[#allocation39_spill] sm:$0xff] %v2541_v30 }
  0xa2   : > { %649 = vrot.lane.b32.xlu2 %v2518_v54, %s2142_s21  ;;  %647 = vrot.lane.b32.xlu1 %v2521_v2, %s2142_s21  ;;  %4199 = vst [vmem:[#allocation40_spill] sm:$0xff] %v2544_v41 }
  0xa4   : > { %v2532_v63 = vpop.permute.xlu2 %535  ;;  %645 = vrot.lane.b32.xlu0 %v2524_v5, %s2142_s21  ;;  %v2536_v32 = vpop.permute.xlu1 %515 }
  0xa5   : > { %4195 = vst [vmem:[#allocation36_spill] sm:$0xff] %v2532_v63  ;;  %v444_v63 = vrot.slane %v2354_v34, 1 }
  0xa6   : > { %4196 = vst [vmem:[#allocation37_spill] sm:$0xff] %v2536_v32  ;;  %v2538_v57 = vpop.permute.xlu0 %513  ;;  %v445_v32 = vrot.slane %v2351_v33, 1 }
  0xa7   : > { %4197 = vst [vmem:[#allocation38_spill] sm:$0xff] %v2538_v57  ;;  %v442_v57 = vrot.slane %v2333_v27, 1 }
  0xa8   : > { %v2566_v48 = vsel %vm398_vm0, %v444_v63, %v445_v32  ;;  %v296_v63 = vrot.slane %v2213_v3, 7 }
  0xa9   : > { %4204 = vst [vmem:[#allocation45_spill] sm:$0xff] %v2566_v48  ;;  %v2572_v54 = vsel %vm398_vm0, %v441_v40, %v442_v57 }
  0xaa   : > { %655 = vrot.lane.b32.xlu2 %v2541_v30, %s2142_s21  ;;  %653 = vrot.lane.b32.xlu1 %v2544_v41, %s2142_s21  ;;  %v2569_v30 = vsel %vm398_vm0, %v442_v57, 0.0  ;;  %4206 = vst [vmem:[#allocation47_spill] sm:$0xff] %v2572_v54 }
  0xab   : > { %4205 = vst [vmem:[#allocation46_spill] sm:$0xff] %v2569_v30 }
  0xac   : > { %v2556_v31 = vpop.permute.xlu2 %541  ;;  %651 = vrot.lane.b32.xlu0 %v2547_v44, %s2142_s21  ;;  %v2560_v43 = vpop.permute.xlu1 %521 }
  0xad   : > { %4201 = vst [vmem:[#allocation42_spill] sm:$0xff] %v2556_v31 }
  0xae   : > { %4202 = vst [vmem:[#allocation43_spill] sm:$0xff] %v2560_v43  ;;  %v2563_v62 = vpop.permute.xlu0 %519 }
  0xaf   : > { %4203 = vst [vmem:[#allocation44_spill] sm:$0xff] %v2563_v62  ;;  %v295_v62 = vrot.slane %v2201_v1, 7 }
  0xb1   : > { %v2589_v57 = vsel %vm291_vm1, 0.0, %v295_v62  ;;  %v2592_v40 = vsel %vm291_vm1, %v295_v62, %v296_v63  ;;  %v299_v62 = vrot.slane %v2216_v4, 7  ;;  %v301_v63 = vrot.slane %v2234_v8, 7 }
  0xb2   : > { %661 = vrot.lane.b32.xlu2 %v2566_v48, %s2142_s21  ;;  %659 = vrot.lane.b32.xlu1 %v2569_v30, %s2142_s21  ;;  %4210 = vst [vmem:[#allocation51_spill] sm:$0xff] %v2589_v57  ;;  %v298_v48 = vrot.slane %v2198_v0, 7 }
  0xb3   : > { %4211 = vst [vmem:[#allocation52_spill] sm:$0xff] %v2592_v40 }
  0xb4   : > { %v2578_v31 = vpop.permute.xlu2 %547  ;;  %657 = vrot.lane.b32.xlu0 %v2572_v54, %s2142_s21  ;;  %v2582_v43 = vpop.permute.xlu1 %527  ;;  %v2805_v54 = vld [vmem:[%s2195_s19 + $0xf0] sm:$0xff] }
  0xb5   : > { %4207 = vst [vmem:[#allocation48_spill] sm:$0xff] %v2578_v31  ;;  %v2595_v31 = vsel %vm398_vm0, %v445_v32, 0.0 }
  0xb6   : > { %4208 = vst [vmem:[#allocation49_spill] sm:$0xff] %v2582_v43  ;;  %v2586_v41 = vpop.permute.xlu0 %525 }
  0xb7   : > { %4209 = vst [vmem:[#allocation50_spill] sm:$0xff] %v2586_v41 }
  0xb8   : > { %4212 = vst [vmem:[#allocation53_spill] sm:$0xff] %v2595_v31 }
  0xb9   : > { %4264 = vst [vmem:[#allocation105_spill] sm:$0xff] %v2805_v54 }
  0xba   : > { %713 = vrot.lane.b32.xlu1 %v2589_v57, %s2143_s22  ;;  %715 = vrot.lane.b32.xlu2 %v2592_v40, %s2143_s22  ;;  %v2613_v57 = vsel %vm291_vm1, %v298_v48, %v299_v62  ;;  %v2616_v40 = vsel %vm291_vm1, 0.0, %v301_v63  ;;  %v304_v62 = vrot.slane %v2228_v6, 7 }
  0xbb   : > { %4216 = vst [vmem:[#allocation57_spill] sm:$0xff] %v2613_v57 }
  0xbc   : > { %v2601_v43 = vpop.permute.xlu2 %601  ;;  %663 = vrot.lane.b32.xlu0 %v2595_v31, %s2142_s21  ;;  %v2605_v41 = vpop.permute.xlu1 %533  ;;  %4217 = vst [vmem:[#allocation58_spill] sm:$0xff] %v2616_v40  ;;  %v305_v31 = vrot.slane %v2249_v11, 7 }
  0xbd   : > { %4213 = vst [vmem:[#allocation54_spill] sm:$0xff] %v2601_v43  ;;  %v2623_v43 = vsel %vm291_vm1, 0.0, %v298_v48 }
  0xbe   : > { %4214 = vst [vmem:[#allocation55_spill] sm:$0xff] %v2605_v41  ;;  %v2609_v32 = vpop.permute.xlu0 %531  ;;  %v2640_v48 = vsel %vm291_vm1, %v304_v62, %v305_v31  ;;  %v308_v31 = vrot.slane %v2243_v9, 7 }
  0xbf   : > { %4215 = vst [vmem:[#allocation56_spill] sm:$0xff] %v2609_v32 }
  0xc0   : > { %4218 = vst [vmem:[#allocation59_spill] sm:$0xff] %v2623_v43 }
  0xc1   : > { %4223 = vst [vmem:[#allocation64_spill] sm:$0xff] %v2640_v48 }
  0xc2   : > { %719 = vrot.lane.b32.xlu1 %v2613_v57, %s2143_s22  ;;  %721 = vrot.lane.b32.xlu2 %v2616_v40, %s2143_s22  ;;  %v302_v57 = vrot.slane %v2231_v7, 7  ;;  %v2637_v40 = vsel %vm291_vm1, 0.0, %v304_v62  ;;  %v310_v62 = vrot.slane %v2264_v14, 7 }
  0xc3   : > { %4222 = vst [vmem:[#allocation63_spill] sm:$0xff] %v2637_v40 }
  0xc4   : > { %717 = vrot.lane.b32.xlu0 %v2623_v43, %s2143_s22  ;;  %v2627_v41 = vpop.permute.xlu2 %607  ;;  %v2629_v32 = vpop.permute.xlu1 %539  ;;  %v307_v43 = vrot.slane %v2246_v10, 7 }
  0xc5   : > { %4219 = vst [vmem:[#allocation60_spill] sm:$0xff] %v2627_v41 }
  0xc6   : > { %4220 = vst [vmem:[#allocation61_spill] sm:$0xff] %v2629_v32  ;;  %v2633_v30 = vpop.permute.xlu0 %537  ;;  %v2647_v32 = vsel %vm291_vm1, %v301_v63, %v302_v57  ;;  %v2664_v57 = vsel %vm291_vm1, 0.0, %v310_v62  ;;  %v2671_v63 = vsel %vm291_vm1, 0.0, %v307_v43 }
  0xc7   : > { %4221 = vst [vmem:[#allocation62_spill] sm:$0xff] %v2633_v30 }
  0xc8   : > { %4224 = vst [vmem:[#allocation65_spill] sm:$0xff] %v2647_v32 }
  0xc9   : > { %4229 = vst [vmem:[#allocation70_spill] sm:$0xff] %v2664_v57 }
  0xca   : > { %725 = vrot.lane.b32.xlu1 %v2637_v40, %s2143_s22  ;;  %727 = vrot.lane.b32.xlu2 %v2640_v48, %s2143_s22  ;;  %v2661_v48 = vsel %vm291_vm1, %v307_v43, %v308_v31  ;;  %4230 = vst [vmem:[#allocation71_spill] sm:$0xff] %v2671_v63  ;;  %v313_v31 = vrot.slane %v2258_v12, 7 }
  0xcb   : > { %4228 = vst [vmem:[#allocation69_spill] sm:$0xff] %v2661_v48 }
  0xcc   : > { %723 = vrot.lane.b32.xlu0 %v2647_v32, %s2143_s22  ;;  %v2651_v30 = vpop.permute.xlu2 %613  ;;  %v2653_v41 = vpop.permute.xlu1 %545 }
  0xcd   : > { %4225 = vst [vmem:[#allocation66_spill] sm:$0xff] %v2651_v30 }
  0xce   : > { %4226 = vst [vmem:[#allocation67_spill] sm:$0xff] %v2653_v41  ;;  %v2658_v40 = vpop.permute.xlu0 %543 }
  0xcf   : > { %4227 = vst [vmem:[#allocation68_spill] sm:$0xff] %v2658_v40  ;;  %v314_v40 = vrot.slane %v2279_v17, 7 }
  0xd1   : > { %v2688_v43 = vsel %vm291_vm1, %v313_v31, %v314_v40  ;;  %v317_v40 = vrot.slane %v2273_v15, 7 }
  0xd2   : > { %731 = vrot.lane.b32.xlu1 %v2661_v48, %s2143_s22  ;;  %733 = vrot.lane.b32.xlu2 %v2664_v57, %s2143_s22  ;;  %v311_v48 = vrot.slane %v2261_v13, 7  ;;  %v2685_v57 = vsel %vm291_vm1, 0.0, %v313_v31  ;;  %4235 = vst [vmem:[#allocation76_spill] sm:$0xff] %v2688_v43  ;;  %v319_v31 = vrot.slane %v2294_v20, 7 }
  0xd3   : > { %4234 = vst [vmem:[#allocation75_spill] sm:$0xff] %v2685_v57 }
  0xd4   : > { %729 = vrot.lane.b32.xlu0 %v2671_v63, %s2143_s22  ;;  %v2675_v30 = vpop.permute.xlu2 %619  ;;  %v2677_v41 = vpop.permute.xlu1 %551  ;;  %v316_v63 = vrot.slane %v2276_v16, 7 }
  0xd5   : > { %4231 = vst [vmem:[#allocation72_spill] sm:$0xff] %v2675_v30  ;;  %v2695_v30 = vsel %vm291_vm1, %v310_v62, %v311_v48  ;;  %v2712_v48 = vsel %vm291_vm1, 0.0, %v319_v31 }
  0xd6   : > { %4232 = vst [vmem:[#allocation73_spill] sm:$0xff] %v2677_v41  ;;  %v2681_v32 = vpop.permute.xlu0 %549  ;;  %v2719_v62 = vsel %vm291_vm1, 0.0, %v316_v63 }
  0xd7   : > { %4233 = vst [vmem:[#allocation74_spill] sm:$0xff] %v2681_v32 }
  0xd8   : > { %4236 = vst [vmem:[#allocation77_spill] sm:$0xff] %v2695_v30 }
  0xd9   : > { %4241 = vst [vmem:[#allocation82_spill] sm:$0xff] %v2712_v48 }
  0xda   : > { %737 = vrot.lane.b32.xlu1 %v2685_v57, %s2143_s22  ;;  %739 = vrot.lane.b32.xlu2 %v2688_v43, %s2143_s22  ;;  %v2709_v43 = vsel %vm291_vm1, %v316_v63, %v317_v40  ;;  %4242 = vst [vmem:[#allocation83_spill] sm:$0xff] %v2719_v62  ;;  %v322_v40 = vrot.slane %v2288_v18, 7 }
  0xdb   : > { %4240 = vst [vmem:[#allocation81_spill] sm:$0xff] %v2709_v43 }
  0xdc   : > { %735 = vrot.lane.b32.xlu0 %v2695_v30, %s2143_s22  ;;  %v2699_v41 = vpop.permute.xlu2 %625  ;;  %v2701_v32 = vpop.permute.xlu1 %605 }
  0xdd   : > { %4237 = vst [vmem:[#allocation78_spill] sm:$0xff] %v2699_v41 }
  0xde   : > { %4238 = vst [vmem:[#allocation79_spill] sm:$0xff] %v2701_v32  ;;  %v2706_v57 = vpop.permute.xlu0 %603  ;;  %v323_v32 = vrot.slane %v2309_v23, 7 }
  0xdf   : > { %4239 = vst [vmem:[#allocation80_spill] sm:$0xff] %v2706_v57 }
  0xe0   : > { %v2736_v63 = vsel %vm291_vm1, %v322_v40, %v323_v32  ;;  %v326_v32 = vrot.slane %v2303_v21, 7 }
  0xe1   : > { %4247 = vst [vmem:[#allocation88_spill] sm:$0xff] %v2736_v63 }
  0xe2   : > { %743 = vrot.lane.b32.xlu1 %v2709_v43, %s2143_s22  ;;  %745 = vrot.lane.b32.xlu2 %v2712_v48, %s2143_s22  ;;  %v320_v43 = vrot.slane %v2291_v19, 7  ;;  %v2733_v48 = vsel %vm291_vm1, 0.0, %v322_v40  ;;  %v328_v40 = vrot.slane %v2324_v26, 7 }
  0xe3   : > { %4246 = vst [vmem:[#allocation87_spill] sm:$0xff] %v2733_v48 }
  0xe4   : > { %741 = vrot.lane.b32.xlu0 %v2719_v62, %s2143_s22  ;;  %v2723_v41 = vpop.permute.xlu2 %631  ;;  %v2725_v57 = vpop.permute.xlu1 %611  ;;  %v325_v62 = vrot.slane %v2306_v22, 7 }
  0xe5   : > { %4243 = vst [vmem:[#allocation84_spill] sm:$0xff] %v2723_v41 }
  0xe6   : > { %4244 = vst [vmem:[#allocation85_spill] sm:$0xff] %v2725_v57  ;;  %v2729_v30 = vpop.permute.xlu0 %609  ;;  %v2743_v57 = vsel %vm291_vm1, %v319_v31, %v320_v43  ;;  %v2760_v43 = vsel %vm291_vm1, 0.0, %v328_v40  ;;  %v2767_v31 = vsel %vm291_vm1, 0.0, %v325_v62 }
  0xe7   : > { %4245 = vst [vmem:[#allocation86_spill] sm:$0xff] %v2729_v30 }
  0xe8   : > { %4248 = vst [vmem:[#allocation89_spill] sm:$0xff] %v2743_v57 }
  0xe9   : > { %4253 = vst [vmem:[#allocation94_spill] sm:$0xff] %v2760_v43 }
  0xea   : > { %749 = vrot.lane.b32.xlu1 %v2733_v48, %s2143_s22  ;;  %751 = vrot.lane.b32.xlu2 %v2736_v63, %s2143_s22  ;;  %v2757_v63 = vsel %vm291_vm1, %v325_v62, %v326_v32  ;;  %4254 = vst [vmem:[#allocation95_spill] sm:$0xff] %v2767_v31  ;;  %v331_v32 = vrot.slane %v2318_v24, 7 }
  0xeb   : > { %4252 = vst [vmem:[#allocation93_spill] sm:$0xff] %v2757_v63 }
  0xec   : > { %747 = vrot.lane.b32.xlu0 %v2743_v57, %s2143_s22  ;;  %v2747_v30 = vpop.permute.xlu2 %637  ;;  %v2749_v41 = vpop.permute.xlu1 %617  ;;  %v2781_v62 = vsel %vm291_vm1, 0.0, %v331_v32 }
  0xed   : > { %4249 = vst [vmem:[#allocation90_spill] sm:$0xff] %v2747_v30  ;;  %v332_v30 = vrot.slane %v2339_v29, 7 }
  0xee   : > { %4250 = vst [vmem:[#allocation91_spill] sm:$0xff] %v2749_v41  ;;  %v2754_v48 = vpop.permute.xlu0 %615 }
  0xef   : > { %4251 = vst [vmem:[#allocation92_spill] sm:$0xff] %v2754_v48  ;;  %v2784_v57 = vsel %vm291_vm1, %v331_v32, %v332_v30  ;;  %v335_v30 = vrot.slane %v2333_v27, 7  ;;  %v337_v32 = vrot.slane %v2354_v34, 7 }
  0xf0   : > { %4258 = vst [vmem:[#allocation99_spill] sm:$0xff] %v2781_v62 }
  0xf1   : > { %4259 = vst [vmem:[#allocation100_spill] sm:$0xff] %v2784_v57 }
  0xf2   : > { %755 = vrot.lane.b32.xlu1 %v2757_v63, %s2143_s22  ;;  %757 = vrot.lane.b32.xlu2 %v2760_v43, %s2143_s22  ;;  %v329_v43 = vrot.slane %v2321_v25, 7 }
  0xf4   : > { %753 = vrot.lane.b32.xlu0 %v2767_v31, %s2143_s22  ;;  %v2771_v41 = vpop.permute.xlu2 %643  ;;  %v2773_v48 = vpop.permute.xlu1 %623 }
  0xf5   : > { %4255 = vst [vmem:[#allocation96_spill] sm:$0xff] %v2771_v41  ;;  %v334_v41 = vrot.slane %v2336_v28, 7 }
  0xf6   : > { %4256 = vst [vmem:[#allocation97_spill] sm:$0xff] %v2773_v48  ;;  %v2777_v63 = vpop.permute.xlu0 %621  ;;  %v2791_v48 = vsel %vm291_vm1, %v328_v40, %v329_v43  ;;  %v2814_v43 = vsel %vm291_vm1, 0.0, %v337_v32 }
  0xf7   : > { %4257 = vst [vmem:[#allocation98_spill] sm:$0xff] %v2777_v63  ;;  %v2811_v40 = vsel %vm291_vm1, %v334_v41, %v335_v30 }
  0xf8   : > { %4260 = vst [vmem:[#allocation101_spill] sm:$0xff] %v2791_v48 }
  0xf9   : > { %4266 = vst [vmem:[#allocation107_spill] sm:$0xff] %v2811_v40 }
  0xfa   : > { %761 = vrot.lane.b32.xlu1 %v2781_v62, %s2143_s22  ;;  %763 = vrot.lane.b32.xlu2 %v2784_v57, %s2143_s22  ;;  %v2808_v57 = vld [vmem:[%s2195_s19 + $0xf8] sm:$0xff]  ;;  %4267 = vst [vmem:[#allocation108_spill] sm:$0xff] %v2814_v43 }
  0xfb   : > { %4265 = vst [vmem:[#allocation106_spill] sm:$0xff] %v2808_v57 }
  0xfc   : > { %759 = vrot.lane.b32.xlu0 %v2791_v48, %s2143_s22  ;;  %v2795_v63 = vpop.permute.xlu2 %649  ;;  %v2797_v31 = vpop.permute.xlu1 %629  ;;  %v2821_v48 = vsel %vm291_vm1, 0.0, %v334_v41 }
  0xfd   : > { %4261 = vst [vmem:[#allocation102_spill] sm:$0xff] %v2795_v63 }
  0xfe   : > { %4262 = vst [vmem:[#allocation103_spill] sm:$0xff] %v2797_v31  ;;  %v2802_v62 = vpop.permute.xlu0 %627  ;;  %v341_v31 = vrot.slane %v2808_v57, 7 }
  0xff   : > { %4263 = vst [vmem:[#allocation104_spill] sm:$0xff] %v2802_v62  ;;  %v340_v62 = vrot.slane %v2805_v54, 7 }
 0x100   : > { %4268 = vst [vmem:[#allocation109_spill] sm:$0xff] %v2821_v48 }
 0x101   : > { %v2838_v41 = vsel %vm291_vm1, %v340_v62, %v341_v31 }
 0x102   : > { %767 = vrot.lane.b32.xlu1 %v2811_v40, %s2143_s22  ;;  %769 = vrot.lane.b32.xlu2 %v2814_v43, %s2143_s22  ;;  %v338_v40 = vrot.slane %v2351_v33, 7  ;;  %v2835_v43 = vsel %vm291_vm1, 0.0, %v340_v62  ;;  %4273 = vst [vmem:[#allocation114_spill] sm:$0xff] %v2838_v41 }
 0x103   : > { %4272 = vst [vmem:[#allocation113_spill] sm:$0xff] %v2835_v43 }
 0x104   : > { %765 = vrot.lane.b32.xlu0 %v2821_v48, %s2143_s22  ;;  %v2827_v30 = vpop.permute.xlu2 %655  ;;  %v2829_v63 = vpop.permute.xlu1 %635 }
 0x105   : > { %4269 = vst [vmem:[#allocation110_spill] sm:$0xff] %v2827_v30  ;;  %v2845_v30 = vsel %vm291_vm1, %v337_v32, %v338_v40 }
 0x106   : > { %4270 = vst [vmem:[#allocation111_spill] sm:$0xff] %v2829_v63  ;;  %v2831_v44 = vpop.permute.xlu0 %633 }
 0x107   : > { %4271 = vst [vmem:[#allocation112_spill] sm:$0xff] %v2831_v44 }
 0x108   : > { %4274 = vst [vmem:[#allocation115_spill] sm:$0xff] %v2845_v30 }
 0x10a   : > { %773 = vrot.lane.b32.xlu1 %v2835_v43, %s2143_s22  ;;  %775 = vrot.lane.b32.xlu2 %v2838_v41, %s2143_s22 }
 0x10c   : > { %771 = vrot.lane.b32.xlu0 %v2845_v30, %s2143_s22  ;;  %v2849_v44 = vpop.permute.xlu2 %661  ;;  %v2851_v63 = vpop.permute.xlu1 %641 }
 0x10e   : > { %v2853_v48 = vpop.permute.xlu0 %639 }
 0x112   : > { %811 = vrot.lane.b32.xlu1 %v2213_v3, %s2144_s23  ;;  %813 = vrot.lane.b32.xlu2 %v2198_v0, %s2144_s23 }
 0x114   : > { %809 = vrot.lane.b32.xlu0 %v2201_v1, %s2144_s23  ;;  %v2861_v31 = vpop.permute.xlu1 %647  ;;  %v2863_v62 = vpop.permute.xlu2 %715 }
 0x116   : > { %v2865_v32 = vpop.permute.xlu0 %645 }
 0x11a   : > { %817 = vrot.lane.b32.xlu1 %v2234_v8, %s2144_s23  ;;  %819 = vrot.lane.b32.xlu2 %v2231_v7, %s2144_s23 }
 0x11c   : > { %815 = vrot.lane.b32.xlu0 %v2216_v4, %s2144_s23  ;;  %v2873_v3 = vpop.permute.xlu1 %653  ;;  %v2875_v0 = vpop.permute.xlu2 %721 }
 0x11d   : > { %4275 = vst [vmem:[#allocation116_spill] sm:$0xff] %v2875_v0  ;;  %v4352_v0 = vld [vmem:[#allocation90_spill] sm:$0xff] }
 0x11e   : > { %v2877_v1 = vpop.permute.xlu0 %651 }
 0x11f   : > { %4276 = vst [vmem:[#allocation117_spill] sm:$0xff] %v2877_v1  ;;  %v4340_v1 = vld [vmem:[#allocation83_spill] sm:$0xff] }
 0x122   : > { %823 = vrot.lane.b32.xlu1 %v2249_v11, %s2144_s23  ;;  %825 = vrot.lane.b32.xlu2 %v2246_v10, %s2144_s23 }
 0x124   : > { %821 = vrot.lane.b32.xlu0 %v2228_v6, %s2144_s23  ;;  %v2885_v8 = vpop.permute.xlu1 %659  ;;  %v2887_v7 = vpop.permute.xlu2 %727 }
 0x125   : > { %4277 = vst [vmem:[#allocation118_spill] sm:$0xff] %v2885_v8 }
 0x126   : > { %4278 = vst [vmem:[#allocation119_spill] sm:$0xff] %v2887_v7  ;;  %v2889_v4 = vpop.permute.xlu0 %657 }
 0x127   : > { %4279 = vst [vmem:[#allocation120_spill] sm:$0xff] %v2889_v4 }
 0x12a   : > { %829 = vrot.lane.b32.xlu1 %v2264_v14, %s2144_s23  ;;  %831 = vrot.lane.b32.xlu2 %v2261_v13, %s2144_s23 }
 0x12c   : > { %827 = vrot.lane.b32.xlu0 %v2243_v9, %s2144_s23  ;;  %v2897_v11 = vpop.permute.xlu1 %713  ;;  %v2899_v10 = vpop.permute.xlu2 %733 }
 0x12d   : > { %4280 = vst [vmem:[#allocation121_spill] sm:$0xff] %v2897_v11  ;;  %v4312_v11 = vld [vmem:[#allocation53_spill] sm:$0xff] }
 0x12e   : > { %4281 = vst [vmem:[#allocation122_spill] sm:$0xff] %v2899_v10  ;;  %v2901_v6 = vpop.permute.xlu0 %663 }
 0x12f   : > { %4282 = vst [vmem:[#allocation123_spill] sm:$0xff] %v2901_v6 }
 0x132   : > { %835 = vrot.lane.b32.xlu1 %v2279_v17, %s2144_s23  ;;  %837 = vrot.lane.b32.xlu2 %v2276_v16, %s2144_s23 }
 0x134   : > { %833 = vrot.lane.b32.xlu0 %v2258_v12, %s2144_s23  ;;  %v2909_v40 = vpop.permute.xlu1 %719  ;;  %v2911_v13 = vpop.permute.xlu2 %739 }
 0x136   : > { %v2913_v9 = vpop.permute.xlu0 %717 }
 0x13a   : > { %841 = vrot.lane.b32.xlu1 %v2294_v20, %s2144_s23  ;;  %843 = vrot.lane.b32.xlu2 %v2291_v19, %s2144_s23 }
 0x13c   : > { %839 = vrot.lane.b32.xlu0 %v2273_v15, %s2144_s23  ;;  %v2921_v17 = vpop.permute.xlu1 %725  ;;  %v2923_v16 = vpop.permute.xlu2 %745 }
 0x13d   : > { %4283 = vst [vmem:[#allocation124_spill] sm:$0xff] %v2921_v17  ;;  %v4303_v17 = vld [vmem:[#allocation41_spill] sm:$0xff] }
 0x13e   : > { %v2925_v12 = vpop.permute.xlu0 %723 }
 0x13f   : > { %4284 = vst [vmem:[#allocation125_spill] sm:$0xff] %v2925_v12 }
 0x142   : > { %847 = vrot.lane.b32.xlu1 %v2309_v23, %s2144_s23  ;;  %849 = vrot.lane.b32.xlu2 %v2306_v22, %s2144_s23 }
 0x144   : > { %845 = vrot.lane.b32.xlu0 %v2288_v18, %s2144_s23  ;;  %v2933_v20 = vpop.permute.xlu1 %731  ;;  %v2935_v19 = vpop.permute.xlu2 %751 }
 0x145   : > { %4285 = vst [vmem:[#allocation126_spill] sm:$0xff] %v2933_v20 }
 0x146   : > { %v2937_v15 = vpop.permute.xlu0 %729 }
 0x147   : > { %4286 = vst [vmem:[#allocation127_spill] sm:$0xff] %v2937_v15 }
 0x14a   : > { %853 = vrot.lane.b32.xlu1 %v2324_v26, %s2144_s23  ;;  %855 = vrot.lane.b32.xlu2 %v2321_v25, %s2144_s23 }
 0x14c   : > { %851 = vrot.lane.b32.xlu0 %v2303_v21, %s2144_s23  ;;  %v2945_v23 = vpop.permute.xlu1 %737  ;;  %v2947_v22 = vpop.permute.xlu2 %757 }
 0x14d   : > { %4287 = vst [vmem:[#allocation128_spill] sm:$0xff] %v2945_v23 }
 0x14e   : > { %v2949_v41 = vpop.permute.xlu0 %735 }
 0x14f   : > { %4288 = vst [vmem:[#allocation129_spill] sm:$0xff] %v2949_v41 }
 0x152   : > { %859 = vrot.lane.b32.xlu1 %v2339_v29, %s2144_s23  ;;  %861 = vrot.lane.b32.xlu2 %v2336_v28, %s2144_s23 }
 0x154   : > { %857 = vrot.lane.b32.xlu0 %v2318_v24, %s2144_s23  ;;  %v2957_v26 = vpop.permute.xlu1 %743  ;;  %v2959_v25 = vpop.permute.xlu2 %763 }
 0x155   : > { %4289 = vst [vmem:[#allocation130_spill] sm:$0xff] %v2959_v25  ;;  %v4339_v25 = vld [vmem:[#allocation79_spill] sm:$0xff] }
 0x156   : > { %v2961_v21 = vpop.permute.xlu0 %741 }
 0x15a   : > { %865 = vrot.lane.b32.xlu1 %v2354_v34, %s2144_s23  ;;  %867 = vrot.lane.b32.xlu2 %v2351_v33, %s2144_s23 }
 0x15c   : > { %863 = vrot.lane.b32.xlu0 %v2333_v27, %s2144_s23  ;;  %v2969_v29 = vpop.permute.xlu1 %749  ;;  %v2971_v20 = vpop.permute.xlu2 %769 }
 0x15d   : > { %4290 = vst [vmem:[#allocation131_spill] sm:$0xff] %v2971_v20 }
 0x15e   : > { %v2973_v24 = vpop.permute.xlu0 %747 }
 0x162   : > { %871 = vrot.lane.b32.xlu1 %v2808_v57, %s2144_s23  ;;  %906 = vrot.lane.b32.xlu2 %v2367_v38, %s2145_s24 }
 0x164   : > { %869 = vrot.lane.b32.xlu0 %v2805_v54, %s2144_s23  ;;  %v2981_v33 = vpop.permute.xlu1 %755  ;;  %v2983_v34 = vpop.permute.xlu2 %775 }
 0x165   : > { %4291 = vst [vmem:[#allocation132_spill] sm:$0xff] %v2983_v34 }
 0x166   : > { %v2985_v27 = vpop.permute.xlu0 %753 }
 0x16a   : > { %910 = vrot.lane.b32.xlu1 %v2388_v47, %s2145_s24  ;;  %912 = vrot.lane.b32.xlu2 %v2385_v46, %s2145_s24  ;;  %v4346_v46 = vld [vmem:[#allocation84_spill] sm:$0xff] }
 0x16c   : > { %908 = vrot.lane.b32.xlu0 %v2364_v37, %s2145_s24  ;;  %v2993_v15 = vpop.permute.xlu1 %761  ;;  %v2995_v38 = vpop.permute.xlu2 %813 }
 0x16e   : > { %v2997_v41 = vpop.permute.xlu0 %759 }
 0x172   : > { %916 = vrot.lane.b32.xlu1 %v2407_v53, %s2145_s24  ;;  %918 = vrot.lane.b32.xlu2 %v2404_v52, %s2145_s24 }
 0x174   : > { %914 = vrot.lane.b32.xlu0 %v2382_v45, %s2145_s24  ;;  %v3005_v43 = vpop.permute.xlu1 %767  ;;  %v3007_v23 = vpop.permute.xlu2 %819  ;;  %v4305_v45 = vld [vmem:[#allocation33_spill] sm:$0xff] }
 0x175   : > { %4292 = vst [vmem:[#allocation133_spill] sm:$0xff] %v3007_v23 }
 0x176   : > { %v3009_v37 = vpop.permute.xlu0 %765 }
 0x177   : > { %4293 = vst [vmem:[#allocation134_spill] sm:$0xff] %v3009_v37 }
 0x17a   : > { %922 = vrot.lane.b32.xlu1 %v2428_v61, %s2145_s24  ;;  %924 = vrot.lane.b32.xlu2 %v2425_v60, %s2145_s24 }
 0x17c   : > { %920 = vrot.lane.b32.xlu0 %v2401_v51, %s2145_s24  ;;  %v3017_v53 = vpop.permute.xlu1 %773  ;;  %v3019_v52 = vpop.permute.xlu2 %825 }
 0x17d   : > { %4294 = vst [vmem:[#allocation135_spill] sm:$0xff] %v3019_v52 }
 0x17e   : > { %v3021_v12 = vpop.permute.xlu0 %771 }
 0x17f   : > { %4295 = vst [vmem:[#allocation136_spill] sm:$0xff] %v3021_v12 }
 0x182   : > { %928 = vrot.lane.b32.xlu1 %v2451_v39, %s2145_s24  ;;  %930 = vrot.lane.b32.xlu2 %v2448_v36, %s2145_s24 }
 0x184   : > { %926 = vrot.lane.b32.xlu0 %v2422_v59, %s2145_s24  ;;  %v3029_v61 = vpop.permute.xlu1 %811  ;;  %v3031_v60 = vpop.permute.xlu2 %831 }
 0x185   : > { %4296 = vst [vmem:[#allocation137_spill] sm:$0xff] %v3031_v60 }
 0x186   : > { %v3033_v51 = vpop.permute.xlu0 %809 }
 0x187   : > { %4297 = vst [vmem:[#allocation138_spill] sm:$0xff] %v3033_v51  ;;  %v448_v51 = vrot.slane %v2808_v57, 1 }
 0x189   : > { %v3109_v4 = vsel %vm398_vm0, %v448_v51, 0.0 }
 0x18a   : > { %934 = vrot.lane.b32.xlu1 %v2476_v58, %s2145_s24  ;;  %936 = vrot.lane.b32.xlu2 %v2473_v56, %s2145_s24  ;;  %4315 = vst [vmem:[#allocation146_spill] sm:$0xff] %v3109_v4 }
 0x18c   : > { %932 = vrot.lane.b32.xlu0 %v2445_v35, %s2145_s24  ;;  %v3041_v52 = vpop.permute.xlu1 %817  ;;  %v3043_v23 = vpop.permute.xlu2 %837 }
 0x18d   : > { %4298 = vst [vmem:[#allocation139_spill] sm:$0xff] %v3041_v52  ;;  %v4341_v52 = vld [vmem:[#allocation81_spill] sm:$0xff] }
 0x18e   : > { %v816_v36 = vpop.permute.xlu0 %815 }
 0x192   : > { %940 = vrot.lane.b32.xlu1 %v2499_v50, %s2145_s24  ;;  %942 = vrot.lane.b32.xlu2 %v2496_v49, %s2145_s24 }
 0x194   : > { %938 = vrot.lane.b32.xlu0 %v2470_v55, %s2145_s24  ;;  %v3051_v58 = vpop.permute.xlu1 %823  ;;  %v3053_v56 = vpop.permute.xlu2 %843 }
 0x195   : > { %4299 = vst [vmem:[#allocation140_spill] sm:$0xff] %v3051_v58  ;;  %v4319_v58 = vld [vmem:[#allocation21_spill] sm:$0xff] }
 0x196   : > { %v3055_v60 = vpop.permute.xlu0 %821 }
 0x197   : > { %4300 = vst [vmem:[#allocation141_spill] sm:$0xff] %v3055_v60  ;;  %v4304_v60 = vld [vmem:[#allocation40_spill] sm:$0xff] }
 0x19a   : > { %946 = vrot.lane.b32.xlu1 %v2524_v5, %s2145_s24  ;;  %948 = vrot.lane.b32.xlu2 %v2521_v2, %s2145_s24  ;;  %v4321_v5 = vld [vmem:[#allocation60_spill] sm:$0xff] }
 0x19c   : > { %944 = vrot.lane.b32.xlu0 %v2493_v42, %s2145_s24  ;;  %v3063_v50 = vpop.permute.xlu1 %829  ;;  %v3065_v35 = vpop.permute.xlu2 %849 }
 0x19d   : > { %4301 = vst [vmem:[#allocation142_spill] sm:$0xff] %v3063_v50  ;;  %v4307_v50 = vld [vmem:[#allocation47_spill] sm:$0xff] }
 0x19e   : > { %v3067_v55 = vpop.permute.xlu0 %827 }
 0x19f   : > { %4302 = vst [vmem:[#allocation143_spill] sm:$0xff] %v3067_v55  ;;  %v4308_v55 = vld [vmem:[#allocation46_spill] sm:$0xff] }
 0x1a2   : > { %952 = vrot.lane.b32.xlu1 %v4303_v17, %s2145_s24  ;;  %954 = vrot.lane.b32.xlu2 %v4304_v60, %s2145_s24  ;;  %v447_v17 = vrot.slane %v2805_v54, 1  ;;  %v4309_v60 = vld [vmem:[#allocation39_spill] sm:$0xff]  ;;  %v4313_v54 = vld [vmem:[#allocation45_spill] sm:$0xff] }
 0x1a4   : > { %950 = vrot.lane.b32.xlu0 %v4305_v45, %s2145_s24  ;;  %v3075_v34 = vpop.permute.xlu1 %835  ;;  %v3077_v2 = vpop.permute.xlu2 %855 }
 0x1a6   : > { %v3079_v6 = vpop.permute.xlu0 %833 }
 0x1a7   : > { %4306 = vst [vmem:[#allocation144_spill] sm:$0xff] %v3079_v6  ;;  %v3094_v6 = vsel %vm398_vm0, %v447_v17, %v448_v51  ;;  %v4316_v17 = vld [vmem:[#allocation59_spill] sm:$0xff]  ;;  %v4320_v51 = vld [vmem:[#allocation52_spill] sm:$0xff] }
 0x1a8   : > { %4311 = vst [vmem:[#allocation46_spill] sm:$0xff] %v3094_v6  ;;  %v1296_v12 = vsel %vm1292_vm2, %v4320_v51, %v4319_v58  ;;  %v4324_v58 = vld [vmem:[#allocation58_spill] sm:$0xff] }
 0x1a9   : > { %v1329_v7 = vsel %vm1325_vm3, %v1296_v12, %v4321_v5 }
 0x1aa   : > { %958 = vrot.lane.b32.xlu1 %v4307_v50, %s2145_s24  ;;  %960 = vrot.lane.b32.xlu2 %v4308_v55, %s2145_s24 }
 0x1ac   : > { %956 = vrot.lane.b32.xlu0 %v4309_v60, %s2145_s24  ;;  %v3089_v45 = vpop.permute.xlu1 %841  ;;  %v3091_v30 = vpop.permute.xlu2 %861 }
 0x1ad   : > { %4310 = vst [vmem:[#allocation47_spill] sm:$0xff] %v3091_v30 }
 0x1ae   : > { %v840_v10 = vpop.permute.xlu0 %839 }
 0x1b2   : > { %964 = vrot.lane.b32.xlu1 %v4312_v11, %s2145_s24  ;;  %966 = vrot.lane.b32.xlu2 %v3094_v6, %s2145_s24  ;;  %v4317_v11 = vld [vmem:[#allocation57_spill] sm:$0xff] }
 0x1b4   : > { %962 = vrot.lane.b32.xlu0 %v4313_v54, %s2145_s24  ;;  %v3102_v57 = vpop.permute.xlu1 %847  ;;  %v3104_v60 = vpop.permute.xlu2 %867 }
 0x1b5   : > { %4314 = vst [vmem:[#allocation145_spill] sm:$0xff] %v3104_v60 }
 0x1b6   : > { %v3106_v20 = vpop.permute.xlu0 %845 }
 0x1ba   : > { %1003 = vrot.lane.b32.xlu1 %v4316_v17, %s2146_s25  ;;  %1005 = vrot.lane.b32.xlu2 %v4317_v11, %s2146_s25  ;;  %v4322_v11 = vld [vmem:[#allocation65_spill] sm:$0xff] }
 0x1bc   : > { %968 = vrot.lane.b32.xlu0 %v3109_v4, %s2145_s24  ;;  %v3117_v6 = vpop.permute.xlu1 %853  ;;  %v3119_v54 = vpop.permute.xlu2 %906  ;;  %v4323_v4 = vld [vmem:[#allocation63_spill] sm:$0xff] }
 0x1bd   : > { %4318 = vst [vmem:[#allocation59_spill] sm:$0xff] %v3119_v54  ;;  %v1362_v54 = vsel %vm1358_vm4, %v1329_v7, %v2909_v40  ;;  %v4328_v7 = vld [vmem:[#allocation69_spill] sm:$0xff] }
 0x1be   : > { %v3121_v60 = vpop.permute.xlu0 %851  ;;  %v1395_v8 = vsel %vm1391_vm5, %v1362_v54, %v816_v36  ;;  %v4329_v36 = vld [vmem:[#allocation64_spill] sm:$0xff] }
 0x1c2   : > { %1009 = vrot.lane.b32.xlu1 %v4322_v11, %s2146_s25  ;;  %1011 = vrot.lane.b32.xlu2 %v4323_v4, %s2146_s25  ;;  %v4327_v4 = vld [vmem:[#allocation71_spill] sm:$0xff] }
 0x1c4   : > { %1007 = vrot.lane.b32.xlu0 %v4324_v58, %s2146_s25  ;;  %v3137_v51 = vpop.permute.xlu1 %859  ;;  %v913_v5 = vpop.permute.xlu2 %912 }
 0x1c5   : > { %4325 = vst [vmem:[#allocation21_spill] sm:$0xff] %v3137_v51  ;;  %v3140_v12 = vsel %vm1424_vm6, %v1395_v8, %v913_v5  ;;  %v4332_v8 = vld [vmem:[#allocation77_spill] sm:$0xff]  ;;  %v4333_v5 = vld [vmem:[#allocation75_spill] sm:$0xff] }
 0x1c6   : > { %4326 = vst [vmem:[#allocation52_spill] sm:$0xff] %v3140_v12  ;;  %v3142_v11 = vpop.permute.xlu0 %857  ;;  %v4334_v12 = vld [vmem:[#allocation70_spill] sm:$0xff]  ;;  %v4338_v51 = vld [vmem:[#allocation51_spill] sm:$0xff] }
 0x1ca   : > { %1015 = vrot.lane.b32.xlu1 %v4327_v4, %s2146_s25  ;;  %1017 = vrot.lane.b32.xlu2 %v4328_v7, %s2146_s25 }
 0x1cc   : > { %1013 = vrot.lane.b32.xlu0 %v4329_v36, %s2146_s25  ;;  %v3150_v54 = vpop.permute.xlu1 %865  ;;  %v3152_v40 = vpop.permute.xlu2 %918 }
 0x1cd   : > { %4330 = vst [vmem:[#allocation60_spill] sm:$0xff] %v3150_v54  ;;  %v4337_v54 = vld [vmem:[#allocation15_spill] sm:$0xff] }
 0x1ce   : > { %4331 = vst [vmem:[#allocation147_spill] sm:$0xff] %v3152_v40  ;;  %v3154_v58 = vpop.permute.xlu0 %863  ;;  %v1295_v40 = vsel %vm1292_vm2, %v4338_v51, %v4337_v54 }
 0x1cf   : > { %v1328_v30 = vsel %vm1325_vm3, %v1295_v40, %v4339_v25  ;;  %v4345_v40 = vld [vmem:[#allocation44_spill] sm:$0xff] }
 0x1d2   : > { %1021 = vrot.lane.b32.xlu1 %v4332_v8, %s2146_s25  ;;  %1023 = vrot.lane.b32.xlu2 %v4333_v5, %s2146_s25 }
 0x1d4   : > { %1019 = vrot.lane.b32.xlu0 %v4334_v12, %s2146_s25  ;;  %v3162_v4 = vpop.permute.xlu1 %871  ;;  %v3164_v7 = vpop.permute.xlu2 %924  ;;  %v1361_v12 = vsel %vm1358_vm4, %v1328_v30, %v2913_v9  ;;  %v4347_v9 = vld [vmem:[#allocation89_spill] sm:$0xff] }
 0x1d5   : > { %4335 = vst [vmem:[#allocation77_spill] sm:$0xff] %v3162_v4  ;;  %v4342_v4 = vld [vmem:[#allocation76_spill] sm:$0xff] }
 0x1d6   : > { %4336 = vst [vmem:[#allocation75_spill] sm:$0xff] %v3164_v7  ;;  %v3166_v36 = vpop.permute.xlu0 %869  ;;  %v1394_v7 = vsel %vm1391_vm5, %v1361_v12, %v2995_v38  ;;  %v1308_v39 = vsel %vm1292_vm2, %v4342_v4, %v4345_v40  ;;  %v4348_v38 = vld [vmem:[#allocation87_spill] sm:$0xff] }
 0x1d7   : > { %v1341_v30 = vsel %vm1325_vm3, %v1308_v39, %v4346_v46  ;;  %v4351_v39 = vld [vmem:[#allocation50_spill] sm:$0xff] }
 0x1d8   : > { %v1374_v12 = vsel %vm1358_vm4, %v1341_v30, %v2957_v26 }
 0x1da   : > { %1027 = vrot.lane.b32.xlu1 %v4340_v1, %s2146_s25  ;;  %1029 = vrot.lane.b32.xlu2 %v4341_v52, %s2146_s25 }
 0x1dc   : > { %1025 = vrot.lane.b32.xlu0 %v4342_v4, %s2146_s25  ;;  %v911_v37 = vpop.permute.xlu1 %910  ;;  %v3183_v51 = vpop.permute.xlu2 %930 }
 0x1dd   : > { %4343 = vst [vmem:[#allocation15_spill] sm:$0xff] %v3183_v51  ;;  %v3186_v25 = vsel %vm1424_vm6, %v1394_v7, %v911_v37  ;;  %v1407_v37 = vsel %vm1391_vm5, %v1374_v12, %v840_v10  ;;  %v4349_v7 = vld [vmem:[#allocation82_spill] sm:$0xff]  ;;  %v4353_v10 = vld [vmem:[#allocation109_spill] sm:$0xff] }
 0x1de   : > { %4344 = vst [vmem:[#allocation51_spill] sm:$0xff] %v3186_v25  ;;  %v3188_v54 = vpop.permute.xlu0 %908  ;;  %v1311_v25 = vsel %vm1292_vm2, %v4349_v7, %v4351_v39  ;;  %v4355_v39 = vld [vmem:[#allocation56_spill] sm:$0xff] }
 0x1df   : > { %v1344_v26 = vsel %vm1325_vm3, %v1311_v25, %v4352_v0 }
 0x1e0   : > { %v1377_v30 = vsel %vm1358_vm4, %v1344_v26, %v2969_v29 }
 0x1e1   : > { %v1410_v12 = vsel %vm1391_vm5, %v1377_v30, %v3106_v20 }
 0x1e2   : > { %1033 = vrot.lane.b32.xlu1 %v4347_v9, %s2146_s25  ;;  %1035 = vrot.lane.b32.xlu2 %v4348_v38, %s2146_s25 }
 0x1e4   : > { %1031 = vrot.lane.b32.xlu0 %v4349_v7, %s2146_s25  ;;  %v3204_v51 = vpop.permute.xlu1 %916  ;;  %v937_v4 = vpop.permute.xlu2 %936 }
 0x1e5   : > { %v3207_v40 = vsel %vm1424_vm6, %v1407_v37, %v937_v4  ;;  %v4354_v37 = vld [vmem:[#allocation88_spill] sm:$0xff] }
 0x1e6   : > { %4350 = vst [vmem:[#allocation79_spill] sm:$0xff] %v3207_v40  ;;  %v3209_v46 = vpop.permute.xlu0 %914  ;;  %v4356_v40 = vld [vmem:[#allocation96_spill] sm:$0xff] }
 0x1ea   : > { %1051 = vrot.lane.b32.xlu1 %v4353_v10, %s2146_s25  ;;  %1131 = vrot.lane.b32.xlu2 %v2288_v18, %s2147_s26  ;;  %v1314_v18 = vsel %vm1292_vm2, %v4354_v37, %v4355_v39  ;;  %v4360_v39 = vld [vmem:[#allocation102_spill] sm:$0xff] }
 0x1eb   : > { %v1347_v29 = vsel %vm1325_vm3, %v1314_v18, %v4356_v40  ;;  %v4361_v18 = vld [vmem:[#allocation103_spill] sm:$0xff] }
 0x1ec   : > { %1037 = vrot.lane.b32.xlu0 %v4354_v37, %s2146_s25  ;;  %v3226_v7 = vpop.permute.xlu1 %922  ;;  %v943_v4 = vpop.permute.xlu2 %942  ;;  %v1380_v20 = vsel %vm1358_vm4, %v1347_v29, %v2981_v33  ;;  %v4357_v37 = vld [vmem:[#allocation20_spill] sm:$0xff]  ;;  %v4358_v33 = vld [vmem:[#allocation62_spill] sm:$0xff] }
 0x1ed   : > { %v3229_v0 = vsel %vm1424_vm6, %v1410_v12, %v943_v4  ;;  %v1413_v26 = vsel %vm1391_vm5, %v1380_v20, %v3121_v60  ;;  %v4359_v4 = vld [vmem:[#allocation94_spill] sm:$0xff]  ;;  %v4362_v20 = vld [vmem:[#allocation107_spill] sm:$0xff] }
 0x1ee   : > { %v3231_v25 = vpop.permute.xlu0 %920  ;;  %v1317_v60 = vsel %vm1292_vm2, %v4359_v4, %v4358_v33  ;;  %v4364_v33 = vld [vmem:[#allocation104_spill] sm:$0xff] }
 0x1f2   : > { %1228 = vrot.lane.b32.xlu1 %v2496_v49, %s2148_s27  ;;  %1244 = vrot.lane.b32.xlu2 %v4307_v50, %s2148_s27  ;;  %v1307_v50 = vsel %vm1292_vm2, %v4333_v5, %v4357_v37 }
 0x1f3   : > { %v1340_v29 = vsel %vm1325_vm3, %v1307_v50, %v4361_v18 }
 0x1f4   : > { %1147 = vrot.lane.b32.xlu0 %v2336_v28, %s2147_s26  ;;  %v3248_v30 = vpop.permute.xlu1 %928  ;;  %v949_v40 = vpop.permute.xlu2 %948  ;;  %v1350_v28 = vsel %vm1325_vm3, %v1317_v60, %v4360_v39  ;;  %v2090_v39 = vld [vmem:[%s2195_s19 + $0x10] sm:$0xff] }
 0x1f5   : > { %v3251_v12 = vsel %vm1424_vm6, %v1413_v26, %v949_v40  ;;  %v4363_v26 = vld [vmem:[#allocation37_spill] sm:$0xff]  ;;  %v1373_v40 = vsel %vm1358_vm4, %v1340_v29, %v2961_v21  ;;  %v1383_v37 = vsel %vm1358_vm4, %v1350_v28, %v2993_v15 }
 0x1f6   : > { %v3253_v49 = vpop.permute.xlu0 %926  ;;  %v1306_v5 = vsel %vm1292_vm2, %v4332_v8, %v4363_v26  ;;  %v1406_v50 = vsel %vm1391_vm5, %v1373_v40, %v3043_v23  ;;  %v4365_v26 = vld [vmem:[#allocation26_spill] sm:$0xff]  ;;  %v4366_v40 = vld [vmem:[#allocation68_spill] sm:$0xff] }
 0x1f7   : > { %v1339_v60 = vsel %vm1325_vm3, %v1306_v5, %v4364_v33  ;;  %v1310_v5 = vsel %vm1292_vm2, %v4341_v52, %v4365_v26  ;;  %v4368_v33 = vld [vmem:[#allocation110_spill] sm:$0xff] }
 0x1f8   : > { %v1372_v21 = vsel %vm1358_vm4, %v1339_v60, %v2911_v13 }
 0x1f9   : > { %v1405_v23 = vsel %vm1391_vm5, %v1372_v21, %v3075_v34  ;;  %v2091_v34 = vld [vmem:[%s2195_s19 + $0x98] sm:$0xff]  ;;  %v4371_v21 = vld [vmem:[#allocation112_spill] sm:$0xff] }
 0x1fa   : > { %1115 = vrot.lane.b32.xlu1 %v2264_v14, %s2147_s26  ;;  %1053 = vrot.lane.b32.xlu2 %v4362_v20, %s2146_s25  ;;  %v1416_v14 = vsel %vm1391_vm5, %v1383_v37, %v3142_v11  ;;  %v4367_v37 = vld [vmem:[#allocation100_spill] sm:$0xff] }
 0x1fb   : > { %v1320_v13 = vsel %vm1292_vm2, %v4367_v37, %v4366_v40 }
 0x1fc   : > { %1099 = vrot.lane.b32.xlu0 %v2090_v39, %s2147_s26  ;;  %v935_v8 = vpop.permute.xlu1 %934  ;;  %v955_v18 = vpop.permute.xlu2 %954  ;;  %v1353_v60 = vsel %vm1325_vm3, %v1320_v13, %v4368_v33  ;;  %v4370_v39 = vld [vmem:[#allocation43_spill] sm:$0xff]  ;;  %v4373_v33 = vld [vmem:[#allocation30_spill] sm:$0xff] }
 0x1fd   : > { %v3287_v15 = vsel %vm1424_vm6, %v1406_v50, %v935_v8  ;;  %v3290_v28 = vsel %vm1424_vm6, %v1416_v14, %v955_v18  ;;  %v4369_v50 = vld [vmem:[#allocation111_spill] sm:$0xff]  ;;  %v1309_v52 = vsel %vm1292_vm2, %v4340_v1, %v4370_v39  ;;  %v1386_v18 = vsel %vm1358_vm4, %v1353_v60, %v3005_v43  ;;  %v4374_v60 = vld [vmem:[#allocation74_spill] sm:$0xff] }
 0x1fe   : > { %v933_v29 = vpop.permute.xlu0 %932  ;;  %v1343_v14 = vsel %vm1325_vm3, %v1310_v5, %v4369_v50  ;;  %v4375_v50 = vld [vmem:[#allocation108_spill] sm:$0xff]  ;;  %v4376_v39 = vld [vmem:[#allocation2_spill] sm:$0xff] }
 0x1ff   : > { %v3295_v11 = vsel %vm1424_vm6, %v1405_v23, %v933_v29  ;;  %v1376_v8 = vsel %vm1358_vm4, %v1343_v14, %v2973_v24  ;;  %v1342_v23 = vsel %vm1325_vm3, %v1309_v52, %v4371_v21  ;;  %v1323_v14 = vsel %vm1292_vm2, %v4375_v50, %v4374_v60  ;;  %v2092_v21 = vld [vmem:[%s2195_s19 + $0xd8] sm:$0xff]  ;;  %v4383_v60 = vld [vmem:[#allocation55_spill] sm:$0xff] }
 0x200   : > { %v1409_v29 = vsel %vm1391_vm5, %v1376_v8, %v3053_v56  ;;  %v1375_v24 = vsel %vm1358_vm4, %v1342_v23, %v2923_v16  ;;  %v1313_v16 = vsel %vm1292_vm2, %v4348_v38, %v4373_v33  ;;  %v292_v52 = vrot.slane %v4376_v39, 7  ;;  %v4377_v8 = vld [vmem:[#allocation49_spill] sm:$0xff]  ;;  %v4413_v39 = vld [vmem:[#allocation16_spill] sm:$0xff] }
 0x201   : > { %v1408_v56 = vsel %vm1391_vm5, %v1375_v24, %v3089_v45  ;;  %v1346_v45 = vsel %vm1325_vm3, %v1313_v16, %v2851_v63  ;;  %v1312_v38 = vsel %vm1292_vm2, %v4347_v9, %v4377_v8  ;;  %v4379_v24 = vld [vmem:[#allocation36_spill] sm:$0xff]  ;;  %v2093_v33 = vld [vmem:[%s2195_s19 + $0x58] sm:$0xff]  ;;  %v4382_v16 = vld [vmem:[#allocation95_spill] sm:$0xff] }
 0x202   : > { %1212 = vrot.lane.b32.xlu1 %v2422_v59, %s2148_s27  ;;  %1133 = vrot.lane.b32.xlu2 %v2091_v34, %s2147_s26  ;;  %v1419_v59 = vsel %vm1391_vm5, %v1386_v18, %v3154_v58  ;;  %v1356_v34 = vsel %vm1325_vm3, %v1323_v14, %v2849_v44  ;;  %v1379_v18 = vsel %vm1358_vm4, %v1346_v45, %v2985_v27 }
 0x203   : > { %v1389_v44 = vsel %vm1358_vm4, %v1356_v34, %v3017_v53  ;;  %v1345_v63 = vsel %vm1325_vm3, %v1312_v38, %v2853_v48  ;;  %v1315_v14 = vsel %vm1292_vm2, %v4382_v16, %v4383_v60  ;;  %v2094_v38 = vld [vmem:[%s2195_s19 + $0x18] sm:$0xff] }
 0x204   : > { %1196 = vrot.lane.b32.xlu0 %v2388_v47, %s2148_s27  ;;  %v941_v26 = vpop.permute.xlu1 %940  ;;  %v961_v1 = vpop.permute.xlu2 %960  ;;  %v4372_v47 = vld [vmem:[#allocation3_spill] sm:$0xff]  ;;  %v1378_v53 = vsel %vm1358_vm4, %v1345_v63, %v2935_v19 }
 0x205   : > { %v3329_v5 = vsel %vm1424_vm6, %v1409_v29, %v941_v26  ;;  %v3332_v43 = vsel %vm1424_vm6, %v1419_v59, %v961_v1  ;;  %v293_v13 = vrot.slane %v4372_v47, 7  ;;  %v4378_v26 = vld [vmem:[#allocation22_spill] sm:$0xff] }
 0x206   : > { %v939_v40 = vpop.permute.xlu0 %938 }
 0x207   : > { %v3337_v58 = vsel %vm1424_vm6, %v1408_v56, %v939_v40  ;;  %v294_v27 = vsel %vm291_vm1, %v292_v52, %v293_v13  ;;  %v4380_v56 = vld [vmem:[#allocation93_spill] sm:$0xff]  ;;  %v4381_v40 = vld [vmem:[#allocation80_spill] sm:$0xff] }
 0x208   : > { %v1294_v1 = vsel %vm1292_vm2, %v294_v27, %v4378_v26  ;;  %v1316_v19 = vsel %vm1292_vm2, %v4380_v56, %v4379_v24  ;;  %v4390_v26 = vld [vmem:[#allocation19_spill] sm:$0xff] }
 0x209   : > { %v1327_v47 = vsel %vm1325_vm3, %v1294_v1, %v4381_v40  ;;  %v1349_v13 = vsel %vm1325_vm3, %v1316_v19, %v2861_v31  ;;  %v4392_v1 = vld [vmem:[#allocation101_spill] sm:$0xff]  ;;  %v4393_v19 = vld [vmem:[#allocation134_spill] sm:$0xff] }
 0x20a   : > { %1230 = vrot.lane.b32.xlu1 %v2493_v42, %s2148_s27  ;;  %1246 = vrot.lane.b32.xlu2 %v4308_v55, %s2148_s27  ;;  %v1412_v42 = vsel %vm1391_vm5, %v1379_v18, %v3065_v35  ;;  %v1422_v55 = vsel %vm1391_vm5, %v1389_v44, %v3166_v36  ;;  %v1411_v36 = vsel %vm1391_vm5, %v1378_v53, %v3102_v57 }
 0x20b   : > { %v1360_v57 = vsel %vm1358_vm4, %v1327_v47, %v2863_v62  ;;  %v1382_v34 = vsel %vm1358_vm4, %v1349_v13, %v2997_v41  ;;  %v1348_v62 = vsel %vm1325_vm3, %v1315_v14, %v2865_v32  ;;  %v4394_v47 = vld [vmem:[#allocation139_spill] sm:$0xff] }
 0x20c   : > { %1149 = vrot.lane.b32.xlu0 %v2092_v21, %s2147_s26  ;;  %v947_v9 = vpop.permute.xlu1 %946  ;;  %v967_v23 = vpop.permute.xlu2 %966  ;;  %v1393_v31 = vsel %vm1391_vm5, %v1360_v57, %v3029_v61  ;;  %v1415_v45 = vsel %vm1391_vm5, %v1382_v34, %v3077_v2  ;;  %v1381_v41 = vsel %vm1358_vm4, %v1348_v62, %v2947_v22  ;;  %v4385_v21 = vld [vmem:[#allocation42_spill] sm:$0xff] }
 0x20d   : > { %v3376_v48 = vsel %vm1424_vm6, %v1412_v42, %v947_v9  ;;  %v3379_v35 = vsel %vm1424_vm6, %v1422_v55, %v967_v23  ;;  %v1426_v8 = vsel %vm1424_vm6, %v1393_v31, %v3188_v54  ;;  %v1414_v2 = vsel %vm1391_vm5, %v1381_v41, %v3117_v6  ;;  %v4384_v42 = vld [vmem:[#allocation4_spill] sm:$0xff]  ;;  %v4386_v9 = vld [vmem:[#allocation99_spill] sm:$0xff]  ;;  %v4387_v23 = vld [vmem:[#allocation86_spill] sm:$0xff] }
 0x20e   : > { %v945_v29 = vpop.permute.xlu0 %944  ;;  %v1297_v55 = vsel %vm1292_vm2, %v4316_v17, %v4384_v42  ;;  %v1319_v22 = vsel %vm1292_vm2, %v4386_v9, %v4385_v21  ;;  %v4391_v17 = vld [vmem:[#allocation61_spill] sm:$0xff]  ;;  %v4397_v31 = vld [vmem:[#allocation130_spill] sm:$0xff] }
 0x20f   : > { %v3384_v59 = vsel %vm1424_vm6, %v1411_v36, %v945_v29  ;;  %v1330_v27 = vsel %vm1325_vm3, %v1297_v55, %v4387_v23  ;;  %v1352_v53 = vsel %vm1325_vm3, %v1319_v22, %v2873_v3  ;;  %v4388_v36 = vld [vmem:[#allocation116_spill] sm:$0xff]  ;;  %v4389_v29 = vld [vmem:[#allocation6_spill] sm:$0xff]  ;;  %v1318_v24 = vsel %vm1292_vm2, %v4392_v1, %v4391_v17  ;;  %v4395_v3 = vld [vmem:[#allocation117_spill] sm:$0xff] }
 0x210   : > { %v1363_v6 = vsel %vm1358_vm4, %v1330_v27, %v4388_v36  ;;  %v1385_v40 = vsel %vm1358_vm4, %v1352_v53, %v4393_v19  ;;  %v1351_v57 = vsel %vm1325_vm3, %v1318_v24, %v4395_v3  ;;  %v4400_v41 = vld [vmem:[#allocation65_spill] sm:$0xff]  ;;  %v4402_v55 = vld [vmem:[#allocation92_spill] sm:$0xff]  ;;  %v4403_v22 = vld [vmem:[#allocation118_spill] sm:$0xff] }
 0x211   : > { %v1396_v13 = vsel %vm1391_vm5, %v1363_v6, %v4394_v47  ;;  %v1384_v62 = vsel %vm1358_vm4, %v1351_v57, %v4397_v31  ;;  %v4404_v27 = vld [vmem:[#allocation119_spill] sm:$0xff]  ;;  %v2095_v36 = vld [vmem:[%s2195_s19 + $0xe0] sm:$0xff]  ;;  %v4408_v24 = vld [vmem:[#allocation140_spill] sm:$0xff] }
 0x212   : > { %1117 = vrot.lane.b32.xlu1 %v2093_v33, %s2147_s26  ;;  %1039 = vrot.lane.b32.xlu2 %v4382_v16, %s2146_s25  ;;  %v4396_v33 = vld [vmem:[#allocation47_spill] sm:$0xff]  ;;  %v1429_v60 = vsel %vm1424_vm6, %v1396_v13, %v3209_v46  ;;  %v4410_v13 = vld [vmem:[#allocation145_spill] sm:$0xff] }
 0x213   : > { %v1418_v16 = vsel %vm1391_vm5, %v1385_v40, %v4396_v33  ;;  %v4405_v6 = vld [vmem:[#allocation35_spill] sm:$0xff]  ;;  %v4409_v40 = vld [vmem:[#allocation120_spill] sm:$0xff]  ;;  %v2096_v33 = vld [vmem:[%s2195_s19 + $0xa0] sm:$0xff] }
 0x214   : > { %1101 = vrot.lane.b32.xlu0 %v2094_v38, %s2147_s26  ;;  %v953_v18 = vpop.permute.xlu1 %952  ;;  %v1006_v44 = vpop.permute.xlu2 %1005  ;;  %v4398_v38 = vld [vmem:[#allocation21_spill] sm:$0xff] }
 0x215   : > { %v3419_v63 = vsel %vm1424_vm6, %v1415_v45, %v953_v18  ;;  %v3422_v61 = vsel %vm1457_vm7, %v1426_v8, %v1006_v44  ;;  %v1417_v18 = vsel %vm1391_vm5, %v1384_v62, %v4398_v38 }
 0x216   : > { %v951_v32 = vpop.permute.xlu0 %950 }
 0x217   : > { %v3427_v54 = vsel %vm1424_vm6, %v1414_v2, %v951_v32  ;;  %v4401_v32 = vld [vmem:[#allocation48_spill] sm:$0xff] }
 0x218   : > { %v1322_v42 = vsel %vm1292_vm2, %v4362_v20, %v4401_v32  ;;  %v4407_v20 = vld [vmem:[#allocation136_spill] sm:$0xff]  ;;  %v4416_v32 = vld [vmem:[#allocation54_spill] sm:$0xff] }
 0x219   : > { %v1355_v23 = vsel %vm1325_vm3, %v1322_v42, %v4403_v22  ;;  %v4418_v22 = vld [vmem:[#allocation121_spill] sm:$0xff] }
 0x21a   : > { %1198 = vrot.lane.b32.xlu1 %v4389_v29, %s2148_s27  ;;  %1214 = vrot.lane.b32.xlu2 %v4390_v26, %s2148_s27  ;;  %v4406_v29 = vld [vmem:[#allocation67_spill] sm:$0xff]  ;;  %v1388_v17 = vsel %vm1358_vm4, %v1355_v23, %v4407_v20 }
 0x21b   : > { %v1321_v26 = vsel %vm1292_vm2, %v4353_v10, %v4406_v29  ;;  %v1421_v3 = vsel %vm1391_vm5, %v1388_v17, %v4410_v13  ;;  %v4420_v29 = vld [vmem:[#allocation73_spill] sm:$0xff]  ;;  %v4422_v17 = vld [vmem:[#allocation138_spill] sm:$0xff] }
 0x21c   : > { %1055 = vrot.lane.b32.xlu0 %v4375_v50, %s2146_s25  ;;  %v959_v14 = vpop.permute.xlu1 %958  ;;  %v1012_v34 = vpop.permute.xlu2 %1011  ;;  %v4399_v50 = vld [vmem:[#allocation27_spill] sm:$0xff]  ;;  %v1354_v47 = vsel %vm1325_vm3, %v1321_v26, %v4409_v40 }
 0x21d   : > { %v3463_v45 = vsel %vm1424_vm6, %v1418_v16, %v959_v14  ;;  %v3466_v8 = vsel %vm1457_vm7, %v1429_v60, %v1012_v34  ;;  %v1300_v2 = vsel %vm1292_vm2, %v4400_v41, %v4399_v50  ;;  %v380_v60 = vsel %vm291_vm1, 0.0, %v292_v52  ;;  %v4411_v14 = vld [vmem:[#allocation131_spill] sm:$0xff] }
 0x21e   : > { %v957_v44 = vpop.permute.xlu0 %956  ;;  %v1333_v21 = vsel %vm1325_vm3, %v1300_v2, %v4402_v55  ;;  %v1387_v34 = vsel %vm1358_vm4, %v1354_v47, %v4411_v14  ;;  %v1293_v50 = vsel %vm1292_vm2, %v380_v60, %v4413_v39  ;;  %v4414_v52 = vld [vmem:[#allocation31_spill] sm:$0xff]  ;;  %v4417_v55 = vld [vmem:[#allocation98_spill] sm:$0xff]  ;;  %v4427_v14 = vld [vmem:[#allocation132_spill] sm:$0xff] }
 0x21f   : > { %v3471_v46 = vsel %vm1424_vm6, %v1417_v18, %v957_v44  ;;  %v1366_v53 = vsel %vm1358_vm4, %v1333_v21, %v4404_v27  ;;  %v4415_v41 = vld [vmem:[#allocation71_spill] sm:$0xff]  ;;  %v1326_v42 = vsel %vm1325_vm3, %v1293_v50, %v4416_v32  ;;  %v4419_v27 = vld [vmem:[#allocation122_spill] sm:$0xff]  ;;  %v4430_v32 = vld [vmem:[#allocation52_spill] sm:$0xff] }
 0x220   : > { %v1399_v19 = vsel %vm1391_vm5, %v1366_v53, %v4408_v24  ;;  %v1303_v2 = vsel %vm1292_vm2, %v4415_v41, %v4414_v52  ;;  %v1359_v23 = vsel %vm1358_vm4, %v1326_v42, %v4418_v22  ;;  %v4421_v26 = vld [vmem:[#allocation115_spill] sm:$0xff]  ;;  %v4429_v52 = vld [vmem:[#allocation5_spill] sm:$0xff] }
 0x221   : > { %v1432_v57 = vsel %vm1424_vm6, %v1399_v19, %v3231_v25  ;;  %v4412_v25 = vld [vmem:[#allocation60_spill] sm:$0xff]  ;;  %v1336_v21 = vsel %vm1325_vm3, %v1303_v2, %v4417_v55  ;;  %v1324_v20 = vsel %vm1292_vm2, %v4421_v26, %v4420_v29  ;;  %v1392_v24 = vsel %vm1391_vm5, %v1359_v23, %v4422_v17  ;;  %v4423_v19 = vld [vmem:[#allocation142_spill] sm:$0xff]  ;;  %v4424_v47 = vld [vmem:[#allocation123_spill] sm:$0xff] }
 0x222   : > { %1151 = vrot.lane.b32.xlu1 %v2095_v36, %s2147_s26  ;;  %1232 = vrot.lane.b32.xlu2 %v4405_v6, %s2148_s27  ;;  %v1420_v38 = vsel %vm1391_vm5, %v1387_v34, %v4412_v25  ;;  %v1369_v53 = vsel %vm1358_vm4, %v1336_v21, %v4419_v27  ;;  %v2097_v36 = vld [vmem:[%s2195_s19 + $0x20] sm:$0xff]  ;;  %v1357_v13 = vsel %vm1325_vm3, %v1324_v20, %v4424_v47  ;;  %v4431_v22 = vld [vmem:[#allocation51_spill] sm:$0xff]  ;;  %v4432_v27 = vld [vmem:[#allocation28_spill] sm:$0xff] }
 0x223   : > { %v2098_v6 = vld [vmem:[%s2195_s19 + $0x60] sm:$0xff]  ;;  %v1402_v40 = vsel %vm1391_vm5, %v1369_v53, %v4423_v19  ;;  %v1390_v34 = vsel %vm1358_vm4, %v1357_v13, %v4427_v14  ;;  %v4435_v29 = vld [vmem:[#allocation7_spill] sm:$0xff]  ;;  %v4437_v17 = vld [vmem:[#allocation124_spill] sm:$0xff] }
 0x224   : > { %1135 = vrot.lane.b32.xlu0 %v2096_v33, %s2147_s26  ;;  %v965_v10 = vpop.permute.xlu1 %964  ;;  %v1018_v16 = vpop.permute.xlu2 %1017  ;;  %v1435_v33 = vsel %vm1424_vm6, %v1402_v40, %v3253_v49  ;;  %v4433_v53 = vld [vmem:[#allocation58_spill] sm:$0xff]  ;;  %v2100_v19 = vld [vmem:[%s2195_s19 + $0xe8] sm:$0xff]  ;;  %v4438_v40 = vld [vmem:[#allocation85_spill] sm:$0xff] }
 0x225   : > { %v3510_v31 = vsel %vm1424_vm6, %v1421_v3, %v965_v10  ;;  %v3513_v62 = vsel %vm1457_vm7, %v1432_v57, %v1018_v16  ;;  %v4425_v3 = vld [vmem:[#allocation59_spill] sm:$0xff]  ;;  %v4426_v10 = vld [vmem:[#allocation45_spill] sm:$0xff] }
 0x226   : > { %v963_v18 = vpop.permute.xlu0 %962  ;;  %v1425_v57 = vsel %vm1424_vm6, %v1392_v24, %v4425_v3  ;;  %v2099_v24 = vld [vmem:[%s2195_s19 + $0xa8] sm:$0xff]  ;;  %v4439_v13 = vld [vmem:[#allocation141_spill] sm:$0xff] }
 0x227   : > { %v3518_v44 = vsel %vm1424_vm6, %v1420_v38, %v963_v18  ;;  %v4428_v18 = vld [vmem:[#allocation77_spill] sm:$0xff] }
 0x228   : > { %v1423_v39 = vsel %vm1391_vm5, %v1390_v34, %v4428_v18  ;;  %v1560_v18 = vld [vmem:[%s4059_s1 + $0x20] sm:$0xf] }
 0x229   : > { %2043 = vmatpush.msk.msra.mxu2 %vm1662_vm8, %v1560_v18  ;;  %2044 = vmatpush.msk.msra.mxu3 %vm1662_vm8, %v1560_v18 }
 0x22a   : > { %1103 = vrot.lane.b32.xlu1 %v2097_v36, %s2147_s26  ;;  %1119 = vrot.lane.b32.xlu2 %v2098_v6, %s2147_s26  ;;  %v1299_v36 = vsel %vm1292_vm2, %v4433_v53, %v4432_v27  ;;  %v2101_v27 = vld [vmem:[%s2195_s19 + $0x28] sm:$0xff] }
 0x22b   : > { %2042 = vmatpush.msk.msra.mxu1 %vm1662_vm8, %v1560_v18  ;;  %2005 = vmatpush.msk.msra.mxu0 %vm1662_vm8, %v1560_v18  ;;  %v1557_v53 = vld [vmem:[%s4059_s1 + $0x8] sm:$0xff]  ;;  %v4455_v18 = vld [vmem:[#allocation129_spill] sm:$0xff] }
 0x22c   : > { %1248 = vrot.lane.b32.xlu0 %v4426_v10, %s2148_s27  ;;  %v1004_v16 = vpop.permute.xlu1 %1003  ;;  %v1024_v60 = vpop.permute.xlu2 %1023  ;;  %v4441_v10 = vld [vmem:[#allocation147_spill] sm:$0xff] }
 0x22d   : > { %v3555_v25 = vsel %vm1457_vm7, %v1425_v57, %v1004_v16  ;;  %v3558_v38 = vsel %vm1457_vm7, %v1435_v33, %v1024_v60  ;;  %v4440_v57 = vld [vmem:[#allocation125_spill] sm:$0xff]  ;;  %v4442_v60 = vld [vmem:[#allocation18_spill] sm:$0xff] }
 0x22e   : > { %v969_v50 = vpop.permute.xlu0 %968 }
 0x22f   : > { %v3563_v49 = vsel %vm1424_vm6, %v1423_v39, %v969_v50  ;;  %v4443_v39 = vld [vmem:[#allocation133_spill] sm:$0xff] }
 0x232   : > { %1057 = vrot.lane.b32.xlu1 %v4421_v26, %s2146_s25  ;;  %1200 = vrot.lane.b32.xlu2 %v4429_v52, %s2148_s27  ;;  %v4436_v26 = vld [vmem:[#allocation57_spill] sm:$0xff] }
 0x233   : > { %v1298_v20 = vsel %vm1292_vm2, %v4436_v26, %v4435_v29  ;;  %v1556_v29 = vld [vmem:[%s4059_s1] sm:$0xff] }
 0x234   : > { %1041 = vrot.lane.b32.xlu0 %v4380_v56, %s2146_s25  ;;  %v1010_v41 = vpop.permute.xlu1 %1009  ;;  %v1030_v2 = vpop.permute.xlu2 %1029  ;;  %v4434_v56 = vld [vmem:[#allocation66_spill] sm:$0xff]  ;;  %v1331_v47 = vsel %vm1325_vm3, %v1298_v20, %v4438_v40 }
 0x235   : > { %v3573_v42 = vsel %vm1457_vm7, %v4430_v32, %v1010_v41  ;;  %v3577_v55 = vsel %vm1457_vm7, %v3295_v11, %v1030_v2  ;;  %v1332_v6 = vsel %vm1325_vm3, %v1299_v36, %v4434_v56  ;;  %v1364_v33 = vsel %vm1358_vm4, %v1331_v47, %v4440_v57  ;;  %v1559_v32 = vld [vmem:[%s4059_s1 + $0x18] sm:$0xff]  ;;  %v4445_v36 = vld [vmem:[#allocation34_spill] sm:$0xff] }
 0x236   : > { %v1008_v21 = vpop.permute.xlu0 %1007  ;;  %v1365_v11 = vsel %vm1358_vm4, %v1332_v6, %v4437_v17  ;;  %v1397_v50 = vsel %vm1391_vm5, %v1364_v33, %v4443_v39  ;;  %2046 = vmatpush.msra.mxu2 %v1559_v32  ;;  %2047 = vmatpush.msra.mxu3 %v1559_v32  ;;  %v4446_v20 = vld [vmem:[#allocation38_spill] sm:$0xff]  ;;  %v4450_v47 = vld [vmem:[#allocation69_spill] sm:$0xff] }
 0x237   : > { %v3581_v23 = vsel %vm1457_vm7, %v4431_v22, %v1008_v21  ;;  %v1398_v3 = vsel %vm1391_vm5, %v1365_v11, %v4439_v13  ;;  %v1430_v41 = vsel %vm1424_vm6, %v1397_v50, %v3204_v51  ;;  %v1558_v22 = vld [vmem:[%s4059_s1 + $0x10] sm:$0xff]  ;;  %2045 = vmatpush.msra.mxu1 %v1559_v32  ;;  %1678 = vmatpush.msra.mxu0 %v1559_v32  ;;  %v4444_v51 = vld [vmem:[#allocation53_spill] sm:$0xff]  ;;  %v4447_v17 = vld [vmem:[#allocation70_spill] sm:$0xff] }
 0x238   : > { %v1431_v16 = vsel %vm1424_vm6, %v1398_v3, %v4441_v10  ;;  %2049 = vmatpush.msra.mxu2 %v1558_v22  ;;  %2050 = vmatpush.msra.mxu3 %v1558_v22  ;;  %v1305_v11 = vsel %vm1292_vm2, %v4447_v17, %v4446_v20  ;;  %v4449_v40 = vld [vmem:[#allocation14_spill] sm:$0xff]  ;;  %v4451_v3 = vld [vmem:[#allocation128_spill] sm:$0xff]  ;;  %v4452_v33 = vld [vmem:[#allocation113_spill] sm:$0xff] }
 0x239   : > { %2048 = vmatpush.msra.mxu1 %v1558_v22  ;;  %1679 = vmatpush.msra.mxu0 %v1558_v22  ;;  %v1304_v13 = vsel %vm1292_vm2, %v4450_v47, %v4449_v40  ;;  %v4453_v10 = vld [vmem:[#allocation97_spill] sm:$0xff]  ;;  %v4456_v50 = vld [vmem:[#allocation15_spill] sm:$0xff]  ;;  %v2103_v17 = vld [vmem:[%s2195_s19 + $0xb0] sm:$0xff] }
 0x23a   : > { %1137 = vrot.lane.b32.xlu1 %v2099_v24, %s2147_s26  ;;  %1153 = vrot.lane.b32.xlu2 %v2100_v19, %s2147_s26  ;;  %v4448_v24 = vld [vmem:[#allocation78_spill] sm:$0xff]  ;;  %v4457_v22 = vld [vmem:[#allocation137_spill] sm:$0xff]  ;;  %v4460_v40 = vld [vmem:[#allocation79_spill] sm:$0xff] }
 0x23b   : > { %2052 = vmatpush.msra.mxu2 %v1557_v53  ;;  %2053 = vmatpush.msra.mxu3 %v1557_v53  ;;  %v1338_v19 = vsel %vm1325_vm3, %v1305_v11, %v4448_v24  ;;  %v4458_v20 = vld [vmem:[#allocation17_spill] sm:$0xff]  ;;  %v4459_v11 = vld [vmem:[#allocation10_spill] sm:$0xff] }
 0x23c   : > { %1216 = vrot.lane.b32.xlu0 %v4442_v60, %s2148_s27  ;;  %v1016_v14 = vpop.permute.xlu1 %1015  ;;  %v3607_v34 = vpop.permute.xlu2 %1035  ;;  %2051 = vmatpush.msra.mxu1 %v1557_v53  ;;  %v1371_v57 = vsel %vm1358_vm4, %v1338_v19, %v4451_v3  ;;  %v4454_v60 = vld [vmem:[#allocation144_spill] sm:$0xff]  ;;  %v4461_v3 = vld [vmem:[#allocation33_spill] sm:$0xff] }
 0x23d   : > { %v3615_v52 = vsel %vm1457_vm7, %v1431_v16, %v1016_v14  ;;  %2055 = vmatpush.msra.mxu2 %v1556_v29  ;;  %2056 = vmatpush.msra.mxu3 %v1556_v29  ;;  %v1337_v16 = vsel %vm1325_vm3, %v1304_v13, %v4453_v10  ;;  %v1404_v14 = vsel %vm1391_vm5, %v1371_v57, %v4454_v60  ;;  %v4462_v57 = vld [vmem:[#allocation46_spill] sm:$0xff] }
 0x23e   : > { %v1014_v2 = vpop.permute.xlu0 %1013  ;;  %1680 = vmatpush.msra.mxu0 %v1557_v53  ;;  %2054 = vmatpush.msra.mxu1 %v1556_v29  ;;  %v1370_v39 = vsel %vm1358_vm4, %v1337_v16, %v4455_v18 }
 0x23f   : > { %v3623_v21 = vsel %vm1457_vm7, %v1430_v41, %v1014_v2  ;;  %v1437_v41 = vsel %vm1424_vm6, %v1404_v14, %v4456_v50  ;;  %v2102_v2 = vld [vmem:[%s2195_s19 + $0x68] sm:$0xff]  ;;  %v2104_v14 = vld [vmem:[%s2195_s19 + $0x70] sm:$0xff] }
 0x240   : > { %1681 = vmatpush.msra.mxu0 %v1556_v29 }
 0x242   : > { %1250 = vrot.lane.b32.xlu1 %v4444_v51, %s2148_s27  ;;  %1105 = vrot.lane.b32.xlu2 %v2101_v27, %s2147_s26  ;;  %v1403_v51 = vsel %vm1391_vm5, %v1370_v39, %v4457_v22  ;;  %v2105_v39 = vld [vmem:[%s2195_s19 + $0x30] sm:$0xff] }
 0x243   : > { %v1436_v53 = vsel %vm1424_vm6, %v1403_v51, %v3248_v30  ;;  %v4466_v51 = vld [vmem:[#allocation114_spill] sm:$0xff] }
 0x244   : > { %1234 = vrot.lane.b32.xlu0 %v4445_v36, %s2148_s27  ;;  %v3637_v56 = vpop.permute.xlu1 %1021  ;;  %v1132_v6 = vpop.permute.xlu2 %1131 }
 0x246   : > { %v3642_v26 = vpop.permute.xlu0 %1019 }
 0x24a   : > { %1043 = vrot.lane.b32.xlu1 %v4359_v4, %s2146_s25  ;;  %1059 = vrot.lane.b32.xlu2 %v4452_v33, %s2146_s25  ;;  %v4463_v33 = vld [vmem:[#allocation105_spill] sm:$0xff] }
 0x24c   : > { %1121 = vrot.lane.b32.xlu0 %v2102_v2, %s2147_s26  ;;  %v1028_v4 = vpop.permute.xlu1 %1027  ;;  %v1245_v32 = vpop.permute.xlu2 %1244 }
 0x24d   : > { %v3671_v27 = vsel %vm1457_vm7, %v1437_v41, %v1028_v4 }
 0x24e   : > { %v1026_v36 = vpop.permute.xlu0 %1025 }
 0x24f   : > { %v3676_v29 = vsel %vm1457_vm7, %v1436_v53, %v1026_v36  ;;  %v4467_v36 = vld [vmem:[#allocation11_spill] sm:$0xff] }
 0x252   : > { %1218 = vrot.lane.b32.xlu1 %v4458_v20, %s2148_s27  ;;  %1139 = vrot.lane.b32.xlu2 %v2103_v17, %s2147_s26  ;;  %v4468_v20 = vld [vmem:[#allocation63_spill] sm:$0xff] }
 0x253   : > { %v1301_v17 = vsel %vm1292_vm2, %v4468_v20, %v4467_v36 }
 0x254   : > { %1202 = vrot.lane.b32.xlu0 %v4459_v11, %s2148_s27  ;;  %v1034_v24 = vpop.permute.xlu1 %1033  ;;  %v3684_v19 = vpop.permute.xlu2 %1053  ;;  %v4469_v11 = vld [vmem:[#allocation91_spill] sm:$0xff] }
 0x255   : > { %v3688_v30 = vsel %vm1457_vm7, %v4460_v40, %v1034_v24  ;;  %v1334_v24 = vsel %vm1325_vm3, %v1301_v17, %v4469_v11  ;;  %v4470_v40 = vld [vmem:[#allocation127_spill] sm:$0xff]  ;;  %v4475_v11 = vld [vmem:[#allocation32_spill] sm:$0xff] }
 0x256   : > { %v1032_v47 = vpop.permute.xlu0 %1031 }
 0x257   : > { %v3692_v13 = vsel %vm1457_vm7, %v3287_v15, %v1032_v47  ;;  %v1474_v15 = vsel %vm1457_vm7, %v3337_v58, %v3607_v34  ;;  %v4464_v34 = vld [vmem:[#allocation9_spill] sm:$0xff]  ;;  %v1367_v47 = vsel %vm1358_vm4, %v1334_v24, %v4470_v40  ;;  %v4476_v24 = vld [vmem:[#allocation64_spill] sm:$0xff] }
 0x258   : > { %v1507_v18 = vsel %vm1490_vm9, %v1474_v15, %v1132_v6  ;;  %v4465_v6 = vld [vmem:[#allocation25_spill] sm:$0xff]  ;;  %v1302_v40 = vsel %vm1292_vm2, %v4476_v24, %v4475_v11 }
 0x25a   : > { %1236 = vrot.lane.b32.xlu1 %v4461_v3, %s2148_s27  ;;  %1252 = vrot.lane.b32.xlu2 %v4462_v57, %s2148_s27  ;;  %v4471_v3 = vld [vmem:[#allocation135_spill] sm:$0xff] }
 0x25b   : > { %v1400_v57 = vsel %vm1391_vm5, %v1367_v47, %v4471_v3 }
 0x25c   : > { %1155 = vrot.lane.b32.xlu0 %v4463_v33, %s2147_s26  ;;  %v1052_v10 = vpop.permute.xlu1 %1051  ;;  %v1134_v16 = vpop.permute.xlu2 %1133  ;;  %v1433_v33 = vsel %vm1424_vm6, %v1400_v57, %v3226_v7  ;;  %v4477_v57 = vld [vmem:[#allocation72_spill] sm:$0xff] }
 0x25d   : > { %v1482_v4 = vsel %vm1457_vm7, %v3290_v28, %v1052_v10  ;;  %v4472_v10 = vld [vmem:[#allocation106_spill] sm:$0xff]  ;;  %v1466_v15 = vsel %vm1457_vm7, %v1433_v33, %v3642_v26 }
 0x25e   : > { %v1038_v60 = vpop.permute.xlu0 %1037 }
 0x262   : > { %1123 = vrot.lane.b32.xlu1 %v2104_v14, %s2147_s26  ;;  %1045 = vrot.lane.b32.xlu2 %v4392_v1, %s2146_s25  ;;  %v4473_v14 = vld [vmem:[#allocation41_spill] sm:$0xff] }
 0x264   : > { %1107 = vrot.lane.b32.xlu0 %v2105_v39, %s2147_s26  ;;  %v1229_v50 = vpop.permute.xlu1 %1228  ;;  %v1247_v41 = vpop.permute.xlu2 %1246  ;;  %v2106_v39 = vld [vmem:[%s2195_s19 + $0xb8] sm:$0xff] }
 0x265   : > { %v1540_v2 = vsel %vm1523_vm10, %v1507_v18, %v1229_v50 }
 0x266   : > { %v1148_v22 = vpop.permute.xlu0 %1147  ;;  %2022 = vmatmul.msk.f32.vlgmr.msra.gmra.mxu2 %vm1565_vm11, %v1540_v2 }
 0x267   : > { %v1515_v1 = vsel %vm1490_vm9, %v1482_v4, %v1148_v22 }
 0x268   : > { %v1548_v58 = vsel %vm1523_vm10, %v1515_v1, %v1245_v32 }
 0x269   : > { %2030 = vmatmul.msk.f32.vlgmr.msra.gmra.mxu3 %vm1565_vm11, %v1548_v58  ;;  %v2107_v58 = vld [vmem:[%s2195_s19 + $0xf0] sm:$0xff] }
 0x26a   : > { %1204 = vrot.lane.b32.xlu1 %v4464_v34, %s2148_s27  ;;  %1220 = vrot.lane.b32.xlu2 %v4465_v6, %s2148_s27  ;;  %v253_v26 = vmul.f32 0.0, %v2107_v58  ;;  %v1475_v34 = vsel %vm1457_vm7, %v3329_v5, %v1038_v60  ;;  %v2108_v6 = vld [vmem:[%s2195_s19 + $0x38] sm:$0xff]  ;;  %v1483_v5 = vsel %vm1457_vm7, %v3471_v46, %v3684_v19  ;;  %v4479_v19 = vld [vmem:[#allocation143_spill] sm:$0xff] }
 0x26b   : > { %v1508_v17 = vsel %vm1490_vm9, %v1475_v34, %v1134_v16  ;;  %v1335_v16 = vsel %vm1325_vm3, %v1302_v40, %v4477_v57  ;;  %v2110_v58 = vld [vmem:[%s2195_s19 + $0xf8] sm:$0xff] }
 0x26c   : > { %1061 = vrot.lane.b32.xlu0 %v4466_v51, %s2146_s25  ;;  %v1116_v28 = vpop.permute.xlu1 %1115  ;;  %v3723_v53 = vpop.permute.xlu2 %1039  ;;  %v2109_v51 = vld [vmem:[%s2195_s19 + $0x78] sm:$0xff]  ;;  %v254_v34 = vmul.f32 0.0, %v2110_v58 }
 0x26d   : > { %v1499_v18 = vsel %vm1490_vm9, %v1466_v15, %v1116_v28  ;;  %v343_v28 = vrot.slane %v253_v26, 7  ;;  %v4480_v15 = vld [vmem:[#allocation8_spill] sm:$0xff]  ;;  %v1476_v40 = vsel %vm1457_vm7, %v3229_v0, %v3723_v53 }
 0x26e   : > { %v1100_v32 = vpop.permute.xlu0 %1099 }
 0x26f   : > { %v1491_v4 = vsel %vm1490_vm9, %v3555_v25, %v1100_v32  ;;  %v4474_v25 = vld [vmem:[#allocation146_spill] sm:$0xff]  ;;  %v397_v3 = vsel %vm291_vm1, 0.0, %v343_v28 }
 0x272   : > { %1157 = vrot.lane.b32.xlu1 %v4472_v10, %s2147_s26  ;;  %1238 = vrot.lane.b32.xlu2 %v4473_v14, %s2148_s27  ;;  %v4478_v10 = vld [vmem:[#allocation126_spill] sm:$0xff] }
 0x273   : > { %v1368_v46 = vsel %vm1358_vm4, %v1335_v16, %v4478_v10 }
 0x274   : > { %1141 = vrot.lane.b32.xlu0 %v2106_v39, %s2147_s26  ;;  %v1213_v50 = vpop.permute.xlu1 %1212  ;;  %v1215_v2 = vpop.permute.xlu2 %1214  ;;  %v1401_v14 = vsel %vm1391_vm5, %v1368_v46, %v4479_v19 }
 0x275   : > { %v1532_v7 = vsel %vm1523_vm10, %v1499_v18, %v1213_v50  ;;  %v4481_v18 = vld [vmem:[#allocation75_spill] sm:$0xff] }
 0x276   : > { %v1197_v22 = vpop.permute.xlu0 %1196  ;;  %2014 = vmatmul.msk.f32.vlgmr.msra.gmra.mxu1 %vm1565_vm11, %v1532_v7  ;;  %v1434_v39 = vsel %vm1424_vm6, %v1401_v14, %v4481_v18  ;;  %v4484_v14 = vld [vmem:[#allocation23_spill] sm:$0xff] }
 0x277   : > { %v1524_v1 = vsel %vm1523_vm10, %v1491_v4, %v1197_v22 }
 0x278   : > { %2006 = vmatmul.msk.f32.vlgmr.msra.gmra.mxu0 %vm1565_vm11, %v1524_v1 }
 0x27a   : > { %1109 = vrot.lane.b32.xlu1 %v2108_v6, %s2147_s26  ;;  %1125 = vrot.lane.b32.xlu2 %v2109_v51, %s2147_s26  ;;  %v2111_v6 = vld [vmem:[%s2195_s19 + $0xc0] sm:$0xff]  ;;  %v451_v51 = vrot.slane %v254_v34, 1 }
 0x27c   : > { %1254 = vrot.lane.b32.xlu0 %v4474_v25, %s2148_s27  ;;  %v1231_v36 = vpop.permute.xlu1 %1230  ;;  %v1233_v20 = vpop.permute.xlu2 %1232  ;;  %v4482_v25 = vld [vmem:[#allocation24_spill] sm:$0xff] }
 0x27d   : > { %v1541_v32 = vsel %vm1523_vm10, %v1508_v17, %v1231_v36 }
 0x27e   : > { %v1150_v60 = vpop.permute.xlu0 %1149  ;;  %2023 = vmatmul.msk.f32.gmra.mxu2 %vm1565_vm11, %v1541_v32 }
 0x27f   : > { %v1516_v47 = vsel %vm1490_vm9, %v1483_v5, %v1150_v60  ;;  %v344_v60 = vrot.slane %v254_v34, 7 }
 0x280   : > { %v1549_v33 = vsel %vm1523_vm10, %v1516_v47, %v1247_v41  ;;  %v1467_v41 = vsel %vm1457_vm7, %v1434_v39, %v3637_v56  ;;  %v450_v56 = vrot.slane %v253_v26, 1 }
 0x281   : > { %2031 = vmatmul.msk.f32.gmra.mxu3 %vm1565_vm11, %v1549_v33  ;;  %v345_v57 = vsel %vm291_vm1, %v343_v28, %v344_v60  ;;  %v2113_v33 = vld [vmem:[%s2195_s19 + $0x80] sm:$0xff] }
 0x282   : > { %1063 = vrot.lane.b32.xlu1 %v397_v3, %s2146_s25  ;;  %1206 = vrot.lane.b32.xlu2 %v4480_v15, %s2148_s27  ;;  %v452_v5 = vsel %vm398_vm0, %v450_v56, %v451_v51  ;;  %v2114_v15 = vld [vmem:[%s2195_s19 + $0xc8] sm:$0xff] }
 0x284   : > { %1047 = vrot.lane.b32.xlu0 %v4386_v9, %s2146_s25  ;;  %v1118_v50 = vpop.permute.xlu1 %1117  ;;  %v1120_v7 = vpop.permute.xlu2 %1119 }
 0x285   : > { %v1500_v4 = vsel %vm1490_vm9, %v1467_v41, %v1118_v50  ;;  %v488_v41 = vsel %vm398_vm0, %v451_v51, 0.0  ;;  %v4486_v50 = vld [vmem:[#allocation39_spill] sm:$0xff] }
 0x286   : > { %v1102_v22 = vpop.permute.xlu0 %1101  ;;  %v1533_v1 = vsel %vm1523_vm10, %v1500_v4, %v1215_v2  ;;  %v2115_v51 = vld [vmem:[%s2195_s19 + $0x88] sm:$0xff] }
 0x287   : > { %2015 = vmatmul.msk.f32.gmra.mxu1 %vm1565_vm11, %v1533_v1  ;;  %v1492_v9 = vsel %vm1490_vm9, %v3422_v61, %v1102_v22  ;;  %v4483_v61 = vld [vmem:[#allocation40_spill] sm:$0xff]  ;;  %v1501_v22 = vsel %vm1490_vm9, %v3558_v38, %v1120_v7 }
 0x28a   : > { %1143 = vrot.lane.b32.xlu1 %v2111_v6, %s2147_s26  ;;  %1159 = vrot.lane.b32.xlu2 %v253_v26, %s2147_s26  ;;  %v2112_v26 = vld [vmem:[%s2195_s19 + $0x40] sm:$0xff] }
 0x28c   : > { %1222 = vrot.lane.b32.xlu0 %v4482_v25, %s2148_s27  ;;  %v1199_v36 = vpop.permute.xlu1 %1198  ;;  %v1201_v2 = vpop.permute.xlu2 %1200 }
 0x28d   : > { %v1525_v17 = vsel %vm1523_vm10, %v1492_v9, %v1199_v36  ;;  %v4487_v9 = vld [vmem:[#allocation12_spill] sm:$0xff] }
 0x28e   : > { %v1056_v32 = vpop.permute.xlu0 %1055  ;;  %2007 = vmatmul.msk.f32.gmra.mxu0 %vm1565_vm11, %v1525_v17 }
 0x28f   : > { %v1484_v0 = vsel %vm1457_vm7, %v3463_v45, %v1056_v32  ;;  %v4485_v45 = vld [vmem:[#allocation13_spill] sm:$0xff] }
 0x292   : > { %1256 = vrot.lane.b32.xlu1 %v452_v5, %s2148_s27  ;;  %1111 = vrot.lane.b32.xlu2 %v2112_v26, %s2147_s26  ;;  %v4488_v5 = vld [vmem:[#allocation29_spill] sm:$0xff] }
 0x294   : > { %1240 = vrot.lane.b32.xlu0 %v4483_v61, %s2148_s27  ;;  %v1152_v11 = vpop.permute.xlu1 %1151  ;;  %v1154_v24 = vpop.permute.xlu2 %1153 }
 0x296   : > { %v1136_v47 = vpop.permute.xlu0 %1135 }
 0x297   : > { %v1509_v3 = vsel %vm1490_vm9, %v1476_v40, %v1136_v47 }
 0x298   : > { %v1542_v16 = vsel %vm1523_vm10, %v1509_v3, %v1233_v20  ;;  %v1517_v20 = vsel %vm1490_vm9, %v1484_v0, %v1152_v11 }
 0x299   : > { %2024 = vmatmul.msk.f32.gmra.mxu2 %vm1565_vm11, %v1542_v16 }
 0x29a   : > { %1049 = vrot.lane.b32.xlu1 %v4367_v37, %s2146_s25  ;;  %1065 = vrot.lane.b32.xlu2 %v345_v57, %s2146_s25 }
 0x29c   : > { %1127 = vrot.lane.b32.xlu0 %v2113_v33, %s2147_s26  ;;  %v1104_v10 = vpop.permute.xlu1 %1103  ;;  %v1106_v28 = vpop.permute.xlu2 %1105 }
 0x29d   : > { %v1493_v53 = vsel %vm1490_vm9, %v3581_v23, %v1104_v10  ;;  %v1494_v40 = vsel %vm1490_vm9, %v3573_v42, %v1106_v28 }
 0x29e   : > { %v1249_v46 = vpop.permute.xlu0 %1248  ;;  %v1526_v19 = vsel %vm1523_vm10, %v1493_v53, %v1201_v2 }
 0x29f   : > { %2008 = vmatmul.msk.f32.gmra.mxu0 %vm1565_vm11, %v1526_v19  ;;  %v1550_v37 = vsel %vm1523_vm10, %v1517_v20, %v1249_v46 }
 0x2a0   : > { %2032 = vmatmul.msk.f32.gmra.mxu3 %vm1565_vm11, %v1550_v37 }
 0x2a2   : > { %1224 = vrot.lane.b32.xlu1 %v4484_v14, %s2148_s27  ;;  %1145 = vrot.lane.b32.xlu2 %v2114_v15, %s2147_s26 }
 0x2a4   : > { %1208 = vrot.lane.b32.xlu0 %v4485_v45, %s2148_s27  ;;  %v1058_v23 = vpop.permute.xlu1 %1057  ;;  %v1060_v39 = vpop.permute.xlu2 %1059 }
 0x2a5   : > { %v1485_v6 = vsel %vm1457_vm7, %v3332_v43, %v1058_v23  ;;  %v1486_v10 = vsel %vm1457_vm7, %v3518_v44, %v1060_v39 }
 0x2a6   : > { %v1042_v18 = vpop.permute.xlu0 %1041  ;;  %v1518_v38 = vsel %vm1490_vm9, %v1485_v6, %v1154_v24 }
 0x2a7   : > { %v1477_v7 = vsel %vm1457_vm7, %v3384_v59, %v1042_v18 }
 0x2aa   : > { %1242 = vrot.lane.b32.xlu1 %v4486_v50, %s2148_s27  ;;  %1258 = vrot.lane.b32.xlu2 %v488_v41, %s2148_s27  ;;  %v3892_v41 = vld [vmem:[%s4060_s2] ss:$0 sm:$0xff] }
 0x2ac   : > { %1161 = vrot.lane.b32.xlu0 %v254_v34, %s2147_s26  ;;  %v1138_v4 = vpop.permute.xlu1 %1137  ;;  %v1140_v56 = vpop.permute.xlu2 %1139  ;;  %v2116_v34 = vld [vmem:[%s2195_s19 + $0x48] sm:$0xff] }
 0x2ad   : > { %v1510_v43 = vsel %vm1490_vm9, %v1477_v7, %v1138_v4 }
 0x2ae   : > { %v1217_v1 = vpop.permute.xlu0 %1216 }
 0x2af   : > { %v1534_v58 = vsel %vm1523_vm10, %v1501_v22, %v1217_v1 }
 0x2b0   : > { %2016 = vmatmul.msk.f32.gmra.mxu1 %vm1565_vm11, %v1534_v58 }
 0x2b2   : > { %1129 = vrot.lane.b32.xlu1 %v2115_v51, %s2147_s26  ;;  %1210 = vrot.lane.b32.xlu2 %v4487_v9, %s2148_s27 }
 0x2b4   : > { %1113 = vrot.lane.b32.xlu0 %v2116_v34, %s2147_s26  ;;  %v1251_v25 = vpop.permute.xlu1 %1250  ;;  %v1253_v32 = vpop.permute.xlu2 %1252 }
 0x2b5   : > { %v1551_v36 = vsel %vm1523_vm10, %v1518_v38, %v1251_v25 }
 0x2b6   : > { %v1235_v2 = vpop.permute.xlu0 %1234  ;;  %2033 = vmatmul.msk.f32.gmra.mxu3 %vm1565_vm11, %v1551_v36 }
 0x2b7   : > { %v1543_v17 = vsel %vm1523_vm10, %v1510_v43, %v1235_v2 }
 0x2b8   : > { %2025 = vmatmul.msk.f32.gmra.mxu2 %vm1565_vm11, %v1543_v17 }
 0x2bc   : > { %1226 = vrot.lane.b32.xlu0 %v4488_v5, %s2148_s27  ;;  %v1044_v26 = vpop.permute.xlu1 %1043  ;;  %v1046_v11 = vpop.permute.xlu2 %1045 }
 0x2bd   : > { %v1478_v57 = vsel %vm1457_vm7, %v3376_v48, %v1044_v26 }
 0x2be   : > { %v1122_v60 = vpop.permute.xlu0 %1121 }
 0x2bf   : > { %v1502_v59 = vsel %vm1490_vm9, %v3676_v29, %v1122_v60  ;;  %v1511_v29 = vsel %vm1490_vm9, %v1478_v57, %v1140_v56 }
 0x2c4   : > { %v1219_v61 = vpop.permute.xlu1 %1218  ;;  %v1221_v42 = vpop.permute.xlu2 %1220 }
 0x2c5   : > { %v1535_v24 = vsel %vm1523_vm10, %v1502_v59, %v1219_v61 }
 0x2c6   : > { %v1203_v47 = vpop.permute.xlu0 %1202  ;;  %2017 = vmatmul.msk.f32.gmra.mxu1 %vm1565_vm11, %v1535_v24 }
 0x2c7   : > { %v1527_v3 = vsel %vm1523_vm10, %v1494_v40, %v1203_v47 }
 0x2c8   : > { %2009 = vmatmul.msk.f32.gmra.mxu0 %vm1565_vm11, %v1527_v3 }
 0x2cc   : > { %v1237_v16 = vpop.permute.xlu1 %1236  ;;  %v1239_v44 = vpop.permute.xlu2 %1238 }
 0x2cd   : > { %v1544_v33 = vsel %vm1523_vm10, %v1511_v29, %v1237_v16 }
 0x2ce   : > { %v1156_v0 = vpop.permute.xlu0 %1155  ;;  %2026 = vmatmul.msk.f32.gmra.mxu2 %vm1565_vm11, %v1544_v33 }
 0x2cf   : > { %v1519_v53 = vsel %vm1490_vm9, %v1486_v10, %v1156_v0 }
 0x2d0   : > { %v1552_v28 = vsel %vm1523_vm10, %v1519_v53, %v1253_v32 }
 0x2d1   : > { %2034 = vmatmul.msk.f32.gmra.mxu3 %vm1565_vm11, %v1552_v28 }
 0x2d4   : > { %v1124_v20 = vpop.permute.xlu1 %1123  ;;  %v1126_v23 = vpop.permute.xlu2 %1125 }
 0x2d5   : > { %v1503_v48 = vsel %vm1490_vm9, %v3671_v27, %v1124_v20  ;;  %v1479_v27 = vsel %vm1457_vm7, %v3251_v12, %v1046_v11  ;;  %v1504_v47 = vsel %vm1490_vm9, %v3577_v55, %v1126_v23 }
 0x2d6   : > { %v1108_v46 = vpop.permute.xlu0 %1107  ;;  %v1536_v19 = vsel %vm1523_vm10, %v1503_v48, %v1221_v42 }
 0x2d7   : > { %2018 = vmatmul.msk.f32.gmra.mxu1 %vm1565_vm11, %v1536_v19  ;;  %v1495_v37 = vsel %vm1490_vm9, %v3466_v8, %v1108_v46 }
 0x2dc   : > { %v1205_v14 = vpop.permute.xlu1 %1204  ;;  %v1207_v6 = vpop.permute.xlu2 %1206 }
 0x2dd   : > { %v1528_v15 = vsel %vm1523_vm10, %v1495_v37, %v1205_v14 }
 0x2de   : > { %v1062_v45 = vpop.permute.xlu0 %1061  ;;  %2010 = vmatmul.msk.f32.gmra.mxu0 %vm1565_vm11, %v1528_v15 }
 0x2df   : > { %v1487_v56 = vsel %vm1457_vm7, %v3510_v31, %v1062_v45 }
 0x2e4   : > { %v1158_v18 = vpop.permute.xlu1 %1157  ;;  %v1160_v59 = vpop.permute.xlu2 %1159 }
 0x2e5   : > { %v1520_v34 = vsel %vm1490_vm9, %v1487_v56, %v1158_v18 }
 0x2e6   : > { %v1142_v39 = vpop.permute.xlu0 %1141 }
 0x2e7   : > { %v1512_v50 = vsel %vm1490_vm9, %v1479_v27, %v1142_v39 }
 0x2e8   : > { %v1545_v8 = vsel %vm1523_vm10, %v1512_v50, %v1239_v44 }
 0x2e9   : > { %v1731_v4 = vpop.f32.mrf.mxu2  ;;  %2027 = vmatmul.msk.f32.gmra.mxu2 %vm1565_vm11, %v1545_v8 }
 0x2ea   : > { %v1732_v22 = vadd.f32 %v3892_v41, %v1731_v4 }
 0x2ec   : > { %vm1795_vm12 = vcmp.gt.f32.partialorder %v1732_v22, 0.0  ;;  %v1827_v12 = vmul.f32 0.2, %v1732_v22  ;;  %v1110_v1 = vpop.permute.xlu1 %1109  ;;  %v1755_v58 = vpop.f32.mrf.mxu3 }
 0x2ed   : > { %v1496_v51 = vsel %vm1490_vm9, %v3623_v21, %v1110_v1  ;;  %v1756_v9 = vadd.f32 %v3892_v41, %v1755_v58  ;;  %v1112_v16 = vpop.permute.xlu2 %1111 }
 0x2ee   : > { %v1859_v25 = vsel %vm1795_vm12, %v1732_v22, %v1827_v12  ;;  %v1255_v38 = vpop.permute.xlu0 %1254  ;;  %v1529_v7 = vsel %vm1523_vm10, %v1496_v51, %v1207_v6  ;;  %v1497_v56 = vsel %vm1490_vm9, %v3615_v52, %v1112_v16 }
 0x2ef   : > { %1891 = vst.msk [vmem:[%s3903_s20 + $0x80] sm:$0xff] %vm1325_vm3, %v1859_v25  ;;  %vm1803_vm13 = vcmp.gt.f32.partialorder %v1756_v9, 0.0  ;;  %v1835_v36 = vmul.f32 0.2, %v1756_v9  ;;  %2011 = vmatmul.msk.f32.gmra.mxu0 %vm1565_vm11, %v1529_v7  ;;  %v1553_v43 = vsel %vm1523_vm10, %v1520_v34, %v1255_v38 }
 0x2f0   : > { %2035 = vmatmul.msk.f32.gmra.mxu3 %vm1565_vm11, %v1553_v43 }
 0x2f1   : > { %v1867_v31 = vsel %vm1803_vm13, %v1756_v9, %v1835_v36 }
 0x2f2   : > { %1899 = vst.msk [vmem:[%s3903_s20 + $0xc0] sm:$0xff] %vm1325_vm3, %v1867_v31 }
 0x2f3   : > { %v1707_v21 = vpop.f32.mrf.mxu1 }
 0x2f4   : > { %v1708_v2 = vadd.f32 %v3892_v41, %v1707_v21  ;;  %v1064_v17 = vpop.permute.xlu1 %1063 }
 0x2f5   : > { %v1683_v32 = vpop.f32.mrf.mxu0  ;;  %v1488_v29 = vsel %vm1457_vm7, %v3379_v35, %v1064_v17  ;;  %v1066_v18 = vpop.permute.xlu2 %1065 }
 0x2f6   : > { %vm1787_vm14 = vcmp.gt.f32.partialorder %v1708_v2, 0.0  ;;  %v1819_v5 = vmul.f32 0.2, %v1708_v2  ;;  %v1684_v26 = vadd.f32 %v3892_v41, %v1683_v32  ;;  %v1048_v60 = vpop.permute.xlu0 %1047  ;;  %v1521_v28 = vsel %vm1490_vm9, %v1488_v29, %v1160_v59 }
 0x2f7   : > { %v1480_v55 = vsel %vm1457_vm7, %v3427_v54, %v1048_v60  ;;  %v1489_v31 = vsel %vm1457_vm7, %v3563_v49, %v1066_v18 }
 0x2f8   : > { %v1851_v61 = vsel %vm1787_vm14, %v1708_v2, %v1819_v5  ;;  %vm1779_vm15 = vcmp.gt.f32.partialorder %v1684_v26, 0.0  ;;  %v1811_v11 = vmul.f32 0.2, %v1684_v26 }
 0x2f9   : > { %1883 = vst.msk [vmem:[%s3903_s20 + $0x40] sm:$0xff] %vm1325_vm3, %v1851_v61 }
 0x2fa   : > { %v1843_v24 = vsel %vm1779_vm15, %v1684_v26, %v1811_v11 }
 0x2fb   : > { %1875 = vst.msk [vmem:[%s3903_s20] sm:$0xff] %vm1325_vm3, %v1843_v24 }
 0x2fc   : > { %v1144_v40 = vpop.permute.xlu1 %1143 }
 0x2fd   : > { %v1513_v35 = vsel %vm1490_vm9, %v1480_v55, %v1144_v40  ;;  %v1146_v12 = vpop.permute.xlu2 %1145 }
 0x2fe   : > { %v1223_v3 = vpop.permute.xlu0 %1222 }
 0x2ff   : > { %v1537_v57 = vsel %vm1523_vm10, %v1504_v47, %v1223_v3 }
 0x300   : > { %2019 = vmatmul.msk.f32.gmra.mxu1 %vm1565_vm11, %v1537_v57 }
 0x301   : > { %v1734_v33 = vpop.f32.mrf.mxu2 }
 0x302   : > { %v1735_v10 = vadd.f32 %v3892_v41, %v1734_v33 }
 0x304   : > { %vm1796_vm0 = vcmp.gt.f32.partialorder %v1735_v10, 0.0  ;;  %v1828_v0 = vmul.f32 0.2, %v1735_v10  ;;  %v1257_v42 = vpop.permute.xlu1 %1256  ;;  %v1710_v53 = vpop.f32.mrf.mxu1 }
 0x305   : > { %v1711_v20 = vadd.f32 %v3892_v41, %v1710_v53  ;;  %v1758_v48 = vpop.f32.mrf.mxu3  ;;  %v1554_v46 = vsel %vm1523_vm10, %v1521_v28, %v1257_v42  ;;  %v1259_v25 = vpop.permute.xlu2 %1258 }
 0x306   : > { %v1860_v19 = vsel %vm1796_vm0, %v1735_v10, %v1828_v0  ;;  %v1759_v44 = vadd.f32 %v3892_v41, %v1758_v48  ;;  %v1241_v37 = vpop.permute.xlu0 %1240  ;;  %2036 = vmatmul.msk.f32.gmra.mxu3 %vm1565_vm11, %v1554_v46 }
 0x307   : > { %1892 = vst.msk [vmem:[%s3903_s20 + $0x88] sm:$0xff] %vm1325_vm3, %v1860_v19  ;;  %vm1788_vm1 = vcmp.gt.f32.partialorder %v1711_v20, 0.0  ;;  %v1820_v14 = vmul.f32 0.2, %v1711_v20  ;;  %v1546_v54 = vsel %vm1523_vm10, %v1513_v35, %v1241_v37 }
 0x308   : > { %vm1804_vm2 = vcmp.gt.f32.partialorder %v1759_v44, 0.0  ;;  %v1836_v15 = vmul.f32 0.2, %v1759_v44  ;;  %2028 = vmatmul.msk.f32.gmra.mxu2 %vm1565_vm11, %v1546_v54 }
 0x309   : > { %v1852_v45 = vsel %vm1788_vm1, %v1711_v20, %v1820_v14 }
 0x30a   : > { %1884 = vst.msk [vmem:[%s3903_s20 + $0x48] sm:$0xff] %vm1325_vm3, %v1852_v45  ;;  %v1868_v23 = vsel %vm1804_vm2, %v1759_v44, %v1836_v15 }
 0x30b   : > { %1900 = vst.msk [vmem:[%s3903_s20 + $0xc8] sm:$0xff] %vm1325_vm3, %v1868_v23  ;;  %v1686_v27 = vpop.f32.mrf.mxu0 }
 0x30c   : > { %v1687_v39 = vadd.f32 %v3892_v41, %v1686_v27  ;;  %v1050_v50 = vpop.permute.xlu1 %1049 }
 0x30d   : > { %v1481_v34 = vsel %vm1457_vm7, %v3419_v63, %v1050_v50  ;;  %v1211_v61 = vpop.permute.xlu2 %1210 }
 0x30e   : > { %vm1780_vm4 = vcmp.gt.f32.partialorder %v1687_v39, 0.0  ;;  %v1812_v8 = vmul.f32 0.2, %v1687_v39  ;;  %v1128_v4 = vpop.permute.xlu0 %1127  ;;  %v1514_v38 = vsel %vm1490_vm9, %v1481_v34, %v1146_v12 }
 0x30f   : > { %v1505_v1 = vsel %vm1490_vm9, %v3692_v13, %v1128_v4 }
 0x310   : > { %v1844_v22 = vsel %vm1780_vm4, %v1687_v39, %v1812_v8 }
 0x311   : > { %1876 = vst.msk [vmem:[%s3903_s20 + $0x8] sm:$0xff] %vm1325_vm3, %v1844_v22 }
 0x314   : > { %v1225_v58 = vpop.permute.xlu1 %1224 }
 0x315   : > { %v1538_v6 = vsel %vm1523_vm10, %v1505_v1, %v1225_v58 }
 0x316   : > { %v1209_v51 = vpop.permute.xlu0 %1208  ;;  %2020 = vmatmul.msk.f32.gmra.mxu1 %vm1565_vm11, %v1538_v6 }
 0x317   : > { %v1530_v9 = vsel %vm1523_vm10, %v1497_v56, %v1209_v51 }
 0x318   : > { %2012 = vmatmul.msk.f32.gmra.mxu0 %vm1565_vm11, %v1530_v9 }
 0x31c   : > { %v1243_v13 = vpop.permute.xlu1 %1242  ;;  %v1689_v7 = vpop.f32.mrf.mxu0 }
 0x31d   : > { %v1690_v36 = vadd.f32 %v3892_v41, %v1689_v7  ;;  %v1737_v43 = vpop.f32.mrf.mxu2  ;;  %v1547_v52 = vsel %vm1523_vm10, %v1514_v38, %v1243_v13 }
 0x31e   : > { %v1738_v21 = vadd.f32 %v3892_v41, %v1737_v43  ;;  %v1162_v2 = vpop.permute.xlu0 %1161  ;;  %2029 = vmatmul.msk.f32.gmra.mxu2 %vm1565_vm11, %v1547_v52 }
 0x31f   : > { %vm1781_vm5 = vcmp.gt.f32.partialorder %v1690_v36, 0.0  ;;  %v1813_v63 = vmul.f32 0.2, %v1690_v36  ;;  %v1522_v17 = vsel %vm1490_vm9, %v1489_v31, %v1162_v2 }
 0x320   : > { %vm1797_vm6 = vcmp.gt.f32.partialorder %v1738_v21, 0.0  ;;  %v1829_v32 = vmul.f32 0.2, %v1738_v21  ;;  %v1555_v5 = vsel %vm1523_vm10, %v1522_v17, %v1259_v25 }
 0x321   : > { %v1845_v26 = vsel %vm1781_vm5, %v1690_v36, %v1813_v63  ;;  %2037 = vmatmul.msk.f32.gmra.mxu3 %vm1565_vm11, %v1555_v5 }
 0x322   : > { %1877 = vst.msk [vmem:[%s3903_s20 + $0x10] sm:$0xff] %vm1325_vm3, %v1845_v26  ;;  %v1861_v49 = vsel %vm1797_vm6, %v1738_v21, %v1829_v32 }
 0x323   : > { %1893 = vst.msk [vmem:[%s3903_s20 + $0x90] sm:$0xff] %vm1325_vm3, %v1861_v49  ;;  %v1761_v60 = vpop.f32.mrf.mxu3 }
 0x324   : > { %v1762_v59 = vadd.f32 %v3892_v41, %v1761_v60  ;;  %v1130_v57 = vpop.permute.xlu1 %1129 }
 0x325   : > { %v1506_v29 = vsel %vm1490_vm9, %v3688_v30, %v1130_v57 }
 0x326   : > { %vm1805_vm7 = vcmp.gt.f32.partialorder %v1762_v59, 0.0  ;;  %v1837_v11 = vmul.f32 0.2, %v1762_v59  ;;  %v1114_v24 = vpop.permute.xlu0 %1113 }
 0x327   : > { %v1498_v40 = vsel %vm1490_vm9, %v3513_v62, %v1114_v24 }
 0x328   : > { %v1869_v47 = vsel %vm1805_vm7, %v1762_v59, %v1837_v11  ;;  %v1531_v3 = vsel %vm1523_vm10, %v1498_v40, %v1211_v61 }
 0x329   : > { %1901 = vst.msk [vmem:[%s3903_s20 + $0xd0] sm:$0xff] %vm1325_vm3, %v1869_v47  ;;  %2013 = vmatmul.msk.f32.gmra.mxu0 %vm1565_vm11, %v1531_v3 }
 0x32d   : > { %v1713_v16 = vpop.f32.mrf.mxu1 }
 0x32e   : > { %v1714_v33 = vadd.f32 %v3892_v41, %v1713_v16  ;;  %v1227_v10 = vpop.permute.xlu0 %1226 }
 0x32f   : > { %v1539_v0 = vsel %vm1523_vm10, %v1506_v29, %v1227_v10 }
 0x330   : > { %vm1789_vm8 = vcmp.gt.f32.partialorder %v1714_v33, 0.0  ;;  %v1821_v62 = vmul.f32 0.2, %v1714_v33  ;;  %2021 = vmatmul.msk.f32.gmra.mxu1 %vm1565_vm11, %v1539_v0 }
 0x332   : > { %v1853_v42 = vsel %vm1789_vm8, %v1714_v33, %v1821_v62 }
 0x333   : > { %1885 = vst.msk [vmem:[%s3903_s20 + $0x50] sm:$0xff] %vm1325_vm3, %v1853_v42 }
 0x339   : > { %v1764_v53 = vpop.f32.mrf.mxu3 }
 0x33a   : > { %v1765_v28 = vadd.f32 %v3892_v41, %v1764_v53 }
 0x33b   : > { %v1740_v55 = vpop.f32.mrf.mxu2 }
 0x33c   : > { %vm1806_vm12 = vcmp.gt.f32.partialorder %v1765_v28, 0.0  ;;  %v1838_v30 = vmul.f32 0.2, %v1765_v28  ;;  %v1741_v20 = vadd.f32 %v3892_v41, %v1740_v55 }
 0x33e   : > { %v1870_v48 = vsel %vm1806_vm12, %v1765_v28, %v1838_v30  ;;  %vm1798_vm9 = vcmp.gt.f32.partialorder %v1741_v20, 0.0  ;;  %v1830_v46 = vmul.f32 0.2, %v1741_v20 }
 0x33f   : > { %1902 = vst.msk [vmem:[%s3903_s20 + $0xd8] sm:$0xff] %vm1325_vm3, %v1870_v48 }
 0x340   : > { %v1862_v35 = vsel %vm1798_vm9, %v1741_v20, %v1830_v46 }
 0x341   : > { %1894 = vst.msk [vmem:[%s3903_s20 + $0x98] sm:$0xff] %vm1325_vm3, %v1862_v35 }
 0x343   : > { %v1716_v19 = vpop.f32.mrf.mxu1 }
 0x344   : > { %v1717_v44 = vadd.f32 %v3892_v41, %v1716_v19 }
 0x345   : > { %v1692_v37 = vpop.f32.mrf.mxu0 }
 0x346   : > { %vm1790_vm10 = vcmp.gt.f32.partialorder %v1717_v44, 0.0  ;;  %v1822_v14 = vmul.f32 0.2, %v1717_v44  ;;  %v1693_v54 = vadd.f32 %v3892_v41, %v1692_v37 }
 0x348   : > { %v1854_v15 = vsel %vm1790_vm10, %v1717_v44, %v1822_v14  ;;  %vm1782_vm11 = vcmp.gt.f32.partialorder %v1693_v54, 0.0  ;;  %v1814_v45 = vmul.f32 0.2, %v1693_v54 }
 0x349   : > { %1886 = vst.msk [vmem:[%s3903_s20 + $0x58] sm:$0xff] %vm1325_vm3, %v1854_v15 }
 0x34a   : > { %v1846_v23 = vsel %vm1782_vm11, %v1693_v54, %v1814_v45 }
 0x34b   : > { %1878 = vst.msk [vmem:[%s3903_s20 + $0x18] sm:$0xff] %vm1325_vm3, %v1846_v23 }
 0x351   : > { %v1743_v18 = vpop.f32.mrf.mxu2 }
 0x352   : > { %v1744_v27 = vadd.f32 %v3892_v41, %v1743_v18 }
 0x354   : > { %vm1799_vm13 = vcmp.gt.f32.partialorder %v1744_v27, 0.0  ;;  %v1831_v39 = vmul.f32 0.2, %v1744_v27  ;;  %v1719_v50 = vpop.f32.mrf.mxu1  ;;  %v1767_v8 = vpop.f32.mrf.mxu3 }
 0x355   : > { %v1720_v4 = vadd.f32 %v3892_v41, %v1719_v50  ;;  %v1768_v22 = vadd.f32 %v3892_v41, %v1767_v8 }
 0x356   : > { %v1863_v12 = vsel %vm1799_vm13, %v1744_v27, %v1831_v39 }
 0x357   : > { %1895 = vst.msk [vmem:[%s3903_s20 + $0xa0] sm:$0xff] %vm1325_vm3, %v1863_v12  ;;  %vm1791_vm14 = vcmp.gt.f32.partialorder %v1720_v4, 0.0  ;;  %v1823_v1 = vmul.f32 0.2, %v1720_v4  ;;  %vm1807_vm15 = vcmp.gt.f32.partialorder %v1768_v22, 0.0 }
 0x358   : > { %v1839_v58 = vmul.f32 0.2, %v1768_v22 }
 0x359   : > { %v1855_v6 = vsel %vm1791_vm14, %v1720_v4, %v1823_v1 }
 0x35a   : > { %1887 = vst.msk [vmem:[%s3903_s20 + $0x60] sm:$0xff] %vm1325_vm3, %v1855_v6  ;;  %v1871_v56 = vsel %vm1807_vm15, %v1768_v22, %v1839_v58 }
 0x35b   : > { %1903 = vst.msk [vmem:[%s3903_s20 + $0xe0] sm:$0xff] %vm1325_vm3, %v1871_v56  ;;  %v1695_v51 = vpop.f32.mrf.mxu0 }
 0x35c   : > { %v1696_v9 = vadd.f32 %v3892_v41, %v1695_v51 }
 0x35e   : > { %vm1783_vm0 = vcmp.gt.f32.partialorder %v1696_v9, 0.0  ;;  %v1815_v34 = vmul.f32 0.2, %v1696_v9 }
 0x360   : > { %v1847_v25 = vsel %vm1783_vm0, %v1696_v9, %v1815_v34 }
 0x361   : > { %1879 = vst.msk [vmem:[%s3903_s20 + $0x20] sm:$0xff] %vm1325_vm3, %v1847_v25 }
 0x36c   : > { %v1698_v38 = vpop.f32.mrf.mxu0  ;;  %v1746_v13 = vpop.f32.mrf.mxu2 }
 0x36d   : > { %v1699_v7 = vadd.f32 %v3892_v41, %v1698_v38  ;;  %v1747_v36 = vadd.f32 %v3892_v41, %v1746_v13 }
 0x36f   : > { %vm1784_vm1 = vcmp.gt.f32.partialorder %v1699_v7, 0.0  ;;  %v1816_v43 = vmul.f32 0.2, %v1699_v7  ;;  %vm1800_vm2 = vcmp.gt.f32.partialorder %v1747_v36, 0.0  ;;  %v1832_v52 = vmul.f32 0.2, %v1747_v36 }
 0x371   : > { %v1848_v31 = vsel %vm1784_vm1, %v1699_v7, %v1816_v43  ;;  %v1864_v21 = vsel %vm1800_vm2, %v1747_v36, %v1832_v52 }
 0x372   : > { %1880 = vst.msk [vmem:[%s3903_s20 + $0x28] sm:$0xff] %vm1325_vm3, %v1848_v31 }
 0x373   : > { %1896 = vst.msk [vmem:[%s3903_s20 + $0xa8] sm:$0xff] %vm1325_vm3, %v1864_v21  ;;  %v1770_v2 = vpop.f32.mrf.mxu3 }
 0x374   : > { %v1771_v63 = vadd.f32 %v3892_v41, %v1770_v2 }
 0x376   : > { %vm1808_vm4 = vcmp.gt.f32.partialorder %v1771_v63, 0.0  ;;  %v1840_v17 = vmul.f32 0.2, %v1771_v63 }
 0x378   : > { %v1872_v32 = vsel %vm1808_vm4, %v1771_v63, %v1840_v17 }
 0x379   : > { %1904 = vst.msk [vmem:[%s3903_s20 + $0xe8] sm:$0xff] %vm1325_vm3, %v1872_v32 }
 0x37d   : > { %v1722_v5 = vpop.f32.mrf.mxu1 }
 0x37e   : > { %v1723_v26 = vadd.f32 %v3892_v41, %v1722_v5 }
 0x380   : > { %vm1792_vm5 = vcmp.gt.f32.partialorder %v1723_v26, 0.0  ;;  %v1824_v49 = vmul.f32 0.2, %v1723_v26 }
 0x382   : > { %v1856_v60 = vsel %vm1792_vm5, %v1723_v26, %v1824_v49 }
 0x383   : > { %1888 = vst.msk [vmem:[%s3903_s20 + $0x68] sm:$0xff] %vm1325_vm3, %v1856_v60 }
 0x389   : > { %v1773_v59 = vpop.f32.mrf.mxu3 }
 0x38a   : > { %v1774_v61 = vadd.f32 %v3892_v41, %v1773_v59 }
 0x38b   : > { %v1749_v11 = vpop.f32.mrf.mxu2 }
 0x38c   : > { %vm1809_vm6 = vcmp.gt.f32.partialorder %v1774_v61, 0.0  ;;  %v1841_v24 = vmul.f32 0.2, %v1774_v61  ;;  %v1750_v40 = vadd.f32 %v3892_v41, %v1749_v11 }
 0x38e   : > { %v1873_v47 = vsel %vm1809_vm6, %v1774_v61, %v1841_v24  ;;  %vm1801_vm7 = vcmp.gt.f32.partialorder %v1750_v40, 0.0  ;;  %v1833_v3 = vmul.f32 0.2, %v1750_v40 }
 0x38f   : > { %1905 = vst.msk [vmem:[%s3903_s20 + $0xf0] sm:$0xff] %vm1325_vm3, %v1873_v47 }
 0x390   : > { %v1865_v57 = vsel %vm1801_vm7, %v1750_v40, %v1833_v3 }
 0x391   : > { %1897 = vst.msk [vmem:[%s3903_s20 + $0xb0] sm:$0xff] %vm1325_vm3, %v1865_v57 }
 0x393   : > { %v1725_v16 = vpop.f32.mrf.mxu1 }
 0x394   : > { %v1726_v29 = vadd.f32 %v3892_v41, %v1725_v16 }
 0x395   : > { %v1701_v33 = vpop.f32.mrf.mxu0 }
 0x396   : > { %vm1793_vm8 = vcmp.gt.f32.partialorder %v1726_v29, 0.0  ;;  %v1825_v10 = vmul.f32 0.2, %v1726_v29  ;;  %v1702_v0 = vadd.f32 %v3892_v41, %v1701_v33 }
 0x398   : > { %v1857_v62 = vsel %vm1793_vm8, %v1726_v29, %v1825_v10  ;;  %vm1785_vm12 = vcmp.gt.f32.partialorder %v1702_v0, 0.0  ;;  %v1817_v42 = vmul.f32 0.2, %v1702_v0 }
 0x399   : > { %1889 = vst.msk [vmem:[%s3903_s20 + $0x70] sm:$0xff] %vm1325_vm3, %v1857_v62 }
 0x39a   : > { %v1849_v53 = vsel %vm1785_vm12, %v1702_v0, %v1817_v42 }
 0x39b   : > { %1881 = vst.msk [vmem:[%s3903_s20 + $0x30] sm:$0xff] %vm1325_vm3, %v1849_v53 }
 0x3a1   : > { %v1752_v28 = vpop.f32.mrf.mxu2 }
 0x3a2   : > { %v1753_v55 = vadd.f32 %v3892_v41, %v1752_v28 }
 0x3a4   : > { %vm1802_vm9 = vcmp.gt.f32.partialorder %v1753_v55, 0.0  ;;  %v1834_v30 = vmul.f32 0.2, %v1753_v55  ;;  %v1776_v20 = vpop.f32.mrf.mxu3 }
 0x3a5   : > { %v1777_v48 = vadd.f32 %v3892_v41, %v1776_v20 }
 0x3a6   : > { %v1866_v46 = vsel %vm1802_vm9, %v1753_v55, %v1834_v30  ;;  %v1704_v35 = vpop.f32.mrf.mxu0 }
 0x3a7   : > { %1898 = vst.msk [vmem:[%s3903_s20 + $0xb8] sm:$0xff] %vm1325_vm3, %v1866_v46  ;;  %vm1810_vm10 = vcmp.gt.f32.partialorder %v1777_v48, 0.0  ;;  %v1842_v19 = vmul.f32 0.2, %v1777_v48  ;;  %v1705_v44 = vadd.f32 %v3892_v41, %v1704_v35 }
 0x3a9   : > { %v1874_v37 = vsel %vm1810_vm10, %v1777_v48, %v1842_v19  ;;  %vm1786_vm11 = vcmp.gt.f32.partialorder %v1705_v44, 0.0  ;;  %v1818_v14 = vmul.f32 0.2, %v1705_v44 }
 0x3aa   : > { %1906 = vst.msk [vmem:[%s3903_s20 + $0xf8] sm:$0xff] %vm1325_vm3, %v1874_v37 }
 0x3ab   : > { %v1850_v54 = vsel %vm1786_vm11, %v1705_v44, %v1818_v14 }
 0x3ac   : > { %1882 = vst.msk [vmem:[%s3903_s20 + $0x38] sm:$0xff] %vm1325_vm3, %v1850_v54 }
 0x3ad   : > { %v1728_v15 = vpop.f32.mrf.mxu1 }
 0x3ae   : > { %v1729_v45 = vadd.f32 %v3892_v41, %v1728_v15 }
 0x3b0   : > { %vm1794_vm13 = vcmp.gt.f32.partialorder %v1729_v45, 0.0  ;;  %v1826_v23 = vmul.f32 0.2, %v1729_v45 }
 0x3b2   : > { %v1858_v18 = vsel %vm1794_vm13, %v1729_v45, %v1826_v23 }
 0x3b3   : > { %1890 = vst.msk [vmem:[%s3903_s20 + $0x78] sm:$0xff] %vm1325_vm3, %v1858_v18 }
 0x3b4 PF: > { %s13_s14 = sadd.s32 1, %s2139_s14   ;;  %s4489_s12 = smov %s2135_s13 }
 0x3b5   : > { %p10_p5 = scmp.ge.s32.totalorder %s13_s14, 4   ;;  %s4490_s13 = smov %s4492_s15 }
 0x3b7   :  { %12 = sbr.rel (!%p10_p5) target bundleno = 2 (0x2), region = 65 }

// kernel: _lambda_.7
= control target key start
LH: loop header
LB: loop body
LE: loop exit
PB: predicated region body
PF: predicated region fallthrough
CT: control target
= control target key end

     0   :  { %s566_s12 = smov 0   ;;  %s568_s13 = smov 0   ;;  %s699_s0 = inlined_call_operand.vmem [shape: f32[2,4,4,16], index: 0, kind: input, shape index: {}]   ;;  %s700_s1 = inlined_call_operand.vmem [shape: f32[144,16], index: 1, kind: input, shape index: {}]   ;;  %s701_s2 = inlined_call_operand.vmem [shape: f32[1,16], index: 2, kind: input, shape index: {}]   ;;  %s702_s3 = inlined_call_operand.vmem [shape: f32[2,4,4,16], index: 3, kind: output, shape index: {}]  }
   0x1   :  { %s570_s14 = smov 0   ;;  %s572_s15 = smov 0  }
   0x2   :  { %s574_s16 = smov 0  }
   0x3 LB: > { %s22_s17 = sadd.s32 1, %s529_s14  ;;  %s25_s18 = sadd.s32 1, %s533_s15  ;;  %s537_s16 = sphi %s574_s16, %s13_s16   ;;  %s533_s15 = sphi %s572_s15, %s706_s15   ;;  %s529_s14 = sphi %s570_s14, %s705_s14   ;;  %s525_s13 = sphi %s568_s13, %s704_s13   ;;  %s521_s12 = sphi %s566_s12, %s703_s12  }
   0x4   : > { %p23_p0 = scmp.ge.s32.totalorder %s22_s17, 4  ;;  %p438_p1 = scmp.ge.s32.totalorder %s537_s16, 1 }
   0x5   : > { %p151_p2 = scmp.lt.s32.totalorder %s537_s16, 9 }
   0x6   : > { %s708_s17 = smov (%p23_p0, %s22_s17), 0  ;;  %s710_s18 = smov (!%p23_p0, %s25_s18), %s533_s15 }
   0x7   : > { %p152_p3 = pnand %p438_p1, %p151_p2  ;;  %p27_p4 = scmp.ge.s32.totalorder %s710_s18, 2 }
   0x8   : > { %p178_p5 = scmp.lt.s32.totalorder (!%p152_p3), %s525_s13, 1  ;;  %s444_s19 = sadd.s32 (!%p152_p3), 4294967295, %s521_s12 }
   0x9   : > { %s712_s18 = smov (%p27_p4, %s710_s18), 0  ;;  %155 = sbr.rel (%p152_p3) target bundleno = 291 (0x123), region = 32 }
   0xa   : > { %p195_p6 = scmp.gt.s32.totalorder (!%p152_p3), %s444_s19, 0  ;;  %p200_p7 = scmp.gt.s32.totalorder (!%p152_p3), %s521_s12, 0 }
   0xb   : > { %s443_s7 = sshll.u32 (!%p152_p3), %s521_s12, 2  ;;  %s539_s25 = smov (!%p152_p3), 48  }
   0xc   : > { %s541_s27 = smov (!%p152_p3), 16   ;;  %s544_s8 = smov (!%p152_p3), 96  }
   0xd   : > { %s545_s9 = smov (!%p152_p3), 112   ;;  %p185_p10 = scmp.lt.s32.totalorder (!%p152_p3), %s521_s12, 3 }
   0xe   : > { %v293_v0 = vld [vmem:[%s700_s1 + $0x78] sm:$0xff]  ;;  %v292_v1 = vld [vmem:[%s700_s1 + $0x70] sm:$0xff]  ;;  %s714_s13 = smov (!%p178_p5, %s525_s13), 1  ;;  %v291_v2 = vld [vmem:[%s700_s1 + $0x68] sm:$0xff]  ;;  %s716_s19 = smov (!%p195_p6, %s444_s19), 0  ;;  %vm225_vm0 = vcmask 1040384  }
   0xf   : > { %303 = vmatpush.msra.mxu0 %v293_v0  ;;  %s450_s26 = sshll.u32 %s714_s13, 4  ;;  %v290_v3 = vld [vmem:[%s700_s1 + $0x60] sm:$0xff]  ;;  %s445_s5 = sshll.u32 %s716_s19, 2  ;;  %v289_v4 = vld [vmem:[%s700_s1 + $0x58] sm:$0xff]  ;;  %v288_v5 = vld [vmem:[%s700_s1 + $0x50] sm:$0xff]  ;;  %vm235_vm1 = vcmask 1042432  }
  0x10   : > { %s618_s4 = scalar_lea.vmem %s699_s0, %s450_s26  ;;  %s205_s19 = sadd.s32 1, %s521_s12  ;;  %v287_v11 = vld [vmem:[%s700_s1 + $0x48] sm:$0xff]  ;;  %v286_v22 = vld [vmem:[%s700_s1 + $0x40] sm:$0xff]  ;;  %v285_v23 = vld [vmem:[%s700_s1 + $0x38] sm:$0xff]  ;;  %vm264_vm2 = vcmask 130048   ;;  %vm266_vm3 = vcmask 261120  }
  0x11   : > { %304 = vmatpush.msra.mxu0 %v292_v1  ;;  %s198_s6 = scalar_lea.vmem %s618_s4, %s445_s5  ;;  %s192_s11 = scalar_lea.vmem %s618_s4, %s443_s7  ;;  %v284_v24 = vld [vmem:[%s700_s1 + $0x30] sm:$0xff]  ;;  %v283_v25 = vld [vmem:[%s700_s1 + $0x28] sm:$0xff]  ;;  %v282_v26 = vld [vmem:[%s700_s1 + $0x20] sm:$0xff]  ;;  %vm268_vm4 = vcmask 392192   ;;  %vm270_vm5 = vcmask 523264   ;;  %vm272_vm6 = vcmask 654336  }
  0x12   : > { %s201_s10 = scalar_select %p200_p7, 1, 0  ;;  %v199_v6 = vld [vmem:[%s198_s6] sm:$0xf]  ;;  %v281_v27 = vld [vmem:[%s700_s1 + $0x18] sm:$0xff]  ;;  %v280_v28 = vld [vmem:[%s700_s1 + $0x10] sm:$0xff] }
  0x13   : > { %305 = vmatpush.msra.mxu0 %v291_v2  ;;  %v193_v7 = vld [vmem:[%s192_s11] sm:$0xf]  ;;  %p206_p8 = scmp.lt.s32.totalorder %s205_s19, 3  ;;  %p211_p9 = scmp.lt.s32.totalorder %s205_s19, 4  ;;  %v279_v29 = vld [vmem:[%s700_s1 + $0x8] sm:$0xff]  ;;  %vm274_vm7 = vcmask 785408  }
  0x14   : > { %s202_s22 = scvt.s32.f32 %s201_s10  ;;  %v220_v8 = vrot.slane %v193_v7, 7  ;;  %v230_v9 = vrot.slane %v193_v7, 1  ;;  %s540_s26 = smov 80   ;;  %v278_v30 = vld [vmem:[%s700_s1] sm:$0xff]  ;;  %v295_v31 = vld [vmem:[%s700_s1 + $0x88] sm:$0xff]  ;;  %vm276_vm8 = vcmask 916480  }
  0x15   : > { %306 = vmatpush.msra.mxu0 %v290_v3  ;;  %s718_s19 = smov (!%p206_p8, %s205_s19), 3  ;;  %s542_s6 = smov 64   ;;  %337 = vmatpush.msra.mxu1 %v295_v31  ;;  %v294_v33 = vld [vmem:[%s700_s1 + $0x80] sm:$0xff]  ;;  %vm346_vm10 = vcmask 125952  }
  0x16   : > { %v203_v10 = vstv %s202_s22  ;;  %v227_v13 = vsel %vm225_vm0, 0.0, %v220_v8  ;;  %v237_v14 = vsel %vm235_vm1, %v230_v9, 0.0  ;;  %s212_s28 = scalar_select %p211_p9, 1, 0  ;;  %v498_v51 = vld [vmem:[%s701_s2] ss:$0 sm:$0xff] }
  0x17   : > { %307 = vmatpush.msra.mxu0 %v289_v4  ;;  %v204_v12 = vmul.f32 %v203_v10, %v199_v6  ;;  %247 = vrot.lane.b32.xlu1 %v227_v13, %s539_s25  ;;  %s446_s29 = sshll.u32 %s718_s19, 2  ;;  %s543_s7 = smov 32  }
  0x18   : > { %254 = vrot.lane.b32.xlu2 %v237_v14, %s540_s26  ;;  %s209_s30 = scalar_lea.vmem %s618_s4, %s446_s29  ;;  %s213_s5 = scvt.s32.f32 %s212_s28  ;;  %338 = vmatpush.msra.mxu1 %v294_v33 }
  0x19   : > { %308 = vmatpush.msra.mxu0 %v288_v5  ;;  %239 = vrot.lane.b32.xlu0 %v204_v12, %s541_s27  ;;  %v229_v15 = vrot.slane %v204_v12, 1  ;;  %v210_v16 = vld [vmem:[%s209_s30] sm:$0xf]  ;;  %v219_v37 = vrot.slane %v204_v12, 7  ;;  %s720_s12 = smov (!%p185_p10, %s521_s12), 3  ;;  %s441_s4 = sshll.u32 %s714_s13, 2 }
  0x1a   : > { %v214_v17 = vstv %s213_s5  ;;  %s188_s22 = sadd.s32 %s441_s4, %s720_s12 }
  0x1b   : > { %309 = vmatpush.msra.mxu0 %v287_v11  ;;  %v236_v18 = vsel %vm235_vm1, %v229_v15, 0.0  ;;  %v215_v19 = vmul.f32 %v214_v17, %v210_v16  ;;  %v226_v39 = vsel %vm225_vm0, 0.0, %v219_v37  ;;  %s442_s19 = sshll.u32 %s188_s22, 2 }
  0x1c   : > { %s190_s25 = scalar_lea.vmem %s702_s3, %s442_s19 }
  0x1d   : > { %v221_v20 = vrot.slane %v215_v19, 7  ;;  %310 = vmatpush.msra.mxu0 %v286_v22  ;;  %v231_v32 = vrot.slane %v215_v19, 1 }
  0x1f   : > { %250 = vrot.lane.b32.xlu1 %v193_v7, %s542_s6  ;;  %v228_v21 = vsel %vm225_vm0, 0.0, %v221_v20  ;;  %311 = vmatpush.msra.mxu0 %v285_v23  ;;  %v238_v34 = vsel %vm235_vm1, %v231_v32, 0.0 }
  0x20   : > { %258 = vrot.lane.b32.xlu2 %v228_v21, %s544_s8  ;;  %447 = vmatmul.msk.f32.vlgmr.msra.gmra.mxu1 %vm264_vm2, %v238_v34 }
  0x21   : > { %243 = vrot.lane.b32.xlu0 %v236_v18, %s543_s7  ;;  %312 = vmatpush.msra.mxu0 %v284_v24 }
  0x23   : > { %313 = vmatpush.msra.mxu0 %v283_v25 }
  0x25   : > { %314 = vmatpush.msra.mxu0 %v282_v26 }
  0x27   : > { %315 = vmatpush.msra.mxu0 %v281_v27 }
  0x29   : > { %261 = vrot.lane.b32.xlu0 %v215_v19, %s545_s9  ;;  %316 = vmatpush.msra.mxu0 %v280_v28 }
  0x2b   : > { %317 = vmatpush.msra.mxu0 %v279_v29 }
  0x2d   : > { %318 = vmatpush.msra.mxu0 %v278_v30 }
  0x72   : > { %v255_v38 = vpop.permute.xlu2 %254 }
  0x7a   : > { %v259_v46 = vpop.permute.xlu2 %258 }
  0x89   : > { %v248_v35 = vpop.permute.xlu1 %247 }
  0x8b   : > { %v240_v36 = vpop.permute.xlu0 %239 }
  0x8c   : > { %v265_v40 = vsel %vm264_vm2, %v226_v39, %v240_v36 }
  0x91   : > { %v251_v42 = vpop.permute.xlu1 %250 }
  0x93   : > { %v244_v41 = vpop.permute.xlu0 %243 }
  0x94   : > { %v267_v43 = vsel %vm266_vm3, %v265_v40, %v244_v41 }
  0x95   : > { %v269_v44 = vsel %vm268_vm4, %v267_v43, %v248_v35 }
  0x96   : > { %v271_v45 = vsel %vm270_vm5, %v269_v44, %v251_v42 }
  0x97   : > { %v273_v47 = vsel %vm272_vm6, %v271_v45, %v255_v38 }
  0x98   : > { %v275_v48 = vsel %vm274_vm7, %v273_v47, %v259_v46 }
  0x9b   : > { %v262_v49 = vpop.permute.xlu0 %261 }
  0x9c   : > { %v277_v50 = vsel %vm276_vm8, %v275_v48, %v262_v49 }
  0x9d   : > { %319 = vmatmul.f32.vlgmr.msra.gmra.mxu0 %v277_v50  ;;  %v340_v53 = vpop.f32.mrf.mxu1 }
 0x11a   : > { %v320_v52 = vpop.f32.mrf.mxu0 }
 0x11b   : > { %v321_v54 = vadd.f32 %v498_v51, %v320_v52 }
 0x11d   : > { %v341_v55 = vadd.f32 %v340_v53, %v321_v54 }
 0x11f   : > { %vm343_vm9 = vcmp.gt.f32.partialorder %v341_v55, 0.0  ;;  %v344_v56 = vmul.f32 0.2, %v341_v55 }
 0x121   : > { %v345_v57 = vsel %vm343_vm9, %v341_v55, %v344_v56 }
 0x122   : > { %347 = vst.msk [vmem:[%s190_s25] sm:$0xf] %vm346_vm10, %v345_v57 }
 0x123 PF: > { %s13_s16 = sadd.s32 1, %s537_s16   ;;  %s703_s12 = smov %s529_s14 }
 0x124   : > { %p10_p11 = scmp.ge.s32.totalorder %s13_s16, 10   ;;  %s704_s13 = smov %s533_s15 }
 0x125   : > { %s705_s14 = smov %s708_s17  ;;  %s706_s15 = smov %s712_s18 }
 0x126   :  { %12 = sbr.rel (!%p10_p11) target bundleno = 3 (0x3), region = 65 }

// kernel: _lambda_.8
= control target key start
LH: loop header
LB: loop body
LE: loop exit
PB: predicated region body
PF: predicated region fallthrough
CT: control target
= control target key end

     0   :  { %s1061_s12 = smov 0   ;;  %s1063_s13 = smov 0   ;;  %s1523_s0 = inlined_call_operand.vmem [shape: f32[2,8,8,32], index: 0, kind: input, shape index: {}]   ;;  %s1524_s1 = inlined_call_operand.vmem [shape: f32[288,8], index: 1, kind: input, shape index: {}]   ;;  %s1525_s2 = inlined_call_operand.vmem [shape: f32[1,8], index: 2, kind: input, shape index: {}]   ;;  %s1526_s3 = inlined_call_operand.vmem [shape: f32[2,64,8], index: 3, kind: output, shape index: {}]  }
   0x1   :  { %s1065_s14 = smov 0  }
   0x2 LB: > { %s25_s15 = sadd.s32 1, %s1032_s13  ;;  %p816_p0 = scmp.ge.s32.totalorder %s1036_s14, 1  ;;  %s1036_s14 = sphi %s1065_s14, %s13_s14   ;;  %s1032_s13 = sphi %s1063_s13, %s1528_s13   ;;  %s1028_s12 = sphi %s1061_s12, %s1527_s12  }
   0x3   : > { %p27_p1 = scmp.ge.s32.totalorder %s25_s15, 2  ;;  %p151_p2 = scmp.lt.s32.totalorder %s1036_s14, 3 }
   0x5   : > { %s1530_s15 = smov (%p27_p1, %s25_s15), 0  ;;  %p152_p3 = pnand %p816_p0, %p151_p2 }
   0x6   : > { %p179_p4 = scmp.lt.s32.totalorder (!%p152_p3), %s1028_s12, 1  ;;  %s1038_s20 = smov (!%p152_p3), 32  }
   0x7   : > { %155 = sbr.rel (%p152_p3) target bundleno = 333 (0x14d), region = 32  ;;  %s1039_s21 = smov (!%p152_p3), 96  }
   0x8   : > { %s1040_s22 = smov (!%p152_p3), 64  }
   0xc   : > { %s1532_s12 = smov (!%p179_p4, %s1028_s12), 1  ;;  %vm288_vm0 = vcmask 1046528   ;;  %vm257_vm1 = vcmask 1040384   ;;  %v527_v51 = vld [vmem:[%s1524_s1 + $0x78] sm:$0xff]  ;;  %v526_v53 = vld [vmem:[%s1524_s1 + $0x70] sm:$0xff]  ;;  %v525_v55 = vld [vmem:[%s1524_s1 + $0x68] sm:$0xff] }
   0xd   : > { %s832_s16 = sshll.u32 %s1532_s12, 6  ;;  %v1208_v52 = vld [vmem:[%s1524_s1 + $0xf8] sm:$0xff]  ;;  %569 = vmatpush.msra.mxu0 %v527_v51  ;;  %v1217_v54 = vld [vmem:[%s1524_s1 + $0xf0] sm:$0xff]  ;;  %834 = vmatpush.msra.mxu3 %v527_v51  ;;  %v1230_v57 = vld [vmem:[%s1524_s1 + $0xe8] sm:$0xff]  ;;  %vm461_vm2 = vcmask 261120   ;;  %vm470_vm3 = vcmask 523264  }
   0xe   : > { %s1087_s19 = scalar_lea.vmem %s1523_s0, %s832_s16  ;;  %610 = vmatpush.msra.mxu1 %v1208_v52  ;;  %v524_v59 = vld [vmem:[%s1524_s1 + $0x60] sm:$0xff]  ;;  %v547_v60 = vld [vmem:[%s1524_s1 + $0x118] sm:$0xff]  ;;  %vm479_vm4 = vcmask 785408   ;;  %vm716_vm6 = vcmask 64512  }
   0xf   : > { %v1090_v0 = vld [vmem:[%s1087_s19] sm:$0xff]  ;;  %v1097_v3 = vld [vmem:[%s1087_s19 + $0x8] sm:$0xff]  ;;  %v1113_v12 = vld [vmem:[%s1087_s19 + $0x10] sm:$0xff]  ;;  %570 = vmatpush.msra.mxu0 %v526_v53  ;;  %835 = vmatpush.msra.mxu3 %v526_v53 }
  0x10   : > { %v1093_v1 = vmul.f32 0.0, %v1090_v0  ;;  %v269_v2 = vrot.slane %v1090_v0, 1  ;;  %v238_v4 = vrot.slane %v1090_v0, 7  ;;  %v239_v5 = vrot.slane %v1097_v3, 7  ;;  %v1124_v17 = vld [vmem:[%s1087_s19 + $0x28] sm:$0xff]  ;;  %v1141_v24 = vld [vmem:[%s1087_s19 + $0x30] sm:$0xff]  ;;  %611 = vmatpush.msra.mxu1 %v1217_v54  ;;  %663 = vmatpush.msra.mxu2 %v547_v60 }
  0x11   : > { %v270_v9 = vrot.slane %v1097_v3, 1  ;;  %v240_v16 = vrot.slane %v1113_v12, 7  ;;  %v274_v22 = vrot.slane %v1124_v17, 1  ;;  %v1144_v25 = vld [vmem:[%s1087_s19 + $0x18] sm:$0xff]  ;;  %v244_v27 = vrot.slane %v1141_v24, 7  ;;  %v1172_v37 = vld [vmem:[%s1087_s19 + $0x20] sm:$0xff]  ;;  %571 = vmatpush.msra.mxu0 %v525_v55  ;;  %836 = vmatpush.msra.mxu3 %v525_v55 }
  0x12   : > { %v290_v6 = vsel %vm288_vm0, %v269_v2, 0.0  ;;  %v1103_v7 = vsel %vm257_vm1, 0.0, %v238_v4  ;;  %v268_v8 = vrot.slane %v1093_v1, 1  ;;  %v1116_v13 = vsel %vm257_vm1, 0.0, %v239_v5  ;;  %v1175_v38 = vld [vmem:[%s1087_s19 + $0x38] sm:$0xff]  ;;  %v1244_v61 = vld [vmem:[%s1524_s1 + $0xe0] sm:$0xff]  ;;  %612 = vmatpush.msra.mxu1 %v1230_v57 }
  0x13   : > { %v893_v10 = vpack.i.bf16 %v290_v6, %v1093_v1  ;;  %v898_v11 = vpack.i.bf16 %v1097_v3, %v1103_v7  ;;  %v1120_v15 = vsel %vm288_vm0, %v270_v9, 0.0  ;;  %v1127_v18 = vsel %vm257_vm1, 0.0, %v240_v16  ;;  %v523_v2 = vld [vmem:[%s1524_s1 + $0x58] sm:$0xff]  ;;  %572 = vmatpush.msra.mxu0 %v524_v59  ;;  %837 = vmatpush.msra.mxu3 %v524_v59  ;;  %v516_v51 = vld [vmem:[%s1524_s1 + $0x20] sm:$0xff]  ;;  %v514_v55 = vld [vmem:[%s1524_s1 + $0x10] sm:$0xff] }
  0x14   : > { %v289_v14 = vsel %vm288_vm0, %v268_v8, 0.0  ;;  %v903_v20 = vpack.i.bf16 %v1120_v15, %v1090_v0  ;;  %v908_v21 = vpack.i.bf16 %v1127_v18, %v290_v6  ;;  %v1138_v23 = vsel %vm288_vm0, %v274_v22, 0.0  ;;  %613 = vmatpush.msra.mxu1 %v1244_v61  ;;  %v1262_v9 = vld [vmem:[%s1524_s1 + $0xd8] sm:$0xff]  ;;  %v521_v22 = vld [vmem:[%s1524_s1 + $0x48] sm:$0xff]  ;;  %v512_v60 = vld [vmem:[%s1524_s1] sm:$0xff] }
  0x15   : > { %894 = vrot.lane.b32.xlu0 %v893_v10, %s1038_s20  ;;  %899 = vrot.lane.b32.xlu1 %v898_v11, %s1039_s21  ;;  %v918_v19 = vpack.i.bf16 %v1116_v13, %v289_v14  ;;  %v913_v26 = vpack.i.bf16 %v1113_v12, %v1116_v13  ;;  %v923_v28 = vpack.i.bf16 %v1097_v3, %v1124_v17  ;;  %v271_v30 = vrot.slane %v1113_v12, 1  ;;  %v522_v10 = vld [vmem:[%s1524_s1 + $0x50] sm:$0xff]  ;;  %v531_v53 = vld [vmem:[%s1524_s1 + $0x98] sm:$0xff] }
  0x16   : > { %909 = vrot.lane.b32.xlu2 %v908_v21, %s1040_s22  ;;  %v928_v29 = vpack.i.bf16 %v1120_v15, %v1138_v23  ;;  %v241_v31 = vrot.slane %v1144_v25, 7  ;;  %v275_v32 = vrot.slane %v1141_v24, 1  ;;  %v1158_v33 = vsel %vm257_vm1, 0.0, %v244_v27  ;;  %573 = vmatpush.msra.mxu0 %v523_v2  ;;  %v546_v11 = vld [vmem:[%s1524_s1 + $0x110] sm:$0xff]  ;;  %v529_v59 = vld [vmem:[%s1524_s1 + $0x88] sm:$0xff] }
  0x17   : > { %v1163_v34 = vsel %vm288_vm0, %v271_v30, 0.0  ;;  %v933_v39 = vpack.i.bf16 %v1127_v18, %v1158_v33  ;;  %v272_v42 = vrot.slane %v1144_v25, 1  ;;  %v242_v43 = vrot.slane %v1172_v37, 7  ;;  %v1275_v14 = vld [vmem:[%s1524_s1 + $0xd0] sm:$0xff]  ;;  %614 = vmatpush.msra.mxu1 %v1262_v9  ;;  %838 = vmatpush.msra.mxu3 %v523_v2 }
  0x18   : > { %v1166_v35 = vsel %vm257_vm1, 0.0, %v241_v31  ;;  %v1169_v36 = vsel %vm288_vm0, %v275_v32, 0.0  ;;  %v938_v40 = vpack.i.bf16 %v1141_v24, %v1163_v34  ;;  %v245_v44 = vrot.slane %v1175_v38, 7  ;;  %574 = vmatpush.msra.mxu0 %v522_v10  ;;  %664 = vmatpush.msra.mxu2 %v546_v11  ;;  %v1308_v32 = vld [vmem:[%s1524_s1 + $0xc0] sm:$0xff] }
  0x19   : > { %v943_v41 = vpack.i.bf16 %v1169_v36, %v1166_v35  ;;  %v1190_v45 = vsel %vm288_vm0, %v272_v42, 0.0  ;;  %v1193_v46 = vsel %vm257_vm1, 0.0, %v242_v43  ;;  %v1225_v56 = vmul.f32 0.0, %v1175_v38  ;;  %615 = vmatpush.msra.mxu1 %v1275_v14  ;;  %839 = vmatpush.msra.mxu3 %v522_v10  ;;  %v518_v42 = vld [vmem:[%s1524_s1 + $0x30] sm:$0xff] }
  0x1a   : > { %v266_v47 = vsel %vm257_vm1, 0.0, %v245_v44  ;;  %v953_v49 = vpack.i.bf16 %v1190_v45, %v1113_v12  ;;  %v958_v50 = vpack.i.bf16 %v1193_v46, %v1163_v34  ;;  %v963_v58 = vpack.i.bf16 %v1172_v37, %v1166_v35  ;;  %575 = vmatpush.msra.mxu0 %v521_v22  ;;  %v1332_v43 = vld [vmem:[%s1524_s1 + $0xb0] sm:$0xff] }
  0x1b   : > { %v948_v48 = vpack.i.bf16 %v266_v47, %v1144_v25  ;;  %v968_v62 = vpack.i.bf16 %v1144_v25, %v1169_v36  ;;  %v973_v63 = vpack.i.bf16 %v1190_v45, %v266_v47  ;;  %v273_v4 = vrot.slane %v1172_v37, 1  ;;  %840 = vmatpush.msra.mxu3 %v521_v22 }
  0x1c   : > { %v276_v5 = vrot.slane %v1175_v38, 1  ;;  %v243_v6 = vrot.slane %v1124_v17, 7  ;;  %v246_v8 = vrot.slane %v1225_v56, 7  ;;  %v978_v27 = vpack.i.bf16 %v1193_v46, %v1175_v38 }
  0x1d   : > { %919 = vrot.lane.b32.xlu0 %v918_v19, %s1040_s22  ;;  %904 = vrot.lane.b32.xlu1 %v903_v20, %s1038_s20  ;;  %v294_v16 = vsel %vm288_vm0, %v273_v4, 0.0  ;;  %v993_v44 = vpack.i.bf16 %v1225_v56, %v1124_v17  ;;  %v998_v47 = vpack.i.bf16 %v1138_v23, %v1172_v37 }
  0x1e   : > { %914 = vrot.lane.b32.xlu2 %v913_v26, %s1039_s21  ;;  %v1279_v19 = vsel %vm288_vm0, %v276_v5, 0.0  ;;  %v1282_v20 = vsel %vm257_vm1, 0.0, %v243_v6  ;;  %v267_v21 = vsel %vm257_vm1, 0.0, %v246_v8  ;;  %v545_v26 = vld [vmem:[%s1524_s1 + $0x108] sm:$0xff] }
  0x1f   : > { %v983_v30 = vpack.i.bf16 %v1279_v19, %v294_v16  ;;  %v988_v31 = vpack.i.bf16 %v267_v21, %v1282_v20  ;;  %665 = vmatpush.msra.mxu2 %v545_v26 }
  0x25   : > { %924 = vrot.lane.b32.xlu0 %v923_v28, %s1038_s20  ;;  %929 = vrot.lane.b32.xlu1 %v928_v29, %s1040_s22  ;;  %v1297_v28 = vld [vmem:[%s1524_s1 + $0xc8] sm:$0xff]  ;;  %v520_v29 = vld [vmem:[%s1524_s1 + $0x40] sm:$0xff] }
  0x26   : > { %934 = vrot.lane.b32.xlu2 %v933_v39, %s1039_s21  ;;  %616 = vmatpush.msra.mxu1 %v1297_v28  ;;  %v519_v39 = vld [vmem:[%s1524_s1 + $0x38] sm:$0xff] }
  0x27   : > { %576 = vmatpush.msra.mxu0 %v520_v29  ;;  %841 = vmatpush.msra.mxu3 %v520_v29 }
  0x28   : > { %617 = vmatpush.msra.mxu1 %v1308_v32 }
  0x29   : > { %577 = vmatpush.msra.mxu0 %v519_v39  ;;  %842 = vmatpush.msra.mxu3 %v519_v39 }
  0x2b   : > { %578 = vmatpush.msra.mxu0 %v518_v42  ;;  %843 = vmatpush.msra.mxu3 %v518_v42 }
  0x2d   : > { %939 = vrot.lane.b32.xlu0 %v938_v40, %s1038_s20  ;;  %944 = vrot.lane.b32.xlu1 %v943_v41, %s1040_s22  ;;  %v1318_v40 = vld [vmem:[%s1524_s1 + $0xb8] sm:$0xff]  ;;  %v544_v41 = vld [vmem:[%s1524_s1 + $0x100] sm:$0xff] }
  0x2e   : > { %949 = vrot.lane.b32.xlu2 %v948_v48, %s1039_s21  ;;  %618 = vmatpush.msra.mxu1 %v1318_v40  ;;  %v1003_v48 = vpack.i.bf16 %v1158_v33, %v294_v16 }
  0x2f   : > { %666 = vmatpush.msra.mxu2 %v544_v41 }
  0x30   : > { %619 = vmatpush.msra.mxu1 %v1332_v43  ;;  %822 = vmatmul.msk.f32.vlgmr.msra.gmra.mxu2 %vm461_vm2, %v1120_v15  ;;  %v517_v15 = vld [vmem:[%s1524_s1 + $0x28] sm:$0xff] }
  0x31   : > { %579 = vmatpush.msra.mxu0 %v517_v15  ;;  %844 = vmatpush.msra.mxu3 %v517_v15 }
  0x33   : > { %580 = vmatpush.msra.mxu0 %v516_v51  ;;  %845 = vmatpush.msra.mxu3 %v516_v51 }
  0x35   : > { %954 = vrot.lane.b32.xlu0 %v953_v49, %s1038_s20  ;;  %959 = vrot.lane.b32.xlu1 %v958_v50, %s1040_s22  ;;  %v1008_v49 = vpack.i.bf16 %v1141_v24, %v1282_v20  ;;  %v533_v50 = vld [vmem:[%s1524_s1 + $0xa8] sm:$0xff] }
  0x36   : > { %964 = vrot.lane.b32.xlu2 %v963_v58, %s1039_s21  ;;  %620 = vmatpush.msra.mxu1 %v533_v50  ;;  %v530_v58 = vld [vmem:[%s1524_s1 + $0x90] sm:$0xff] }
  0x38   : > { %823 = vmatmul.msk.f32.gmra.mxu2 %vm461_vm2, %v1163_v34  ;;  %v532_v34 = vld [vmem:[%s1524_s1 + $0xa0] sm:$0xff] }
  0x39   : > { %621 = vmatpush.msra.mxu1 %v532_v34 }
  0x3b   : > { %622 = vmatpush.msra.mxu1 %v531_v53 }
  0x3d   : > { %969 = vrot.lane.b32.xlu0 %v968_v62, %s1038_s20  ;;  %974 = vrot.lane.b32.xlu1 %v973_v63, %s1040_s22  ;;  %v528_v62 = vld [vmem:[%s1524_s1 + $0x80] sm:$0xff] }
  0x3e   : > { %979 = vrot.lane.b32.xlu2 %v978_v27, %s1039_s21  ;;  %623 = vmatpush.msra.mxu1 %v530_v58 }
  0x40   : > { %824 = vmatmul.msk.f32.gmra.mxu2 %vm461_vm2, %v1190_v45  ;;  %v515_v45 = vld [vmem:[%s1524_s1 + $0x18] sm:$0xff]  ;;  %624 = vmatpush.msra.mxu1 %v529_v59 }
  0x41   : > { %581 = vmatpush.msra.mxu0 %v515_v45  ;;  %846 = vmatpush.msra.mxu3 %v515_v45 }
  0x42   : > { %625 = vmatpush.msra.mxu1 %v528_v62 }
  0x43   : > { %582 = vmatpush.msra.mxu0 %v514_v55  ;;  %847 = vmatpush.msra.mxu3 %v514_v55  ;;  %v277_v55 = vrot.slane %v1225_v56, 1 }
  0x45   : > { %984 = vrot.lane.b32.xlu0 %v983_v30, %s1038_s20  ;;  %989 = vrot.lane.b32.xlu1 %v988_v31, %s1040_s22 }
  0x46   : > { %994 = vrot.lane.b32.xlu2 %v993_v44, %s1039_s21 }
  0x48   : > { %825 = vmatmul.msk.f32.gmra.mxu2 %vm461_vm2, %v294_v16 }
  0x4d   : > { %999 = vrot.lane.b32.xlu0 %v998_v47, %s1038_s20  ;;  %1004 = vrot.lane.b32.xlu1 %v1003_v48, %s1040_s22 }
  0x4e   : > { %1009 = vrot.lane.b32.xlu2 %v1008_v49, %s1039_s21  ;;  %s1489_s21 = scalar_lea.vmem %s1526_s3, %s832_s16 }
  0x50   : > { %826 = vmatmul.msk.f32.gmra.mxu2 %vm461_vm2, %v1138_v23  ;;  %v513_v23 = vld [vmem:[%s1524_s1 + $0x8] sm:$0xff] }
  0x51   : > { %583 = vmatpush.msra.mxu0 %v513_v23  ;;  %848 = vmatpush.msra.mxu3 %v513_v23 }
  0x53   : > { %584 = vmatpush.msra.mxu0 %v512_v60  ;;  %849 = vmatpush.msra.mxu3 %v512_v60 }
  0x55   : > { %850 = vmatpush.msrb.mxu3 %v1208_v52 }
  0x57   : > { %851 = vmatpush.msrb.mxu3 %v1217_v54 }
  0x58   : > { %827 = vmatmul.msk.f32.gmra.mxu2 %vm461_vm2, %v1169_v36 }
  0x59   : > { %852 = vmatpush.msrb.mxu3 %v1230_v57  ;;  %v237_v57 = vrot.slane %v1093_v1, 7 }
  0x5b   : > { %853 = vmatpush.msrb.mxu3 %v1244_v61  ;;  %v258_v5 = vsel %vm257_vm1, 0.0, %v237_v57 }
  0x5d   : > { %854 = vmatpush.msrb.mxu3 %v1262_v9 }
  0x5f   : > { %855 = vmatpush.msrb.mxu3 %v1275_v14 }
  0x60   : > { %828 = vmatmul.msk.f32.gmra.mxu2 %vm461_vm2, %v1279_v19 }
  0x61   : > { %856 = vmatpush.msrb.mxu3 %v1297_v28 }
  0x63   : > { %857 = vmatpush.msrb.mxu3 %v1308_v32 }
  0x65   : > { %858 = vmatpush.msrb.mxu3 %v1318_v40 }
  0x67   : > { %859 = vmatpush.msrb.mxu3 %v1332_v43 }
  0x69   : > { %860 = vmatpush.msrb.mxu3 %v533_v50 }
  0x6b   : > { %861 = vmatpush.msrb.mxu3 %v532_v34 }
  0x6d   : > { %862 = vmatpush.msrb.mxu3 %v531_v53 }
  0x6f   : > { %863 = vmatpush.msrb.mxu3 %v530_v58 }
  0x70   : > { %v910_v63 = vpop.permute.xlu2 %909 }
  0x71   : > { %864 = vmatpush.msrb.mxu3 %v529_v59  ;;  %v911_v31 = vunpack.i.l.bf16 %v910_v63  ;;  %v912_v32 = vunpack.i.h.bf16 %v910_v63 }
  0x73   : > { %865 = vmatpush.msrb.mxu3 %v528_v62 }
  0x78   : > { %v915_v36 = vpop.permute.xlu2 %914 }
  0x79   : > { %v917_v39 = vunpack.i.h.bf16 %v915_v36  ;;  %v916_v40 = vunpack.i.l.bf16 %v915_v36 }
  0x80   : > { %v1407_v2 = vpop.permute.xlu2 %934 }
  0x81   : > { %v936_v43 = vunpack.i.l.bf16 %v1407_v2  ;;  %v937_v23 = vunpack.i.h.bf16 %v1407_v2 }
  0x87   : > { %v895_v52 = vpop.permute.xlu0 %894  ;;  %v900_v54 = vpop.permute.xlu1 %899 }
  0x88   : > { %v897_v61 = vunpack.i.h.bf16 %v895_v52  ;;  %v896_v4 = vunpack.i.l.bf16 %v895_v52  ;;  %v902_v9 = vunpack.i.h.bf16 %v900_v54  ;;  %v901_v16 = vunpack.i.l.bf16 %v900_v54  ;;  %v950_v30 = vpop.permute.xlu2 %949 }
  0x89   : > { %v952_v62 = vunpack.i.h.bf16 %v950_v30  ;;  %v951_v63 = vunpack.i.l.bf16 %v950_v30 }
  0x8a   : > { %v462_v1 = vsel %vm461_vm2, %v258_v5, %v896_v4  ;;  %v488_v21 = vsel %vm461_vm2, %v1090_v0, %v897_v61 }
  0x8f   : > { %v920_v6 = vpop.permute.xlu0 %919  ;;  %v905_v8 = vpop.permute.xlu1 %904 }
  0x90   : > { %v922_v10 = vunpack.i.h.bf16 %v920_v6  ;;  %v921_v11 = vunpack.i.l.bf16 %v920_v6  ;;  %v906_v14 = vunpack.i.l.bf16 %v905_v8  ;;  %v907_v19 = vunpack.i.h.bf16 %v905_v8  ;;  %v965_v58 = vpop.permute.xlu2 %964 }
  0x92   : > { %v471_v22 = vsel %vm470_vm3, %v462_v1, %v921_v11  ;;  %v496_v26 = vsel %vm470_vm3, %v488_v21, %v922_v10  ;;  %v463_v29 = vsel %vm461_vm2, %v1103_v7, %v906_v14  ;;  %v489_v0 = vsel %vm461_vm2, %v1097_v3, %v907_v19 }
  0x93   : > { %v480_v27 = vsel %vm479_vm4, %v471_v22, %v901_v16  ;;  %v504_v28 = vsel %vm479_vm4, %v496_v26, %v902_v9  ;;  %v472_v44 = vsel %vm470_vm3, %v463_v29, %v911_v31  ;;  %v497_v15 = vsel %vm470_vm3, %v489_v0, %v912_v32 }
  0x94   : > { %585 = vmatmul.f32.vlgmr.msra.gmra.mxu0 %v480_v27  ;;  %626 = vmatmul.f32.vlgmr.msra.gmra.mxu1 %v504_v28  ;;  %v481_v3 = vsel %vm479_vm4, %v472_v44, %v916_v40  ;;  %v505_v51 = vsel %vm479_vm4, %v497_v15, %v917_v39  ;;  %v967_v11 = vunpack.i.h.bf16 %v965_v58 }
  0x97   : > { %v925_v41 = vpop.permute.xlu0 %924  ;;  %v930_v42 = vpop.permute.xlu1 %929 }
  0x98   : > { %v927_v47 = vunpack.i.h.bf16 %v925_v41  ;;  %v926_v48 = vunpack.i.l.bf16 %v925_v41  ;;  %v931_v49 = vunpack.i.l.bf16 %v930_v42  ;;  %v932_v50 = vunpack.i.h.bf16 %v930_v42  ;;  %v980_v1 = vpop.permute.xlu2 %979 }
  0x99   : > { %v982_v0 = vunpack.i.h.bf16 %v980_v1  ;;  %v981_v32 = vunpack.i.l.bf16 %v980_v1 }
  0x9a   : > { %v468_v7 = vsel %vm461_vm2, %v1282_v20, %v926_v48  ;;  %v464_v53 = vsel %vm461_vm2, %v1116_v13, %v927_v47  ;;  %v298_v20 = vsel %vm288_vm0, %v277_v55, 0.0 }
  0x9b   : > { %v477_v34 = vsel %vm470_vm3, %v468_v7, %v931_v49  ;;  %v473_v36 = vsel %vm470_vm3, %v464_v53, %v932_v50  ;;  %829 = vmatmul.msk.f32.gmra.mxu2 %vm461_vm2, %v298_v20 }
  0x9c   : > { %588 = vmatmul.f32.gmra.mxu0 %v481_v3  ;;  %629 = vmatmul.f32.gmra.mxu1 %v505_v51  ;;  %v486_v45 = vsel %vm479_vm4, %v477_v34, %v936_v43  ;;  %v482_v2 = vsel %vm479_vm4, %v473_v36, %v937_v23 }
  0x9d   : > { %603 = vmatmul.f32.vlgmr.msra.gmra.mxu3 %v486_v45 }
  0x9f   : > { %v940_v59 = vpop.permute.xlu0 %939  ;;  %v945_v60 = vpop.permute.xlu1 %944 }
  0xa0   : > { %v942_v52 = vunpack.i.h.bf16 %v940_v59  ;;  %v941_v54 = vunpack.i.l.bf16 %v940_v59  ;;  %v947_v57 = vunpack.i.h.bf16 %v945_v60  ;;  %v946_v13 = vunpack.i.l.bf16 %v945_v60  ;;  %v995_v43 = vpop.permute.xlu2 %994 }
  0xa1   : > { %v997_v50 = vunpack.i.h.bf16 %v995_v43  ;;  %v996_v3 = vunpack.i.l.bf16 %v995_v43 }
  0xa2   : > { %v469_v56 = vsel %vm461_vm2, %v1158_v33, %v942_v52  ;;  %v490_v61 = vsel %vm461_vm2, %v1113_v12, %v941_v54  ;;  %v966_v33 = vunpack.i.l.bf16 %v965_v58 }
  0xa3   : > { %v478_v4 = vsel %vm470_vm3, %v469_v56, %v947_v57  ;;  %v498_v5 = vsel %vm470_vm3, %v490_v61, %v946_v13 }
  0xa4   : > { %591 = vmatmul.f32.gmra.mxu0 %v482_v2  ;;  %v487_v6 = vsel %vm479_vm4, %v478_v4, %v952_v62  ;;  %v506_v8 = vsel %vm479_vm4, %v498_v5, %v951_v63 }
  0xa5   : > { %606 = vmatmul.f32.gmra.mxu3 %v487_v6  ;;  %632 = vmatmul.f32.gmra.mxu1 %v506_v8 }
  0xa7   : > { %v955_v9 = vpop.permute.xlu0 %954  ;;  %v960_v10 = vpop.permute.xlu1 %959 }
  0xa8   : > { %v957_v14 = vunpack.i.h.bf16 %v955_v9  ;;  %v956_v16 = vunpack.i.l.bf16 %v955_v9  ;;  %v962_v12 = vunpack.i.h.bf16 %v960_v10  ;;  %v961_v19 = vunpack.i.l.bf16 %v960_v10  ;;  %v1010_v59 = vpop.permute.xlu2 %1009 }
  0xa9   : > { %v1012_v63 = vunpack.i.h.bf16 %v1010_v59  ;;  %v1011_v36 = vunpack.i.l.bf16 %v1010_v59 }
  0xaa   : > { %v465_v21 = vsel %vm461_vm2, %v1127_v18, %v956_v16  ;;  %v491_v22 = vsel %vm461_vm2, %v1144_v25, %v957_v14 }
  0xab   : > { %v474_v26 = vsel %vm470_vm3, %v465_v21, %v961_v19  ;;  %v499_v27 = vsel %vm470_vm3, %v491_v22, %v962_v12 }
  0xac   : > { %v483_v28 = vsel %vm479_vm4, %v474_v26, %v966_v33  ;;  %v507_v29 = vsel %vm479_vm4, %v499_v27, %v967_v11 }
  0xad   : > { %594 = vmatmul.f32.gmra.mxu0 %v483_v28  ;;  %635 = vmatmul.f32.gmra.mxu1 %v507_v29 }
  0xaf   : > { %v970_v30 = vpop.permute.xlu0 %969  ;;  %v975_v31 = vpop.permute.xlu1 %974 }
  0xb0   : > { %v972_v39 = vunpack.i.h.bf16 %v970_v30  ;;  %v971_v40 = vunpack.i.l.bf16 %v970_v30  ;;  %v977_v18 = vunpack.i.h.bf16 %v975_v31  ;;  %v976_v41 = vunpack.i.l.bf16 %v975_v31 }
  0xb2   : > { %v466_v25 = vsel %vm461_vm2, %v1166_v35, %v972_v39  ;;  %v494_v42 = vsel %vm461_vm2, %v1141_v24, %v971_v40 }
  0xb3   : > { %v475_v44 = vsel %vm470_vm3, %v466_v25, %v977_v18  ;;  %v502_v47 = vsel %vm470_vm3, %v494_v42, %v976_v41  ;;  %v668_v5 = vpop.f32.mrf.mxu2 }
  0xb4   : > { %v484_v48 = vsel %vm479_vm4, %v475_v44, %v982_v0  ;;  %v510_v49 = vsel %vm479_vm4, %v502_v47, %v981_v32 }
  0xb5   : > { %597 = vmatmul.f32.gmra.mxu0 %v484_v48  ;;  %644 = vmatmul.f32.vlgmr.msrb.gmra.mxu3 %v510_v49 }
  0xb7   : > { %v985_v15 = vpop.permute.xlu0 %984  ;;  %v990_v7 = vpop.permute.xlu1 %989 }
  0xb8   : > { %v987_v51 = vunpack.i.h.bf16 %v985_v15  ;;  %v986_v35 = vunpack.i.l.bf16 %v985_v15  ;;  %v992_v34 = vunpack.i.h.bf16 %v990_v7  ;;  %v991_v45 = vunpack.i.l.bf16 %v990_v7 }
  0xba   : > { %v492_v24 = vsel %vm461_vm2, %v1172_v37, %v986_v35  ;;  %v495_v53 = vsel %vm461_vm2, %v1175_v38, %v987_v51 }
  0xbb   : > { %v500_v55 = vsel %vm470_vm3, %v492_v24, %v991_v45  ;;  %v503_v58 = vsel %vm470_vm3, %v495_v53, %v992_v34  ;;  %v671_v6 = vpop.f32.mrf.mxu2 }
  0xbc   : > { %v508_v20 = vsel %vm479_vm4, %v500_v55, %v996_v3  ;;  %v511_v23 = vsel %vm479_vm4, %v503_v58, %v997_v50 }
  0xbd   : > { %638 = vmatmul.f32.gmra.mxu1 %v508_v20  ;;  %647 = vmatmul.f32.gmra.mxu3 %v511_v23 }
  0xbf   : > { %v1000_v60 = vpop.permute.xlu0 %999  ;;  %v1005_v62 = vpop.permute.xlu1 %1004 }
  0xc0   : > { %v1002_v52 = vunpack.i.h.bf16 %v1000_v60  ;;  %v1001_v37 = vunpack.i.l.bf16 %v1000_v60  ;;  %v1007_v54 = vunpack.i.h.bf16 %v1005_v62  ;;  %v1006_v57 = vunpack.i.l.bf16 %v1005_v62 }
  0xc2   : > { %v467_v38 = vsel %vm461_vm2, %v1193_v46, %v1001_v37  ;;  %v493_v13 = vsel %vm461_vm2, %v1124_v17, %v1002_v52  ;;  %v1481_v46 = vld [vmem:[%s1525_s2] ss:$0 sm:$0xff] }
  0xc3   : > { %v476_v56 = vsel %vm470_vm3, %v467_v38, %v1006_v57  ;;  %v501_v61 = vsel %vm470_vm3, %v493_v13, %v1007_v54  ;;  %v674_v8 = vpop.f32.mrf.mxu2 }
  0xc4   : > { %v485_v2 = vsel %vm479_vm4, %v476_v56, %v1011_v36  ;;  %v509_v4 = vsel %vm479_vm4, %v501_v61, %v1012_v63 }
  0xc5   : > { %600 = vmatmul.f32.gmra.mxu0 %v485_v2  ;;  %641 = vmatmul.f32.gmra.mxu1 %v509_v4 }
  0xcb   : > { %v677_v16 = vpop.f32.mrf.mxu2 }
  0xd3   : > { %v680_v0 = vpop.f32.mrf.mxu2 }
  0xdb   : > { %v683_v44 = vpop.f32.mrf.mxu2 }
  0xe3   : > { %v686_v3 = vpop.f32.mrf.mxu2 }
 0x111   : > { %v586_v17 = vpop.f32.mrf.mxu0  ;;  %v627_v9 = vpop.f32.mrf.mxu1 }
 0x112   : > { %v587_v10 = vadd.f32 %v1481_v46, %v586_v17 }
 0x114   : > { %v628_v11 = vadd.f32 %v627_v9, %v587_v10 }
 0x116   : > { %v669_v33 = vadd.f32 %v668_v5, %v628_v11 }
 0x118   : > { %vm692_vm5 = vcmp.gt.f32.partialorder %v669_v33, 0.0  ;;  %v700_v14 = vmul.f32 0.2, %v669_v33 }
 0x119   : > { %v589_v12 = vpop.f32.mrf.mxu0  ;;  %v630_v19 = vpop.f32.mrf.mxu1 }
 0x11a   : > { %v708_v1 = vsel %vm692_vm5, %v669_v33, %v700_v14  ;;  %v590_v21 = vadd.f32 %v1481_v46, %v589_v12 }
 0x11b   : > { %717 = vst.msk [vmem:[%s1489_s21] sm:$0xff] %vm716_vm6, %v708_v1 }
 0x11c   : > { %v631_v22 = vadd.f32 %v630_v19, %v590_v21 }
 0x11e   : > { %v672_v26 = vadd.f32 %v671_v6, %v631_v22  ;;  %v689_v63 = vpop.f32.mrf.mxu2 }
 0x120   : > { %vm693_vm7 = vcmp.gt.f32.partialorder %v672_v26, 0.0  ;;  %v701_v27 = vmul.f32 0.2, %v672_v26  ;;  %v604_v39 = vpop.f32.mrf.mxu3 }
 0x121   : > { %v592_v28 = vpop.f32.mrf.mxu0  ;;  %v605_v51 = vadd.f32 %v1481_v46, %v604_v39 }
 0x122   : > { %v709_v29 = vsel %vm693_vm7, %v672_v26, %v701_v27  ;;  %v593_v30 = vadd.f32 %v1481_v46, %v592_v28  ;;  %v633_v31 = vpop.f32.mrf.mxu1 }
 0x123   : > { %718 = vst.msk [vmem:[%s1489_s21 + $0x8] sm:$0xff] %vm716_vm6, %v709_v29 }
 0x124   : > { %v634_v32 = vadd.f32 %v633_v31, %v593_v30 }
 0x126   : > { %v675_v40 = vadd.f32 %v674_v8, %v634_v32 }
 0x128   : > { %vm694_vm8 = vcmp.gt.f32.partialorder %v675_v40, 0.0  ;;  %v702_v18 = vmul.f32 0.2, %v675_v40  ;;  %v607_v49 = vpop.f32.mrf.mxu3 }
 0x129   : > { %v608_v23 = vadd.f32 %v1481_v46, %v607_v49 }
 0x12a   : > { %v710_v41 = vsel %vm694_vm8, %v675_v40, %v702_v18  ;;  %v595_v25 = vpop.f32.mrf.mxu0  ;;  %v636_v43 = vpop.f32.mrf.mxu1 }
 0x12b   : > { %719 = vst.msk [vmem:[%s1489_s21 + $0x10] sm:$0xff] %vm716_vm6, %v710_v41  ;;  %v596_v42 = vadd.f32 %v1481_v46, %v595_v25 }
 0x12d   : > { %v637_v47 = vadd.f32 %v636_v43, %v596_v42 }
 0x12f   : > { %v678_v48 = vadd.f32 %v677_v16, %v637_v47 }
 0x131   : > { %vm695_vm9 = vcmp.gt.f32.partialorder %v678_v48, 0.0  ;;  %v703_v15 = vmul.f32 0.2, %v678_v48 }
 0x132   : > { %v598_v50 = vpop.f32.mrf.mxu0 }
 0x133   : > { %v711_v7 = vsel %vm695_vm9, %v678_v48, %v703_v15  ;;  %v599_v34 = vadd.f32 %v1481_v46, %v598_v50 }
 0x134   : > { %720 = vst.msk [vmem:[%s1489_s21 + $0x18] sm:$0xff] %vm716_vm6, %v711_v7 }
 0x138   : > { %v645_v35 = vpop.f32.mrf.mxu3 }
 0x139   : > { %v646_v45 = vadd.f32 %v645_v35, %v605_v51 }
 0x13a   : > { %v639_v24 = vpop.f32.mrf.mxu1 }
 0x13b   : > { %v640_v53 = vadd.f32 %v639_v24, %v599_v34  ;;  %v687_v55 = vadd.f32 %v686_v3, %v646_v45 }
 0x13d   : > { %v681_v58 = vadd.f32 %v680_v0, %v640_v53  ;;  %vm698_vm10 = vcmp.gt.f32.partialorder %v687_v55, 0.0  ;;  %v706_v20 = vmul.f32 0.2, %v687_v55 }
 0x13f   : > { %vm696_vm11 = vcmp.gt.f32.partialorder %v681_v58, 0.0  ;;  %v704_v59 = vmul.f32 0.2, %v681_v58  ;;  %v714_v60 = vsel %vm698_vm10, %v687_v55, %v706_v20 }
 0x140   : > { %723 = vst.msk [vmem:[%s1489_s21 + $0x30] sm:$0xff] %vm716_vm6, %v714_v60  ;;  %v648_v62 = vpop.f32.mrf.mxu3 }
 0x141   : > { %v712_v36 = vsel %vm696_vm11, %v681_v58, %v704_v59  ;;  %v649_v52 = vadd.f32 %v648_v62, %v608_v23 }
 0x142   : > { %721 = vst.msk [vmem:[%s1489_s21 + $0x20] sm:$0xff] %vm716_vm6, %v712_v36  ;;  %v601_v37 = vpop.f32.mrf.mxu0  ;;  %v642_v38 = vpop.f32.mrf.mxu1 }
 0x143   : > { %v602_v54 = vadd.f32 %v1481_v46, %v601_v37  ;;  %v690_v57 = vadd.f32 %v689_v63, %v649_v52 }
 0x145   : > { %v643_v13 = vadd.f32 %v642_v38, %v602_v54  ;;  %vm699_vm12 = vcmp.gt.f32.partialorder %v690_v57, 0.0  ;;  %v707_v56 = vmul.f32 0.2, %v690_v57 }
 0x147   : > { %v684_v61 = vadd.f32 %v683_v44, %v643_v13  ;;  %v715_v2 = vsel %vm699_vm12, %v690_v57, %v707_v56 }
 0x148   : > { %724 = vst.msk [vmem:[%s1489_s21 + $0x38] sm:$0xff] %vm716_vm6, %v715_v2 }
 0x149   : > { %vm697_vm13 = vcmp.gt.f32.partialorder %v684_v61, 0.0  ;;  %v705_v4 = vmul.f32 0.2, %v684_v61 }
 0x14b   : > { %v713_v5 = vsel %vm697_vm13, %v684_v61, %v705_v4 }
 0x14c   : > { %722 = vst.msk [vmem:[%s1489_s21 + $0x28] sm:$0xff] %vm716_vm6, %v713_v5 }
 0x14d PF: > { %s13_s14 = sadd.s32 1, %s1036_s14   ;;  %s1527_s12 = smov %s1032_s13 }
 0x14e   : > { %p10_p5 = scmp.ge.s32.totalorder %s13_s14, 4   ;;  %s1528_s13 = smov %s1530_s15 }
 0x150   :  { %12 = sbr.rel (!%p10_p5) target bundleno = 2 (0x2), region = 65 }

// kernel: _lambda_.9
= control target key start
LH: loop header
LB: loop body
LE: loop exit
PB: predicated region body
PF: predicated region fallthrough
CT: control target
= control target key end

     0   :  { %s2683_s12 = smov 0   ;;  %s2685_s13 = smov 0   ;;  %s4317_s0 = inlined_call_operand.vmem [shape: f32[2,16,16,16], index: 0, kind: input, shape index: {}]   ;;  %s4318_s1 = inlined_call_operand.vmem [shape: f32[144,8], index: 1, kind: input, shape index: {}]   ;;  %s4319_s2 = inlined_call_operand.vmem [shape: f32[1,8], index: 2, kind: input, shape index: {}]   ;;  %s4320_s3 = inlined_call_operand.vmem [shape: f32[2,256,8], index: 3, kind: output, shape index: {}]  }
   0x1   :  { %s2687_s14 = smov 0  }
   0x2 LB: > { %s25_s15 = sadd.s32 1, %s2650_s13  ;;  %p1959_p0 = scmp.ge.s32.totalorder %s2654_s14, 1  ;;  %s2654_s14 = sphi %s2687_s14, %s13_s14   ;;  %s2650_s13 = sphi %s2685_s13, %s4560_s13   ;;  %s2646_s12 = sphi %s2683_s12, %s4559_s12  }
   0x3   : > { %p27_p1 = scmp.ge.s32.totalorder %s25_s15, 2  ;;  %p151_p2 = scmp.lt.s32.totalorder %s2654_s14, 3 }
   0x5   : > { %s4562_s15 = smov (%p27_p1, %s25_s15), 0  ;;  %p152_p3 = pnand %p1959_p0, %p151_p2 }
   0x7   : > { %155 = sbr.rel (%p152_p3) target bundleno = 576 (0x240), region = 32 }
   0xc   : > { %p179_p4 = scmp.lt.s32.totalorder %s2646_s12, 1  ;;  %s2656_s20 = smov 16   ;;  %vm398_vm0 = vcmask 1046528   ;;  %vm291_vm1 = vcmask 1040384   ;;  %vm1195_vm2 = vcmask 130048   ;;  %vm1228_vm3 = vcmask 261120  }
   0xd   : > { %s2657_s21 = smov 32   ;;  %s2658_s22 = smov 48   ;;  %vm1261_vm4 = vcmask 392192   ;;  %vm1294_vm5 = vcmask 523264   ;;  %vm1327_vm6 = vcmask 654336   ;;  %vm1360_vm7 = vcmask 785408  }
   0xe   : > { %s4564_s12 = smov (!%p179_p4, %s2646_s12), 1  ;;  %s2659_s23 = smov 64   ;;  %vm1393_vm8 = vcmask 916480   ;;  %vm1835_vm10 = vcmask 64512  }
   0xf   : > { %s2000_s16 = sshll.u32 %s4564_s12, 8  ;;  %s2660_s28 = smov 80  }
  0x10   : > { %s2709_s19 = scalar_lea.vmem %s4317_s0, %s2000_s16  ;;  %s2661_s29 = smov 112  }
  0x11   : > { %v2712_v0 = vld [vmem:[%s2709_s19 + $0x30] sm:$0xff]  ;;  %v2715_v1 = vld [vmem:[%s2709_s19 + $0x38] sm:$0xff]  ;;  %v2728_v5 = vld [vmem:[%s2709_s19] sm:$0xff]  ;;  %s2662_s30 = smov 96  }
  0x12   : > { %v2718_v2 = vld [vmem:[%s2709_s19 + $0x10] sm:$0xff]  ;;  %v2722_v3 = vpack.i.bf16 %v2715_v1, %v2712_v0  ;;  %v2725_v4 = vld [vmem:[%s2709_s19 + $0x18] sm:$0xff]  ;;  %v2731_v6 = vld [vmem:[%s2709_s19 + $0x8] sm:$0xff]  ;;  %v2754_v11 = vmul.f32 0.0, %v2728_v5  ;;  %v402_v47 = vrot.slane %v2728_v5, 1  ;;  %v411_v62 = vrot.slane %v2712_v0, 1 }
  0x13   : > { %4412 = vst [vmem:[#allocation2_spill] sm:$0xff] %v2725_v4  ;;  %v2735_v7 = vpack.i.bf16 %v2725_v4, %v2718_v2  ;;  %v2739_v8 = vpack.i.bf16 %v2731_v6, %v2728_v5  ;;  %v2748_v9 = vld [vmem:[%s2709_s19 + $0x40] sm:$0xff]  ;;  %v2751_v10 = vld [vmem:[%s2709_s19 + $0x48] sm:$0xff]  ;;  %v2757_v12 = vmul.f32 0.0, %v2731_v6  ;;  %v2778_v18 = vld [vmem:[%s2709_s19 + $0x70] sm:$0xff]  ;;  %v403_v48 = vrot.slane %v2731_v6, 1 }
  0x14   : > { %2083 = vrot.lane.b32.xlu2 %v2722_v3, %s2656_s20  ;;  %v2760_v13 = vld [vmem:[%s2709_s19 + $0x20] sm:$0xff]  ;;  %v2763_v14 = vld [vmem:[%s2709_s19 + $0x28] sm:$0xff]  ;;  %v2767_v15 = vpack.i.bf16 %v2751_v10, %v2748_v9  ;;  %v2784_v19 = vld [vmem:[%s2709_s19 + $0x78] sm:$0xff]  ;;  %v399_v43 = vrot.slane %v2754_v11, 1  ;;  %v405_v60 = vrot.slane %v2718_v2, 1  ;;  %v406_v61 = vrot.slane %v2725_v4, 1 }
  0x15   : > { %2073 = vrot.lane.b32.xlu1 %v2735_v7, %s2656_s20  ;;  %2068 = vrot.lane.b32.xlu0 %v2739_v8, %s2656_s20  ;;  %4413 = vst [vmem:[#allocation3_spill] sm:$0xff] %v2760_v13  ;;  %v2771_v16 = vpack.i.bf16 %v2763_v14, %v2760_v13  ;;  %v2092_v17 = vpack.i.bf16 %v2757_v12, %v2754_v11  ;;  %v2787_v20 = vld [vmem:[%s2709_s19 + $0x60] sm:$0xff]  ;;  %v2790_v21 = vld [vmem:[%s2709_s19 + $0x68] sm:$0xff]  ;;  %v400_v44 = vrot.slane %v2757_v12, 1  ;;  %v2904_v54 = vsel %vm398_vm0, %v403_v48, 0.0 }
  0x16   : > { %4414 = vst [vmem:[#allocation4_spill] sm:$0xff] %v2763_v14  ;;  %v2793_v22 = vld [vmem:[%s2709_s19 + $0x50] sm:$0xff]  ;;  %v2796_v23 = vld [vmem:[%s2709_s19 + $0x58] sm:$0xff]  ;;  %v2800_v24 = vpack.i.bf16 %v2784_v19, %v2778_v18  ;;  %v2804_v25 = vpack.i.bf16 %v2790_v21, %v2787_v20  ;;  %v2813_v27 = vld [vmem:[%s2709_s19 + $0xa0] sm:$0xff]  ;;  %v2901_v53 = vsel %vm398_vm0, %v402_v47, %v403_v48  ;;  %v408_v58 = vrot.slane %v2760_v13, 1 }
  0x17   : > { %v2808_v26 = vpack.i.bf16 %v2796_v23, %v2793_v22  ;;  %4415 = vst [vmem:[#allocation5_spill] sm:$0xff] %v2813_v27  ;;  %v2820_v28 = vld [vmem:[%s2709_s19 + $0xa8] sm:$0xff]  ;;  %v2823_v29 = vld [vmem:[%s2709_s19 + $0x90] sm:$0xff]  ;;  %v2826_v30 = vld [vmem:[%s2709_s19 + $0x98] sm:$0xff]  ;;  %v401_v49 = vsel %vm398_vm0, %v399_v43, %v400_v44  ;;  %v471_v50 = vsel %vm398_vm0, %v400_v44, 0.0  ;;  %v2152_v57 = vpack.i.bf16 %v2904_v54, %v2901_v53 }
  0x18   : > { %4416 = vst [vmem:[#allocation6_spill] sm:$0xff] %v2820_v28  ;;  %v2829_v31 = vld [vmem:[%s2709_s19 + $0x80] sm:$0xff]  ;;  %v2832_v32 = vld [vmem:[%s2709_s19 + $0x88] sm:$0xff]  ;;  %v2836_v33 = vpack.i.bf16 %v2820_v28, %v2813_v27  ;;  %v2840_v34 = vpack.i.bf16 %v2826_v30, %v2823_v29  ;;  %v2849_v36 = vld [vmem:[%s2709_s19 + $0xd0] sm:$0xff]  ;;  %v2147_v55 = vpack.i.bf16 %v471_v50, %v401_v49  ;;  %v409_v59 = vrot.slane %v2763_v14, 1 }
  0x19   : > { %4417 = vst [vmem:[#allocation7_spill] sm:$0xff] %v2826_v30  ;;  %v2844_v35 = vpack.i.bf16 %v2832_v32, %v2829_v31  ;;  %v2856_v37 = vld [vmem:[%s2709_s19 + $0xd8] sm:$0xff]  ;;  %v2859_v38 = vld [vmem:[%s2709_s19 + $0xc0] sm:$0xff]  ;;  %v2862_v39 = vld [vmem:[%s2709_s19 + $0xc8] sm:$0xff]  ;;  %v412_v63 = vrot.slane %v2715_v1, 1  ;;  %v2926_v44 = vsel %vm398_vm0, %v405_v60, %v406_v61  ;;  %v2929_v47 = vsel %vm398_vm0, %v406_v61, 0.0 }
  0x1a   : > { %v2865_v40 = vld [vmem:[%s2709_s19 + $0xb0] sm:$0xff]  ;;  %v2868_v41 = vld [vmem:[%s2709_s19 + $0xb8] sm:$0xff]  ;;  %v2872_v42 = vpack.i.bf16 %v2856_v37, %v2849_v36  ;;  %v2878_v45 = vpack.i.bf16 %v2862_v39, %v2859_v38  ;;  %v2895_v51 = vld [vmem:[%s2709_s19 + $0xe0] sm:$0xff]  ;;  %4421 = vst [vmem:[#allocation11_spill] sm:$0xff] %v2901_v53  ;;  %v2921_v43 = vsel %vm398_vm0, %v409_v59, 0.0  ;;  %v296_v60 = vrot.slane %v2731_v6, 7 }
  0x1b   : > { %4418 = vst [vmem:[#allocation8_spill] sm:$0xff] %v2865_v40  ;;  %v2882_v46 = vpack.i.bf16 %v2868_v41, %v2865_v40  ;;  %v2898_v52 = vld [vmem:[%s2709_s19 + $0xe8] sm:$0xff]  ;;  %v2932_v48 = vsel %vm398_vm0, %v411_v62, %v412_v63  ;;  %v2935_v49 = vsel %vm398_vm0, %v412_v63, 0.0  ;;  %v417_v61 = vrot.slane %v2793_v22, 1 }
  0x1c   : > { %2088 = vrot.lane.b32.xlu2 %v2767_v15, %s2656_s20  ;;  %4419 = vst [vmem:[#allocation9_spill] sm:$0xff] %v2868_v41  ;;  %v2142_v56 = vpack.i.bf16 %v2898_v52, %v2895_v51  ;;  %v418_v62 = vrot.slane %v2796_v23, 1  ;;  %v414_v63 = vrot.slane %v2748_v9, 1 }
  0x1d   : > { %2078 = vrot.lane.b32.xlu1 %v2771_v16, %s2656_s20  ;;  %2093 = vrot.lane.b32.xlu0 %v2092_v17, %s2656_s20  ;;  %4420 = vst [vmem:[#allocation10_spill] sm:$0xff] %v2878_v45  ;;  %v2918_v17 = vsel %vm398_vm0, %v408_v58, %v409_v59  ;;  %v420_v58 = vrot.slane %v2787_v20, 1  ;;  %v421_v59 = vrot.slane %v2790_v21, 1 }
  0x1e   : > { %4422 = vst [vmem:[#allocation12_spill] sm:$0xff] %v2904_v54  ;;  %v2162_v50 = vpack.i.bf16 %v2921_v43, %v2918_v17  ;;  %v415_v54 = vrot.slane %v2751_v10, 1  ;;  %v2966_v53 = vsel %vm398_vm0, %v417_v61, %v418_v62  ;;  %v430_v61 = vrot.slane %v2826_v30, 1 }
  0x1f   : > { %4423 = vst [vmem:[#allocation13_spill] sm:$0xff] %v2921_v43  ;;  %v2960_v6 = vsel %vm398_vm0, %v420_v58, %v421_v59  ;;  %v2969_v43 = vsel %vm398_vm0, %v418_v62, 0.0  ;;  %v426_v62 = vrot.slane %v2829_v31, 1 }
  0x20   : > { %4424 = vst [vmem:[#allocation14_spill] sm:$0xff] %v2932_v48 }
  0x21   : > { %4425 = vst [vmem:[#allocation15_spill] sm:$0xff] %v2935_v49 }
  0x22   : > { %4426 = vst [vmem:[#allocation16_spill] sm:$0xff] %v2960_v6 }
  0x23   : > { %4428 = vst [vmem:[#allocation18_spill] sm:$0xff] %v2966_v53 }
  0x24   : > { %2108 = vrot.lane.b32.xlu2 %v2800_v24, %s2656_s20  ;;  %4429 = vst [vmem:[#allocation19_spill] sm:$0xff] %v2969_v43 }
  0x25   : > { %2103 = vrot.lane.b32.xlu1 %v2804_v25, %s2656_s20  ;;  %2098 = vrot.lane.b32.xlu0 %v2808_v26, %s2656_s20 }
  0x2c   : > { %2123 = vrot.lane.b32.xlu2 %v2836_v33, %s2656_s20 }
  0x2d   : > { %2118 = vrot.lane.b32.xlu1 %v2840_v34, %s2656_s20  ;;  %2113 = vrot.lane.b32.xlu0 %v2844_v35, %s2656_s20 }
  0x34   : > { %2138 = vrot.lane.b32.xlu2 %v2872_v42, %s2656_s20 }
  0x35   : > { %2133 = vrot.lane.b32.xlu1 %v2878_v45, %s2656_s20  ;;  %2128 = vrot.lane.b32.xlu0 %v2882_v46, %s2656_s20 }
  0x3c   : > { %2153 = vrot.lane.b32.xlu2 %v2152_v57, %s2657_s21  ;;  %v4329_v57 = vrot.slane %v2728_v5, 7 }
  0x3d   : > { %2148 = vrot.lane.b32.xlu1 %v2147_v55, %s2657_s21  ;;  %2143 = vrot.lane.b32.xlu0 %v2142_v56, %s2656_s20  ;;  %v2157_v55 = vpack.i.bf16 %v2929_v47, %v2926_v44  ;;  %v2167_v56 = vpack.i.bf16 %v2935_v49, %v2932_v48  ;;  %v2963_v48 = vsel %vm398_vm0, %v421_v59, 0.0  ;;  %v429_v59 = vrot.slane %v2823_v29, 1 }
  0x3e   : > { %v2954_v49 = vsel %vm291_vm1, %v4329_v57, %v296_v60  ;;  %4427 = vst [vmem:[#allocation17_spill] sm:$0xff] %v2963_v48  ;;  %v2972_v60 = vsel %vm398_vm0, %v414_v63, %v415_v54  ;;  %v427_v63 = vrot.slane %v2832_v32, 1  ;;  %v424_v57 = vrot.slane %v2784_v19, 1 }
  0x3f   : > { %4430 = vst [vmem:[#allocation20_spill] sm:$0xff] %v2972_v60 }
  0x44   : > { %2168 = vrot.lane.b32.xlu2 %v2167_v56, %s2657_s21  ;;  %v2975_v56 = vsel %vm398_vm0, %v415_v54, 0.0  ;;  %v423_v54 = vrot.slane %v2778_v18, 1 }
  0x45   : > { %2163 = vrot.lane.b32.xlu1 %v2162_v50, %s2657_s21  ;;  %2158 = vrot.lane.b32.xlu0 %v2157_v55, %s2657_s21  ;;  %4431 = vst [vmem:[#allocation21_spill] sm:$0xff] %v2975_v56  ;;  %v2182_v50 = vpack.i.bf16 %v2963_v48, %v2960_v6  ;;  %v2177_v55 = vpack.i.bf16 %v2969_v43, %v2966_v53  ;;  %v2996_v6 = vsel %vm398_vm0, %v430_v61, 0.0  ;;  %v3002_v53 = vsel %vm398_vm0, %v427_v63, 0.0 }
  0x46   : > { %v2172_v58 = vpack.i.bf16 %v2975_v56, %v2972_v60  ;;  %v2993_v48 = vsel %vm398_vm0, %v429_v59, %v430_v61  ;;  %4433 = vst [vmem:[#allocation23_spill] sm:$0xff] %v2996_v6  ;;  %v2999_v43 = vsel %vm398_vm0, %v426_v62, %v427_v63  ;;  %v3005_v56 = vsel %vm398_vm0, %v423_v54, %v424_v57 }
  0x47   : > { %4432 = vst [vmem:[#allocation22_spill] sm:$0xff] %v2993_v48  ;;  %v438_v61 = vrot.slane %v2859_v38, 1  ;;  %v439_v62 = vrot.slane %v2862_v39, 1  ;;  %v435_v63 = vrot.slane %v2865_v40, 1  ;;  %v436_v54 = vrot.slane %v2868_v41, 1 }
  0x48   : > { %4434 = vst [vmem:[#allocation24_spill] sm:$0xff] %v2999_v43  ;;  %v433_v60 = vrot.slane %v2820_v28, 1 }
  0x49   : > { %4435 = vst [vmem:[#allocation25_spill] sm:$0xff] %v3002_v53 }
  0x4a   : > { %4436 = vst [vmem:[#allocation26_spill] sm:$0xff] %v3005_v56 }
  0x4c   : > { %2183 = vrot.lane.b32.xlu2 %v2182_v50, %s2657_s21  ;;  %v3008_v50 = vsel %vm398_vm0, %v424_v57, 0.0  ;;  %v432_v57 = vrot.slane %v2813_v27, 1 }
  0x4d   : > { %2178 = vrot.lane.b32.xlu1 %v2177_v55, %s2657_s21  ;;  %2173 = vrot.lane.b32.xlu0 %v2172_v58, %s2657_s21  ;;  %4437 = vst [vmem:[#allocation27_spill] sm:$0xff] %v3008_v50  ;;  %v2197_v55 = vpack.i.bf16 %v2996_v6, %v2993_v48  ;;  %v2192_v58 = vpack.i.bf16 %v3002_v53, %v2999_v43  ;;  %v3029_v6 = vsel %vm398_vm0, %v439_v62, 0.0  ;;  %v3035_v53 = vsel %vm398_vm0, %v436_v54, 0.0 }
  0x4e   : > { %v2187_v59 = vpack.i.bf16 %v3008_v50, %v3005_v56  ;;  %v3026_v56 = vsel %vm398_vm0, %v438_v61, %v439_v62  ;;  %4439 = vst [vmem:[#allocation29_spill] sm:$0xff] %v3029_v6  ;;  %v3032_v48 = vsel %vm398_vm0, %v435_v63, %v436_v54  ;;  %v3038_v45 = vsel %vm398_vm0, %v432_v57, %v433_v60 }
  0x4f   : > { %4438 = vst [vmem:[#allocation28_spill] sm:$0xff] %v3026_v56  ;;  %v444_v62 = vrot.slane %v2895_v51, 1  ;;  %v445_v63 = vrot.slane %v2898_v52, 1  ;;  %v441_v54 = vrot.slane %v2849_v36, 1  ;;  %v442_v57 = vrot.slane %v2856_v37, 1 }
  0x50   : > { %4440 = vst [vmem:[#allocation30_spill] sm:$0xff] %v3032_v48 }
  0x51   : > { %4441 = vst [vmem:[#allocation31_spill] sm:$0xff] %v3035_v53 }
  0x52   : > { %4442 = vst [vmem:[#allocation32_spill] sm:$0xff] %v3038_v45 }
  0x54   : > { %2198 = vrot.lane.b32.xlu2 %v2197_v55, %s2657_s21  ;;  %v3041_v55 = vsel %vm398_vm0, %v433_v60, 0.0  ;;  %v4444_v60 = vrot.slane %v2728_v5, 7 }
  0x55   : > { %2193 = vrot.lane.b32.xlu1 %v2192_v58, %s2657_s21  ;;  %2188 = vrot.lane.b32.xlu0 %v2187_v59, %s2657_s21  ;;  %4443 = vst [vmem:[#allocation33_spill] sm:$0xff] %v3041_v55  ;;  %v2212_v58 = vpack.i.bf16 %v3029_v6, %v3026_v56  ;;  %v2207_v59 = vpack.i.bf16 %v3035_v53, %v3032_v48  ;;  %v3065_v53 = vsel %vm398_vm0, %v445_v63, 0.0 }
  0x56   : > { %v2202_v61 = vpack.i.bf16 %v3041_v55, %v3038_v45  ;;  %v3059_v6 = vsel %vm291_vm1, 0.0, %v4444_v60  ;;  %v3062_v56 = vsel %vm398_vm0, %v444_v62, %v445_v63  ;;  %4446 = vst [vmem:[#allocation35_spill] sm:$0xff] %v3065_v53  ;;  %v3068_v48 = vsel %vm398_vm0, %v441_v54, %v442_v57 }
  0x57   : > { %4445 = vst [vmem:[#allocation34_spill] sm:$0xff] %v3062_v56  ;;  %v2222_v5 = vpack.i.bf16 %v3065_v53, %v3062_v56  ;;  %v304_v62 = vrot.slane %v2712_v0, 7  ;;  %v305_v63 = vrot.slane %v2715_v1, 7  ;;  %v301_v60 = vrot.slane %v2760_v13, 7 }
  0x58   : > { %4447 = vst [vmem:[#allocation36_spill] sm:$0xff] %v3068_v48  ;;  %v302_v54 = vrot.slane %v2763_v14, 7  ;;  %v299_v55 = vrot.slane %v2725_v4, 7 }
  0x59   : > { %v3089_v53 = vsel %vm291_vm1, %v304_v62, %v305_v63  ;;  %v3092_v0 = vsel %vm291_vm1, 0.0, %v304_v62  ;;  %v3098_v56 = vsel %vm291_vm1, 0.0, %v301_v60  ;;  %v313_v63 = vrot.slane %v2787_v20, 7 }
  0x5a   : > { %v3095_v1 = vsel %vm291_vm1, %v301_v60, %v302_v54  ;;  %v314_v60 = vrot.slane %v2790_v21, 7  ;;  %v310_v54 = vrot.slane %v2793_v22, 7 }
  0x5b   : > { %v3125_v20 = vsel %vm291_vm1, 0.0, %v313_v63 }
  0x5c   : > { %2213 = vrot.lane.b32.xlu2 %v2212_v58, %s2657_s21  ;;  %v3071_v58 = vsel %vm398_vm0, %v442_v57, 0.0  ;;  %v298_v57 = vrot.slane %v2718_v2, 7  ;;  %v3122_v45 = vsel %vm291_vm1, %v313_v63, %v314_v60  ;;  %4450 = vst [vmem:[#allocation39_spill] sm:$0xff] %v3125_v20  ;;  %v322_v63 = vrot.slane %v2823_v29, 7 }
  0x5d   : > { %2208 = vrot.lane.b32.xlu1 %v2207_v59, %s2657_s21  ;;  %2203 = vrot.lane.b32.xlu0 %v2202_v61, %s2657_s21  ;;  %4448 = vst [vmem:[#allocation37_spill] sm:$0xff] %v3071_v58  ;;  %v2227_v59 = vpack.i.bf16 %v2954_v49, %v3059_v6  ;;  %v2217_v61 = vpack.i.bf16 %v3071_v58, %v3068_v48  ;;  %v308_v48 = vrot.slane %v2751_v10, 7  ;;  %v323_v60 = vrot.slane %v2826_v30, 7 }
  0x5e   : > { %v3101_v58 = vsel %vm291_vm1, %v298_v57, %v299_v55  ;;  %v311_v55 = vrot.slane %v2796_v23, 7  ;;  %4449 = vst [vmem:[#allocation38_spill] sm:$0xff] %v3122_v45  ;;  %v3160_v13 = vsel %vm291_vm1, 0.0, %v322_v63  ;;  %v326_v30 = vrot.slane %v2820_v28, 7 }
  0x5f   : > { %v3157_v14 = vsel %vm291_vm1, %v322_v63, %v323_v60  ;;  %v331_v60 = vrot.slane %v2859_v38, 7 }
  0x60   : > { %v3130_v22 = vsel %vm291_vm1, %v310_v54, %v311_v55  ;;  %v316_v55 = vrot.slane %v2778_v18, 7 }
  0x61   : > { %4451 = vst [vmem:[#allocation40_spill] sm:$0xff] %v3130_v22 }
  0x64   : > { %2228 = vrot.lane.b32.xlu2 %v2227_v59, %s2658_s22  ;;  %v3104_v59 = vsel %vm291_vm1, 0.0, %v298_v57  ;;  %v307_v57 = vrot.slane %v2748_v9, 7  ;;  %v3133_v9 = vsel %vm291_vm1, 0.0, %v310_v54  ;;  %v319_v54 = vrot.slane %v2829_v31, 7 }
  0x65   : > { %2223 = vrot.lane.b32.xlu1 %v2222_v5, %s2657_s21  ;;  %2218 = vrot.lane.b32.xlu0 %v2217_v61, %s2657_s21  ;;  %v2242_v5 = vpack.i.bf16 %v3089_v53, %v3092_v0  ;;  %v2237_v61 = vpack.i.bf16 %v3095_v1, %v3098_v56  ;;  %v2232_v62 = vpack.i.bf16 %v3101_v58, %v3104_v59 }
  0x66   : > { %v3136_v10 = vsel %vm291_vm1, %v307_v57, %v308_v48  ;;  %v3139_v23 = vsel %vm291_vm1, 0.0, %v307_v57  ;;  %v320_v48 = vrot.slane %v2832_v32, 7  ;;  %v317_v57 = vrot.slane %v2784_v19, 7 }
  0x67   : > { %v3168_v18 = vsel %vm291_vm1, 0.0, %v319_v54 }
  0x68   : > { %v3165_v31 = vsel %vm291_vm1, %v319_v54, %v320_v48  ;;  %4452 = vst [vmem:[#allocation41_spill] sm:$0xff] %v3168_v18  ;;  %v3171_v19 = vsel %vm291_vm1, %v316_v55, %v317_v57  ;;  %v332_v54 = vrot.slane %v2862_v39, 7  ;;  %v328_v48 = vrot.slane %v2865_v40, 7 }
  0x69   : > { %4453 = vst [vmem:[#allocation42_spill] sm:$0xff] %v3171_v19  ;;  %v325_v57 = vrot.slane %v2813_v27, 7  ;;  %v3195_v39 = vsel %vm291_vm1, 0.0, %v331_v60  ;;  %v338_v27 = vrot.slane %v2898_v52, 7 }
  0x6a   : > { %v3192_v38 = vsel %vm291_vm1, %v331_v60, %v332_v54  ;;  %v3203_v40 = vsel %vm291_vm1, 0.0, %v328_v48  ;;  %v3215_v54 = vld [vmem:[%s2709_s19 + $0xf8] sm:$0xff] }
  0x6b   : > { %4456 = vst [vmem:[#allocation45_spill] sm:$0xff] %v3203_v40  ;;  %v2287_v60 = vpack.i.bf16 %v3192_v38, %v3195_v39 }
  0x6c   : > { %2243 = vrot.lane.b32.xlu2 %v2242_v5, %s2658_s22  ;;  %v2257_v5 = vpack.i.bf16 %v3122_v45, %v3125_v20  ;;  %4458 = vst [vmem:[#allocation47_spill] sm:$0xff] %v3215_v54 }
  0x6d   : > { %2238 = vrot.lane.b32.xlu1 %v2237_v61, %s2658_s22  ;;  %2233 = vrot.lane.b32.xlu0 %v2232_v62, %s2658_s22  ;;  %v2252_v61 = vpack.i.bf16 %v3130_v22, %v3133_v9  ;;  %v2247_v62 = vpack.i.bf16 %v3136_v10, %v3139_v23 }
  0x6e   : > { %v3127_v21 = vpop.permute.xlu2 %2083 }
  0x74   : > { %2258 = vrot.lane.b32.xlu2 %v2257_v5, %s2658_s22  ;;  %v3174_v5 = vsel %vm291_vm1, 0.0, %v316_v55  ;;  %v329_v55 = vrot.slane %v2868_v41, 7 }
  0x75   : > { %2253 = vrot.lane.b32.xlu1 %v2252_v61, %s2658_s22  ;;  %2248 = vrot.lane.b32.xlu0 %v2247_v62, %s2658_s22  ;;  %4454 = vst [vmem:[#allocation43_spill] sm:$0xff] %v3174_v5  ;;  %v2272_v61 = vpack.i.bf16 %v3157_v14, %v3160_v13  ;;  %v2267_v62 = vpack.i.bf16 %v3165_v31, %v3168_v18 }
  0x76   : > { %v3162_v4 = vpop.permute.xlu2 %2088  ;;  %v2262_v63 = vpack.i.bf16 %v3171_v19, %v3174_v5  ;;  %v3200_v41 = vsel %vm291_vm1, %v328_v48, %v329_v55  ;;  %v334_v5 = vrot.slane %v2849_v36, 7  ;;  %v335_v19 = vrot.slane %v2856_v37, 7 }
  0x77   : > { %4455 = vst [vmem:[#allocation44_spill] sm:$0xff] %v3200_v41  ;;  %v2282_v55 = vpack.i.bf16 %v3200_v41, %v3203_v40 }
  0x78   : > { %v3247_v37 = vsel %vm291_vm1, %v334_v5, %v335_v19  ;;  %v3250_v52 = vsel %vm291_vm1, 0.0, %v334_v5 }
  0x79   : > { %4463 = vst [vmem:[#allocation52_spill] sm:$0xff] %v3250_v52 }
  0x7c   : > { %2273 = vrot.lane.b32.xlu2 %v2272_v61, %s2658_s22  ;;  %v3206_v61 = vsel %vm291_vm1, %v325_v57, %v326_v30  ;;  %v341_v30 = vrot.slane %v3215_v54, 7 }
  0x7d   : > { %2268 = vrot.lane.b32.xlu1 %v2267_v62, %s2658_s22  ;;  %2263 = vrot.lane.b32.xlu0 %v2262_v63, %s2658_s22  ;;  %v3209_v62 = vsel %vm291_vm1, 0.0, %v325_v57  ;;  %v3212_v63 = vld [vmem:[%s2709_s19 + $0xf0] sm:$0xff]  ;;  %v337_v57 = vrot.slane %v2895_v51, 7 }
  0x7e   : > { %v3197_v18 = vpop.permute.xlu2 %2108  ;;  %4457 = vst [vmem:[#allocation46_spill] sm:$0xff] %v3209_v62  ;;  %v2277_v48 = vpack.i.bf16 %v3206_v61, %v3209_v62  ;;  %v340_v28 = vrot.slane %v3212_v63, 7 }
  0x7f   : > { %v3241_v51 = vsel %vm291_vm1, %v337_v57, %v338_v27  ;;  %v3244_v36 = vsel %vm291_vm1, 0.0, %v337_v57  ;;  %v2292_v27 = vpack.i.bf16 %v3247_v37, %v3250_v52  ;;  %v2085_v52 = vunpack.i.l.bf16 %v3127_v21 }
  0x80   : > { %v3233_v40 = vsel %vm291_vm1, %v340_v28, %v341_v30  ;;  %v3236_v41 = vsel %vm291_vm1, 0.0, %v340_v28  ;;  %4461 = vst [vmem:[#allocation50_spill] sm:$0xff] %v3241_v51 }
  0x81   : > { %4459 = vst [vmem:[#allocation48_spill] sm:$0xff] %v3233_v40  ;;  %v2302_v28 = vpack.i.bf16 %v3233_v40, %v3236_v41 }
  0x82   : > { %4460 = vst [vmem:[#allocation49_spill] sm:$0xff] %v3236_v41 }
  0x83   : > { %4462 = vst [vmem:[#allocation51_spill] sm:$0xff] %v3244_v36 }
  0x84   : > { %2288 = vrot.lane.b32.xlu2 %v2287_v60, %s2658_s22 }
  0x85   : > { %2283 = vrot.lane.b32.xlu1 %v2282_v55, %s2658_s22  ;;  %2278 = vrot.lane.b32.xlu0 %v2277_v48, %s2658_s22  ;;  %v2297_v48 = vpack.i.bf16 %v3241_v51, %v3244_v36 }
  0x86   : > { %v3238_v62 = vpop.permute.xlu2 %2123 }
  0x87   : > { %v3252_v60 = vpop.permute.xlu1 %2073  ;;  %v2069_v55 = vpop.permute.xlu0 %2068 }
  0x88   : > { %v2071_v57 = vunpack.i.h.bf16 %v2069_v55  ;;  %v2070_v40 = vunpack.i.l.bf16 %v2069_v55 }
  0x8a   : > { %v1198_v55 = vsel %vm1195_vm2, %v3059_v6, %v2070_v40 }
  0x8c   : > { %2303 = vrot.lane.b32.xlu2 %v2302_v28, %s2658_s22 }
  0x8d   : > { %2298 = vrot.lane.b32.xlu1 %v2297_v48, %s2658_s22  ;;  %2293 = vrot.lane.b32.xlu0 %v2292_v27, %s2658_s22 }
  0x8e   : > { %v3263_v19 = vpop.permute.xlu2 %2138 }
  0x8f   : > { %v3265_v5 = vpop.permute.xlu1 %2078  ;;  %v3267_v30 = vpop.permute.xlu0 %2093 }
  0x94   : > { %2318 = vrot.lane.b32.xlu2 %v2771_v16, %s2659_s23  ;;  %v1199_v16 = vsel %vm1195_vm2, %v2954_v49, %v2071_v57  ;;  %v1204_v57 = vsel %vm1195_vm2, %v3092_v0, %v2085_v52  ;;  %v3316_v52 = vld [vmem:[%s4318_s1 + $0x80] sm:$0xff] }
  0x95   : > { %2313 = vrot.lane.b32.xlu1 %v2735_v7, %s2659_s23  ;;  %2308 = vrot.lane.b32.xlu0 %v2739_v8, %s2659_s23  ;;  %v2086_v8 = vunpack.i.h.bf16 %v3127_v21  ;;  %4466 = vst [vmem:[#allocation55_spill] sm:$0xff] %v3316_v52 }
  0x96   : > { %v2154_v28 = vpop.permute.xlu2 %2153 }
  0x97   : > { %v2104_v48 = vpop.permute.xlu1 %2103  ;;  %v3275_v27 = vpop.permute.xlu0 %2098  ;;  %v2156_v41 = vunpack.i.h.bf16 %v2154_v28  ;;  %v2155_v36 = vunpack.i.l.bf16 %v2154_v28  ;;  %v1205_v21 = vsel %vm1195_vm2, %v3089_v53, %v2086_v8  ;;  %v292_v8 = vrot.slane %v2754_v11, 7 }
  0x98   : > { %v2106_v28 = vunpack.i.h.bf16 %v2104_v48  ;;  %v2096_v11 = vunpack.i.h.bf16 %v3267_v30 }
  0x99   : > { %v3282_v51 = vsel %vm1228_vm3, %v1198_v55, %v2155_v36  ;;  %v3285_v7 = vsel %vm1228_vm3, %v1199_v16, %v2156_v41  ;;  %v2105_v55 = vunpack.i.l.bf16 %v2104_v48 }
  0x9c   : > { %2333 = vrot.lane.b32.xlu2 %v2808_v26, %s2659_s23  ;;  %v3304_v26 = vld [vmem:[%s4318_s1 + $0x88] sm:$0xff] }
  0x9d   : > { %2328 = vrot.lane.b32.xlu1 %v2767_v15, %s2659_s23  ;;  %2323 = vrot.lane.b32.xlu0 %v2722_v3, %s2659_s23  ;;  %4464 = vst [vmem:[#allocation53_spill] sm:$0xff] %v3304_v26 }
  0x9e   : > { %v2169_v40 = vpop.permute.xlu2 %2168  ;;  %1640 = vmatpush.msra.mxu1 %v3304_v26 }
  0x9f   : > { %v2119_v49 = vpop.permute.xlu1 %2118  ;;  %v3295_v6 = vpop.permute.xlu0 %2113  ;;  %v2171_v36 = vunpack.i.h.bf16 %v2169_v40  ;;  %v2170_v41 = vunpack.i.l.bf16 %v2169_v40  ;;  %v293_v40 = vrot.slane %v2757_v12, 7 }
  0xa0   : > { %1641 = vmatpush.msra.mxu1 %v3316_v52  ;;  %v2095_v52 = vunpack.i.l.bf16 %v3267_v30  ;;  %v2121_v26 = vunpack.i.h.bf16 %v2119_v49  ;;  %v2075_v30 = vunpack.i.l.bf16 %v3252_v60 }
  0xa1   : > { %v3307_v15 = vsel %vm1228_vm3, %v1205_v21, %v2171_v36  ;;  %v3310_v3 = vsel %vm1228_vm3, %v1204_v57, %v2170_v41  ;;  %1966 = vmatmul.msk.f32.vlgmr.msra.gmra.mxu1 %vm1195_vm2, %v2926_v44  ;;  %v1210_v21 = vsel %vm1195_vm2, %v3125_v20, %v2105_v55  ;;  %v294_v12 = vsel %vm291_vm1, %v292_v8, %v293_v40 }
  0xa2   : > { %4465 = vst [vmem:[#allocation54_spill] sm:$0xff] %v3307_v15  ;;  %v2120_v15 = vunpack.i.l.bf16 %v2119_v49  ;;  %v2081_v55 = vunpack.i.h.bf16 %v3265_v5  ;;  %v2080_v49 = vunpack.i.l.bf16 %v3265_v5 }
  0xa4   : > { %2348 = vrot.lane.b32.xlu2 %v2844_v35, %s2659_s23  ;;  %v1211_v35 = vsel %vm1195_vm2, %v3122_v45, %v2106_v28  ;;  %v2076_v28 = vunpack.i.h.bf16 %v3252_v60  ;;  %v1216_v60 = vsel %vm1195_vm2, %v3160_v13, %v2120_v15  ;;  %v2091_v15 = vunpack.i.h.bf16 %v3162_v4 }
  0xa5   : > { %2343 = vrot.lane.b32.xlu1 %v2800_v24, %s2659_s23  ;;  %2338 = vrot.lane.b32.xlu0 %v2804_v25, %s2659_s23 }
  0xa6   : > { %v2184_v16 = vpop.permute.xlu2 %2183 }
  0xa7   : > { %v2134_v36 = vpop.permute.xlu1 %2133  ;;  %v3329_v41 = vpop.permute.xlu0 %2128  ;;  %v2186_v48 = vunpack.i.h.bf16 %v2184_v16  ;;  %v2185_v57 = vunpack.i.l.bf16 %v2184_v16  ;;  %v380_v16 = vsel %vm291_vm1, 0.0, %v292_v8  ;;  %v1197_v8 = vsel %vm1195_vm2, %v294_v12, %v2096_v11 }
  0xa8   : > { %v1196_v40 = vsel %vm1195_vm2, %v380_v16, %v2095_v52  ;;  %v2135_v45 = vunpack.i.l.bf16 %v2134_v36 }
  0xa9   : > { %v3336_v24 = vsel %vm1228_vm3, %v1211_v35, %v2186_v48  ;;  %v3339_v25 = vsel %vm1228_vm3, %v1210_v21, %v2185_v57  ;;  %1967 = vmatmul.msk.f32.gmra.mxu1 %vm1195_vm2, %v2929_v47 }
  0xaa   : > { %4467 = vst [vmem:[#allocation56_spill] sm:$0xff] %v3336_v24 }
  0xac   : > { %2363 = vrot.lane.b32.xlu2 %v2882_v46, %s2659_s23 }
  0xad   : > { %2358 = vrot.lane.b32.xlu1 %v2836_v33, %s2659_s23  ;;  %2353 = vrot.lane.b32.xlu0 %v2840_v34, %s2659_s23  ;;  %v2377_v33 = vpack.i.bf16 %v2999_v43, %v3008_v50  ;;  %v1217_v34 = vsel %vm1195_vm2, %v3157_v14, %v2121_v26  ;;  %v2136_v26 = vunpack.i.h.bf16 %v2134_v36  ;;  %v1202_v36 = vsel %vm1195_vm2, %v3098_v56, %v2080_v49 }
  0xae   : > { %v2199_v46 = vpop.permute.xlu2 %2198  ;;  %v2382_v49 = vpack.i.bf16 %v3160_v13, %v3165_v31 }
  0xaf   : > { %v2149_v48 = vpop.permute.xlu1 %2148  ;;  %v3359_v57 = vpop.permute.xlu0 %2143  ;;  %v2201_v35 = vunpack.i.h.bf16 %v2199_v46  ;;  %v2200_v21 = vunpack.i.l.bf16 %v2199_v46  ;;  %v3380_v46 = vmul.f32 0.0, %v3212_v63  ;;  %v1203_v63 = vsel %vm1195_vm2, %v3095_v1, %v2081_v55 }
  0xb0   : > { %v2151_v5 = vunpack.i.h.bf16 %v2149_v48  ;;  %v2150_v24 = vunpack.i.l.bf16 %v2149_v48  ;;  %v2090_v48 = vunpack.i.l.bf16 %v3162_v4  ;;  %v2101_v4 = vunpack.i.h.bf16 %v3275_v27 }
  0xb1   : > { %v3368_v11 = vsel %vm1228_vm3, %v1217_v34, %v2201_v35  ;;  %v3371_v52 = vsel %vm1228_vm3, %v1216_v60, %v2200_v21  ;;  %4468 = vst [vmem:[#allocation57_spill] sm:$0xff] %v3380_v46  ;;  %v1200_v35 = vsel %vm1195_vm2, %v3104_v59, %v2075_v30  ;;  %v1201_v21 = vsel %vm1195_vm2, %v3101_v58, %v2076_v28 }
  0xb2   : > { %v3374_v12 = vsel %vm1228_vm3, %v1196_v40, %v2150_v24  ;;  %v3377_v16 = vsel %vm1228_vm3, %v1197_v8, %v2151_v5  ;;  %1968 = vmatmul.msk.f32.gmra.mxu1 %vm1195_vm2, %v2918_v17  ;;  %v4469_v24 = vld [vmem:[#allocation10_spill] sm:$0xff]  ;;  %v3401_v28 = vmul.f32 0.0, %v3215_v54  ;;  %v2100_v30 = vunpack.i.l.bf16 %v3275_v27 }
  0xb3   : > { %v2387_v55 = vpack.i.bf16 %v2823_v29, %v2832_v32 }
  0xb4   : > { %2378 = vrot.lane.b32.xlu2 %v2377_v33, %s2660_s28  ;;  %4470 = vst [vmem:[#allocation10_spill] sm:$0xff] %v3401_v28  ;;  %v1222_v33 = vsel %vm1195_vm2, %v3195_v39, %v2135_v45  ;;  %v344_v32 = vrot.slane %v3401_v28, 7 }
  0xb5   : > { %2373 = vrot.lane.b32.xlu1 %v2872_v42, %s2659_s23  ;;  %2368 = vrot.lane.b32.xlu0 %v4469_v24, %s2659_s23  ;;  %v1223_v42 = vsel %vm1195_vm2, %v3192_v38, %v2136_v26  ;;  %v4408_v26 = vrot.slane %v3215_v54, 1 }
  0xb6   : > { %v2214_v8 = vpop.permute.xlu2 %2213 }
  0xb7   : > { %v2164_v34 = vpop.permute.xlu1 %2163  ;;  %v2159_v60 = vpop.permute.xlu0 %2158  ;;  %v2216_v5 = vunpack.i.h.bf16 %v2214_v8  ;;  %v2215_v24 = vunpack.i.l.bf16 %v2214_v8 }
  0xb8   : > { %v2166_v27 = vunpack.i.h.bf16 %v2164_v34  ;;  %v2165_v43 = vunpack.i.l.bf16 %v2164_v34  ;;  %v2161_v20 = vunpack.i.h.bf16 %v2159_v60  ;;  %v2160_v50 = vunpack.i.l.bf16 %v2159_v60  ;;  %v4471_v60 = vld [vmem:[#allocation13_spill] sm:$0xff] }
  0xb9   : > { %v3414_v29 = vsel %vm1228_vm3, %v1223_v42, %v2216_v5  ;;  %v3417_v13 = vsel %vm1228_vm3, %v1222_v33, %v2215_v24  ;;  %v1207_v42 = vsel %vm1195_vm2, %v3136_v10, %v2091_v15  ;;  %v1206_v33 = vsel %vm1195_vm2, %v3139_v23, %v2090_v48 }
  0xba   : > { %v1235_v45 = vsel %vm1228_vm3, %v1202_v36, %v2165_v43  ;;  %v1236_v40 = vsel %vm1228_vm3, %v1203_v63, %v2166_v27  ;;  %v3424_v8 = vsel %vm1228_vm3, %v1201_v21, %v2161_v20  ;;  %v3427_v34 = vsel %vm1228_vm3, %v1200_v35, %v2160_v50  ;;  %1969 = vmatmul.msk.f32.gmra.mxu1 %vm1195_vm2, %v4471_v60 }
  0xbb   : > { %v2111_v43 = vunpack.i.h.bf16 %v3197_v18  ;;  %v2110_v20 = vunpack.i.l.bf16 %v3197_v18  ;;  %v1209_v50 = vsel %vm1195_vm2, %v3130_v22, %v2101_v4  ;;  %v1208_v35 = vsel %vm1195_vm2, %v3133_v9, %v2100_v30 }
  0xbc   : > { %871 = vrot.lane.b32.xlu2 %v3215_v54, %s2659_s23  ;;  %v2116_v15 = vunpack.i.h.bf16 %v3295_v6  ;;  %v4472_v21 = vrot.slane %v3380_v46, 7  ;;  %v3452_v63 = vsel %vm398_vm0, %v4408_v26, 0.0  ;;  %v2115_v36 = vunpack.i.l.bf16 %v3295_v6  ;;  %v4476_v26 = vld [vmem:[#allocation11_spill] sm:$0xff] }
  0xbd   : > { %2388 = vrot.lane.b32.xlu1 %v2387_v55, %s2661_s29  ;;  %2383 = vrot.lane.b32.xlu0 %v2382_v49, %s2662_s30  ;;  %4473 = vst [vmem:[#allocation13_spill] sm:$0xff] %v3452_v63  ;;  %v2402_v49 = vpack.i.bf16 %v2718_v2, %v3401_v28 }
  0xbe   : > { %v2229_v48 = vpop.permute.xlu2 %2228  ;;  %v345_v18 = vsel %vm291_vm1, %v4472_v21, %v344_v32 }
  0xbf   : > { %v2179_v4 = vpop.permute.xlu1 %2178  ;;  %v2174_v30 = vpop.permute.xlu0 %2173  ;;  %v2231_v55 = vunpack.i.h.bf16 %v2229_v48  ;;  %v2230_v5 = vunpack.i.l.bf16 %v2229_v48  ;;  %v2397_v6 = vpack.i.bf16 %v3104_v59, %v345_v18  ;;  %v2392_v48 = vpack.i.bf16 %v4476_v26, %v3452_v63  ;;  %v4479_v18 = vld [vmem:[#allocation43_spill] sm:$0xff] }
  0xc0   : > { %v2181_v24 = vunpack.i.h.bf16 %v2179_v4  ;;  %v2180_v27 = vunpack.i.l.bf16 %v2179_v4  ;;  %v2176_v22 = vunpack.i.h.bf16 %v2174_v30  ;;  %v2175_v46 = vunpack.i.l.bf16 %v2174_v30 }
  0xc1   : > { %v3459_v32 = vsel %vm1261_vm4, %v3377_v16, %v2231_v55  ;;  %v3463_v21 = vsel %vm1261_vm4, %v3374_v12, %v2230_v5  ;;  %v4477_v16 = vld [vmem:[#allocation14_spill] sm:$0xff]  ;;  %v1212_v26 = vsel %vm1195_vm2, %v4479_v18, %v2110_v20 }
  0xc2   : > { %4474 = vst [vmem:[#allocation58_spill] sm:$0xff] %v3459_v32  ;;  %v1241_v54 = vsel %vm1228_vm3, %v1208_v35, %v2180_v27  ;;  %v1242_v2 = vsel %vm1228_vm3, %v1209_v50, %v2181_v24  ;;  %v3471_v4 = vsel %vm1228_vm3, %v1207_v42, %v2176_v22  ;;  %v3474_v30 = vsel %vm1228_vm3, %v1206_v33, %v2175_v46  ;;  %v4478_v12 = vld [vmem:[#allocation42_spill] sm:$0xff]  ;;  %v4480_v33 = vld [vmem:[#allocation41_spill] sm:$0xff]  ;;  %v4481_v24 = vld [vmem:[#allocation7_spill] sm:$0xff] }
  0xc3   : > { %4475 = vst [vmem:[#allocation59_spill] sm:$0xff] %v3463_v21  ;;  %1970 = vmatmul.msk.f32.gmra.mxu1 %vm1195_vm2, %v4477_v16  ;;  %v1213_v59 = vsel %vm1195_vm2, %v4478_v12, %v2111_v43  ;;  %v2126_v22 = vunpack.i.h.bf16 %v3238_v62  ;;  %v2125_v46 = vunpack.i.l.bf16 %v3238_v62  ;;  %v1215_v42 = vsel %vm1195_vm2, %v3165_v31, %v2116_v15  ;;  %v4482_v27 = vld [vmem:[#allocation2_spill] sm:$0xff] }
  0xc4   : > { %2403 = vrot.lane.b32.xlu2 %v2402_v49, %s2661_s29  ;;  %v1214_v50 = vsel %vm1195_vm2, %v4480_v33, %v2115_v36  ;;  %v2131_v43 = vunpack.i.h.bf16 %v3329_v41  ;;  %v2412_v15 = vpack.i.bf16 %v3101_v58, %v3157_v14  ;;  %v4483_v36 = vld [vmem:[#allocation25_spill] sm:$0xff]  ;;  %v4484_v33 = vld [vmem:[#allocation12_spill] sm:$0xff]  ;;  %v4486_v58 = vld [vmem:[#allocation46_spill] sm:$0xff] }
  0xc5   : > { %2398 = vrot.lane.b32.xlu1 %v2397_v6, %s2662_s30  ;;  %2393 = vrot.lane.b32.xlu0 %v2392_v48, %s2660_s28  ;;  %v2417_v6 = vpack.i.bf16 %v4482_v27, %v4481_v24  ;;  %v2407_v21 = vpack.i.bf16 %v4484_v33, %v4483_v36  ;;  %v1219_v14 = vsel %vm1195_vm2, %v3206_v61, %v2126_v22  ;;  %v4488_v33 = vld [vmem:[#allocation45_spill] sm:$0xff]  ;;  %v4492_v18 = vld [vmem:[#allocation22_spill] sm:$0xff] }
  0xc6   : > { %v2244_v35 = vpop.permute.xlu2 %2243  ;;  %v2422_v36 = vpack.i.bf16 %v2926_v44, %v4492_v18 }
  0xc7   : > { %v2194_v55 = vpop.permute.xlu1 %2193  ;;  %v2189_v5 = vpop.permute.xlu0 %2188  ;;  %v2246_v20 = vunpack.i.h.bf16 %v2244_v35  ;;  %v2245_v49 = vunpack.i.l.bf16 %v2244_v35 }
  0xc8   : > { %v2196_v48 = vunpack.i.h.bf16 %v2194_v55  ;;  %v2195_v28 = vunpack.i.l.bf16 %v2194_v55  ;;  %v2191_v63 = vunpack.i.h.bf16 %v2189_v5  ;;  %v2190_v62 = vunpack.i.l.bf16 %v2189_v5 }
  0xc9   : > { %v3495_v32 = vsel %vm1261_vm4, %v1236_v40, %v2246_v20  ;;  %v3498_v31 = vsel %vm1261_vm4, %v1235_v45, %v2245_v49  ;;  %v2130_v40 = vunpack.i.l.bf16 %v3329_v41  ;;  %v4485_v45 = vld [vmem:[#allocation15_spill] sm:$0xff]  ;;  %v4487_v41 = vld [vmem:[#allocation44_spill] sm:$0xff] }
  0xca   : > { %v1247_v35 = vsel %vm1228_vm3, %v1214_v50, %v2195_v28  ;;  %v1248_v24 = vsel %vm1228_vm3, %v1215_v42, %v2196_v48  ;;  %v3507_v55 = vsel %vm1228_vm3, %v1213_v59, %v2191_v63  ;;  %v3510_v5 = vsel %vm1228_vm3, %v1212_v26, %v2190_v62 }
  0xcb   : > { %1971 = vmatmul.msk.f32.gmra.mxu1 %vm1195_vm2, %v4485_v45  ;;  %v1218_v28 = vsel %vm1195_vm2, %v4486_v58, %v2125_v46  ;;  %v2141_v63 = vunpack.i.h.bf16 %v3263_v19  ;;  %v2140_v59 = vunpack.i.l.bf16 %v3263_v19  ;;  %v1221_v26 = vsel %vm1195_vm2, %v4487_v41, %v2131_v43 }
  0xcc   : > { %2418 = vrot.lane.b32.xlu2 %v2417_v6, %s2661_s29  ;;  %v1220_v50 = vsel %vm1195_vm2, %v4488_v33, %v2130_v40  ;;  %v4489_v6 = vld [vmem:[#allocation5_spill] sm:$0xff]  ;;  %v2427_v40 = vpack.i.bf16 %v3098_v56, %v4486_v58  ;;  %v4494_v56 = vld [vmem:[#allocation52_spill] sm:$0xff] }
  0xcd   : > { %2413 = vrot.lane.b32.xlu1 %v2412_v15, %s2662_s30  ;;  %2408 = vrot.lane.b32.xlu0 %v2407_v21, %s2660_s28  ;;  %v4490_v21 = vld [vmem:[#allocation3_spill] sm:$0xff]  ;;  %v1225_v44 = vsel %vm1195_vm2, %v3247_v37, %v2141_v63 }
  0xce   : > { %v2259_v42 = vpop.permute.xlu2 %2258  ;;  %v2432_v48 = vpack.i.bf16 %v4490_v21, %v4489_v6 }
  0xcf   : > { %v2209_v20 = vpop.permute.xlu1 %2208  ;;  %v2204_v22 = vpop.permute.xlu0 %2203  ;;  %v2261_v49 = vunpack.i.h.bf16 %v2259_v42  ;;  %v2260_v27 = vunpack.i.l.bf16 %v2259_v42 }
  0xd0   : > { %v2211_v62 = vunpack.i.h.bf16 %v2209_v20  ;;  %v2210_v46 = vunpack.i.l.bf16 %v2209_v20  ;;  %v2206_v15 = vunpack.i.h.bf16 %v2204_v22  ;;  %v2205_v12 = vunpack.i.l.bf16 %v2204_v22 }
  0xd1   : > { %v3531_v19 = vsel %vm1261_vm4, %v1242_v2, %v2261_v49  ;;  %v3534_v43 = vsel %vm1261_vm4, %v1241_v54, %v2260_v27  ;;  %v2146_v2 = vunpack.i.h.bf16 %v3359_v57  ;;  %v4493_v54 = vld [vmem:[#allocation20_spill] sm:$0xff] }
  0xd2   : > { %4491 = vst [vmem:[#allocation11_spill] sm:$0xff] %v3531_v19  ;;  %v1253_v42 = vsel %vm1228_vm3, %v1220_v50, %v2210_v46  ;;  %v1254_v6 = vsel %vm1228_vm3, %v1221_v26, %v2211_v62  ;;  %v3543_v20 = vsel %vm1228_vm3, %v1219_v14, %v2206_v15  ;;  %v3546_v22 = vsel %vm1228_vm3, %v1218_v28, %v2205_v12  ;;  %v4495_v28 = vld [vmem:[#allocation50_spill] sm:$0xff]  ;;  %v4497_v62 = vld [vmem:[#allocation4_spill] sm:$0xff]  ;;  %v4499_v19 = vld [vmem:[#allocation51_spill] sm:$0xff] }
  0xd3   : > { %1972 = vmatmul.msk.f32.gmra.mxu1 %vm1195_vm2, %v4493_v54  ;;  %v1224_v14 = vsel %vm1195_vm2, %v4494_v56, %v2140_v59  ;;  %v2145_v12 = vunpack.i.l.bf16 %v3359_v57  ;;  %v1227_v26 = vsel %vm1195_vm2, %v4495_v28, %v2146_v2  ;;  %v2442_v59 = vpack.i.bf16 %v3095_v1, %v3206_v61  ;;  %v4498_v2 = vld [vmem:[#allocation23_spill] sm:$0xff]  ;;  %v4500_v1 = vld [vmem:[#allocation21_spill] sm:$0xff] }
  0xd4   : > { %2433 = vrot.lane.b32.xlu2 %v2432_v48, %s2661_s29  ;;  %v4496_v48 = vld [vmem:[#allocation6_spill] sm:$0xff] }
  0xd5   : > { %2428 = vrot.lane.b32.xlu1 %v2427_v40, %s2662_s30  ;;  %2423 = vrot.lane.b32.xlu0 %v2422_v36, %s2660_s28  ;;  %v2447_v46 = vpack.i.bf16 %v4497_v62, %v4496_v48  ;;  %v1226_v48 = vsel %vm1195_vm2, %v4499_v19, %v2145_v12 }
  0xd6   : > { %v2274_v58 = vpop.permute.xlu2 %2273 }
  0xd7   : > { %v2224_v50 = vpop.permute.xlu1 %2223  ;;  %v2219_v49 = vpop.permute.xlu0 %2218  ;;  %v2276_v27 = vunpack.i.h.bf16 %v2274_v58  ;;  %v2275_v21 = vunpack.i.l.bf16 %v2274_v58  ;;  %v2437_v58 = vpack.i.bf16 %v2929_v47, %v4498_v2 }
  0xd8   : > { %v2226_v36 = vunpack.i.h.bf16 %v2224_v50  ;;  %v2225_v15 = vunpack.i.l.bf16 %v2224_v50  ;;  %v2221_v40 = vunpack.i.h.bf16 %v2219_v49  ;;  %v2220_v63 = vunpack.i.l.bf16 %v2219_v49 }
  0xd9   : > { %v3564_v18 = vsel %vm1261_vm4, %v1248_v24, %v2276_v27  ;;  %v3567_v57 = vsel %vm1261_vm4, %v1247_v35, %v2275_v21  ;;  %v2613_v27 = vld [vmem:[%s2709_s19 + $0x30] sm:$0xff] }
  0xda   : > { %v3576_v50 = vsel %vm1228_vm3, %v1225_v44, %v2221_v40  ;;  %v3579_v49 = vsel %vm1228_vm3, %v1224_v14, %v2220_v63  ;;  %v3582_v24 = vsel %vm1228_vm3, %v1227_v26, %v2226_v36  ;;  %v1259_v35 = vsel %vm1228_vm3, %v1226_v48, %v2225_v15  ;;  %v4501_v21 = vld [vmem:[#allocation8_spill] sm:$0xff] }
  0xdb   : > { %1973 = vmatmul.msk.f32.gmra.mxu1 %vm1195_vm2, %v4500_v1  ;;  %v2462_v26 = vpack.i.bf16 %v2613_v27, %v4501_v21 }
  0xdc   : > { %2448 = vrot.lane.b32.xlu2 %v2447_v46, %s2661_s29 }
  0xdd   : > { %2443 = vrot.lane.b32.xlu1 %v2442_v59, %s2662_s30  ;;  %2438 = vrot.lane.b32.xlu0 %v2437_v58, %s2660_s28  ;;  %v2457_v59 = vpack.i.bf16 %v3092_v0, %v4488_v33  ;;  %v4502_v58 = vld [vmem:[#allocation32_spill] sm:$0xff]  ;;  %v4503_v0 = vld [vmem:[#allocation18_spill] sm:$0xff]  ;;  %v2614_v33 = vld [vmem:[%s2709_s19 + $0x38] sm:$0xff] }
  0xde   : > { %v2289_v47 = vpop.permute.xlu2 %2288  ;;  %v2452_v48 = vpack.i.bf16 %v2918_v17, %v4502_v58 }
  0xdf   : > { %v2239_v61 = vpop.permute.xlu1 %2238  ;;  %v2234_v44 = vpop.permute.xlu0 %2233  ;;  %v2291_v12 = vunpack.i.h.bf16 %v2289_v47  ;;  %v2290_v14 = vunpack.i.l.bf16 %v2289_v47 }
  0xe0   : > { %v2241_v62 = vunpack.i.h.bf16 %v2239_v61  ;;  %v2240_v36 = vunpack.i.l.bf16 %v2239_v61  ;;  %v2236_v15 = vunpack.i.h.bf16 %v2234_v44  ;;  %v2235_v40 = vunpack.i.l.bf16 %v2234_v44  ;;  %v4504_v44 = vld [vmem:[#allocation9_spill] sm:$0xff] }
  0xe1   : > { %v3593_v46 = vsel %vm1261_vm4, %v1254_v6, %v2291_v12  ;;  %v3596_v63 = vsel %vm1261_vm4, %v1253_v42, %v2290_v14  ;;  %v2477_v12 = vpack.i.bf16 %v2614_v33, %v4504_v44  ;;  %v2615_v44 = vld [vmem:[%s2709_s19 + $0x40] sm:$0xff] }
  0xe2   : > { %v1266_v47 = vsel %vm1261_vm4, %v3427_v34, %v2240_v36  ;;  %v1267_v61 = vsel %vm1261_vm4, %v3424_v8, %v2241_v62  ;;  %v3608_v6 = vsel %vm1261_vm4, %v3282_v51, %v2235_v40  ;;  %v3612_v42 = vsel %vm1261_vm4, %v3285_v7, %v2236_v15  ;;  %v4505_v62 = vld [vmem:[#allocation33_spill] sm:$0xff] }
  0xe3   : > { %1974 = vmatmul.msk.f32.gmra.mxu1 %vm1195_vm2, %v4503_v0  ;;  %v2467_v36 = vpack.i.bf16 %v4471_v60, %v4505_v62  ;;  %v4508_v60 = vld [vmem:[#allocation19_spill] sm:$0xff] }
  0xe4   : > { %2463 = vrot.lane.b32.xlu2 %v2462_v26, %s2661_s29  ;;  %v2472_v26 = vpack.i.bf16 %v3089_v53, %v4487_v41 }
  0xe5   : > { %2458 = vrot.lane.b32.xlu1 %v2457_v59, %s2662_s30  ;;  %2453 = vrot.lane.b32.xlu0 %v2452_v48, %s2660_s28 }
  0xe6   : > { %v3619_v17 = vpop.permute.xlu2 %2303 }
  0xe7   : > { %v2254_v8 = vpop.permute.xlu1 %2253  ;;  %v2249_v34 = vpop.permute.xlu0 %2248  ;;  %v2305_v51 = vunpack.i.l.bf16 %v3619_v17 }
  0xe8   : > { %v2256_v7 = vunpack.i.h.bf16 %v2254_v8  ;;  %v2255_v14 = vunpack.i.l.bf16 %v2254_v8  ;;  %v2251_v27 = vunpack.i.h.bf16 %v2249_v34  ;;  %v2250_v21 = vunpack.i.l.bf16 %v2249_v34  ;;  %v4507_v8 = vld [vmem:[#allocation54_spill] sm:$0xff] }
  0xe9   : > { %v3629_v15 = vsel %vm1261_vm4, %v1259_v35, %v2305_v51 }
  0xea   : > { %4506 = vst [vmem:[#allocation14_spill] sm:$0xff] %v3629_v15  ;;  %v1272_v40 = vsel %vm1261_vm4, %v3474_v30, %v2255_v14  ;;  %v1273_v59 = vsel %vm1261_vm4, %v3471_v4, %v2256_v7  ;;  %v3637_v48 = vsel %vm1261_vm4, %v3310_v3, %v2250_v21  ;;  %v3641_v53 = vsel %vm1261_vm4, %v4507_v8, %v2251_v27 }
  0xeb   : > { %1975 = vmatmul.msk.f32.gmra.mxu1 %vm1195_vm2, %v4508_v60  ;;  %v2487_v21 = vpack.i.bf16 %v3139_v23, %v3195_v39  ;;  %v4510_v23 = vld [vmem:[#allocation16_spill] sm:$0xff] }
  0xec   : > { %2478 = vrot.lane.b32.xlu2 %v2477_v12, %s2661_s29  ;;  %v2616_v12 = vld [vmem:[%s2709_s19 + $0xc0] sm:$0xff]  ;;  %v1440_v39 = vld [vmem:[%s4318_s1 + $0x70] sm:$0xff] }
  0xed   : > { %2473 = vrot.lane.b32.xlu1 %v2472_v26, %s2662_s30  ;;  %2468 = vrot.lane.b32.xlu0 %v2467_v36, %s2660_s28  ;;  %v2492_v7 = vpack.i.bf16 %v2615_v44, %v2616_v12  ;;  %v4509_v26 = vld [vmem:[#allocation30_spill] sm:$0xff] }
  0xee   : > { %v2319_v4 = vpop.permute.xlu2 %2318  ;;  %v2482_v36 = vpack.i.bf16 %v4477_v16, %v4509_v26 }
  0xef   : > { %v2269_v30 = vpop.permute.xlu1 %2268  ;;  %v3648_v41 = vpop.permute.xlu0 %2263  ;;  %v2321_v3 = vunpack.i.h.bf16 %v2319_v4  ;;  %v2320_v35 = vunpack.i.l.bf16 %v2319_v4 }
  0xf0   : > { %v2271_v34 = vunpack.i.h.bf16 %v2269_v30  ;;  %v2270_v51 = vunpack.i.l.bf16 %v2269_v30  ;;  %v2265_v33 = vunpack.i.l.bf16 %v3648_v41 }
  0xf1   : > { %v3654_v14 = vsel %vm1294_vm5, %v1267_v61, %v2321_v3  ;;  %v3657_v27 = vsel %vm1294_vm5, %v1266_v47, %v2320_v35  ;;  %v1441_v47 = vld [vmem:[%s4318_s1 + $0x78] sm:$0xff]  ;;  %v2502_v3 = vpack.i.bf16 %v3136_v10, %v3192_v38  ;;  %v2617_v35 = vld [vmem:[%s2709_s19 + $0x48] sm:$0xff] }
  0xf2   : > { %v3665_v8 = vsel %vm1261_vm4, %v3510_v5, %v2270_v51  ;;  %v3669_v4 = vsel %vm1261_vm4, %v3507_v55, %v2271_v34  ;;  %v3673_v61 = vsel %vm1261_vm4, %v3339_v25, %v2265_v33  ;;  %2002 = vmatpush.msra.mxu2 %v1441_v47  ;;  %1513 = vmatpush.msra.mxu0 %v1441_v47  ;;  %v2618_v34 = vld [vmem:[%s2709_s19 + $0xc8] sm:$0xff] }
  0xf3   : > { %1976 = vmatmul.msk.f32.gmra.mxu1 %vm1195_vm2, %v4510_v23  ;;  %2003 = vmatpush.msra.mxu3 %v1441_v47  ;;  %v2507_v51 = vpack.i.bf16 %v2617_v35, %v2618_v34  ;;  %v4511_v10 = vld [vmem:[#allocation31_spill] sm:$0xff] }
  0xf4   : > { %2493 = vrot.lane.b32.xlu2 %v2492_v7, %s2661_s29  ;;  %2004 = vmatpush.msra.mxu2 %v1440_v39  ;;  %v2497_v38 = vpack.i.bf16 %v4485_v45, %v4511_v10  ;;  %v1438_v45 = vld [vmem:[%s4318_s1 + $0x60] sm:$0xff] }
  0xf5   : > { %2488 = vrot.lane.b32.xlu1 %v2487_v21, %s2662_s30  ;;  %2483 = vrot.lane.b32.xlu0 %v2482_v36, %s2660_s28  ;;  %v1439_v21 = vld [vmem:[%s4318_s1 + $0x68] sm:$0xff] }
  0xf6   : > { %v2334_v25 = vpop.permute.xlu2 %2333  ;;  %1514 = vmatpush.msra.mxu0 %v1440_v39  ;;  %2005 = vmatpush.msra.mxu3 %v1440_v39 }
  0xf7   : > { %v2284_v16 = vpop.permute.xlu1 %2283  ;;  %v2279_v55 = vpop.permute.xlu0 %2278  ;;  %v2336_v5 = vunpack.i.h.bf16 %v2334_v25  ;;  %v2335_v30 = vunpack.i.l.bf16 %v2334_v25  ;;  %2006 = vmatpush.msra.mxu2 %v1439_v21 }
  0xf8   : > { %v2286_v33 = vunpack.i.h.bf16 %v2284_v16  ;;  %v2285_v44 = vunpack.i.l.bf16 %v2284_v16  ;;  %v2281_v12 = vunpack.i.h.bf16 %v2279_v55  ;;  %v2280_v7 = vunpack.i.l.bf16 %v2279_v55  ;;  %1515 = vmatpush.msra.mxu0 %v1439_v21  ;;  %2007 = vmatpush.msra.mxu3 %v1439_v21 }
  0xf9   : > { %v3694_v36 = vsel %vm1294_vm5, %v1273_v59, %v2336_v5  ;;  %v3697_v47 = vsel %vm1294_vm5, %v1272_v40, %v2335_v30  ;;  %2008 = vmatpush.msra.mxu2 %v1438_v45  ;;  %v2619_v5 = vld [vmem:[%s2709_s19 + $0x50] sm:$0xff] }
  0xfa   : > { %v3703_v25 = vsel %vm1261_vm4, %v3546_v22, %v2285_v44  ;;  %v3707_v16 = vsel %vm1261_vm4, %v3543_v20, %v2286_v33  ;;  %v3711_v59 = vsel %vm1261_vm4, %v3371_v52, %v2280_v7  ;;  %v3715_v40 = vsel %vm1261_vm4, %v3368_v11, %v2281_v12  ;;  %v1437_v20 = vld [vmem:[%s4318_s1 + $0x58] sm:$0xff]  ;;  %1516 = vmatpush.msra.mxu0 %v1438_v45  ;;  %v1436_v11 = vld [vmem:[%s4318_s1 + $0x50] sm:$0xff]  ;;  %v1435_v44 = vld [vmem:[%s4318_s1 + $0x48] sm:$0xff] }
  0xfb   : > { %v4512_v52 = vld [vmem:[#allocation17_spill] sm:$0xff]  ;;  %2010 = vmatpush.msra.mxu2 %v1437_v20  ;;  %2009 = vmatpush.msra.mxu3 %v1438_v45  ;;  %v2620_v30 = vld [vmem:[%s2709_s19 + $0xd0] sm:$0xff]  ;;  %v2517_v12 = vpack.i.bf16 %v3133_v9, %v4494_v56  ;;  %v1434_v9 = vld [vmem:[%s4318_s1 + $0x40] sm:$0xff] }
  0xfc   : > { %2508 = vrot.lane.b32.xlu2 %v2507_v51, %s2661_s29  ;;  %1977 = vmatmul.msk.f32.gmra.mxu1 %vm1195_vm2, %v4512_v52  ;;  %v2522_v35 = vpack.i.bf16 %v2619_v5, %v2620_v30  ;;  %v4513_v7 = vld [vmem:[#allocation28_spill] sm:$0xff]  ;;  %v4516_v56 = vld [vmem:[#allocation26_spill] sm:$0xff] }
  0xfd   : > { %2503 = vrot.lane.b32.xlu1 %v2502_v3, %s2662_s30  ;;  %2498 = vrot.lane.b32.xlu0 %v2497_v38, %s2660_s28  ;;  %v2512_v21 = vpack.i.bf16 %v4493_v54, %v4513_v7  ;;  %v1433_v54 = vld [vmem:[%s4318_s1 + $0x38] sm:$0xff]  ;;  %v4517_v30 = vld [vmem:[#allocation40_spill] sm:$0xff] }
  0xfe   : > { %v3731_v22 = vpop.permute.xlu2 %2348  ;;  %1517 = vmatpush.msra.mxu0 %v1437_v20  ;;  %2012 = vmatpush.msra.mxu2 %v1436_v11 }
  0xff   : > { %v2299_v39 = vpop.permute.xlu1 %2298  ;;  %v2294_v55 = vpop.permute.xlu0 %2293  ;;  %2011 = vmatpush.msra.mxu3 %v1437_v20 }
 0x100   : > { %v2301_v34 = vunpack.i.h.bf16 %v2299_v39  ;;  %v2300_v51 = vunpack.i.l.bf16 %v2299_v39  ;;  %v2296_v33 = vunpack.i.h.bf16 %v2294_v55  ;;  %v2295_v3 = vunpack.i.l.bf16 %v2294_v55  ;;  %1518 = vmatpush.msra.mxu0 %v1436_v11  ;;  %2014 = vmatpush.msra.mxu2 %v1435_v44 }
 0x101   : > { %2013 = vmatpush.msra.mxu3 %v1436_v11 }
 0x102   : > { %v3744_v38 = vsel %vm1261_vm4, %v3579_v49, %v2300_v51  ;;  %v3748_v45 = vsel %vm1261_vm4, %v3576_v50, %v2301_v34  ;;  %v3752_v39 = vsel %vm1261_vm4, %v3417_v13, %v2295_v3  ;;  %v3756_v20 = vsel %vm1261_vm4, %v3414_v29, %v2296_v33  ;;  %1519 = vmatpush.msra.mxu0 %v1435_v44  ;;  %v1432_v29 = vld [vmem:[%s4318_s1 + $0x30] sm:$0xff]  ;;  %v2621_v34 = vld [vmem:[%s2709_s19 + $0x58] sm:$0xff]  ;;  %v1431_v3 = vld [vmem:[%s4318_s1 + $0x28] sm:$0xff] }
 0x103   : > { %4514 = vst [vmem:[#allocation7_spill] sm:$0xff] %v3744_v38  ;;  %2016 = vmatpush.msra.mxu2 %v1434_v9  ;;  %2015 = vmatpush.msra.mxu3 %v1435_v44  ;;  %v2622_v51 = vld [vmem:[%s2709_s19 + $0xd8] sm:$0xff] }
 0x104   : > { %4515 = vst [vmem:[#allocation2_spill] sm:$0xff] %v3748_v45  ;;  %2523 = vrot.lane.b32.xlu2 %v2522_v35, %s2661_s29  ;;  %1978 = vmatmul.msk.f32.gmra.mxu1 %vm1195_vm2, %v4516_v56  ;;  %v2532_v35 = vpack.i.bf16 %v4517_v30, %v3247_v37  ;;  %v2537_v33 = vpack.i.bf16 %v2621_v34, %v2622_v51  ;;  %v4521_v45 = vld [vmem:[#allocation36_spill] sm:$0xff] }
 0x105   : > { %2518 = vrot.lane.b32.xlu1 %v2517_v12, %s2662_s30  ;;  %2513 = vrot.lane.b32.xlu0 %v2512_v21, %s2660_s28  ;;  %v4518_v21 = vld [vmem:[#allocation29_spill] sm:$0xff]  ;;  %v2542_v38 = vpack.i.bf16 %v4503_v0, %v4521_v45 }
 0x106   : > { %v2364_v13 = vpop.permute.xlu2 %2363  ;;  %2018 = vmatpush.msra.mxu2 %v1433_v54  ;;  %1520 = vmatpush.msra.mxu0 %v1434_v9 }
 0x107   : > { %v3772_v50 = vpop.permute.xlu1 %2313  ;;  %v3774_v49 = vpop.permute.xlu0 %2308  ;;  %v2366_v11 = vunpack.i.h.bf16 %v2364_v13  ;;  %v2365_v55 = vunpack.i.l.bf16 %v2364_v13  ;;  %v2527_v13 = vpack.i.bf16 %v4500_v1, %v4518_v21  ;;  %2017 = vmatpush.msra.mxu3 %v1434_v9  ;;  %v1428_v1 = vld [vmem:[%s4318_s1 + $0x10] sm:$0xff]  ;;  %v4519_v9 = vld [vmem:[#allocation27_spill] sm:$0xff] }
 0x108   : > { %v2316_v5 = vunpack.i.h.bf16 %v3772_v50  ;;  %2020 = vmatpush.msra.mxu2 %v1432_v29  ;;  %1521 = vmatpush.msra.mxu0 %v1433_v54 }
 0x109   : > { %v3786_v12 = vsel %vm1294_vm5, %v3707_v16, %v2366_v11  ;;  %v3790_v44 = vsel %vm1294_vm5, %v3703_v25, %v2365_v55  ;;  %v1430_v16 = vld [vmem:[%s4318_s1 + $0x20] sm:$0xff]  ;;  %v1429_v25 = vld [vmem:[%s4318_s1 + $0x18] sm:$0xff]  ;;  %2019 = vmatpush.msra.mxu3 %v1433_v54 }
 0x10a   : > { %v3796_v37 = vsel %vm1294_vm5, %v3612_v42, %v2316_v5  ;;  %2022 = vmatpush.msra.mxu2 %v1431_v3  ;;  %1522 = vmatpush.msra.mxu0 %v1432_v29  ;;  %v2623_v55 = vld [vmem:[%s2709_s19 + $0x60] sm:$0xff] }
 0x10b   : > { %v3816_v5 = vld [vmem:[%s2709_s19 + $0xe0] sm:$0xff]  ;;  %2021 = vmatpush.msra.mxu3 %v1432_v29 }
 0x10c   : > { %2538 = vrot.lane.b32.xlu2 %v2537_v33, %s2661_s29  ;;  %2024 = vmatpush.msra.mxu2 %v1430_v16  ;;  %v2552_v30 = vpack.i.bf16 %v2623_v55, %v3816_v5  ;;  %v1426_v29 = vld [vmem:[%s4318_s1] sm:$0xff] }
 0x10d   : > { %2533 = vrot.lane.b32.xlu1 %v2532_v35, %s2662_s30  ;;  %2528 = vrot.lane.b32.xlu0 %v2527_v13, %s2660_s28  ;;  %v1427_v13 = vld [vmem:[%s4318_s1 + $0x8] sm:$0xff] }
 0x10e   : > { %v3810_v42 = vpop.permute.xlu2 %2378  ;;  %1979 = vmatmul.msk.f32.gmra.mxu1 %vm1195_vm2, %v4519_v9  ;;  %2026 = vmatpush.msra.mxu2 %v1429_v25  ;;  %v4520_v9 = vld [vmem:[#allocation39_spill] sm:$0xff] }
 0x10f   : > { %v2329_v11 = vpop.permute.xlu1 %2328  ;;  %v2324_v54 = vpop.permute.xlu0 %2323  ;;  %1523 = vmatpush.msra.mxu0 %v1431_v3  ;;  %v2547_v15 = vpack.i.bf16 %v4520_v9, %v4499_v19  ;;  %2023 = vmatpush.msra.mxu3 %v1431_v3  ;;  %v4526_v9 = vld [vmem:[#allocation11_spill] sm:$0xff] }
 0x110   : > { %v2331_v35 = vunpack.i.h.bf16 %v2329_v11  ;;  %v2330_v34 = vunpack.i.l.bf16 %v2329_v11  ;;  %v2326_v51 = vunpack.i.h.bf16 %v2324_v54  ;;  %v2325_v33 = vunpack.i.l.bf16 %v2324_v54  ;;  %2028 = vmatpush.msra.mxu2 %v1428_v1 }
 0x111   : > { %1524 = vmatpush.msra.mxu0 %v1430_v16  ;;  %2025 = vmatpush.msra.mxu3 %v1430_v16 }
 0x112   : > { %v3831_v11 = vsel %vm1294_vm5, %v3637_v48, %v2330_v34  ;;  %v3835_v54 = vsel %vm1294_vm5, %v3641_v53, %v2331_v35  ;;  %v3839_v19 = vsel %vm1294_vm5, %v3498_v31, %v2325_v33  ;;  %v3843_v0 = vsel %vm1294_vm5, %v3495_v32, %v2326_v51  ;;  %2030 = vmatpush.msra.mxu2 %v1427_v13  ;;  %v4522_v31 = vld [vmem:[#allocation24_spill] sm:$0xff]  ;;  %v2626_v35 = vld [vmem:[%s2709_s19 + $0xe8] sm:$0xff]  ;;  %v4524_v51 = vld [vmem:[#allocation37_spill] sm:$0xff] }
 0x113   : > { %1525 = vmatpush.msra.mxu0 %v1429_v25  ;;  %2027 = vmatpush.msra.mxu3 %v1429_v25  ;;  %v2557_v33 = vpack.i.bf16 %v4508_v60, %v4524_v51  ;;  %v4530_v60 = vld [vmem:[#allocation53_spill] sm:$0xff] }
 0x114   : > { %2553 = vrot.lane.b32.xlu2 %v2552_v30, %s2661_s29  ;;  %2032 = vmatpush.msra.mxu2 %v1426_v29  ;;  %v2625_v30 = vld [vmem:[%s2709_s19 + $0x68] sm:$0xff] }
 0x115   : > { %2548 = vrot.lane.b32.xlu1 %v2547_v15, %s2662_s30  ;;  %2543 = vrot.lane.b32.xlu0 %v2542_v38, %s2660_s28  ;;  %v2567_v34 = vpack.i.bf16 %v2625_v30, %v2626_v35  ;;  %v4523_v15 = vld [vmem:[#allocation38_spill] sm:$0xff] }
 0x116   : > { %v3848_v48 = vpop.permute.xlu2 %871  ;;  %1980 = vmatmul.msk.f32.gmra.mxu1 %vm1195_vm2, %v4522_v31  ;;  %1526 = vmatpush.msra.mxu0 %v1428_v1  ;;  %v2562_v38 = vpack.i.bf16 %v4523_v15, %v4495_v28 }
 0x117   : > { %v3852_v32 = vpop.permute.xlu1 %2343  ;;  %v2339_v53 = vpop.permute.xlu0 %2338  ;;  %2029 = vmatpush.msra.mxu3 %v1428_v1 }
 0x118   : > { %v2345_v3 = vunpack.i.l.bf16 %v3852_v32  ;;  %v2341_v16 = vunpack.i.h.bf16 %v2339_v53  ;;  %v2340_v55 = vunpack.i.l.bf16 %v2339_v53  ;;  %1527 = vmatpush.msra.mxu0 %v1427_v13 }
 0x119   : > { %2031 = vmatpush.msra.mxu3 %v1427_v13 }
 0x11a   : > { %v3863_v25 = vsel %vm1294_vm5, %v3534_v43, %v2340_v55  ;;  %v3867_v31 = vsel %vm1294_vm5, %v4526_v9, %v2341_v16  ;;  %v3871_v53 = vsel %vm1294_vm5, %v3673_v61, %v2345_v3  ;;  %1528 = vmatpush.msra.mxu0 %v1426_v29  ;;  %v4529_v43 = vld [vmem:[#allocation25_spill] sm:$0xff]  ;;  %v4532_v3 = vld [vmem:[#allocation43_spill] sm:$0xff] }
 0x11b   : > { %4525 = vst [vmem:[#allocation12_spill] sm:$0xff] %v3863_v25  ;;  %2033 = vmatpush.msra.mxu3 %v1426_v29  ;;  %v4531_v61 = vld [vmem:[#allocation49_spill] sm:$0xff]  ;;  %v4533_v55 = vld [vmem:[#allocation55_spill] sm:$0xff]  ;;  %v4534_v29 = vld [vmem:[#allocation34_spill] sm:$0xff] }
 0x11c   : > { %4527 = vst [vmem:[#allocation15_spill] sm:$0xff] %v3867_v31  ;;  %2568 = vrot.lane.b32.xlu2 %v2567_v34, %s2661_s29  ;;  %v2582_v16 = vpack.i.bf16 %v4532_v3, %v4531_v61  ;;  %v2577_v30 = vpack.i.bf16 %v4510_v23, %v4534_v29  ;;  %v2572_v34 = vpack.i.bf16 %v2626_v35, %v3816_v5  ;;  %v4537_v23 = vld [vmem:[#allocation48_spill] sm:$0xff] }
 0x11d   : > { %4528 = vst [vmem:[#allocation46_spill] sm:$0xff] %v3871_v53  ;;  %2563 = vrot.lane.b32.xlu1 %v2562_v38, %s2662_s30  ;;  %2558 = vrot.lane.b32.xlu0 %v2557_v33, %s2660_s28  ;;  %v4536_v38 = vld [vmem:[#allocation22_spill] sm:$0xff]  ;;  %v2266_v33 = vunpack.i.h.bf16 %v3648_v41  ;;  %v2627_v53 = vld [vmem:[%s2709_s19 + $0x70] sm:$0xff] }
 0x11e   : > { %v3876_v28 = vpop.permute.xlu2 %2403  ;;  %1981 = vmatmul.msk.f32.gmra.mxu1 %vm1195_vm2, %v4529_v43  ;;  %2034 = vmatpush.msrb.mxu3 %v4530_v60  ;;  %v3891_v15 = vpop.f32.mrf.mxu1  ;;  %v4538_v60 = vld [vmem:[#allocation42_spill] sm:$0xff] }
 0x11f   : > { %v3881_v1 = vpop.permute.xlu1 %2358  ;;  %v3883_v13 = vpop.permute.xlu0 %2353  ;;  %4535 = vst [vmem:[#allocation44_spill] sm:$0xff] %v3891_v15  ;;  %v2597_v5 = vpack.i.bf16 %v4538_v60, %v4537_v23  ;;  %v4539_v15 = vld [vmem:[#allocation35_spill] sm:$0xff] }
 0x120   : > { %2035 = vmatpush.msrb.mxu3 %v4533_v55 }
 0x124   : > { %2583 = vrot.lane.b32.xlu2 %v2582_v16, %s2662_s30 }
 0x125   : > { %2578 = vrot.lane.b32.xlu1 %v2577_v30, %s2660_s28  ;;  %2573 = vrot.lane.b32.xlu0 %v2572_v34, %s2659_s23  ;;  %v2346_v30 = vunpack.i.h.bf16 %v3852_v32  ;;  %v2592_v34 = vpack.i.bf16 %v4512_v52, %v4539_v15 }
 0x126   : > { %1982 = vmatmul.msk.f32.gmra.mxu1 %vm1195_vm2, %v4536_v38  ;;  %v3901_v16 = vpop.permute.xlu2 %2418  ;;  %v2628_v38 = vld [vmem:[%s2709_s19 + $0xf0] sm:$0xff]  ;;  %v3908_v25 = vpop.f32.mrf.mxu1 }
 0x127   : > { %v2374_v9 = vpop.permute.xlu1 %2373  ;;  %v2369_v43 = vpop.permute.xlu0 %2368  ;;  %v2587_v31 = vpack.i.bf16 %v2627_v53, %v2628_v38  ;;  %v447_v41 = vrot.slane %v2628_v38, 1  ;;  %4540 = vst [vmem:[#allocation45_spill] sm:$0xff] %v3908_v25  ;;  %v4541_v53 = vld [vmem:[#allocation56_spill] sm:$0xff] }
 0x128   : > { %v2376_v35 = vunpack.i.h.bf16 %v2374_v9  ;;  %v2375_v61 = vunpack.i.l.bf16 %v2374_v9  ;;  %v2371_v3 = vunpack.i.h.bf16 %v2369_v43  ;;  %v2370_v55 = vunpack.i.l.bf16 %v2369_v43 }
 0x129   : > { %v1277_v43 = vsel %vm1261_vm4, %v4541_v53, %v2266_v33  ;;  %v2306_v53 = vunpack.i.h.bf16 %v3619_v17 }
 0x12a   : > { %v3912_v23 = vsel %vm1294_vm5, %v3752_v39, %v2375_v61  ;;  %v3916_v9 = vsel %vm1294_vm5, %v3756_v20, %v2376_v35  ;;  %v3920_v32 = vsel %vm1294_vm5, %v3596_v63, %v2370_v55  ;;  %v3924_v52 = vsel %vm1294_vm5, %v3593_v46, %v2371_v3  ;;  %v4542_v20 = vld [vmem:[#allocation47_spill] sm:$0xff] }
 0x12b   : > { %v2380_v39 = vunpack.i.l.bf16 %v3810_v42  ;;  %v4543_v63 = vrot.slane %v4542_v20, 1  ;;  %v1310_v46 = vsel %vm1294_vm5, %v1277_v43, %v2346_v30  ;;  %v2350_v3 = vunpack.i.l.bf16 %v3731_v22 }
 0x12c   : > { %2598 = vrot.lane.b32.xlu2 %v2597_v5, %s2662_s30  ;;  %v1293_v17 = vsel %vm1261_vm4, %v3582_v24, %v2306_v53  ;;  %v4545_v53 = vld [vmem:[#allocation57_spill] sm:$0xff] }
 0x12d   : > { %2593 = vrot.lane.b32.xlu1 %v2592_v34, %s2660_s28  ;;  %2588 = vrot.lane.b32.xlu0 %v2587_v31, %s2661_s29  ;;  %v3935_v60 = vsel %vm398_vm0, %v447_v41, %v4543_v63  ;;  %v1343_v55 = vsel %vm1327_vm6, %v1310_v46, %v2380_v39  ;;  %v2629_v34 = vld [vmem:[%s2709_s19 + $0x78] sm:$0xff]  ;;  %v1311_v39 = vsel %vm1294_vm5, %v3665_v8, %v2350_v3  ;;  %v2310_v46 = vunpack.i.l.bf16 %v3774_v49 }
 0x12e   : > { %1983 = vmatmul.msk.f32.gmra.mxu1 %vm1195_vm2, %v4498_v2  ;;  %v2607_v31 = vpack.i.bf16 %v4516_v56, %v3935_v60  ;;  %v2630_v41 = vld [vmem:[%s2709_s19 + $0xf8] sm:$0xff]  ;;  %v2381_v2 = vunpack.i.h.bf16 %v3810_v42  ;;  %v3948_v43 = vpop.permute.xlu2 %2433  ;;  %v1326_v24 = vsel %vm1294_vm5, %v1293_v17, %v3848_v48 }
 0x12f   : > { %v2389_v5 = vpop.permute.xlu1 %2388  ;;  %v2384_v33 = vpop.permute.xlu0 %2383  ;;  %v2602_v30 = vpack.i.bf16 %v2629_v34, %v2630_v41 }
 0x130   : > { %v2390_v35 = vunpack.i.l.bf16 %v2389_v5  ;;  %v2385_v61 = vunpack.i.l.bf16 %v2384_v33  ;;  %v3951_v63 = vpop.f32.mrf.mxu1  ;;  %v2386_v25 = vunpack.i.h.bf16 %v2384_v33  ;;  %v1344_v42 = vsel %vm1327_vm6, %v1311_v39, %v2381_v2 }
 0x131   : > { %v2406_v33 = vunpack.i.h.bf16 %v3876_v28  ;;  %v4546_v2 = vrot.slane %v4545_v53, 7 }
 0x132   : > { %v1376_v20 = vsel %vm1360_vm7, %v1343_v55, %v2385_v61  ;;  %v2391_v61 = vunpack.i.h.bf16 %v2389_v5  ;;  %v1377_v8 = vsel %vm1360_vm7, %v1344_v42, %v2386_v25 }
 0x133   : > { %v1409_v56 = vsel %vm1393_vm8, %v1376_v20, %v2390_v35  ;;  %v2405_v35 = vunpack.i.l.bf16 %v3876_v28  ;;  %v4544_v20 = vld [vmem:[#allocation59_spill] sm:$0xff] }
 0x134   : > { %1574 = vmatmul.f32.vlgmr.msra.gmra.mxu2 %v1409_v56  ;;  %2608 = vrot.lane.b32.xlu2 %v2607_v31, %s2660_s28  ;;  %v397_v56 = vsel %vm291_vm1, 0.0, %v4546_v2  ;;  %v1410_v25 = vsel %vm1393_vm8, %v1377_v8, %v2391_v61  ;;  %v2311_v61 = vunpack.i.h.bf16 %v3774_v49  ;;  %v2421_v8 = vunpack.i.h.bf16 %v3901_v16 }
 0x135   : > { %869 = vrot.lane.b32.xlu1 %v2628_v38, %s2659_s23  ;;  %2603 = vrot.lane.b32.xlu0 %v2602_v30, %s2661_s29  ;;  %v1295_v30 = vsel %vm1294_vm5, %v4544_v20, %v2310_v46  ;;  %v4547_v46 = vld [vmem:[#allocation41_spill] sm:$0xff] }
 0x137   : > { %v2399_v31 = vpop.permute.xlu1 %2398  ;;  %v2394_v55 = vpop.permute.xlu0 %2393 }
 0x138   : > { %v2401_v3 = vunpack.i.h.bf16 %v2399_v31  ;;  %v2400_v34 = vunpack.i.l.bf16 %v2399_v31  ;;  %v2396_v41 = vunpack.i.h.bf16 %v2394_v55  ;;  %v2395_v38 = vunpack.i.l.bf16 %v2394_v55  ;;  %v3978_v31 = vpop.permute.xlu2 %2448  ;;  %v3984_v55 = vpop.f32.mrf.mxu1 }
 0x13a   : > { %v1328_v28 = vsel %vm1327_vm6, %v1295_v30, %v2396_v41  ;;  %v1359_v5 = vsel %vm1327_vm6, %v1326_v24, %v2395_v38  ;;  %v2351_v41 = vunpack.i.h.bf16 %v3731_v22  ;;  %v4548_v30 = vld [vmem:[#allocation58_spill] sm:$0xff] }
 0x13b   : > { %v1361_v39 = vsel %vm1360_vm7, %v1328_v28, %v2401_v3  ;;  %v1392_v42 = vsel %vm1360_vm7, %v1359_v5, %v2400_v34  ;;  %v2420_v3 = vunpack.i.l.bf16 %v3901_v16  ;;  %v1296_v24 = vsel %vm1294_vm5, %v4548_v30, %v2311_v61 }
 0x13c   : > { %1577 = vmatmul.f32.gmra.mxu2 %v1410_v25  ;;  %1031 = vrot.lane.b32.xlu2 %v4547_v46, %s2662_s30  ;;  %v1394_v48 = vsel %vm1393_vm8, %v1361_v39, %v2406_v33  ;;  %v1425_v17 = vsel %vm1393_vm8, %v1392_v42, %v2405_v35  ;;  %v1312_v49 = vsel %vm1294_vm5, %v3669_v4, %v2351_v41  ;;  %v2315_v39 = vunpack.i.l.bf16 %v3772_v50  ;;  %v2631_v4 = vld [vmem:[%s2709_s19 + $0x80] sm:$0xff] }
 0x13d   : > { %1063 = vrot.lane.b32.xlu0 %v397_v56, %s2662_s30  ;;  %1529 = vmatmul.f32.vlgmr.msra.gmra.mxu0 %v1394_v48  ;;  %v2355_v42 = vunpack.i.l.bf16 %v3883_v13  ;;  %v2435_v41 = vunpack.i.l.bf16 %v3948_v43  ;;  %s4194_s30 = scalar_lea.vmem %s4320_s3, %s2000_s16 }
 0x13e   : > { %1622 = vmatmul.f32.vlgmr.msra.gmra.mxu3 %v1425_v17  ;;  %1159 = vrot.lane.b32.xlu1 %v4545_v53, %s2661_s29  ;;  %v2436_v17 = vunpack.i.h.bf16 %v3948_v43 }
 0x13f   : > { %v2414_v33 = vpop.permute.xlu1 %2413  ;;  %v2409_v35 = vpop.permute.xlu0 %2408 }
 0x140   : > { %v2416_v34 = vunpack.i.h.bf16 %v2414_v33  ;;  %v2415_v38 = vunpack.i.l.bf16 %v2414_v33  ;;  %v2411_v20 = vunpack.i.h.bf16 %v2409_v35  ;;  %v2410_v22 = vunpack.i.l.bf16 %v2409_v35  ;;  %v4007_v46 = vpop.permute.xlu2 %2463  ;;  %v4011_v48 = vpop.f32.mrf.mxu1 }
 0x142   : > { %v1329_v2 = vsel %vm1327_vm6, %v1296_v24, %v2411_v20  ;;  %v1345_v56 = vsel %vm1327_vm6, %v1312_v49, %v2410_v22  ;;  %v2356_v24 = vunpack.i.h.bf16 %v3883_v13 }
 0x143   : > { %v1362_v28 = vsel %vm1360_vm7, %v1329_v2, %v2416_v34  ;;  %v1378_v16 = vsel %vm1360_vm7, %v1345_v56, %v2415_v38  ;;  %v1297_v34 = vsel %vm1294_vm5, %v3608_v6, %v2315_v39  ;;  %v1313_v38 = vsel %vm1294_vm5, %v3567_v57, %v2355_v42 }
 0x144   : > { %v1395_v5 = vsel %vm1393_vm8, %v1362_v28, %v2421_v8  ;;  %v1411_v25 = vsel %vm1393_vm8, %v1378_v16, %v2420_v3  ;;  %v2451_v57 = vunpack.i.h.bf16 %v3978_v31  ;;  %v2450_v6 = vunpack.i.l.bf16 %v3978_v31 }
 0x145   : > { %1127 = vrot.lane.b32.xlu0 %v2631_v4, %s2661_s29  ;;  %1532 = vmatmul.f32.gmra.mxu0 %v1395_v5  ;;  %v1314_v13 = vsel %vm1294_vm5, %v3564_v18, %v2356_v24  ;;  %v2466_v18 = vunpack.i.h.bf16 %v4007_v46 }
 0x146   : > { %1580 = vmatmul.f32.gmra.mxu2 %v1411_v25  ;;  %1984 = vmatmul.msk.f32.vlgmr.msrb.gmra.mxu3 %vm1195_vm2, %v4502_v58 }
 0x147   : > { %v2429_v61 = vpop.permute.xlu1 %2428  ;;  %v2424_v50 = vpop.permute.xlu0 %2423 }
 0x148   : > { %v2431_v8 = vunpack.i.h.bf16 %v2429_v61  ;;  %v2430_v3 = vunpack.i.l.bf16 %v2429_v61  ;;  %v2426_v33 = vunpack.i.h.bf16 %v2424_v50  ;;  %v2425_v35 = vunpack.i.l.bf16 %v2424_v50  ;;  %v2479_v28 = vpop.permute.xlu2 %2478  ;;  %v4030_v42 = vpop.f32.mrf.mxu1 }
 0x149   : > { %v2360_v50 = vunpack.i.l.bf16 %v3881_v1 }
 0x14a   : > { %v1330_v58 = vsel %vm1327_vm6, %v1297_v34, %v2426_v33  ;;  %v1346_v20 = vsel %vm1327_vm6, %v1313_v38, %v2425_v35 }
 0x14b   : > { %v1363_v22 = vsel %vm1360_vm7, %v1330_v58, %v2431_v8  ;;  %v1379_v43 = vsel %vm1360_vm7, %v1346_v20, %v2430_v3  ;;  %v1315_v58 = vsel %vm1294_vm5, %v3711_v59, %v2360_v50  ;;  %v2480_v59 = vunpack.i.l.bf16 %v2479_v28 }
 0x14c   : > { %v1396_v49 = vsel %vm1393_vm8, %v1363_v22, %v2436_v17  ;;  %v1412_v30 = vsel %vm1393_vm8, %v1379_v43, %v2435_v41 }
 0x14d   : > { %1535 = vmatmul.f32.gmra.mxu0 %v1396_v49 }
 0x14e   : > { %1583 = vmatmul.f32.gmra.mxu2 %v1412_v30  ;;  %1985 = vmatmul.msk.f32.gmra.mxu3 %vm1195_vm2, %v4505_v62 }
 0x14f   : > { %v2444_v2 = vpop.permute.xlu1 %2443  ;;  %v2439_v56 = vpop.permute.xlu0 %2438 }
 0x150   : > { %v2446_v16 = vunpack.i.h.bf16 %v2444_v2  ;;  %v2445_v5 = vunpack.i.l.bf16 %v2444_v2  ;;  %v2441_v25 = vunpack.i.h.bf16 %v2439_v56  ;;  %v2440_v39 = vunpack.i.l.bf16 %v2439_v56  ;;  %v2494_v20 = vpop.permute.xlu2 %2493 }
 0x152   : > { %v1331_v4 = vsel %vm1327_vm6, %v3796_v37, %v2441_v25  ;;  %v1347_v62 = vsel %vm1327_vm6, %v1314_v13, %v2440_v39  ;;  %v2465_v37 = vunpack.i.l.bf16 %v4007_v46 }
 0x153   : > { %v1364_v17 = vsel %vm1360_vm7, %v1331_v4, %v2446_v16  ;;  %v1380_v31 = vsel %vm1360_vm7, %v1347_v62, %v2445_v5 }
 0x154   : > { %v1397_v41 = vsel %vm1393_vm8, %v1364_v17, %v2451_v57  ;;  %v1413_v61 = vsel %vm1393_vm8, %v1380_v31, %v2450_v6  ;;  %v2361_v57 = vunpack.i.h.bf16 %v3881_v1 }
 0x155   : > { %1538 = vmatmul.f32.gmra.mxu0 %v1397_v41 }
 0x156   : > { %1586 = vmatmul.f32.gmra.mxu2 %v1413_v61  ;;  %1986 = vmatmul.msk.f32.gmra.mxu3 %vm1195_vm2, %v4509_v26  ;;  %v4051_v26 = vpop.f32.mrf.mxu1  ;;  %v1316_v39 = vsel %vm1294_vm5, %v3715_v40, %v2361_v57  ;;  %v2496_v40 = vunpack.i.h.bf16 %v2494_v20 }
 0x157   : > { %v2459_v8 = vpop.permute.xlu1 %2458  ;;  %v2454_v3 = vpop.permute.xlu0 %2453 }
 0x158   : > { %v2461_v33 = vunpack.i.h.bf16 %v2459_v8  ;;  %v2460_v35 = vunpack.i.l.bf16 %v2459_v8  ;;  %v2456_v34 = vunpack.i.h.bf16 %v2454_v3  ;;  %v2455_v38 = vunpack.i.l.bf16 %v2454_v3  ;;  %v2509_v62 = vpop.permute.xlu2 %2508 }
 0x15a   : > { %v1332_v22 = vsel %vm1327_vm6, %v3657_v27, %v2456_v34  ;;  %v1348_v43 = vsel %vm1327_vm6, %v1315_v58, %v2455_v38  ;;  %v2481_v27 = vunpack.i.h.bf16 %v2479_v28 }
 0x15b   : > { %v1365_v49 = vsel %vm1360_vm7, %v1332_v22, %v2461_v33  ;;  %v1381_v46 = vsel %vm1360_vm7, %v1348_v43, %v2460_v35  ;;  %v2510_v22 = vunpack.i.l.bf16 %v2509_v62 }
 0x15c   : > { %v1398_v30 = vsel %vm1393_vm8, %v1365_v49, %v2466_v18  ;;  %v1414_v24 = vsel %vm1393_vm8, %v1381_v46, %v2465_v37 }
 0x15d   : > { %1541 = vmatmul.f32.gmra.mxu0 %v1398_v30 }
 0x15e   : > { %1589 = vmatmul.f32.gmra.mxu2 %v1414_v24  ;;  %1987 = vmatmul.msk.f32.gmra.mxu3 %vm1195_vm2, %v4511_v10  ;;  %v4069_v31 = vpop.f32.mrf.mxu1 }
 0x15f   : > { %v2474_v6 = vpop.permute.xlu1 %2473  ;;  %v2469_v2 = vpop.permute.xlu0 %2468 }
 0x160   : > { %v2476_v56 = vunpack.i.h.bf16 %v2474_v6  ;;  %v2475_v16 = vunpack.i.l.bf16 %v2474_v6  ;;  %v2471_v5 = vunpack.i.h.bf16 %v2469_v2  ;;  %v2470_v25 = vunpack.i.l.bf16 %v2469_v2  ;;  %v2524_v58 = vpop.permute.xlu2 %2523 }
 0x162   : > { %v1333_v13 = vsel %vm1327_vm6, %v3654_v14, %v2471_v5  ;;  %v1349_v1 = vsel %vm1327_vm6, %v1316_v39, %v2470_v25  ;;  %v2495_v14 = vunpack.i.l.bf16 %v2494_v20 }
 0x163   : > { %v1366_v4 = vsel %vm1360_vm7, %v1333_v13, %v2476_v56  ;;  %v1382_v10 = vsel %vm1360_vm7, %v1349_v1, %v2475_v16  ;;  %v2526_v56 = vunpack.i.h.bf16 %v2524_v58  ;;  %v2525_v16 = vunpack.i.l.bf16 %v2524_v58 }
 0x164   : > { %v1399_v28 = vsel %vm1393_vm8, %v1366_v4, %v2481_v27  ;;  %v1415_v17 = vsel %vm1393_vm8, %v1382_v10, %v2480_v59 }
 0x165   : > { %1544 = vmatmul.f32.gmra.mxu0 %v1399_v28 }
 0x166   : > { %1592 = vmatmul.f32.gmra.mxu2 %v1415_v17  ;;  %1988 = vmatmul.msk.f32.gmra.mxu3 %vm1195_vm2, %v4513_v7  ;;  %v4083_v20 = vpop.f32.mrf.mxu1 }
 0x167   : > { %v2489_v41 = vpop.permute.xlu1 %2488  ;;  %v2484_v61 = vpop.permute.xlu0 %2483 }
 0x168   : > { %v2491_v50 = vunpack.i.h.bf16 %v2489_v41  ;;  %v2490_v18 = vunpack.i.l.bf16 %v2489_v41  ;;  %v2486_v37 = vunpack.i.h.bf16 %v2484_v61  ;;  %v2485_v8 = vunpack.i.l.bf16 %v2484_v61  ;;  %v2539_v25 = vpop.permute.xlu2 %2538 }
 0x169   : > { %v2540_v41 = vunpack.i.l.bf16 %v2539_v25 }
 0x16a   : > { %v1334_v3 = vsel %vm1327_vm6, %v3839_v19, %v2486_v37  ;;  %v1350_v33 = vsel %vm1327_vm6, %v3790_v44, %v2485_v8  ;;  %v2511_v19 = vunpack.i.h.bf16 %v2509_v62 }
 0x16b   : > { %v1367_v35 = vsel %vm1360_vm7, %v1334_v3, %v2491_v50  ;;  %v1383_v34 = vsel %vm1360_vm7, %v1350_v33, %v2490_v18 }
 0x16c   : > { %v1400_v7 = vsel %vm1393_vm8, %v1367_v35, %v2496_v40  ;;  %v1416_v38 = vsel %vm1393_vm8, %v1383_v34, %v2495_v14  ;;  %v2541_v14 = vunpack.i.h.bf16 %v2539_v25 }
 0x16d   : > { %1547 = vmatmul.f32.gmra.mxu0 %v1400_v7 }
 0x16e   : > { %1595 = vmatmul.f32.gmra.mxu2 %v1416_v38  ;;  %1989 = vmatmul.msk.f32.gmra.mxu3 %vm1195_vm2, %v4518_v21  ;;  %v4095_v4 = vpop.f32.mrf.mxu1 }
 0x16f   : > { %v2504_v43 = vpop.permute.xlu1 %2503  ;;  %v2499_v44 = vpop.permute.xlu0 %2498 }
 0x170   : > { %v2506_v49 = vunpack.i.h.bf16 %v2504_v43  ;;  %v2505_v46 = vunpack.i.l.bf16 %v2504_v43  ;;  %v2501_v30 = vunpack.i.h.bf16 %v2499_v44  ;;  %v2500_v24 = vunpack.i.l.bf16 %v2499_v44  ;;  %v2554_v8 = vpop.permute.xlu2 %2553 }
 0x171   : > { %v2556_v58 = vunpack.i.h.bf16 %v2554_v8 }
 0x172   : > { %v1335_v57 = vsel %vm1327_vm6, %v3843_v0, %v2501_v30  ;;  %v1351_v27 = vsel %vm1327_vm6, %v3786_v12, %v2500_v24 }
 0x173   : > { %v1368_v59 = vsel %vm1360_vm7, %v1335_v57, %v2506_v49  ;;  %v1384_v21 = vsel %vm1360_vm7, %v1351_v27, %v2505_v46 }
 0x174   : > { %v1401_v6 = vsel %vm1393_vm8, %v1368_v59, %v2511_v19  ;;  %v1417_v2 = vsel %vm1393_vm8, %v1384_v21, %v2510_v22 }
 0x175   : > { %1550 = vmatmul.f32.gmra.mxu0 %v1401_v6 }
 0x176   : > { %1598 = vmatmul.f32.gmra.mxu2 %v1417_v2  ;;  %1990 = vmatmul.msk.f32.gmra.mxu3 %vm1195_vm2, %v4521_v45  ;;  %v4111_v35 = vpop.f32.mrf.mxu1 }
 0x177   : > { %v2519_v5 = vpop.permute.xlu1 %2518  ;;  %v2514_v0 = vpop.permute.xlu0 %2513 }
 0x178   : > { %v2521_v39 = vunpack.i.h.bf16 %v2519_v5  ;;  %v2520_v12 = vunpack.i.l.bf16 %v2519_v5  ;;  %v2516_v13 = vunpack.i.h.bf16 %v2514_v0  ;;  %v2515_v1 = vunpack.i.l.bf16 %v2514_v0  ;;  %v2569_v27 = vpop.permute.xlu2 %2568 }
 0x179   : > { %v2570_v6 = vunpack.i.l.bf16 %v2569_v27 }
 0x17a   : > { %v1336_v10 = vsel %vm1327_vm6, %v3831_v11, %v2516_v13  ;;  %v1352_v62 = vsel %vm1327_vm6, %v3920_v32, %v2515_v1 }
 0x17b   : > { %v1369_v28 = vsel %vm1360_vm7, %v1336_v10, %v2521_v39  ;;  %v1385_v45 = vsel %vm1360_vm7, %v1352_v62, %v2520_v12 }
 0x17c   : > { %v1402_v17 = vsel %vm1393_vm8, %v1369_v28, %v2526_v56  ;;  %v1418_v40 = vsel %vm1393_vm8, %v1385_v45, %v2525_v16 }
 0x17d   : > { %1553 = vmatmul.f32.gmra.mxu0 %v1402_v17 }
 0x17e   : > { %1601 = vmatmul.f32.gmra.mxu2 %v1418_v40  ;;  %1991 = vmatmul.msk.f32.gmra.mxu3 %vm1195_vm2, %v4524_v51  ;;  %v4127_v21 = vpop.f32.mrf.mxu1  ;;  %v4549_v40 = vld [vmem:[#allocation7_spill] sm:$0xff] }
 0x17f   : > { %v2534_v61 = vpop.permute.xlu1 %2533  ;;  %v2529_v11 = vpop.permute.xlu0 %2528 }
 0x180   : > { %v2536_v50 = vunpack.i.h.bf16 %v2534_v61  ;;  %v2535_v18 = vunpack.i.l.bf16 %v2534_v61  ;;  %v2531_v32 = vunpack.i.h.bf16 %v2529_v11  ;;  %v2530_v37 = vunpack.i.l.bf16 %v2529_v11  ;;  %v2584_v10 = vpop.permute.xlu2 %2583  ;;  %v4550_v11 = vld [vmem:[#allocation13_spill] sm:$0xff] }
 0x181   : > { %v2585_v61 = vunpack.i.l.bf16 %v2584_v10 }
 0x182   : > { %v1337_v3 = vsel %vm1327_vm6, %v3835_v54, %v2531_v32  ;;  %v1353_v33 = vsel %vm1327_vm6, %v3924_v52, %v2530_v37  ;;  %v2555_v54 = vunpack.i.l.bf16 %v2554_v8  ;;  %v450_v8 = vrot.slane %v4545_v53, 1 }
 0x183   : > { %v1370_v34 = vsel %vm1360_vm7, %v1337_v3, %v2536_v50  ;;  %v1386_v51 = vsel %vm1360_vm7, %v1353_v33, %v2535_v18  ;;  %v4551_v50 = vld [vmem:[#allocation12_spill] sm:$0xff]  ;;  %v4552_v3 = vld [vmem:[#allocation10_spill] sm:$0xff] }
 0x184   : > { %v1403_v7 = vsel %vm1393_vm8, %v1370_v34, %v2541_v14  ;;  %v1419_v38 = vsel %vm1393_vm8, %v1386_v51, %v2540_v41  ;;  %v2586_v41 = vunpack.i.h.bf16 %v2584_v10  ;;  %v451_v33 = vrot.slane %v4552_v3, 1 }
 0x185   : > { %1556 = vmatmul.f32.gmra.mxu0 %v1403_v7 }
 0x186   : > { %1604 = vmatmul.f32.gmra.mxu2 %v1419_v38  ;;  %1992 = vmatmul.msk.f32.gmra.mxu3 %vm1195_vm2, %v4534_v29  ;;  %v4141_v62 = vpop.f32.mrf.mxu1  ;;  %v452_v53 = vsel %vm398_vm0, %v450_v8, %v451_v33 }
 0x187   : > { %v2549_v19 = vpop.permute.xlu1 %2548  ;;  %v2544_v22 = vpop.permute.xlu0 %2543 }
 0x188   : > { %v2551_v52 = vunpack.i.h.bf16 %v2549_v19  ;;  %v2550_v43 = vunpack.i.l.bf16 %v2549_v19  ;;  %v2546_v44 = vunpack.i.h.bf16 %v2544_v22  ;;  %v2545_v49 = vunpack.i.l.bf16 %v2544_v22  ;;  %v2599_v34 = vpop.permute.xlu2 %2598 }
 0x18a   : > { %v1338_v46 = vsel %vm1327_vm6, %v3697_v47, %v2546_v44  ;;  %v1354_v30 = vsel %vm1327_vm6, %v3912_v23, %v2545_v49  ;;  %v2571_v47 = vunpack.i.h.bf16 %v2569_v27  ;;  %v2601_v49 = vunpack.i.h.bf16 %v2599_v34 }
 0x18b   : > { %v1371_v24 = vsel %vm1360_vm7, %v1338_v46, %v2551_v52  ;;  %v1387_v57 = vsel %vm1360_vm7, %v1354_v30, %v2550_v43  ;;  %v2600_v46 = vunpack.i.l.bf16 %v2599_v34  ;;  %v4553_v30 = vld [vmem:[#allocation2_spill] sm:$0xff]  ;;  %v4557_v34 = vld [vmem:[#allocation44_spill] sm:$0xff] }
 0x18c   : > { %v1404_v29 = vsel %vm1393_vm8, %v1371_v24, %v2556_v58  ;;  %v1420_v59 = vsel %vm1393_vm8, %v1387_v57, %v2555_v54  ;;  %v4554_v57 = vld [vmem:[#allocation15_spill] sm:$0xff] }
 0x18d   : > { %1559 = vmatmul.f32.gmra.mxu0 %v1404_v29 }
 0x18e   : > { %1607 = vmatmul.f32.gmra.mxu2 %v1420_v59  ;;  %1993 = vmatmul.msk.f32.gmra.mxu3 %vm1195_vm2, %v4539_v15  ;;  %v4152_v38 = vpop.f32.mrf.mxu1 }
 0x18f   : > { %v2564_v2 = vpop.permute.xlu1 %2563  ;;  %v2559_v23 = vpop.permute.xlu0 %2558 }
 0x190   : > { %v2566_v56 = vunpack.i.h.bf16 %v2564_v2  ;;  %v2565_v16 = vunpack.i.l.bf16 %v2564_v2  ;;  %v2561_v5 = vunpack.i.h.bf16 %v2559_v23  ;;  %v2560_v0 = vunpack.i.l.bf16 %v2559_v23 }
 0x192   : > { %v1339_v25 = vsel %vm1327_vm6, %v3694_v36, %v2561_v5  ;;  %v1355_v39 = vsel %vm1327_vm6, %v3916_v9, %v2560_v0 }
 0x193   : > { %v1372_v12 = vsel %vm1360_vm7, %v1339_v25, %v2566_v56  ;;  %v1388_v13 = vsel %vm1360_vm7, %v1355_v39, %v2565_v16  ;;  %v2609_v16 = vpop.permute.xlu2 %2608 }
 0x194   : > { %v1405_v15 = vsel %vm1393_vm8, %v1372_v12, %v2571_v47  ;;  %v1421_v1 = vsel %vm1393_vm8, %v1388_v13, %v2570_v6  ;;  %v2610_v39 = vunpack.i.l.bf16 %v2609_v16  ;;  %v488_v12 = vsel %vm398_vm0, %v451_v33, 0.0  ;;  %v4555_v13 = vld [vmem:[#allocation14_spill] sm:$0xff] }
 0x195   : > { %1562 = vmatmul.f32.gmra.mxu0 %v1405_v15 }
 0x196   : > { %1610 = vmatmul.f32.gmra.mxu2 %v1421_v1  ;;  %1994 = vmatmul.msk.f32.gmra.mxu3 %vm1195_vm2, %v3935_v60  ;;  %v4169_v25 = vpop.f32.mrf.mxu1 }
 0x197   : > { %v2579_v36 = vpop.permute.xlu1 %2578  ;;  %v2574_v28 = vpop.permute.xlu0 %2573 }
 0x198   : > { %v2575_v45 = vunpack.i.l.bf16 %v2574_v28  ;;  %v2581_v9 = vunpack.i.h.bf16 %v2579_v36  ;;  %v2580_v17 = vunpack.i.l.bf16 %v2579_v36  ;;  %v2576_v58 = vunpack.i.h.bf16 %v2574_v28 }
 0x19a   : > { %v1323_v14 = vsel %vm1294_vm5, %v4549_v40, %v2575_v45  ;;  %v1340_v18 = vsel %vm1327_vm6, %v4551_v50, %v2581_v9  ;;  %v1324_v24 = vsel %vm1294_vm5, %v4553_v30, %v2576_v58  ;;  %v2611_v9 = vunpack.i.h.bf16 %v2609_v16  ;;  %v4181_v40 = vld [vmem:[%s4319_s2] ss:$0 sm:$0xff]  ;;  %v4558_v30 = vld [vmem:[#allocation45_spill] sm:$0xff] }
 0x19b   : > { %v1356_v60 = vsel %vm1327_vm6, %v1323_v14, %v2580_v17  ;;  %v1373_v54 = vsel %vm1360_vm7, %v1340_v18, %v2586_v41  ;;  %v1032_v17 = vpop.permute.xlu2 %1031  ;;  %v4556_v41 = vld [vmem:[#allocation46_spill] sm:$0xff] }
 0x19c   : > { %v1389_v19 = vsel %vm1360_vm7, %v1356_v60, %v2585_v61  ;;  %v1342_v61 = vsel %vm1327_vm6, %v4556_v41, %v2611_v9 }
 0x19e   : > { %1995 = vmatmul.msk.f32.gmra.mxu3 %vm1195_vm2, %v4550_v11  ;;  %v1688_v14 = vpop.f32.mrf.mxu1  ;;  %v1375_v11 = vsel %vm1360_vm7, %v1342_v61, %v1032_v17 }
 0x19f   : > { %v2594_v32 = vpop.permute.xlu1 %2593  ;;  %v2589_v37 = vpop.permute.xlu0 %2588 }
 0x1a0   : > { %v2591_v51 = vunpack.i.h.bf16 %v2589_v37  ;;  %v2590_v7 = vunpack.i.l.bf16 %v2589_v37  ;;  %v2596_v22 = vunpack.i.h.bf16 %v2594_v32  ;;  %v2595_v52 = vunpack.i.l.bf16 %v2594_v32 }
 0x1a2   : > { %v1406_v43 = vsel %vm1393_vm8, %v1373_v54, %v2591_v51  ;;  %v1422_v44 = vsel %vm1393_vm8, %v1389_v19, %v2590_v7  ;;  %v1341_v27 = vsel %vm1327_vm6, %v4554_v57, %v2596_v22  ;;  %v1357_v29 = vsel %vm1327_vm6, %v1324_v24, %v2595_v52 }
 0x1a3   : > { %1565 = vmatmul.f32.gmra.mxu0 %v1406_v43  ;;  %1613 = vmatmul.f32.gmra.mxu2 %v1422_v44  ;;  %v1374_v23 = vsel %vm1360_vm7, %v1341_v27, %v2601_v49  ;;  %v1390_v56 = vsel %vm1360_vm7, %v1357_v29, %v2600_v46 }
 0x1a6   : > { %1996 = vmatmul.msk.f32.gmra.mxu3 %vm1195_vm2, %v452_v53  ;;  %v1691_v58 = vpop.f32.mrf.mxu1 }
 0x1a7   : > { %v870_v59 = vpop.permute.xlu1 %869  ;;  %v2604_v47 = vpop.permute.xlu0 %2603 }
 0x1a8   : > { %v2606_v6 = vunpack.i.h.bf16 %v2604_v47  ;;  %v2605_v2 = vunpack.i.l.bf16 %v2604_v47  ;;  %v1325_v15 = vsel %vm1294_vm5, %v4555_v13, %v870_v59 }
 0x1a9   : > { %v1358_v10 = vsel %vm1327_vm6, %v1325_v15, %v2610_v39 }
 0x1aa   : > { %v1407_v5 = vsel %vm1393_vm8, %v1374_v23, %v2606_v6  ;;  %v1423_v0 = vsel %vm1393_vm8, %v1390_v56, %v2605_v2 }
 0x1ab   : > { %1568 = vmatmul.f32.gmra.mxu0 %v1407_v5  ;;  %1616 = vmatmul.f32.gmra.mxu2 %v1423_v0 }
 0x1ae   : > { %1997 = vmatmul.msk.f32.gmra.mxu3 %vm1195_vm2, %v488_v12  ;;  %v1694_v29 = vpop.f32.mrf.mxu1 }
 0x1af   : > { %v1064_v1 = vpop.permute.xlu0 %1063 }
 0x1b0   : > { %v1391_v36 = vsel %vm1360_vm7, %v1358_v10, %v1064_v1  ;;  %v1160_v28 = vpop.permute.xlu1 %1159 }
 0x1b1   : > { %v1424_v45 = vsel %vm1393_vm8, %v1391_v36, %v1160_v28 }
 0x1b3   : > { %1619 = vmatmul.f32.gmra.mxu2 %v1424_v45 }
 0x1b7   : > { %v1128_v50 = vpop.permute.xlu0 %1127  ;;  %v1575_v18 = vpop.f32.mrf.mxu2 }
 0x1b8   : > { %v1576_v60 = vadd.f32 %v4181_v40, %v1575_v18  ;;  %v1408_v32 = vsel %vm1393_vm8, %v1375_v11, %v1128_v50 }
 0x1b9   : > { %1571 = vmatmul.f32.gmra.mxu0 %v1408_v32 }
 0x1ba   : > { %v1689_v37 = vadd.f32 %v1688_v14, %v1576_v60  ;;  %v1530_v8 = vpop.f32.mrf.mxu0 }
 0x1bb   : > { %v1531_v3 = vadd.f32 %v4181_v40, %v1530_v8 }
 0x1bc   : > { %vm1754_vm9 = vcmp.gt.f32.partialorder %v1689_v37, 0.0  ;;  %v1786_v33 = vmul.f32 0.2, %v1689_v37 }
 0x1bd   : > { %v1644_v51 = vadd.f32 %v4557_v34, %v1531_v3 }
 0x1be   : > { %v1818_v7 = vsel %vm1754_vm9, %v1689_v37, %v1786_v33 }
 0x1bf   : > { %1851 = vst.msk [vmem:[%s4194_s30 + $0x78] sm:$0xff] %vm1835_vm10, %v1818_v7  ;;  %vm1739_vm11 = vcmp.gt.f32.partialorder %v1644_v51, 0.0  ;;  %v1771_v54 = vmul.f32 0.2, %v1644_v51  ;;  %v1578_v19 = vpop.f32.mrf.mxu2 }
 0x1c0   : > { %v1579_v22 = vadd.f32 %v4181_v40, %v1578_v19 }
 0x1c1   : > { %v1803_v52 = vsel %vm1739_vm11, %v1644_v51, %v1771_v54  ;;  %v4200_v43 = vpop.f32.mrf.mxu3 }
 0x1c2   : > { %1836 = vst.msk [vmem:[%s4194_s30] sm:$0xff] %vm1835_vm10, %v1803_v52  ;;  %v1692_v44 = vadd.f32 %v1691_v58, %v1579_v22  ;;  %v1533_v53 = vpop.f32.mrf.mxu0 }
 0x1c3   : > { %v1534_v49 = vadd.f32 %v4181_v40, %v1533_v53 }
 0x1c4   : > { %vm1755_vm12 = vcmp.gt.f32.partialorder %v1692_v44, 0.0  ;;  %v1787_v46 = vmul.f32 0.2, %v1692_v44 }
 0x1c5   : > { %v1647_v24 = vadd.f32 %v4558_v30, %v1534_v49 }
 0x1c6   : > { %v1819_v57 = vsel %vm1755_vm12, %v1692_v44, %v1787_v46 }
 0x1c7   : > { %1852 = vst.msk [vmem:[%s4194_s30 + $0x80] sm:$0xff] %vm1835_vm10, %v1819_v57  ;;  %vm1740_vm13 = vcmp.gt.f32.partialorder %v1647_v24, 0.0  ;;  %v1772_v27 = vmul.f32 0.2, %v1647_v24 }
 0x1c9   : > { %v1804_v59 = vsel %vm1740_vm13, %v1647_v24, %v1772_v27  ;;  %v1581_v47 = vpop.f32.mrf.mxu2  ;;  %v1697_v6 = vpop.f32.mrf.mxu3 }
 0x1ca   : > { %1837 = vst.msk [vmem:[%s4194_s30 + $0x8] sm:$0xff] %vm1835_vm10, %v1804_v59  ;;  %v1582_v2 = vadd.f32 %v4181_v40, %v1581_v47  ;;  %v1536_v23 = vpop.f32.mrf.mxu0 }
 0x1cb   : > { %v1537_v56 = vadd.f32 %v4181_v40, %v1536_v23 }
 0x1cc   : > { %v1695_v16 = vadd.f32 %v1694_v29, %v1582_v2 }
 0x1cd   : > { %v1650_v5 = vadd.f32 %v3951_v63, %v1537_v56 }
 0x1ce   : > { %vm1756_vm14 = vcmp.gt.f32.partialorder %v1695_v16, 0.0  ;;  %v1788_v0 = vmul.f32 0.2, %v1695_v16 }
 0x1cf   : > { %vm1741_vm15 = vcmp.gt.f32.partialorder %v1650_v5, 0.0  ;;  %v1773_v39 = vmul.f32 0.2, %v1650_v5 }
 0x1d0   : > { %v1820_v12 = vsel %vm1756_vm14, %v1695_v16, %v1788_v0 }
 0x1d1   : > { %v1805_v13 = vsel %vm1741_vm15, %v1650_v5, %v1773_v39  ;;  %1853 = vst.msk [vmem:[%s4194_s30 + $0x88] sm:$0xff] %vm1835_vm10, %v1820_v12  ;;  %v1584_v15 = vpop.f32.mrf.mxu2  ;;  %v1700_v1 = vpop.f32.mrf.mxu3 }
 0x1d2   : > { %1838 = vst.msk [vmem:[%s4194_s30 + $0x10] sm:$0xff] %vm1835_vm10, %v1805_v13  ;;  %v1585_v10 = vadd.f32 %v4181_v40, %v1584_v15  ;;  %v1539_v36 = vpop.f32.mrf.mxu0 }
 0x1d3   : > { %v1540_v28 = vadd.f32 %v4181_v40, %v1539_v36 }
 0x1d4   : > { %v1698_v63 = vadd.f32 %v1697_v6, %v1585_v10 }
 0x1d5   : > { %v1653_v45 = vadd.f32 %v3984_v55, %v1540_v28 }
 0x1d6   : > { %vm1757_vm0 = vcmp.gt.f32.partialorder %v1698_v63, 0.0  ;;  %v1789_v9 = vmul.f32 0.2, %v1698_v63 }
 0x1d7   : > { %vm1742_vm1 = vcmp.gt.f32.partialorder %v1653_v45, 0.0  ;;  %v1774_v17 = vmul.f32 0.2, %v1653_v45 }
 0x1d8   : > { %v1821_v14 = vsel %vm1757_vm0, %v1698_v63, %v1789_v9 }
 0x1d9   : > { %1854 = vst.msk [vmem:[%s4194_s30 + $0x90] sm:$0xff] %vm1835_vm10, %v1821_v14  ;;  %v1806_v41 = vsel %vm1742_vm1, %v1653_v45, %v1774_v17  ;;  %v1587_v61 = vpop.f32.mrf.mxu2  ;;  %v1703_v11 = vpop.f32.mrf.mxu3 }
 0x1da   : > { %1839 = vst.msk [vmem:[%s4194_s30 + $0x18] sm:$0xff] %vm1835_vm10, %v1806_v41  ;;  %v1588_v50 = vadd.f32 %v4181_v40, %v1587_v61  ;;  %v1542_v18 = vpop.f32.mrf.mxu0 }
 0x1db   : > { %v1543_v60 = vadd.f32 %v4181_v40, %v1542_v18 }
 0x1dc   : > { %v1701_v55 = vadd.f32 %v1700_v1, %v1588_v50 }
 0x1dd   : > { %v1656_v32 = vadd.f32 %v4011_v48, %v1543_v60 }
 0x1de   : > { %vm1758_vm2 = vcmp.gt.f32.partialorder %v1701_v55, 0.0  ;;  %v1790_v37 = vmul.f32 0.2, %v1701_v55 }
 0x1df   : > { %vm1743_vm3 = vcmp.gt.f32.partialorder %v1656_v32, 0.0  ;;  %v1775_v8 = vmul.f32 0.2, %v1656_v32 }
 0x1e0   : > { %v1822_v3 = vsel %vm1758_vm2, %v1701_v55, %v1790_v37 }
 0x1e1   : > { %1855 = vst.msk [vmem:[%s4194_s30 + $0x98] sm:$0xff] %vm1835_vm10, %v1822_v3  ;;  %v1807_v33 = vsel %vm1743_vm3, %v1656_v32, %v1775_v8  ;;  %v1590_v34 = vpop.f32.mrf.mxu2  ;;  %v1706_v51 = vpop.f32.mrf.mxu3 }
 0x1e2   : > { %1840 = vst.msk [vmem:[%s4194_s30 + $0x20] sm:$0xff] %vm1835_vm10, %v1807_v33  ;;  %v1591_v7 = vadd.f32 %v4181_v40, %v1590_v34  ;;  %v1545_v58 = vpop.f32.mrf.mxu0 }
 0x1e3   : > { %v1546_v54 = vadd.f32 %v4181_v40, %v1545_v58 }
 0x1e4   : > { %v1704_v48 = vadd.f32 %v1703_v11, %v1591_v7 }
 0x1e5   : > { %v1659_v19 = vadd.f32 %v4030_v42, %v1546_v54 }
 0x1e6   : > { %vm1759_vm4 = vcmp.gt.f32.partialorder %v1704_v48, 0.0  ;;  %v1791_v22 = vmul.f32 0.2, %v1704_v48 }
 0x1e7   : > { %vm1744_vm5 = vcmp.gt.f32.partialorder %v1659_v19, 0.0  ;;  %v1776_v52 = vmul.f32 0.2, %v1659_v19 }
 0x1e8   : > { %v1823_v44 = vsel %vm1759_vm4, %v1704_v48, %v1791_v22 }
 0x1e9   : > { %1856 = vst.msk [vmem:[%s4194_s30 + $0xa0] sm:$0xff] %vm1835_vm10, %v1823_v44  ;;  %v1808_v53 = vsel %vm1744_vm5, %v1659_v19, %v1776_v52  ;;  %v1593_v49 = vpop.f32.mrf.mxu2  ;;  %v1709_v46 = vpop.f32.mrf.mxu3 }
 0x1ea   : > { %1841 = vst.msk [vmem:[%s4194_s30 + $0x28] sm:$0xff] %vm1835_vm10, %v1808_v53  ;;  %v1594_v30 = vadd.f32 %v4181_v40, %v1593_v49  ;;  %v1548_v24 = vpop.f32.mrf.mxu0 }
 0x1eb   : > { %v1549_v57 = vadd.f32 %v4181_v40, %v1548_v24 }
 0x1ec   : > { %v1707_v42 = vadd.f32 %v1706_v51, %v1594_v30 }
 0x1ed   : > { %v1662_v27 = vadd.f32 %v4051_v26, %v1549_v57 }
 0x1ee   : > { %vm1760_vm6 = vcmp.gt.f32.partialorder %v1707_v42, 0.0  ;;  %v1792_v29 = vmul.f32 0.2, %v1707_v42 }
 0x1ef   : > { %vm1745_vm7 = vcmp.gt.f32.partialorder %v1662_v27, 0.0  ;;  %v1777_v59 = vmul.f32 0.2, %v1662_v27 }
 0x1f0   : > { %v1824_v47 = vsel %vm1760_vm6, %v1707_v42, %v1792_v29 }
 0x1f1   : > { %1857 = vst.msk [vmem:[%s4194_s30 + $0xa8] sm:$0xff] %vm1835_vm10, %v1824_v47  ;;  %v1809_v6 = vsel %vm1745_vm7, %v1662_v27, %v1777_v59  ;;  %v1596_v2 = vpop.f32.mrf.mxu2  ;;  %v1712_v23 = vpop.f32.mrf.mxu3 }
 0x1f2   : > { %1842 = vst.msk [vmem:[%s4194_s30 + $0x30] sm:$0xff] %vm1835_vm10, %v1809_v6  ;;  %v1597_v56 = vadd.f32 %v4181_v40, %v1596_v2  ;;  %v1551_v16 = vpop.f32.mrf.mxu0 }
 0x1f3   : > { %v1552_v5 = vadd.f32 %v4181_v40, %v1551_v16 }
 0x1f4   : > { %v1710_v26 = vadd.f32 %v1709_v46, %v1597_v56 }
 0x1f5   : > { %v1665_v0 = vadd.f32 %v4069_v31, %v1552_v5 }
 0x1f6   : > { %vm1761_vm8 = vcmp.gt.f32.partialorder %v1710_v26, 0.0  ;;  %v1793_v39 = vmul.f32 0.2, %v1710_v26 }
 0x1f7   : > { %vm1746_vm9 = vcmp.gt.f32.partialorder %v1665_v0, 0.0  ;;  %v1778_v12 = vmul.f32 0.2, %v1665_v0 }
 0x1f8   : > { %v1825_v13 = vsel %vm1761_vm8, %v1710_v26, %v1793_v39 }
 0x1f9   : > { %1858 = vst.msk [vmem:[%s4194_s30 + $0xb0] sm:$0xff] %vm1835_vm10, %v1825_v13  ;;  %v1810_v15 = vsel %vm1746_vm9, %v1665_v0, %v1778_v12  ;;  %v1599_v1 = vpop.f32.mrf.mxu2  ;;  %v1715_v10 = vpop.f32.mrf.mxu3 }
 0x1fa   : > { %1843 = vst.msk [vmem:[%s4194_s30 + $0x38] sm:$0xff] %vm1835_vm10, %v1810_v15  ;;  %v1600_v36 = vadd.f32 %v4181_v40, %v1599_v1  ;;  %v1554_v28 = vpop.f32.mrf.mxu0 }
 0x1fb   : > { %v1555_v63 = vadd.f32 %v4181_v40, %v1554_v28 }
 0x1fc   : > { %v1713_v31 = vadd.f32 %v1712_v23, %v1600_v36 }
 0x1fd   : > { %v1668_v45 = vadd.f32 %v4083_v20, %v1555_v63 }
 0x1fe   : > { %vm1762_vm11 = vcmp.gt.f32.partialorder %v1713_v31, 0.0  ;;  %v1794_v9 = vmul.f32 0.2, %v1713_v31 }
 0x1ff   : > { %vm1747_vm12 = vcmp.gt.f32.partialorder %v1668_v45, 0.0  ;;  %v1779_v17 = vmul.f32 0.2, %v1668_v45 }
 0x200   : > { %v1826_v14 = vsel %vm1762_vm11, %v1713_v31, %v1794_v9 }
 0x201   : > { %1859 = vst.msk [vmem:[%s4194_s30 + $0xb8] sm:$0xff] %vm1835_vm10, %v1826_v14  ;;  %v1811_v41 = vsel %vm1747_vm12, %v1668_v45, %v1779_v17  ;;  %v1602_v61 = vpop.f32.mrf.mxu2  ;;  %v1718_v11 = vpop.f32.mrf.mxu3  ;;  %v1624_v14 = vadd.f32 %v4181_v40, %v4200_v43 }
 0x202   : > { %1844 = vst.msk [vmem:[%s4194_s30 + $0x40] sm:$0xff] %vm1835_vm10, %v1811_v41  ;;  %v1603_v50 = vadd.f32 %v4181_v40, %v1602_v61  ;;  %v1557_v18 = vpop.f32.mrf.mxu0 }
 0x203   : > { %v1558_v60 = vadd.f32 %v4181_v40, %v1557_v18 }
 0x204   : > { %v1716_v20 = vadd.f32 %v1715_v10, %v1603_v50 }
 0x205   : > { %v1671_v55 = vadd.f32 %v4095_v4, %v1558_v60 }
 0x206   : > { %vm1763_vm13 = vcmp.gt.f32.partialorder %v1716_v20, 0.0  ;;  %v1795_v32 = vmul.f32 0.2, %v1716_v20 }
 0x207   : > { %vm1748_vm14 = vcmp.gt.f32.partialorder %v1671_v55, 0.0  ;;  %v1780_v37 = vmul.f32 0.2, %v1671_v55 }
 0x208   : > { %v1827_v8 = vsel %vm1763_vm13, %v1716_v20, %v1795_v32 }
 0x209   : > { %1860 = vst.msk [vmem:[%s4194_s30 + $0xc0] sm:$0xff] %vm1835_vm10, %v1827_v8  ;;  %v1812_v3 = vsel %vm1748_vm14, %v1671_v55, %v1780_v37  ;;  %v1605_v33 = vpop.f32.mrf.mxu2  ;;  %v1721_v34 = vpop.f32.mrf.mxu3 }
 0x20a   : > { %1845 = vst.msk [vmem:[%s4194_s30 + $0x48] sm:$0xff] %vm1835_vm10, %v1812_v3  ;;  %v1606_v51 = vadd.f32 %v4181_v40, %v1605_v33  ;;  %v1560_v7 = vpop.f32.mrf.mxu0 }
 0x20b   : > { %v1561_v58 = vadd.f32 %v4181_v40, %v1560_v7 }
 0x20c   : > { %v1719_v4 = vadd.f32 %v1718_v11, %v1606_v51 }
 0x20d   : > { %v1674_v54 = vadd.f32 %v4111_v35, %v1561_v58 }
 0x20e   : > { %vm1764_vm15 = vcmp.gt.f32.partialorder %v1719_v4, 0.0  ;;  %v1796_v48 = vmul.f32 0.2, %v1719_v4 }
 0x20f   : > { %vm1749_vm0 = vcmp.gt.f32.partialorder %v1674_v54, 0.0  ;;  %v1781_v19 = vmul.f32 0.2, %v1674_v54 }
 0x210   : > { %v1828_v22 = vsel %vm1764_vm15, %v1719_v4, %v1796_v48 }
 0x211   : > { %1861 = vst.msk [vmem:[%s4194_s30 + $0xc8] sm:$0xff] %vm1835_vm10, %v1828_v22  ;;  %v1813_v52 = vsel %vm1749_vm0, %v1674_v54, %v1781_v19  ;;  %v1608_v44 = vpop.f32.mrf.mxu2  ;;  %v1724_v53 = vpop.f32.mrf.mxu3 }
 0x212   : > { %1846 = vst.msk [vmem:[%s4194_s30 + $0x50] sm:$0xff] %vm1835_vm10, %v1813_v52  ;;  %v1609_v49 = vadd.f32 %v4181_v40, %v1608_v44  ;;  %v1563_v46 = vpop.f32.mrf.mxu0 }
 0x213   : > { %v1564_v30 = vadd.f32 %v4181_v40, %v1563_v46 }
 0x214   : > { %v1722_v35 = vadd.f32 %v1721_v34, %v1609_v49 }
 0x215   : > { %v1677_v24 = vadd.f32 %v4127_v21, %v1564_v30 }
 0x216   : > { %vm1765_vm1 = vcmp.gt.f32.partialorder %v1722_v35, 0.0  ;;  %v1797_v57 = vmul.f32 0.2, %v1722_v35 }
 0x217   : > { %vm1750_vm2 = vcmp.gt.f32.partialorder %v1677_v24, 0.0  ;;  %v1782_v42 = vmul.f32 0.2, %v1677_v24 }
 0x218   : > { %v1829_v27 = vsel %vm1765_vm1, %v1722_v35, %v1797_v57 }
 0x219   : > { %1862 = vst.msk [vmem:[%s4194_s30 + $0xd0] sm:$0xff] %vm1835_vm10, %v1829_v27  ;;  %v1814_v29 = vsel %vm1750_vm2, %v1677_v24, %v1782_v42  ;;  %v1611_v59 = vpop.f32.mrf.mxu2  ;;  %v1727_v47 = vpop.f32.mrf.mxu3 }
 0x21a   : > { %1847 = vst.msk [vmem:[%s4194_s30 + $0x58] sm:$0xff] %vm1835_vm10, %v1814_v29  ;;  %v1612_v6 = vadd.f32 %v4181_v40, %v1611_v59 }
 0x21c   : > { %v1725_v2 = vadd.f32 %v1724_v53, %v1612_v6 }
 0x21e   : > { %vm1766_vm3 = vcmp.gt.f32.partialorder %v1725_v2, 0.0  ;;  %v1798_v23 = vmul.f32 0.2, %v1725_v2 }
 0x220   : > { %v1830_v21 = vsel %vm1766_vm3, %v1725_v2, %v1798_v23  ;;  %v1566_v56 = vpop.f32.mrf.mxu0 }
 0x221   : > { %1863 = vst.msk [vmem:[%s4194_s30 + $0xd8] sm:$0xff] %vm1835_vm10, %v1830_v21  ;;  %v1567_v16 = vadd.f32 %v4181_v40, %v1566_v56  ;;  %v1730_v5 = vpop.f32.mrf.mxu3 }
 0x223   : > { %v1680_v26 = vadd.f32 %v4141_v62, %v1567_v16 }
 0x225   : > { %vm1751_vm4 = vcmp.gt.f32.partialorder %v1680_v26, 0.0  ;;  %v1783_v0 = vmul.f32 0.2, %v1680_v26 }
 0x226   : > { %v1614_v39 = vpop.f32.mrf.mxu2 }
 0x227   : > { %v1815_v12 = vsel %vm1751_vm4, %v1680_v26, %v1783_v0  ;;  %v1615_v13 = vadd.f32 %v4181_v40, %v1614_v39 }
 0x228   : > { %1848 = vst.msk [vmem:[%s4194_s30 + $0x60] sm:$0xff] %vm1835_vm10, %v1815_v12  ;;  %v1569_v15 = vpop.f32.mrf.mxu0 }
 0x229   : > { %v1728_v1 = vadd.f32 %v1727_v47, %v1615_v13  ;;  %v1570_v10 = vadd.f32 %v4181_v40, %v1569_v15  ;;  %v1733_v36 = vpop.f32.mrf.mxu3 }
 0x22b   : > { %vm1767_vm5 = vcmp.gt.f32.partialorder %v1728_v1, 0.0  ;;  %v1799_v28 = vmul.f32 0.2, %v1728_v1  ;;  %v1683_v63 = vadd.f32 %v4152_v38, %v1570_v10 }
 0x22d   : > { %v1831_v62 = vsel %vm1767_vm5, %v1728_v1, %v1799_v28  ;;  %vm1752_vm6 = vcmp.gt.f32.partialorder %v1683_v63, 0.0  ;;  %v1784_v31 = vmul.f32 0.2, %v1683_v63 }
 0x22e   : > { %1864 = vst.msk [vmem:[%s4194_s30 + $0xe0] sm:$0xff] %vm1835_vm10, %v1831_v62  ;;  %v1617_v45 = vpop.f32.mrf.mxu2 }
 0x22f   : > { %v1816_v9 = vsel %vm1752_vm6, %v1683_v63, %v1784_v31  ;;  %v1618_v17 = vadd.f32 %v4181_v40, %v1617_v45 }
 0x230   : > { %1849 = vst.msk [vmem:[%s4194_s30 + $0x68] sm:$0xff] %vm1835_vm10, %v1816_v9 }
 0x231   : > { %v1731_v41 = vadd.f32 %v1730_v5, %v1618_v17  ;;  %v1736_v61 = vpop.f32.mrf.mxu3 }
 0x232   : > { %v1737_v11 = vadd.f32 %v1736_v61, %v1624_v14 }
 0x233   : > { %vm1768_vm7 = vcmp.gt.f32.partialorder %v1731_v41, 0.0  ;;  %v1800_v38 = vmul.f32 0.2, %v1731_v41 }
 0x234   : > { %vm1770_vm8 = vcmp.gt.f32.partialorder %v1737_v11, 0.0  ;;  %v1802_v50 = vmul.f32 0.2, %v1737_v11 }
 0x235   : > { %v1832_v18 = vsel %vm1768_vm7, %v1731_v41, %v1800_v38 }
 0x236   : > { %1865 = vst.msk [vmem:[%s4194_s30 + $0xe8] sm:$0xff] %vm1835_vm10, %v1832_v18  ;;  %v1834_v60 = vsel %vm1770_vm8, %v1737_v11, %v1802_v50  ;;  %v1572_v20 = vpop.f32.mrf.mxu0  ;;  %v1620_v55 = vpop.f32.mrf.mxu2 }
 0x237   : > { %1867 = vst.msk [vmem:[%s4194_s30 + $0xf8] sm:$0xff] %vm1835_vm10, %v1834_v60  ;;  %v1573_v43 = vadd.f32 %v4181_v40, %v1572_v20  ;;  %v1621_v32 = vadd.f32 %v4181_v40, %v1620_v55 }
 0x239   : > { %v1686_v37 = vadd.f32 %v4169_v25, %v1573_v43  ;;  %v1734_v8 = vadd.f32 %v1733_v36, %v1621_v32 }
 0x23b   : > { %vm1753_vm9 = vcmp.gt.f32.partialorder %v1686_v37, 0.0  ;;  %v1785_v3 = vmul.f32 0.2, %v1686_v37  ;;  %vm1769_vm11 = vcmp.gt.f32.partialorder %v1734_v8, 0.0  ;;  %v1801_v33 = vmul.f32 0.2, %v1734_v8 }
 0x23d   : > { %v1817_v34 = vsel %vm1753_vm9, %v1686_v37, %v1785_v3  ;;  %v1833_v51 = vsel %vm1769_vm11, %v1734_v8, %v1801_v33 }
 0x23e   : > { %1850 = vst.msk [vmem:[%s4194_s30 + $0x70] sm:$0xff] %vm1835_vm10, %v1817_v34 }
 0x23f   : > { %1866 = vst.msk [vmem:[%s4194_s30 + $0xf0] sm:$0xff] %vm1835_vm10, %v1833_v51 }
 0x240 PF: > { %s13_s14 = sadd.s32 1, %s2654_s14   ;;  %s4559_s12 = smov %s2650_s13 }
 0x241   : > { %p10_p5 = scmp.ge.s32.totalorder %s13_s14, 4   ;;  %s4560_s13 = smov %s4562_s15 }
 0x243   :  { %12 = sbr.rel (!%p10_p5) target bundleno = 2 (0x2), region = 65 }

</bundles_post_ra>
